<compile_context>
chip_gen: v6e
topology: v6e:2x2x1
jax: 0.10.0
libtpu: 0.0.40
codegen_flags: <defaults>
</compile_context>

<pallas_src>
import functools

import jax
import jax.numpy as jnp
from jax import lax
from jax.experimental import pallas as pl
from jax.experimental.pallas import tpu as pltpu


def _round_up(x, m):
    return ((x + m - 1) // m) * m


# ---------------------------------------------------------------------------
# Fused kernel: layer1/layer2 interleaved recurrence -> linear, one T-chunk
# per grid step.
# ---------------------------------------------------------------------------
def fused_lstm_kernel(x_ref, wih1_ref, whh1_ref, b1_ref,
                      w2_ref, b2_ref,
                      wlin_ref, blin_ref,
                      y_ref, hout_ref,
                      h1_ref, c1_ref, h2_ref, c2_ref,
                      h2seq_ref):
    tc, bp, _ = x_ref.shape
    hp = whh1_ref.shape[0]          # padded hidden size (multiple of 128)

    @pl.when(pl.program_id(0) == 0)
    def _init():                     # zero initial (h0, c0) — do_init=True path
        h1_ref[...] = jnp.zeros_like(h1_ref)
        c1_ref[...] = jnp.zeros_like(c1_ref)
        h2_ref[...] = jnp.zeros_like(h2_ref)
        c2_ref[...] = jnp.zeros_like(c2_ref)

    def activate(gates, c):
        # 128-lane aligned gate slices; sigmoid/tanh go to the EUP slot.
        i = jax.nn.sigmoid(gates[:, 0 * hp:1 * hp])
        f = jax.nn.sigmoid(gates[:, 1 * hp:2 * hp])
        g = jnp.tanh(gates[:, 2 * hp:3 * hp])
        o = jax.nn.sigmoid(gates[:, 3 * hp:4 * hp])
        c_new = f * c + i * g
        h_new = o * jnp.tanh(c_new)
        return h_new, c_new

    # -------- layer-1 input projection hoisted: one big MXU matmul/chunk -----
    x2d = x_ref[...].reshape(tc * bp, x_ref.shape[2])
    gx1 = jnp.dot(x2d, wih1_ref[...], preferred_element_type=jnp.float32) + b1_ref[...]
    gx1 = gx1.reshape(tc, bp, 4 * hp)

    whh1 = whh1_ref[...]
    w2 = w2_ref[...]                 # [[W_ih2],[W_hh2]] stacked: (2*Hp, 4*Hp)
    b2 = b2_ref[...]

    h1, c1 = h1_ref[...], c1_ref[...]
    h2, c2 = h2_ref[...], c2_ref[...]
    for t in range(tc):              # fully unrolled wavefront over the chunk
        # ---- layer 1, step t: depends only on h1(t-1) ----
        g1 = gx1[t] + jnp.dot(h1, whh1, preferred_element_type=jnp.float32)
        h1, c1 = activate(g1, c1)
        # ---- layer 2, step t: depends on h1(t), h2(t-1); overlaps with the
        #      layer-1 step t+1 chain in the unrolled schedule ----
        inp2 = jnp.concatenate([h1, h2], axis=1)            # (Bp, 2*Hp), free
        g2 = jnp.dot(inp2, w2, preferred_element_type=jnp.float32) + b2
        h2, c2 = activate(g2, c2)
        h2seq_ref[t] = h2
    h1_ref[...] = h1
    c1_ref[...] = c1
    h2_ref[...] = h2
    c2_ref[...] = c2

    # lstm_out: one dense lane-aligned store per chunk
    hout_ref[...] = h2seq_ref[...].astype(hout_ref.dtype)

    # -------- linear head (fused epilogue, 2-D MXU matmul) --------------------
    h2d = h2seq_ref[...].reshape(tc * bp, hp)
    y = jnp.dot(h2d, wlin_ref[...], preferred_element_type=jnp.float32) + blin_ref[...]
    y_ref[...] = y.reshape(tc, bp, y_ref.shape[2]).astype(y_ref.dtype)


# ---------------------------------------------------------------------------
# Parameter re-layout helpers (PyTorch layout -> padded, gate-blocked layout)
# ---------------------------------------------------------------------------
def _pack_ih(w, hp, dp):
    """PyTorch weight (4H, D_in) -> (Dp, 4*Hp); gate k lives at cols [k*Hp, k*Hp+H)."""
    four_h, d_in = w.shape
    h = four_h // 4
    out = jnp.zeros((dp, 4 * hp), w.dtype)
    for k in range(4):
        out = out.at[:d_in, k * hp:k * hp + h].set(w[k * h:(k + 1) * h, :].T)
    return out


def _pack_bias(b_ih, b_hh, hp):
    b = b_ih + b_hh
    h = b.shape[0] // 4
    out = jnp.zeros((1, 4 * hp), b.dtype)
    for k in range(4):
        out = out.at[0, k * hp:k * hp + h].set(b[k * h:(k + 1) * h])
    return out


def _pack_linear(w, b, hp, op):
    o, h = w.shape
    wp = jnp.zeros((hp, op), w.dtype).at[:h, :o].set(w.T)
    bb = jnp.zeros((1, op), b.dtype).at[0, :o].set(b)
    return wp, bb


# ---------------------------------------------------------------------------
# Wrapper (public interface matches the PyTorch module: batch-first x)
# ---------------------------------------------------------------------------
@functools.partial(jax.jit, static_argnames=("hidden_dim",))
def lstm_module_forward(x, params, *, hidden_dim):
    """x: (B, T, input_dim).  Returns (y_pred (B,T,O), lstm_out (B,T,H))."""
    assert len(params["layers"]) == 2, "module fixes num_layers=2"
    B, T, D = x.shape
    H = hidden_dim
    (wi1, wh1, bi1, bh1), (wi2, wh2, bi2, bh2) = params["layers"]
    w_lin, b_lin = params["linear"]
    O = w_lin.shape[0]

    LANE, SUB = 128, 8
    Hp = _round_up(H, LANE)
    Dp = _round_up(D, LANE)
    Op = _round_up(O, LANE)
    Bp = _round_up(B, SUB)
    Tc = min(16, _round_up(T, 8))               # timesteps per grid step
    Tp = _round_up(T, Tc)
    n_chunks = Tp // Tc

    # kernel-layout (padded, gate-blocked) parameters
    wih1 = _pack_ih(wi1, Hp, Dp)
    whh1 = _pack_ih(wh1, Hp, Hp)
    b1 = _pack_bias(bi1, bh1, Hp)
    # layer-2: stack input-projection and recurrent weights -> one matmul/step
    w2 = jnp.concatenate([_pack_ih(wi2, Hp, Hp), _pack_ih(wh2, Hp, Hp)], axis=0)
    b2 = _pack_bias(bi2, bh2, Hp)
    wlin, blin = _pack_linear(w_lin, b_lin, Hp, Op)

    # single relayout pass: time-major + padding (padded lanes stay exactly 0
    # through the recurrence, so they never pollute real lanes)
    xt = jnp.transpose(x, (1, 0, 2))
    xt = jnp.pad(xt, ((0, Tp - T), (0, Bp - B), (0, Dp - D)))

    f32 = jnp.float32
    w_bytes = (wih1.size + whh1.size + w2.size + wlin.size
               + b1.size + b2.size + blin.size) * x.dtype.itemsize
    cost = pl.CostEstimate(
        flops=int(2 * Tp * Bp * 4 * Hp * (Dp + 3 * Hp) + 2 * Tp * Bp * Hp * Op),
        transcendentals=int(2 * Tp * Bp * 5 * Hp),
        bytes_accessed=int(xt.size * xt.dtype.itemsize + w_bytes
                           + Tp * Bp * (Op + Hp) * x.dtype.itemsize),
    )

    def wspec(shape):
        return pl.BlockSpec(shape, lambda t: (0, 0))

    y_pad, hout_pad = pl.pallas_call(
        fused_lstm_kernel,
        out_shape=(jax.ShapeDtypeStruct((Tp, Bp, Op), x.dtype),
                   jax.ShapeDtypeStruct((Tp, Bp, Hp), x.dtype)),
        grid_spec=pltpu.PrefetchScalarGridSpec(
            num_scalar_prefetch=0,
            grid=(n_chunks,),
            in_specs=[
                pl.BlockSpec((Tc, Bp, Dp), lambda t: (t, 0, 0)),      # x chunk
                wspec((Dp, 4 * Hp)), wspec((Hp, 4 * Hp)), wspec((1, 4 * Hp)),
                wspec((2 * Hp, 4 * Hp)), wspec((1, 4 * Hp)),
                wspec((Hp, Op)), wspec((1, Op)),
            ],
            out_specs=[
                pl.BlockSpec((Tc, Bp, Op), lambda t: (t, 0, 0)),      # y_pred
                pl.BlockSpec((Tc, Bp, Hp), lambda t: (t, 0, 0)),      # lstm_out
            ],
            scratch_shapes=[
                pltpu.VMEM((Bp, Hp), f32), pltpu.VMEM((Bp, Hp), f32),  # h1, c1
                pltpu.VMEM((Bp, Hp), f32), pltpu.VMEM((Bp, Hp), f32),  # h2, c2
                pltpu.VMEM((Tc, Bp, Hp), f32),                         # layer-2 h seq
            ]),
        compiler_params=pltpu.CompilerParams(dimension_semantics=("arbitrary",)),
        cost_estimate=cost,
    )(xt, wih1, whh1, b1, w2, b2, wlin, blin)

    y_pred = jnp.transpose(y_pad[:T, :B, :O], (1, 0, 2))
    lstm_out = jnp.transpose(hout_pad[:T, :B, :H], (1, 0, 2))
    return y_pred, lstm_out


# ---------------------------------------------------------------------------
# Parameter init matching PyTorch defaults
#   nn.LSTM:        U(-1/sqrt(H), 1/sqrt(H)) for all weights/biases
#   LinearZeroInit: zero weight, zero bias
# ---------------------------------------------------------------------------
def init_params(key, input_dim, hidden_dim, output_dim, num_layers=2, dtype=jnp.float32):
    bound = 1.0 / (hidden_dim ** 0.5)
    layers = []
    for l in range(num_layers):
        d_in = input_dim if l == 0 else hidden_dim
        key, k1, k2, k3, k4 = jax.random.split(key, 5)
        w_ih = jax.random.uniform(k1, (4 * hidden_dim, d_in), dtype, -bound, bound)
        w_hh = jax.random.uniform(k2, (4 * hidden_dim, hidden_dim), dtype, -bound, bound)
        b_ih = jax.random.uniform(k3, (4 * hidden_dim,), dtype, -bound, bound)
        b_hh = jax.random.uniform(k4, (4 * hidden_dim,), dtype, -bound, bound)
        layers.append((w_ih, w_hh, b_ih, b_hh))
    w_lin = jnp.zeros((output_dim, hidden_dim), dtype)
    b_lin = jnp.zeros((output_dim,), dtype)
    return {"layers": layers, "linear": (w_lin, b_lin)}


# ---------------------------------------------------------------------------
# Pure-JAX reference (correctness check only)
# ---------------------------------------------------------------------------
def reference_forward(x, params, hidden_dim):
    B, T, _ = x.shape
    H = hidden_dim
    out = x.astype(jnp.float32)
    for (w_ih, w_hh, b_ih, b_hh) in params["layers"]:
        wih_t = w_ih.T.astype(jnp.float32)
        whh_t = w_hh.T.astype(jnp.float32)
        b = (b_ih + b_hh).astype(jnp.float32)
        h0 = jnp.zeros((B, H), jnp.float32)
        c0 = jnp.zeros((B, H), jnp.float32)

        def step(carry, x_t):
            h, c = carry
            gates = x_t @ wih_t + h @ whh_t + b
            i = jax.nn.sigmoid(gates[:, 0 * H:1 * H])
            f = jax.nn.sigmoid(gates[:, 1 * H:2 * H])
            g = jnp.tanh(gates[:, 2 * H:3 * H])
            o = jax.nn.sigmoid(gates[:, 3 * H:4 * H])
            c = f * c + i * g
            h = o * jnp.tanh(c)
            return (h, c), h

        _, hs = lax.scan(step, (h0, c0), jnp.transpose(out, (1, 0, 2)))
        out = jnp.transpose(hs, (1, 0, 2))
    w_lin, b_lin = params["linear"]
    y = out @ w_lin.T.astype(jnp.float32) + b_lin.astype(jnp.float32)
    return y.astype(x.dtype), out.astype(x.dtype)


# ---------------------------------------------------------------------------
if __name__ == "__main__":
    B, T = 2, 8
    input_dim, hidden_dim, output_dim, num_layers = 16, 32, 1, 2

    key = jax.random.PRNGKey(0)
    key, kx, kp = jax.random.split(key, 3)
    x = jax.random.normal(kx, (B, T, input_dim), jnp.float32)
    params = init_params(kp, input_dim, hidden_dim, output_dim, num_layers)

    # Module-faithful run (LinearZeroInit -> y_pred is exactly zero).
    y_pred, lstm_out = lstm_module_forward(x, params, hidden_dim=hidden_dim)
    y_pred = jax.block_until_ready(y_pred)
    lstm_out = jax.block_until_ready(lstm_out)

    y_ref, lstm_ref = reference_forward(x, params, hidden_dim)
    assert y_pred.shape == (B, T, output_dim)
    assert lstm_out.shape == (B, T, hidden_dim)
    assert jnp.allclose(lstm_out, lstm_ref, atol=1e-5, rtol=1e-5)
    assert jnp.allclose(y_pred, y_ref, atol=1e-5, rtol=1e-5)

    # Secondary check with a non-zero linear head to exercise the fused epilogue.
    key, kl1, kl2 = jax.random.split(key, 3)
    params_rnd = {
        "layers": params["layers"],
        "linear": (0.1 * jax.random.normal(kl1, (output_dim, hidden_dim), jnp.float32),
                   0.1 * jax.random.normal(kl2, (output_dim,), jnp.float32)),
    }
    y2, lo2 = lstm_module_forward(x, params_rnd, hidden_dim=hidden_dim)
    y2 = jax.block_until_ready(y2)
    y2_ref, lo2_ref = reference_forward(x, params_rnd, hidden_dim)
    assert jnp.allclose(lo2, lo2_ref, atol=1e-5, rtol=1e-5)
    assert jnp.allclose(y2, y2_ref, atol=1e-5, rtol=1e-5)

    print("KERNEL_OK")
</pallas_src>

<mosaic_0001>
module attributes {stable_mosaic.version = 11 : i64} {
  func.func @fused_lstm_kernel(%arg0: i32, %arg1: memref<8x8x128xf32, #tpu.memory_space<vmem>>, %arg2: memref<128x512xf32, #tpu.memory_space<vmem>>, %arg3: memref<128x512xf32, #tpu.memory_space<vmem>>, %arg4: memref<1x512xf32, #tpu.memory_space<vmem>>, %arg5: memref<256x512xf32, #tpu.memory_space<vmem>>, %arg6: memref<1x512xf32, #tpu.memory_space<vmem>>, %arg7: memref<128x128xf32, #tpu.memory_space<vmem>>, %arg8: memref<1x128xf32, #tpu.memory_space<vmem>>, %arg9: memref<8x8x128xf32, #tpu.memory_space<vmem>>, %arg10: memref<8x8x128xf32, #tpu.memory_space<vmem>>, %arg11: memref<8x128xf32, #tpu.memory_space<vmem>>, %arg12: memref<8x128xf32, #tpu.memory_space<vmem>>, %arg13: memref<8x128xf32, #tpu.memory_space<vmem>>, %arg14: memref<8x128xf32, #tpu.memory_space<vmem>>, %arg15: memref<8x8x128xf32, #tpu.memory_space<vmem>>) attributes {dimension_semantics = [#tpu.dimension_semantics<arbitrary>], iteration_bounds = array<i64: 1>, scalar_prefetch = 0 : i64, scratch_operands = 5 : i64, tpu.core_type = #tpu.core_type<tc>, window_params = [{transform_indices = @transform_0, window_bounds = array<i64: 8, 8, 128>}, {pipeline_mode = #tpu.pipeline_mode<synchronous>, transform_indices = @transform_1, window_bounds = array<i64: 128, 512>}, {pipeline_mode = #tpu.pipeline_mode<synchronous>, transform_indices = @transform_2, window_bounds = array<i64: 128, 512>}, {pipeline_mode = #tpu.pipeline_mode<synchronous>, transform_indices = @transform_3, window_bounds = array<i64: 1, 512>}, {pipeline_mode = #tpu.pipeline_mode<synchronous>, transform_indices = @transform_4, window_bounds = array<i64: 256, 512>}, {pipeline_mode = #tpu.pipeline_mode<synchronous>, transform_indices = @transform_5, window_bounds = array<i64: 1, 512>}, {pipeline_mode = #tpu.pipeline_mode<synchronous>, transform_indices = @transform_6, window_bounds = array<i64: 128, 128>}, {pipeline_mode = #tpu.pipeline_mode<synchronous>, transform_indices = @transform_7, window_bounds = array<i64: 1, 128>}, {transform_indices = @transform_8, window_bounds = array<i64: 8, 8, 128>}, {transform_indices = @transform_9, window_bounds = array<i64: 8, 8, 128>}]} {
    %c0_i32 = arith.constant 0 : i32
    %0 = arith.cmpi eq, %arg0, %c0_i32 : i32
    %1 = arith.extui %0 : i1 to i32
    %c0_i32_0 = arith.constant 0 : i32
    %2 = arith.cmpi ne, %1, %c0_i32_0 : i32
    scf.if %2 {
      %cst_127 = arith.constant 0.000000e+00 : f32
      %521 = vector.broadcast %cst_127 : f32 to vector<8x128xf32>
      %c0_128 = arith.constant 0 : index
      %c0_129 = arith.constant 0 : index
      %522 = vector.load %arg11[%c0_128, %c0_129] : memref<8x128xf32, #tpu.memory_space<vmem>>, vector<8x128xf32>
      tpu.vector_store %arg11[%c0_128, %c0_129], %521 {strides = array<i32>} : memref<8x128xf32, #tpu.memory_space<vmem>>, vector<8x128xf32>,
      %cst_130 = arith.constant 0.000000e+00 : f32
      %523 = vector.broadcast %cst_130 : f32 to vector<8x128xf32>
      %c0_131 = arith.constant 0 : index
      %c0_132 = arith.constant 0 : index
      %524 = vector.load %arg12[%c0_131, %c0_132] : memref<8x128xf32, #tpu.memory_space<vmem>>, vector<8x128xf32>
      tpu.vector_store %arg12[%c0_131, %c0_132], %523 {strides = array<i32>} : memref<8x128xf32, #tpu.memory_space<vmem>>, vector<8x128xf32>,
      %cst_133 = arith.constant 0.000000e+00 : f32
      %525 = vector.broadcast %cst_133 : f32 to vector<8x128xf32>
      %c0_134 = arith.constant 0 : index
      %c0_135 = arith.constant 0 : index
      %526 = vector.load %arg13[%c0_134, %c0_135] : memref<8x128xf32, #tpu.memory_space<vmem>>, vector<8x128xf32>
      tpu.vector_store %arg13[%c0_134, %c0_135], %525 {strides = array<i32>} : memref<8x128xf32, #tpu.memory_space<vmem>>, vector<8x128xf32>,
      %cst_136 = arith.constant 0.000000e+00 : f32
      %527 = vector.broadcast %cst_136 : f32 to vector<8x128xf32>
      %c0_137 = arith.constant 0 : index
      %c0_138 = arith.constant 0 : index
      %528 = vector.load %arg14[%c0_137, %c0_138] : memref<8x128xf32, #tpu.memory_space<vmem>>, vector<8x128xf32>
      tpu.vector_store %arg14[%c0_137, %c0_138], %527 {strides = array<i32>} : memref<8x128xf32, #tpu.memory_space<vmem>>, vector<8x128xf32>,
    } else {
    }
    %c0 = arith.constant 0 : index
    %c0_1 = arith.constant 0 : index
    %c0_2 = arith.constant 0 : index
    %3 = vector.load %arg1[%c0, %c0_1, %c0_2] : memref<8x8x128xf32, #tpu.memory_space<vmem>>, vector<8x8x128xf32>
    %4 = vector.shape_cast %3 : vector<8x8x128xf32> to vector<64x128xf32>
    %c0_3 = arith.constant 0 : index
    %c0_4 = arith.constant 0 : index
    %5 = vector.load %arg2[%c0_3, %c0_4] : memref<128x512xf32, #tpu.memory_space<vmem>>, vector<128x512xf32>
    %cst = arith.constant dense<0.000000e+00> : vector<64x512xf32>
    %6 = tpu.matmul %4, %5, %cst {dimension_numbers = #tpu.dot_dimension_numbers<[1], [0], [0], [1], [0, 0, 1, 1], [], []>} : vector<64x128xf32>, vector<128x512xf32>, vector<64x512xf32> -> vector<64x512xf32>
    %c0_5 = arith.constant 0 : index
    %c0_6 = arith.constant 0 : index
    %7 = vector.load %arg4[%c0_5, %c0_6] : memref<1x512xf32, #tpu.memory_space<vmem>>, vector<1x512xf32>
    %8 = vector.broadcast %7 : vector<1x512xf32> to vector<64x512xf32>
    %9 = arith.addf %6, %8 : vector<64x512xf32>
    %10 = vector.shape_cast %9 : vector<64x512xf32> to vector<8x8x512xf32>
    %c0_7 = arith.constant 0 : index
    %c0_8 = arith.constant 0 : index
    %11 = vector.load %arg3[%c0_7, %c0_8] : memref<128x512xf32, #tpu.memory_space<vmem>>, vector<128x512xf32>
    %c0_9 = arith.constant 0 : index
    %c0_10 = arith.constant 0 : index
    %12 = vector.load %arg5[%c0_9, %c0_10] : memref<256x512xf32, #tpu.memory_space<vmem>>, vector<256x512xf32>
    %c0_11 = arith.constant 0 : index
    %c0_12 = arith.constant 0 : index
    %13 = vector.load %arg6[%c0_11, %c0_12] : memref<1x512xf32, #tpu.memory_space<vmem>>, vector<1x512xf32>
    %c0_13 = arith.constant 0 : index
    %c0_14 = arith.constant 0 : index
    %14 = vector.load %arg11[%c0_13, %c0_14] : memref<8x128xf32, #tpu.memory_space<vmem>>, vector<8x128xf32>
    %c0_15 = arith.constant 0 : index
    %c0_16 = arith.constant 0 : index
    %15 = vector.load %arg12[%c0_15, %c0_16] : memref<8x128xf32, #tpu.memory_space<vmem>>, vector<8x128xf32>
    %c0_17 = arith.constant 0 : index
    %c0_18 = arith.constant 0 : index
    %16 = vector.load %arg13[%c0_17, %c0_18] : memref<8x128xf32, #tpu.memory_space<vmem>>, vector<8x128xf32>
    %c0_19 = arith.constant 0 : index
    %c0_20 = arith.constant 0 : index
    %17 = vector.load %arg14[%c0_19, %c0_20] : memref<8x128xf32, #tpu.memory_space<vmem>>, vector<8x128xf32>
    %18 = vector.extract_strided_slice %10 {offsets = [0, 0, 0], sizes = [1, 8, 512], strides = [1, 1, 1]} : vector<8x8x512xf32> to vector<1x8x512xf32>
    %19 = vector.shape_cast %18 : vector<1x8x512xf32> to vector<8x512xf32>
    %cst_21 = arith.constant dense<0.000000e+00> : vector<8x512xf32>
    %20 = tpu.matmul %14, %11, %cst_21 {dimension_numbers = #tpu.dot_dimension_numbers<[1], [0], [0], [1], [0, 0, 1, 1], [], []>} : vector<8x128xf32>, vector<128x512xf32>, vector<8x512xf32> -> vector<8x512xf32>
    %21 = arith.addf %19, %20 : vector<8x512xf32>
    %22 = vector.extract_strided_slice %21 {offsets = [0, 0], sizes = [8, 128], strides = [1, 1]} : vector<8x512xf32> to vector<8x128xf32>
    %23 = arith.negf %22 : vector<8x128xf32>
    %24 = math.exp %23 : vector<8x128xf32>
    %cst_22 = arith.constant 1.000000e+00 : f32
    %25 = vector.broadcast %cst_22 : f32 to vector<8x128xf32>
    %26 = arith.addf %25, %24 : vector<8x128xf32>
    %27 = arith.divf %25, %26 : vector<8x128xf32>
    %28 = vector.extract_strided_slice %21 {offsets = [0, 128], sizes = [8, 128], strides = [1, 1]} : vector<8x512xf32> to vector<8x128xf32>
    %29 = arith.negf %28 : vector<8x128xf32>
    %30 = math.exp %29 : vector<8x128xf32>
    %cst_23 = arith.constant 1.000000e+00 : f32
    %31 = vector.broadcast %cst_23 : f32 to vector<8x128xf32>
    %32 = arith.addf %31, %30 : vector<8x128xf32>
    %33 = arith.divf %31, %32 : vector<8x128xf32>
    %34 = vector.extract_strided_slice %21 {offsets = [0, 256], sizes = [8, 128], strides = [1, 1]} : vector<8x512xf32> to vector<8x128xf32>
    %35 = math.tanh %34 : vector<8x128xf32>
    %36 = vector.extract_strided_slice %21 {offsets = [0, 384], sizes = [8, 128], strides = [1, 1]} : vector<8x512xf32> to vector<8x128xf32>
    %37 = arith.negf %36 : vector<8x128xf32>
    %38 = math.exp %37 : vector<8x128xf32>
    %cst_24 = arith.constant 1.000000e+00 : f32
    %39 = vector.broadcast %cst_24 : f32 to vector<8x128xf32>
    %40 = arith.addf %39, %38 : vector<8x128xf32>
    %41 = arith.divf %39, %40 : vector<8x128xf32>
    %42 = arith.mulf %33, %15 : vector<8x128xf32>
    %43 = arith.mulf %27, %35 : vector<8x128xf32>
    %44 = arith.addf %42, %43 : vector<8x128xf32>
    %45 = math.tanh %44 : vector<8x128xf32>
    %46 = arith.mulf %41, %45 : vector<8x128xf32>
    %47 = tpu.concatenate %46, %16 in 1 : vector<8x128xf32>, vector<8x128xf32> -> vector<8x256xf32>
    %cst_25 = arith.constant dense<0.000000e+00> : vector<8x512xf32>
    %48 = tpu.matmul %47, %12, %cst_25 {dimension_numbers = #tpu.dot_dimension_numbers<[1], [0], [0], [1], [0, 0, 1, 1], [], []>} : vector<8x256xf32>, vector<256x512xf32>, vector<8x512xf32> -> vector<8x512xf32>
    %49 = vector.broadcast %13 : vector<1x512xf32> to vector<8x512xf32>
    %50 = arith.addf %48, %49 : vector<8x512xf32>
    %51 = vector.extract_strided_slice %50 {offsets = [0, 0], sizes = [8, 128], strides = [1, 1]} : vector<8x512xf32> to vector<8x128xf32>
    %52 = arith.negf %51 : vector<8x128xf32>
    %53 = math.exp %52 : vector<8x128xf32>
    %cst_26 = arith.constant 1.000000e+00 : f32
    %54 = vector.broadcast %cst_26 : f32 to vector<8x128xf32>
    %55 = arith.addf %54, %53 : vector<8x128xf32>
    %56 = arith.divf %54, %55 : vector<8x128xf32>
    %57 = vector.extract_strided_slice %50 {offsets = [0, 128], sizes = [8, 128], strides = [1, 1]} : vector<8x512xf32> to vector<8x128xf32>
    %58 = arith.negf %57 : vector<8x128xf32>
    %59 = math.exp %58 : vector<8x128xf32>
    %cst_27 = arith.constant 1.000000e+00 : f32
    %60 = vector.broadcast %cst_27 : f32 to vector<8x128xf32>
    %61 = arith.addf %60, %59 : vector<8x128xf32>
    %62 = arith.divf %60, %61 : vector<8x128xf32>
    %63 = vector.extract_strided_slice %50 {offsets = [0, 256], sizes = [8, 128], strides = [1, 1]} : vector<8x512xf32> to vector<8x128xf32>
    %64 = math.tanh %63 : vector<8x128xf32>
    %65 = vector.extract_strided_slice %50 {offsets = [0, 384], sizes = [8, 128], strides = [1, 1]} : vector<8x512xf32> to vector<8x128xf32>
    %66 = arith.negf %65 : vector<8x128xf32>
    %67 = math.exp %66 : vector<8x128xf32>
    %cst_28 = arith.constant 1.000000e+00 : f32
    %68 = vector.broadcast %cst_28 : f32 to vector<8x128xf32>
    %69 = arith.addf %68, %67 : vector<8x128xf32>
    %70 = arith.divf %68, %69 : vector<8x128xf32>
    %71 = arith.mulf %62, %17 : vector<8x128xf32>
    %72 = arith.mulf %56, %64 : vector<8x128xf32>
    %73 = arith.addf %71, %72 : vector<8x128xf32>
    %74 = math.tanh %73 : vector<8x128xf32>
    %75 = arith.mulf %70, %74 : vector<8x128xf32>
    %c0_29 = arith.constant 0 : index
    %c0_30 = arith.constant 0 : index
    %c0_31 = arith.constant 0 : index
    %76 = vector.load %arg15[%c0_29, %c0_30, %c0_31] : memref<8x8x128xf32, #tpu.memory_space<vmem>>, vector<1x8x128xf32>
    %77 = vector.shape_cast %76 : vector<1x8x128xf32> to vector<8x128xf32>
    %78 = vector.shape_cast %75 : vector<8x128xf32> to vector<1x8x128xf32>
    tpu.vector_store %arg15[%c0_29, %c0_30, %c0_31], %78 {strides = array<i32>} : memref<8x8x128xf32, #tpu.memory_space<vmem>>, vector<1x8x128xf32>,
    %79 = vector.extract_strided_slice %10 {offsets = [1, 0, 0], sizes = [1, 8, 512], strides = [1, 1, 1]} : vector<8x8x512xf32> to vector<1x8x512xf32>
    %80 = vector.shape_cast %79 : vector<1x8x512xf32> to vector<8x512xf32>
    %cst_32 = arith.constant dense<0.000000e+00> : vector<8x512xf32>
    %81 = tpu.matmul %46, %11, %cst_32 {dimension_numbers = #tpu.dot_dimension_numbers<[1], [0], [0], [1], [0, 0, 1, 1], [], []>} : vector<8x128xf32>, vector<128x512xf32>, vector<8x512xf32> -> vector<8x512xf32>
    %82 = arith.addf %80, %81 : vector<8x512xf32>
    %83 = vector.extract_strided_slice %82 {offsets = [0, 0], sizes = [8, 128], strides = [1, 1]} : vector<8x512xf32> to vector<8x128xf32>
    %84 = arith.negf %83 : vector<8x128xf32>
    %85 = math.exp %84 : vector<8x128xf32>
    %cst_33 = arith.constant 1.000000e+00 : f32
    %86 = vector.broadcast %cst_33 : f32 to vector<8x128xf32>
    %87 = arith.addf %86, %85 : vector<8x128xf32>
    %88 = arith.divf %86, %87 : vector<8x128xf32>
    %89 = vector.extract_strided_slice %82 {offsets = [0, 128], sizes = [8, 128], strides = [1, 1]} : vector<8x512xf32> to vector<8x128xf32>
    %90 = arith.negf %89 : vector<8x128xf32>
    %91 = math.exp %90 : vector<8x128xf32>
    %cst_34 = arith.constant 1.000000e+00 : f32
    %92 = vector.broadcast %cst_34 : f32 to vector<8x128xf32>
    %93 = arith.addf %92, %91 : vector<8x128xf32>
    %94 = arith.divf %92, %93 : vector<8x128xf32>
    %95 = vector.extract_strided_slice %82 {offsets = [0, 256], sizes = [8, 128], strides = [1, 1]} : vector<8x512xf32> to vector<8x128xf32>
    %96 = math.tanh %95 : vector<8x128xf32>
    %97 = vector.extract_strided_slice %82 {offsets = [0, 384], sizes = [8, 128], strides = [1, 1]} : vector<8x512xf32> to vector<8x128xf32>
    %98 = arith.negf %97 : vector<8x128xf32>
    %99 = math.exp %98 : vector<8x128xf32>
    %cst_35 = arith.constant 1.000000e+00 : f32
    %100 = vector.broadcast %cst_35 : f32 to vector<8x128xf32>
    %101 = arith.addf %100, %99 : vector<8x128xf32>
    %102 = arith.divf %100, %101 : vector<8x128xf32>
    %103 = arith.mulf %94, %44 : vector<8x128xf32>
    %104 = arith.mulf %88, %96 : vector<8x128xf32>
    %105 = arith.addf %103, %104 : vector<8x128xf32>
    %106 = math.tanh %105 : vector<8x128xf32>
    %107 = arith.mulf %102, %106 : vector<8x128xf32>
    %108 = tpu.concatenate %107, %75 in 1 : vector<8x128xf32>, vector<8x128xf32> -> vector<8x256xf32>
    %cst_36 = arith.constant dense<0.000000e+00> : vector<8x512xf32>
    %109 = tpu.matmul %108, %12, %cst_36 {dimension_numbers = #tpu.dot_dimension_numbers<[1], [0], [0], [1], [0, 0, 1, 1], [], []>} : vector<8x256xf32>, vector<256x512xf32>, vector<8x512xf32> -> vector<8x512xf32>
    %110 = vector.broadcast %13 : vector<1x512xf32> to vector<8x512xf32>
    %111 = arith.addf %109, %110 : vector<8x512xf32>
    %112 = vector.extract_strided_slice %111 {offsets = [0, 0], sizes = [8, 128], strides = [1, 1]} : vector<8x512xf32> to vector<8x128xf32>
    %113 = arith.negf %112 : vector<8x128xf32>
    %114 = math.exp %113 : vector<8x128xf32>
    %cst_37 = arith.constant 1.000000e+00 : f32
    %115 = vector.broadcast %cst_37 : f32 to vector<8x128xf32>
    %116 = arith.addf %115, %114 : vector<8x128xf32>
    %117 = arith.divf %115, %116 : vector<8x128xf32>
    %118 = vector.extract_strided_slice %111 {offsets = [0, 128], sizes = [8, 128], strides = [1, 1]} : vector<8x512xf32> to vector<8x128xf32>
    %119 = arith.negf %118 : vector<8x128xf32>
    %120 = math.exp %119 : vector<8x128xf32>
    %cst_38 = arith.constant 1.000000e+00 : f32
    %121 = vector.broadcast %cst_38 : f32 to vector<8x128xf32>
    %122 = arith.addf %121, %120 : vector<8x128xf32>
    %123 = arith.divf %121, %122 : vector<8x128xf32>
    %124 = vector.extract_strided_slice %111 {offsets = [0, 256], sizes = [8, 128], strides = [1, 1]} : vector<8x512xf32> to vector<8x128xf32>
    %125 = math.tanh %124 : vector<8x128xf32>
    %126 = vector.extract_strided_slice %111 {offsets = [0, 384], sizes = [8, 128], strides = [1, 1]} : vector<8x512xf32> to vector<8x128xf32>
    %127 = arith.negf %126 : vector<8x128xf32>
    %128 = math.exp %127 : vector<8x128xf32>
    %cst_39 = arith.constant 1.000000e+00 : f32
    %129 = vector.broadcast %cst_39 : f32 to vector<8x128xf32>
    %130 = arith.addf %129, %128 : vector<8x128xf32>
    %131 = arith.divf %129, %130 : vector<8x128xf32>
    %132 = arith.mulf %123, %73 : vector<8x128xf32>
    %133 = arith.mulf %117, %125 : vector<8x128xf32>
    %134 = arith.addf %132, %133 : vector<8x128xf32>
    %135 = math.tanh %134 : vector<8x128xf32>
    %136 = arith.mulf %131, %135 : vector<8x128xf32>
    %c1 = arith.constant 1 : index
    %c0_40 = arith.constant 0 : index
    %c0_41 = arith.constant 0 : index
    %137 = vector.load %arg15[%c1, %c0_40, %c0_41] : memref<8x8x128xf32, #tpu.memory_space<vmem>>, vector<1x8x128xf32>
    %138 = vector.shape_cast %137 : vector<1x8x128xf32> to vector<8x128xf32>
    %139 = vector.shape_cast %136 : vector<8x128xf32> to vector<1x8x128xf32>
    tpu.vector_store %arg15[%c1, %c0_40, %c0_41], %139 {strides = array<i32>} : memref<8x8x128xf32, #tpu.memory_space<vmem>>, vector<1x8x128xf32>,
    %140 = vector.extract_strided_slice %10 {offsets = [2, 0, 0], sizes = [1, 8, 512], strides = [1, 1, 1]} : vector<8x8x512xf32> to vector<1x8x512xf32>
    %141 = vector.shape_cast %140 : vector<1x8x512xf32> to vector<8x512xf32>
    %cst_42 = arith.constant dense<0.000000e+00> : vector<8x512xf32>
    %142 = tpu.matmul %107, %11, %cst_42 {dimension_numbers = #tpu.dot_dimension_numbers<[1], [0], [0], [1], [0, 0, 1, 1], [], []>} : vector<8x128xf32>, vector<128x512xf32>, vector<8x512xf32> -> vector<8x512xf32>
    %143 = arith.addf %141, %142 : vector<8x512xf32>
    %144 = vector.extract_strided_slice %143 {offsets = [0, 0], sizes = [8, 128], strides = [1, 1]} : vector<8x512xf32> to vector<8x128xf32>
    %145 = arith.negf %144 : vector<8x128xf32>
    %146 = math.exp %145 : vector<8x128xf32>
    %cst_43 = arith.constant 1.000000e+00 : f32
    %147 = vector.broadcast %cst_43 : f32 to vector<8x128xf32>
    %148 = arith.addf %147, %146 : vector<8x128xf32>
    %149 = arith.divf %147, %148 : vector<8x128xf32>
    %150 = vector.extract_strided_slice %143 {offsets = [0, 128], sizes = [8, 128], strides = [1, 1]} : vector<8x512xf32> to vector<8x128xf32>
    %151 = arith.negf %150 : vector<8x128xf32>
    %152 = math.exp %151 : vector<8x128xf32>
    %cst_44 = arith.constant 1.000000e+00 : f32
    %153 = vector.broadcast %cst_44 : f32 to vector<8x128xf32>
    %154 = arith.addf %153, %152 : vector<8x128xf32>
    %155 = arith.divf %153, %154 : vector<8x128xf32>
    %156 = vector.extract_strided_slice %143 {offsets = [0, 256], sizes = [8, 128], strides = [1, 1]} : vector<8x512xf32> to vector<8x128xf32>
    %157 = math.tanh %156 : vector<8x128xf32>
    %158 = vector.extract_strided_slice %143 {offsets = [0, 384], sizes = [8, 128], strides = [1, 1]} : vector<8x512xf32> to vector<8x128xf32>
    %159 = arith.negf %158 : vector<8x128xf32>
    %160 = math.exp %159 : vector<8x128xf32>
    %cst_45 = arith.constant 1.000000e+00 : f32
    %161 = vector.broadcast %cst_45 : f32 to vector<8x128xf32>
    %162 = arith.addf %161, %160 : vector<8x128xf32>
    %163 = arith.divf %161, %162 : vector<8x128xf32>
    %164 = arith.mulf %155, %105 : vector<8x128xf32>
    %165 = arith.mulf %149, %157 : vector<8x128xf32>
    %166 = arith.addf %164, %165 : vector<8x128xf32>
    %167 = math.tanh %166 : vector<8x128xf32>
    %168 = arith.mulf %163, %167 : vector<8x128xf32>
    %169 = tpu.concatenate %168, %136 in 1 : vector<8x128xf32>, vector<8x128xf32> -> vector<8x256xf32>
    %cst_46 = arith.constant dense<0.000000e+00> : vector<8x512xf32>
    %170 = tpu.matmul %169, %12, %cst_46 {dimension_numbers = #tpu.dot_dimension_numbers<[1], [0], [0], [1], [0, 0, 1, 1], [], []>} : vector<8x256xf32>, vector<256x512xf32>, vector<8x512xf32> -> vector<8x512xf32>
    %171 = vector.broadcast %13 : vector<1x512xf32> to vector<8x512xf32>
    %172 = arith.addf %170, %171 : vector<8x512xf32>
    %173 = vector.extract_strided_slice %172 {offsets = [0, 0], sizes = [8, 128], strides = [1, 1]} : vector<8x512xf32> to vector<8x128xf32>
    %174 = arith.negf %173 : vector<8x128xf32>
    %175 = math.exp %174 : vector<8x128xf32>
    %cst_47 = arith.constant 1.000000e+00 : f32
    %176 = vector.broadcast %cst_47 : f32 to vector<8x128xf32>
    %177 = arith.addf %176, %175 : vector<8x128xf32>
    %178 = arith.divf %176, %177 : vector<8x128xf32>
    %179 = vector.extract_strided_slice %172 {offsets = [0, 128], sizes = [8, 128], strides = [1, 1]} : vector<8x512xf32> to vector<8x128xf32>
    %180 = arith.negf %179 : vector<8x128xf32>
    %181 = math.exp %180 : vector<8x128xf32>
    %cst_48 = arith.constant 1.000000e+00 : f32
    %182 = vector.broadcast %cst_48 : f32 to vector<8x128xf32>
    %183 = arith.addf %182, %181 : vector<8x128xf32>
    %184 = arith.divf %182, %183 : vector<8x128xf32>
    %185 = vector.extract_strided_slice %172 {offsets = [0, 256], sizes = [8, 128], strides = [1, 1]} : vector<8x512xf32> to vector<8x128xf32>
    %186 = math.tanh %185 : vector<8x128xf32>
    %187 = vector.extract_strided_slice %172 {offsets = [0, 384], sizes = [8, 128], strides = [1, 1]} : vector<8x512xf32> to vector<8x128xf32>
    %188 = arith.negf %187 : vector<8x128xf32>
    %189 = math.exp %188 : vector<8x128xf32>
    %cst_49 = arith.constant 1.000000e+00 : f32
    %190 = vector.broadcast %cst_49 : f32 to vector<8x128xf32>
    %191 = arith.addf %190, %189 : vector<8x128xf32>
    %192 = arith.divf %190, %191 : vector<8x128xf32>
    %193 = arith.mulf %184, %134 : vector<8x128xf32>
    %194 = arith.mulf %178, %186 : vector<8x128xf32>
    %195 = arith.addf %193, %194 : vector<8x128xf32>
    %196 = math.tanh %195 : vector<8x128xf32>
    %197 = arith.mulf %192, %196 : vector<8x128xf32>
    %c2 = arith.constant 2 : index
    %c0_50 = arith.constant 0 : index
    %c0_51 = arith.constant 0 : index
    %198 = vector.load %arg15[%c2, %c0_50, %c0_51] : memref<8x8x128xf32, #tpu.memory_space<vmem>>, vector<1x8x128xf32>
    %199 = vector.shape_cast %198 : vector<1x8x128xf32> to vector<8x128xf32>
    %200 = vector.shape_cast %197 : vector<8x128xf32> to vector<1x8x128xf32>
    tpu.vector_store %arg15[%c2, %c0_50, %c0_51], %200 {strides = array<i32>} : memref<8x8x128xf32, #tpu.memory_space<vmem>>, vector<1x8x128xf32>,
    %201 = vector.extract_strided_slice %10 {offsets = [3, 0, 0], sizes = [1, 8, 512], strides = [1, 1, 1]} : vector<8x8x512xf32> to vector<1x8x512xf32>
    %202 = vector.shape_cast %201 : vector<1x8x512xf32> to vector<8x512xf32>
    %cst_52 = arith.constant dense<0.000000e+00> : vector<8x512xf32>
    %203 = tpu.matmul %168, %11, %cst_52 {dimension_numbers = #tpu.dot_dimension_numbers<[1], [0], [0], [1], [0, 0, 1, 1], [], []>} : vector<8x128xf32>, vector<128x512xf32>, vector<8x512xf32> -> vector<8x512xf32>
    %204 = arith.addf %202, %203 : vector<8x512xf32>
    %205 = vector.extract_strided_slice %204 {offsets = [0, 0], sizes = [8, 128], strides = [1, 1]} : vector<8x512xf32> to vector<8x128xf32>
    %206 = arith.negf %205 : vector<8x128xf32>
    %207 = math.exp %206 : vector<8x128xf32>
    %cst_53 = arith.constant 1.000000e+00 : f32
    %208 = vector.broadcast %cst_53 : f32 to vector<8x128xf32>
    %209 = arith.addf %208, %207 : vector<8x128xf32>
    %210 = arith.divf %208, %209 : vector<8x128xf32>
    %211 = vector.extract_strided_slice %204 {offsets = [0, 128], sizes = [8, 128], strides = [1, 1]} : vector<8x512xf32> to vector<8x128xf32>
    %212 = arith.negf %211 : vector<8x128xf32>
    %213 = math.exp %212 : vector<8x128xf32>
    %cst_54 = arith.constant 1.000000e+00 : f32
    %214 = vector.broadcast %cst_54 : f32 to vector<8x128xf32>
    %215 = arith.addf %214, %213 : vector<8x128xf32>
    %216 = arith.divf %214, %215 : vector<8x128xf32>
    %217 = vector.extract_strided_slice %204 {offsets = [0, 256], sizes = [8, 128], strides = [1, 1]} : vector<8x512xf32> to vector<8x128xf32>
    %218 = math.tanh %217 : vector<8x128xf32>
    %219 = vector.extract_strided_slice %204 {offsets = [0, 384], sizes = [8, 128], strides = [1, 1]} : vector<8x512xf32> to vector<8x128xf32>
    %220 = arith.negf %219 : vector<8x128xf32>
    %221 = math.exp %220 : vector<8x128xf32>
    %cst_55 = arith.constant 1.000000e+00 : f32
    %222 = vector.broadcast %cst_55 : f32 to vector<8x128xf32>
    %223 = arith.addf %222, %221 : vector<8x128xf32>
    %224 = arith.divf %222, %223 : vector<8x128xf32>
    %225 = arith.mulf %216, %166 : vector<8x128xf32>
    %226 = arith.mulf %210, %218 : vector<8x128xf32>
    %227 = arith.addf %225, %226 : vector<8x128xf32>
    %228 = math.tanh %227 : vector<8x128xf32>
    %229 = arith.mulf %224, %228 : vector<8x128xf32>
    %230 = tpu.concatenate %229, %197 in 1 : vector<8x128xf32>, vector<8x128xf32> -> vector<8x256xf32>
    %cst_56 = arith.constant dense<0.000000e+00> : vector<8x512xf32>
    %231 = tpu.matmul %230, %12, %cst_56 {dimension_numbers = #tpu.dot_dimension_numbers<[1], [0], [0], [1], [0, 0, 1, 1], [], []>} : vector<8x256xf32>, vector<256x512xf32>, vector<8x512xf32> -> vector<8x512xf32>
    %232 = vector.broadcast %13 : vector<1x512xf32> to vector<8x512xf32>
    %233 = arith.addf %231, %232 : vector<8x512xf32>
    %234 = vector.extract_strided_slice %233 {offsets = [0, 0], sizes = [8, 128], strides = [1, 1]} : vector<8x512xf32> to vector<8x128xf32>
    %235 = arith.negf %234 : vector<8x128xf32>
    %236 = math.exp %235 : vector<8x128xf32>
    %cst_57 = arith.constant 1.000000e+00 : f32
    %237 = vector.broadcast %cst_57 : f32 to vector<8x128xf32>
    %238 = arith.addf %237, %236 : vector<8x128xf32>
    %239 = arith.divf %237, %238 : vector<8x128xf32>
    %240 = vector.extract_strided_slice %233 {offsets = [0, 128], sizes = [8, 128], strides = [1, 1]} : vector<8x512xf32> to vector<8x128xf32>
    %241 = arith.negf %240 : vector<8x128xf32>
    %242 = math.exp %241 : vector<8x128xf32>
    %cst_58 = arith.constant 1.000000e+00 : f32
    %243 = vector.broadcast %cst_58 : f32 to vector<8x128xf32>
    %244 = arith.addf %243, %242 : vector<8x128xf32>
    %245 = arith.divf %243, %244 : vector<8x128xf32>
    %246 = vector.extract_strided_slice %233 {offsets = [0, 256], sizes = [8, 128], strides = [1, 1]} : vector<8x512xf32> to vector<8x128xf32>
    %247 = math.tanh %246 : vector<8x128xf32>
    %248 = vector.extract_strided_slice %233 {offsets = [0, 384], sizes = [8, 128], strides = [1, 1]} : vector<8x512xf32> to vector<8x128xf32>
    %249 = arith.negf %248 : vector<8x128xf32>
    %250 = math.exp %249 : vector<8x128xf32>
    %cst_59 = arith.constant 1.000000e+00 : f32
    %251 = vector.broadcast %cst_59 : f32 to vector<8x128xf32>
    %252 = arith.addf %251, %250 : vector<8x128xf32>
    %253 = arith.divf %251, %252 : vector<8x128xf32>
    %254 = arith.mulf %245, %195 : vector<8x128xf32>
    %255 = arith.mulf %239, %247 : vector<8x128xf32>
    %256 = arith.addf %254, %255 : vector<8x128xf32>
    %257 = math.tanh %256 : vector<8x128xf32>
    %258 = arith.mulf %253, %257 : vector<8x128xf32>
    %c3 = arith.constant 3 : index
    %c0_60 = arith.constant 0 : index
    %c0_61 = arith.constant 0 : index
    %259 = vector.load %arg15[%c3, %c0_60, %c0_61] : memref<8x8x128xf32, #tpu.memory_space<vmem>>, vector<1x8x128xf32>
    %260 = vector.shape_cast %259 : vector<1x8x128xf32> to vector<8x128xf32>
    %261 = vector.shape_cast %258 : vector<8x128xf32> to vector<1x8x128xf32>
    tpu.vector_store %arg15[%c3, %c0_60, %c0_61], %261 {strides = array<i32>} : memref<8x8x128xf32, #tpu.memory_space<vmem>>, vector<1x8x128xf32>,
    %262 = vector.extract_strided_slice %10 {offsets = [4, 0, 0], sizes = [1, 8, 512], strides = [1, 1, 1]} : vector<8x8x512xf32> to vector<1x8x512xf32>
    %263 = vector.shape_cast %262 : vector<1x8x512xf32> to vector<8x512xf32>
    %cst_62 = arith.constant dense<0.000000e+00> : vector<8x512xf32>
    %264 = tpu.matmul %229, %11, %cst_62 {dimension_numbers = #tpu.dot_dimension_numbers<[1], [0], [0], [1], [0, 0, 1, 1], [], []>} : vector<8x128xf32>, vector<128x512xf32>, vector<8x512xf32> -> vector<8x512xf32>
    %265 = arith.addf %263, %264 : vector<8x512xf32>
    %266 = vector.extract_strided_slice %265 {offsets = [0, 0], sizes = [8, 128], strides = [1, 1]} : vector<8x512xf32> to vector<8x128xf32>
    %267 = arith.negf %266 : vector<8x128xf32>
    %268 = math.exp %267 : vector<8x128xf32>
    %cst_63 = arith.constant 1.000000e+00 : f32
    %269 = vector.broadcast %cst_63 : f32 to vector<8x128xf32>
    %270 = arith.addf %269, %268 : vector<8x128xf32>
    %271 = arith.divf %269, %270 : vector<8x128xf32>
    %272 = vector.extract_strided_slice %265 {offsets = [0, 128], sizes = [8, 128], strides = [1, 1]} : vector<8x512xf32> to vector<8x128xf32>
    %273 = arith.negf %272 : vector<8x128xf32>
    %274 = math.exp %273 : vector<8x128xf32>
    %cst_64 = arith.constant 1.000000e+00 : f32
    %275 = vector.broadcast %cst_64 : f32 to vector<8x128xf32>
    %276 = arith.addf %275, %274 : vector<8x128xf32>
    %277 = arith.divf %275, %276 : vector<8x128xf32>
    %278 = vector.extract_strided_slice %265 {offsets = [0, 256], sizes = [8, 128], strides = [1, 1]} : vector<8x512xf32> to vector<8x128xf32>
    %279 = math.tanh %278 : vector<8x128xf32>
    %280 = vector.extract_strided_slice %265 {offsets = [0, 384], sizes = [8, 128], strides = [1, 1]} : vector<8x512xf32> to vector<8x128xf32>
    %281 = arith.negf %280 : vector<8x128xf32>
    %282 = math.exp %281 : vector<8x128xf32>
    %cst_65 = arith.constant 1.000000e+00 : f32
    %283 = vector.broadcast %cst_65 : f32 to vector<8x128xf32>
    %284 = arith.addf %283, %282 : vector<8x128xf32>
    %285 = arith.divf %283, %284 : vector<8x128xf32>
    %286 = arith.mulf %277, %227 : vector<8x128xf32>
    %287 = arith.mulf %271, %279 : vector<8x128xf32>
    %288 = arith.addf %286, %287 : vector<8x128xf32>
    %289 = math.tanh %288 : vector<8x128xf32>
    %290 = arith.mulf %285, %289 : vector<8x128xf32>
    %291 = tpu.concatenate %290, %258 in 1 : vector<8x128xf32>, vector<8x128xf32> -> vector<8x256xf32>
    %cst_66 = arith.constant dense<0.000000e+00> : vector<8x512xf32>
    %292 = tpu.matmul %291, %12, %cst_66 {dimension_numbers = #tpu.dot_dimension_numbers<[1], [0], [0], [1], [0, 0, 1, 1], [], []>} : vector<8x256xf32>, vector<256x512xf32>, vector<8x512xf32> -> vector<8x512xf32>
    %293 = vector.broadcast %13 : vector<1x512xf32> to vector<8x512xf32>
    %294 = arith.addf %292, %293 : vector<8x512xf32>
    %295 = vector.extract_strided_slice %294 {offsets = [0, 0], sizes = [8, 128], strides = [1, 1]} : vector<8x512xf32> to vector<8x128xf32>
    %296 = arith.negf %295 : vector<8x128xf32>
    %297 = math.exp %296 : vector<8x128xf32>
    %cst_67 = arith.constant 1.000000e+00 : f32
    %298 = vector.broadcast %cst_67 : f32 to vector<8x128xf32>
    %299 = arith.addf %298, %297 : vector<8x128xf32>
    %300 = arith.divf %298, %299 : vector<8x128xf32>
    %301 = vector.extract_strided_slice %294 {offsets = [0, 128], sizes = [8, 128], strides = [1, 1]} : vector<8x512xf32> to vector<8x128xf32>
    %302 = arith.negf %301 : vector<8x128xf32>
    %303 = math.exp %302 : vector<8x128xf32>
    %cst_68 = arith.constant 1.000000e+00 : f32
    %304 = vector.broadcast %cst_68 : f32 to vector<8x128xf32>
    %305 = arith.addf %304, %303 : vector<8x128xf32>
    %306 = arith.divf %304, %305 : vector<8x128xf32>
    %307 = vector.extract_strided_slice %294 {offsets = [0, 256], sizes = [8, 128], strides = [1, 1]} : vector<8x512xf32> to vector<8x128xf32>
    %308 = math.tanh %307 : vector<8x128xf32>
    %309 = vector.extract_strided_slice %294 {offsets = [0, 384], sizes = [8, 128], strides = [1, 1]} : vector<8x512xf32> to vector<8x128xf32>
    %310 = arith.negf %309 : vector<8x128xf32>
    %311 = math.exp %310 : vector<8x128xf32>
    %cst_69 = arith.constant 1.000000e+00 : f32
    %312 = vector.broadcast %cst_69 : f32 to vector<8x128xf32>
    %313 = arith.addf %312, %311 : vector<8x128xf32>
    %314 = arith.divf %312, %313 : vector<8x128xf32>
    %315 = arith.mulf %306, %256 : vector<8x128xf32>
    %316 = arith.mulf %300, %308 : vector<8x128xf32>
    %317 = arith.addf %315, %316 : vector<8x128xf32>
    %318 = math.tanh %317 : vector<8x128xf32>
    %319 = arith.mulf %314, %318 : vector<8x128xf32>
    %c4 = arith.constant 4 : index
    %c0_70 = arith.constant 0 : index
    %c0_71 = arith.constant 0 : index
    %320 = vector.load %arg15[%c4, %c0_70, %c0_71] : memref<8x8x128xf32, #tpu.memory_space<vmem>>, vector<1x8x128xf32>
    %321 = vector.shape_cast %320 : vector<1x8x128xf32> to vector<8x128xf32>
    %322 = vector.shape_cast %319 : vector<8x128xf32> to vector<1x8x128xf32>
    tpu.vector_store %arg15[%c4, %c0_70, %c0_71], %322 {strides = array<i32>} : memref<8x8x128xf32, #tpu.memory_space<vmem>>, vector<1x8x128xf32>,
    %323 = vector.extract_strided_slice %10 {offsets = [5, 0, 0], sizes = [1, 8, 512], strides = [1, 1, 1]} : vector<8x8x512xf32> to vector<1x8x512xf32>
    %324 = vector.shape_cast %323 : vector<1x8x512xf32> to vector<8x512xf32>
    %cst_72 = arith.constant dense<0.000000e+00> : vector<8x512xf32>
    %325 = tpu.matmul %290, %11, %cst_72 {dimension_numbers = #tpu.dot_dimension_numbers<[1], [0], [0], [1], [0, 0, 1, 1], [], []>} : vector<8x128xf32>, vector<128x512xf32>, vector<8x512xf32> -> vector<8x512xf32>
    %326 = arith.addf %324, %325 : vector<8x512xf32>
    %327 = vector.extract_strided_slice %326 {offsets = [0, 0], sizes = [8, 128], strides = [1, 1]} : vector<8x512xf32> to vector<8x128xf32>
    %328 = arith.negf %327 : vector<8x128xf32>
    %329 = math.exp %328 : vector<8x128xf32>
    %cst_73 = arith.constant 1.000000e+00 : f32
    %330 = vector.broadcast %cst_73 : f32 to vector<8x128xf32>
    %331 = arith.addf %330, %329 : vector<8x128xf32>
    %332 = arith.divf %330, %331 : vector<8x128xf32>
    %333 = vector.extract_strided_slice %326 {offsets = [0, 128], sizes = [8, 128], strides = [1, 1]} : vector<8x512xf32> to vector<8x128xf32>
    %334 = arith.negf %333 : vector<8x128xf32>
    %335 = math.exp %334 : vector<8x128xf32>
    %cst_74 = arith.constant 1.000000e+00 : f32
    %336 = vector.broadcast %cst_74 : f32 to vector<8x128xf32>
    %337 = arith.addf %336, %335 : vector<8x128xf32>
    %338 = arith.divf %336, %337 : vector<8x128xf32>
    %339 = vector.extract_strided_slice %326 {offsets = [0, 256], sizes = [8, 128], strides = [1, 1]} : vector<8x512xf32> to vector<8x128xf32>
    %340 = math.tanh %339 : vector<8x128xf32>
    %341 = vector.extract_strided_slice %326 {offsets = [0, 384], sizes = [8, 128], strides = [1, 1]} : vector<8x512xf32> to vector<8x128xf32>
    %342 = arith.negf %341 : vector<8x128xf32>
    %343 = math.exp %342 : vector<8x128xf32>
    %cst_75 = arith.constant 1.000000e+00 : f32
    %344 = vector.broadcast %cst_75 : f32 to vector<8x128xf32>
    %345 = arith.addf %344, %343 : vector<8x128xf32>
    %346 = arith.divf %344, %345 : vector<8x128xf32>
    %347 = arith.mulf %338, %288 : vector<8x128xf32>
    %348 = arith.mulf %332, %340 : vector<8x128xf32>
    %349 = arith.addf %347, %348 : vector<8x128xf32>
    %350 = math.tanh %349 : vector<8x128xf32>
    %351 = arith.mulf %346, %350 : vector<8x128xf32>
    %352 = tpu.concatenate %351, %319 in 1 : vector<8x128xf32>, vector<8x128xf32> -> vector<8x256xf32>
    %cst_76 = arith.constant dense<0.000000e+00> : vector<8x512xf32>
    %353 = tpu.matmul %352, %12, %cst_76 {dimension_numbers = #tpu.dot_dimension_numbers<[1], [0], [0], [1], [0, 0, 1, 1], [], []>} : vector<8x256xf32>, vector<256x512xf32>, vector<8x512xf32> -> vector<8x512xf32>
    %354 = vector.broadcast %13 : vector<1x512xf32> to vector<8x512xf32>
    %355 = arith.addf %353, %354 : vector<8x512xf32>
    %356 = vector.extract_strided_slice %355 {offsets = [0, 0], sizes = [8, 128], strides = [1, 1]} : vector<8x512xf32> to vector<8x128xf32>
    %357 = arith.negf %356 : vector<8x128xf32>
    %358 = math.exp %357 : vector<8x128xf32>
    %cst_77 = arith.constant 1.000000e+00 : f32
    %359 = vector.broadcast %cst_77 : f32 to vector<8x128xf32>
    %360 = arith.addf %359, %358 : vector<8x128xf32>
    %361 = arith.divf %359, %360 : vector<8x128xf32>
    %362 = vector.extract_strided_slice %355 {offsets = [0, 128], sizes = [8, 128], strides = [1, 1]} : vector<8x512xf32> to vector<8x128xf32>
    %363 = arith.negf %362 : vector<8x128xf32>
    %364 = math.exp %363 : vector<8x128xf32>
    %cst_78 = arith.constant 1.000000e+00 : f32
    %365 = vector.broadcast %cst_78 : f32 to vector<8x128xf32>
    %366 = arith.addf %365, %364 : vector<8x128xf32>
    %367 = arith.divf %365, %366 : vector<8x128xf32>
    %368 = vector.extract_strided_slice %355 {offsets = [0, 256], sizes = [8, 128], strides = [1, 1]} : vector<8x512xf32> to vector<8x128xf32>
    %369 = math.tanh %368 : vector<8x128xf32>
    %370 = vector.extract_strided_slice %355 {offsets = [0, 384], sizes = [8, 128], strides = [1, 1]} : vector<8x512xf32> to vector<8x128xf32>
    %371 = arith.negf %370 : vector<8x128xf32>
    %372 = math.exp %371 : vector<8x128xf32>
    %cst_79 = arith.constant 1.000000e+00 : f32
    %373 = vector.broadcast %cst_79 : f32 to vector<8x128xf32>
    %374 = arith.addf %373, %372 : vector<8x128xf32>
    %375 = arith.divf %373, %374 : vector<8x128xf32>
    %376 = arith.mulf %367, %317 : vector<8x128xf32>
    %377 = arith.mulf %361, %369 : vector<8x128xf32>
    %378 = arith.addf %376, %377 : vector<8x128xf32>
    %379 = math.tanh %378 : vector<8x128xf32>
    %380 = arith.mulf %375, %379 : vector<8x128xf32>
    %c5 = arith.constant 5 : index
    %c0_80 = arith.constant 0 : index
    %c0_81 = arith.constant 0 : index
    %381 = vector.load %arg15[%c5, %c0_80, %c0_81] : memref<8x8x128xf32, #tpu.memory_space<vmem>>, vector<1x8x128xf32>
    %382 = vector.shape_cast %381 : vector<1x8x128xf32> to vector<8x128xf32>
    %383 = vector.shape_cast %380 : vector<8x128xf32> to vector<1x8x128xf32>
    tpu.vector_store %arg15[%c5, %c0_80, %c0_81], %383 {strides = array<i32>} : memref<8x8x128xf32, #tpu.memory_space<vmem>>, vector<1x8x128xf32>,
    %384 = vector.extract_strided_slice %10 {offsets = [6, 0, 0], sizes = [1, 8, 512], strides = [1, 1, 1]} : vector<8x8x512xf32> to vector<1x8x512xf32>
    %385 = vector.shape_cast %384 : vector<1x8x512xf32> to vector<8x512xf32>
    %cst_82 = arith.constant dense<0.000000e+00> : vector<8x512xf32>
    %386 = tpu.matmul %351, %11, %cst_82 {dimension_numbers = #tpu.dot_dimension_numbers<[1], [0], [0], [1], [0, 0, 1, 1], [], []>} : vector<8x128xf32>, vector<128x512xf32>, vector<8x512xf32> -> vector<8x512xf32>
    %387 = arith.addf %385, %386 : vector<8x512xf32>
    %388 = vector.extract_strided_slice %387 {offsets = [0, 0], sizes = [8, 128], strides = [1, 1]} : vector<8x512xf32> to vector<8x128xf32>
    %389 = arith.negf %388 : vector<8x128xf32>
    %390 = math.exp %389 : vector<8x128xf32>
    %cst_83 = arith.constant 1.000000e+00 : f32
    %391 = vector.broadcast %cst_83 : f32 to vector<8x128xf32>
    %392 = arith.addf %391, %390 : vector<8x128xf32>
    %393 = arith.divf %391, %392 : vector<8x128xf32>
    %394 = vector.extract_strided_slice %387 {offsets = [0, 128], sizes = [8, 128], strides = [1, 1]} : vector<8x512xf32> to vector<8x128xf32>
    %395 = arith.negf %394 : vector<8x128xf32>
    %396 = math.exp %395 : vector<8x128xf32>
    %cst_84 = arith.constant 1.000000e+00 : f32
    %397 = vector.broadcast %cst_84 : f32 to vector<8x128xf32>
    %398 = arith.addf %397, %396 : vector<8x128xf32>
    %399 = arith.divf %397, %398 : vector<8x128xf32>
    %400 = vector.extract_strided_slice %387 {offsets = [0, 256], sizes = [8, 128], strides = [1, 1]} : vector<8x512xf32> to vector<8x128xf32>
    %401 = math.tanh %400 : vector<8x128xf32>
    %402 = vector.extract_strided_slice %387 {offsets = [0, 384], sizes = [8, 128], strides = [1, 1]} : vector<8x512xf32> to vector<8x128xf32>
    %403 = arith.negf %402 : vector<8x128xf32>
    %404 = math.exp %403 : vector<8x128xf32>
    %cst_85 = arith.constant 1.000000e+00 : f32
    %405 = vector.broadcast %cst_85 : f32 to vector<8x128xf32>
    %406 = arith.addf %405, %404 : vector<8x128xf32>
    %407 = arith.divf %405, %406 : vector<8x128xf32>
    %408 = arith.mulf %399, %349 : vector<8x128xf32>
    %409 = arith.mulf %393, %401 : vector<8x128xf32>
    %410 = arith.addf %408, %409 : vector<8x128xf32>
    %411 = math.tanh %410 : vector<8x128xf32>
    %412 = arith.mulf %407, %411 : vector<8x128xf32>
    %413 = tpu.concatenate %412, %380 in 1 : vector<8x128xf32>, vector<8x128xf32> -> vector<8x256xf32>
    %cst_86 = arith.constant dense<0.000000e+00> : vector<8x512xf32>
    %414 = tpu.matmul %413, %12, %cst_86 {dimension_numbers = #tpu.dot_dimension_numbers<[1], [0], [0], [1], [0, 0, 1, 1], [], []>} : vector<8x256xf32>, vector<256x512xf32>, vector<8x512xf32> -> vector<8x512xf32>
    %415 = vector.broadcast %13 : vector<1x512xf32> to vector<8x512xf32>
    %416 = arith.addf %414, %415 : vector<8x512xf32>
    %417 = vector.extract_strided_slice %416 {offsets = [0, 0], sizes = [8, 128], strides = [1, 1]} : vector<8x512xf32> to vector<8x128xf32>
    %418 = arith.negf %417 : vector<8x128xf32>
    %419 = math.exp %418 : vector<8x128xf32>
    %cst_87 = arith.constant 1.000000e+00 : f32
    %420 = vector.broadcast %cst_87 : f32 to vector<8x128xf32>
    %421 = arith.addf %420, %419 : vector<8x128xf32>
    %422 = arith.divf %420, %421 : vector<8x128xf32>
    %423 = vector.extract_strided_slice %416 {offsets = [0, 128], sizes = [8, 128], strides = [1, 1]} : vector<8x512xf32> to vector<8x128xf32>
    %424 = arith.negf %423 : vector<8x128xf32>
    %425 = math.exp %424 : vector<8x128xf32>
    %cst_88 = arith.constant 1.000000e+00 : f32
    %426 = vector.broadcast %cst_88 : f32 to vector<8x128xf32>
    %427 = arith.addf %426, %425 : vector<8x128xf32>
    %428 = arith.divf %426, %427 : vector<8x128xf32>
    %429 = vector.extract_strided_slice %416 {offsets = [0, 256], sizes = [8, 128], strides = [1, 1]} : vector<8x512xf32> to vector<8x128xf32>
    %430 = math.tanh %429 : vector<8x128xf32>
    %431 = vector.extract_strided_slice %416 {offsets = [0, 384], sizes = [8, 128], strides = [1, 1]} : vector<8x512xf32> to vector<8x128xf32>
    %432 = arith.negf %431 : vector<8x128xf32>
    %433 = math.exp %432 : vector<8x128xf32>
    %cst_89 = arith.constant 1.000000e+00 : f32
    %434 = vector.broadcast %cst_89 : f32 to vector<8x128xf32>
    %435 = arith.addf %434, %433 : vector<8x128xf32>
    %436 = arith.divf %434, %435 : vector<8x128xf32>
    %437 = arith.mulf %428, %378 : vector<8x128xf32>
    %438 = arith.mulf %422, %430 : vector<8x128xf32>
    %439 = arith.addf %437, %438 : vector<8x128xf32>
    %440 = math.tanh %439 : vector<8x128xf32>
    %441 = arith.mulf %436, %440 : vector<8x128xf32>
    %c6 = arith.constant 6 : index
    %c0_90 = arith.constant 0 : index
    %c0_91 = arith.constant 0 : index
    %442 = vector.load %arg15[%c6, %c0_90, %c0_91] : memref<8x8x128xf32, #tpu.memory_space<vmem>>, vector<1x8x128xf32>
    %443 = vector.shape_cast %442 : vector<1x8x128xf32> to vector<8x128xf32>
    %444 = vector.shape_cast %441 : vector<8x128xf32> to vector<1x8x128xf32>
    tpu.vector_store %arg15[%c6, %c0_90, %c0_91], %444 {strides = array<i32>} : memref<8x8x128xf32, #tpu.memory_space<vmem>>, vector<1x8x128xf32>,
    %445 = vector.extract_strided_slice %10 {offsets = [7, 0, 0], sizes = [1, 8, 512], strides = [1, 1, 1]} : vector<8x8x512xf32> to vector<1x8x512xf32>
    %446 = vector.shape_cast %445 : vector<1x8x512xf32> to vector<8x512xf32>
    %cst_92 = arith.constant dense<0.000000e+00> : vector<8x512xf32>
    %447 = tpu.matmul %412, %11, %cst_92 {dimension_numbers = #tpu.dot_dimension_numbers<[1], [0], [0], [1], [0, 0, 1, 1], [], []>} : vector<8x128xf32>, vector<128x512xf32>, vector<8x512xf32> -> vector<8x512xf32>
    %448 = arith.addf %446, %447 : vector<8x512xf32>
    %449 = vector.extract_strided_slice %448 {offsets = [0, 0], sizes = [8, 128], strides = [1, 1]} : vector<8x512xf32> to vector<8x128xf32>
    %450 = arith.negf %449 : vector<8x128xf32>
    %451 = math.exp %450 : vector<8x128xf32>
    %cst_93 = arith.constant 1.000000e+00 : f32
    %452 = vector.broadcast %cst_93 : f32 to vector<8x128xf32>
    %453 = arith.addf %452, %451 : vector<8x128xf32>
    %454 = arith.divf %452, %453 : vector<8x128xf32>
    %455 = vector.extract_strided_slice %448 {offsets = [0, 128], sizes = [8, 128], strides = [1, 1]} : vector<8x512xf32> to vector<8x128xf32>
    %456 = arith.negf %455 : vector<8x128xf32>
    %457 = math.exp %456 : vector<8x128xf32>
    %cst_94 = arith.constant 1.000000e+00 : f32
    %458 = vector.broadcast %cst_94 : f32 to vector<8x128xf32>
    %459 = arith.addf %458, %457 : vector<8x128xf32>
    %460 = arith.divf %458, %459 : vector<8x128xf32>
    %461 = vector.extract_strided_slice %448 {offsets = [0, 256], sizes = [8, 128], strides = [1, 1]} : vector<8x512xf32> to vector<8x128xf32>
    %462 = math.tanh %461 : vector<8x128xf32>
    %463 = vector.extract_strided_slice %448 {offsets = [0, 384], sizes = [8, 128], strides = [1, 1]} : vector<8x512xf32> to vector<8x128xf32>
    %464 = arith.negf %463 : vector<8x128xf32>
    %465 = math.exp %464 : vector<8x128xf32>
    %cst_95 = arith.constant 1.000000e+00 : f32
    %466 = vector.broadcast %cst_95 : f32 to vector<8x128xf32>
    %467 = arith.addf %466, %465 : vector<8x128xf32>
    %468 = arith.divf %466, %467 : vector<8x128xf32>
    %469 = arith.mulf %460, %410 : vector<8x128xf32>
    %470 = arith.mulf %454, %462 : vector<8x128xf32>
    %471 = arith.addf %469, %470 : vector<8x128xf32>
    %472 = math.tanh %471 : vector<8x128xf32>
    %473 = arith.mulf %468, %472 : vector<8x128xf32>
    %474 = tpu.concatenate %473, %441 in 1 : vector<8x128xf32>, vector<8x128xf32> -> vector<8x256xf32>
    %cst_96 = arith.constant dense<0.000000e+00> : vector<8x512xf32>
    %475 = tpu.matmul %474, %12, %cst_96 {dimension_numbers = #tpu.dot_dimension_numbers<[1], [0], [0], [1], [0, 0, 1, 1], [], []>} : vector<8x256xf32>, vector<256x512xf32>, vector<8x512xf32> -> vector<8x512xf32>
    %476 = vector.broadcast %13 : vector<1x512xf32> to vector<8x512xf32>
    %477 = arith.addf %475, %476 : vector<8x512xf32>
    %478 = vector.extract_strided_slice %477 {offsets = [0, 0], sizes = [8, 128], strides = [1, 1]} : vector<8x512xf32> to vector<8x128xf32>
    %479 = arith.negf %478 : vector<8x128xf32>
    %480 = math.exp %479 : vector<8x128xf32>
    %cst_97 = arith.constant 1.000000e+00 : f32
    %481 = vector.broadcast %cst_97 : f32 to vector<8x128xf32>
    %482 = arith.addf %481, %480 : vector<8x128xf32>
    %483 = arith.divf %481, %482 : vector<8x128xf32>
    %484 = vector.extract_strided_slice %477 {offsets = [0, 128], sizes = [8, 128], strides = [1, 1]} : vector<8x512xf32> to vector<8x128xf32>
    %485 = arith.negf %484 : vector<8x128xf32>
    %486 = math.exp %485 : vector<8x128xf32>
    %cst_98 = arith.constant 1.000000e+00 : f32
    %487 = vector.broadcast %cst_98 : f32 to vector<8x128xf32>
    %488 = arith.addf %487, %486 : vector<8x128xf32>
    %489 = arith.divf %487, %488 : vector<8x128xf32>
    %490 = vector.extract_strided_slice %477 {offsets = [0, 256], sizes = [8, 128], strides = [1, 1]} : vector<8x512xf32> to vector<8x128xf32>
    %491 = math.tanh %490 : vector<8x128xf32>
    %492 = vector.extract_strided_slice %477 {offsets = [0, 384], sizes = [8, 128], strides = [1, 1]} : vector<8x512xf32> to vector<8x128xf32>
    %493 = arith.negf %492 : vector<8x128xf32>
    %494 = math.exp %493 : vector<8x128xf32>
    %cst_99 = arith.constant 1.000000e+00 : f32
    %495 = vector.broadcast %cst_99 : f32 to vector<8x128xf32>
    %496 = arith.addf %495, %494 : vector<8x128xf32>
    %497 = arith.divf %495, %496 : vector<8x128xf32>
    %498 = arith.mulf %489, %439 : vector<8x128xf32>
    %499 = arith.mulf %483, %491 : vector<8x128xf32>
    %500 = arith.addf %498, %499 : vector<8x128xf32>
    %501 = math.tanh %500 : vector<8x128xf32>
    %502 = arith.mulf %497, %501 : vector<8x128xf32>
    %c7 = arith.constant 7 : index
    %c0_100 = arith.constant 0 : index
    %c0_101 = arith.constant 0 : index
    %503 = vector.load %arg15[%c7, %c0_100, %c0_101] : memref<8x8x128xf32, #tpu.memory_space<vmem>>, vector<1x8x128xf32>
    %504 = vector.shape_cast %503 : vector<1x8x128xf32> to vector<8x128xf32>
    %505 = vector.shape_cast %502 : vector<8x128xf32> to vector<1x8x128xf32>
    tpu.vector_store %arg15[%c7, %c0_100, %c0_101], %505 {strides = array<i32>} : memref<8x8x128xf32, #tpu.memory_space<vmem>>, vector<1x8x128xf32>,
    %c0_102 = arith.constant 0 : index
    %c0_103 = arith.constant 0 : index
    %506 = vector.load %arg11[%c0_102, %c0_103] : memref<8x128xf32, #tpu.memory_space<vmem>>, vector<8x128xf32>
    tpu.vector_store %arg11[%c0_102, %c0_103], %473 {strides = array<i32>} : memref<8x128xf32, #tpu.memory_space<vmem>>, vector<8x128xf32>,
    %c0_104 = arith.constant 0 : index
    %c0_105 = arith.constant 0 : index
    %507 = vector.load %arg12[%c0_104, %c0_105] : memref<8x128xf32, #tpu.memory_space<vmem>>, vector<8x128xf32>
    tpu.vector_store %arg12[%c0_104, %c0_105], %471 {strides = array<i32>} : memref<8x128xf32, #tpu.memory_space<vmem>>, vector<8x128xf32>,
    %c0_106 = arith.constant 0 : index
    %c0_107 = arith.constant 0 : index
    %508 = vector.load %arg13[%c0_106, %c0_107] : memref<8x128xf32, #tpu.memory_space<vmem>>, vector<8x128xf32>
    tpu.vector_store %arg13[%c0_106, %c0_107], %502 {strides = array<i32>} : memref<8x128xf32, #tpu.memory_space<vmem>>, vector<8x128xf32>,
    %c0_108 = arith.constant 0 : index
    %c0_109 = arith.constant 0 : index
    %509 = vector.load %arg14[%c0_108, %c0_109] : memref<8x128xf32, #tpu.memory_space<vmem>>, vector<8x128xf32>
    tpu.vector_store %arg14[%c0_108, %c0_109], %500 {strides = array<i32>} : memref<8x128xf32, #tpu.memory_space<vmem>>, vector<8x128xf32>,
    %c0_110 = arith.constant 0 : index
    %c0_111 = arith.constant 0 : index
    %c0_112 = arith.constant 0 : index
    %510 = vector.load %arg15[%c0_110, %c0_111, %c0_112] : memref<8x8x128xf32, #tpu.memory_space<vmem>>, vector<8x8x128xf32>
    %c0_113 = arith.constant 0 : index
    %c0_114 = arith.constant 0 : index
    %c0_115 = arith.constant 0 : index
    %511 = vector.load %arg10[%c0_113, %c0_114, %c0_115] : memref<8x8x128xf32, #tpu.memory_space<vmem>>, vector<8x8x128xf32>
    tpu.vector_store %arg10[%c0_113, %c0_114, %c0_115], %510 {strides = array<i32>} : memref<8x8x128xf32, #tpu.memory_space<vmem>>, vector<8x8x128xf32>,
    %c0_116 = arith.constant 0 : index
    %c0_117 = arith.constant 0 : index
    %c0_118 = arith.constant 0 : index
    %512 = vector.load %arg15[%c0_116, %c0_117, %c0_118] : memref<8x8x128xf32, #tpu.memory_space<vmem>>, vector<8x8x128xf32>
    %513 = vector.shape_cast %512 : vector<8x8x128xf32> to vector<64x128xf32>
    %c0_119 = arith.constant 0 : index
    %c0_120 = arith.constant 0 : index
    %514 = vector.load %arg7[%c0_119, %c0_120] : memref<128x128xf32, #tpu.memory_space<vmem>>, vector<128x128xf32>
    %cst_121 = arith.constant dense<0.000000e+00> : vector<64x128xf32>
    %515 = tpu.matmul %513, %514, %cst_121 {dimension_numbers = #tpu.dot_dimension_numbers<[1], [0], [0], [1], [0, 0, 1, 1], [], []>} : vector<64x128xf32>, vector<128x128xf32>, vector<64x128xf32> -> vector<64x128xf32>
    %c0_122 = arith.constant 0 : index
    %c0_123 = arith.constant 0 : index
    %516 = vector.load %arg8[%c0_122, %c0_123] : memref<1x128xf32, #tpu.memory_space<vmem>>, vector<1x128xf32>
    %517 = vector.broadcast %516 : vector<1x128xf32> to vector<64x128xf32>
    %518 = arith.addf %515, %517 : vector<64x128xf32>
    %519 = vector.shape_cast %518 : vector<64x128xf32> to vector<8x8x128xf32>
    %c0_124 = arith.constant 0 : index
    %c0_125 = arith.constant 0 : index
    %c0_126 = arith.constant 0 : index
    %520 = vector.load %arg9[%c0_124, %c0_125, %c0_126] : memref<8x8x128xf32, #tpu.memory_space<vmem>>, vector<8x8x128xf32>
    tpu.vector_store %arg9[%c0_124, %c0_125, %c0_126], %519 {strides = array<i32>} : memref<8x8x128xf32, #tpu.memory_space<vmem>>, vector<8x8x128xf32>,
    return
  }
  func.func @transform_0(%arg0: i32) -> (i32, i32, i32) {
    %c0_i32 = arith.constant 0 : i32
    %c0_i32_0 = arith.constant 0 : i32
    %c0_i32_1 = arith.constant 0 : i32
    return %arg0, %c0_i32, %c0_i32_0 : i32, i32, i32
  }
  func.func @transform_1(%arg0: i32) -> (i32, i32) {
    %c0_i32 = arith.constant 0 : i32
    %c0_i32_0 = arith.constant 0 : i32
    %c0_i32_1 = arith.constant 0 : i32
    return %c0_i32, %c0_i32_0 : i32, i32
  }
  func.func @transform_2(%arg0: i32) -> (i32, i32) {
    %c0_i32 = arith.constant 0 : i32
    %c0_i32_0 = arith.constant 0 : i32
    %c0_i32_1 = arith.constant 0 : i32
    return %c0_i32, %c0_i32_0 : i32, i32
  }
  func.func @transform_3(%arg0: i32) -> (i32, i32) {
    %c0_i32 = arith.constant 0 : i32
    %c0_i32_0 = arith.constant 0 : i32
    %c0_i32_1 = arith.constant 0 : i32
    return %c0_i32, %c0_i32_0 : i32, i32
  }
  func.func @transform_4(%arg0: i32) -> (i32, i32) {
    %c0_i32 = arith.constant 0 : i32
    %c0_i32_0 = arith.constant 0 : i32
    %c0_i32_1 = arith.constant 0 : i32
    return %c0_i32, %c0_i32_0 : i32, i32
  }
  func.func @transform_5(%arg0: i32) -> (i32, i32) {
    %c0_i32 = arith.constant 0 : i32
    %c0_i32_0 = arith.constant 0 : i32
    %c0_i32_1 = arith.constant 0 : i32
    return %c0_i32, %c0_i32_0 : i32, i32
  }
  func.func @transform_6(%arg0: i32) -> (i32, i32) {
    %c0_i32 = arith.constant 0 : i32
    %c0_i32_0 = arith.constant 0 : i32
    %c0_i32_1 = arith.constant 0 : i32
    return %c0_i32, %c0_i32_0 : i32, i32
  }
  func.func @transform_7(%arg0: i32) -> (i32, i32) {
    %c0_i32 = arith.constant 0 : i32
    %c0_i32_0 = arith.constant 0 : i32
    %c0_i32_1 = arith.constant 0 : i32
    return %c0_i32, %c0_i32_0 : i32, i32
  }
  func.func @transform_8(%arg0: i32) -> (i32, i32, i32) {
    %c0_i32 = arith.constant 0 : i32
    %c0_i32_0 = arith.constant 0 : i32
    %c0_i32_1 = arith.constant 0 : i32
    return %arg0, %c0_i32, %c0_i32_0 : i32, i32, i32
  }
  func.func @transform_9(%arg0: i32) -> (i32, i32, i32) {
    %c0_i32 = arith.constant 0 : i32
    %c0_i32_0 = arith.constant 0 : i32
    %c0_i32_1 = arith.constant 0 : i32
    return %arg0, %c0_i32, %c0_i32_0 : i32, i32, i32
  }
}

</mosaic_0001>

<bundles_post_ra>
// kernel: lstm_module_forward.1
= control target key start
LH: loop header
LB: loop body
LE: loop exit
PB: predicated region body
PF: predicated region fallthrough
CT: control target
= control target key end

     0   :  { %v10508_v3 = vmov 0.0   ;;  %s10498_s1 = inlined_call_operand.vmem [shape: f32[128,512], index: 1, kind: input, shape index: {}]   ;;  %s10499_s2 = inlined_call_operand.vmem [shape: f32[128,512], index: 2, kind: input, shape index: {}]   ;;  %s10500_s0 = inlined_call_operand.vmem [shape: f32[8,8,128], index: 0, kind: input, shape index: {}]   ;;  %s10501_s4 = inlined_call_operand.vmem [shape: f32[256,512], index: 4, kind: input, shape index: {}]   ;;  %s10502_s3 = inlined_call_operand.vmem [shape: f32[1,512], index: 3, kind: input, shape index: {}]   ;;  %s10503_s5 = inlined_call_operand.vmem [shape: f32[1,512], index: 5, kind: input, shape index: {}]   ;;  %s10504_s9 = inlined_call_operand.vmem [shape: f32[8,8,128], index: 9, kind: output, shape index: {1}]   ;;  %s10505_s6 = inlined_call_operand.vmem [shape: f32[128,128], index: 6, kind: input, shape index: {}]   ;;  %s10506_s7 = inlined_call_operand.vmem [shape: f32[1,128], index: 7, kind: input, shape index: {}]   ;;  %s10507_s8 = inlined_call_operand.vmem [shape: f32[8,8,128], index: 8, kind: output, shape index: {0}]  }
   0x1   :  { %v108_v0 = vld [vmem:[%s10498_s1 + $0x1e8] sm:$0xff]  ;;  %v107_v1 = vld [vmem:[%s10498_s1 + $0x1e0] sm:$0xff]  ;;  %197 = vmatprep.mubr.f32.mxu1 %v10508_v3  ;;  %620 = vmatprep.mubr.f32.mxu0 %v10508_v3 }
   0x2   :  { %v104_v2 = vld [vmem:[%s10498_s1 + $0x1c8] sm:$0xff]  ;;  %133 = vmatprep.subr.mxu1 %v108_v0  ;;  %v103_v5 = vld [vmem:[%s10498_s1 + $0x1c0] sm:$0xff] }
   0x3   :  { %v420_v4 = vld [vmem:[%s10499_s2 + $0x1e8] sm:$0xff]  ;;  %v419_v6 = vld [vmem:[%s10499_s2 + $0x1e0] sm:$0xff]  ;;  %134 = vmatpush1.msra.mxu1 %v107_v1  ;;  %v110_v1 = vld [vmem:[%s10498_s1 + $0x1f8] sm:$0xff] }
   0x4   :  { %556 = vmatprep.subr.mxu0 %v420_v4  ;;  %v100_v7 = vld [vmem:[%s10498_s1 + $0x1a8] sm:$0xff]  ;;  %135 = vmatprep.subr.mxu1 %v104_v2  ;;  %v99_v9 = vld [vmem:[%s10498_s1 + $0x1a0] sm:$0xff]  ;;  %v109_v2 = vld [vmem:[%s10498_s1 + $0x1f0] sm:$0xff] }
   0x5   :  { %v416_v8 = vld [vmem:[%s10499_s2 + $0x1c8] sm:$0xff]  ;;  %557 = vmatpush1.msra.mxu0 %v419_v6  ;;  %v415_v10 = vld [vmem:[%s10499_s2 + $0x1c0] sm:$0xff]  ;;  %136 = vmatpush1.msra.mxu1 %v103_v5  ;;  %v106_v5 = vld [vmem:[%s10498_s1 + $0x1d8] sm:$0xff] }
   0x6   :  { %v412_v11 = vld [vmem:[%s10499_s2 + $0x1a8] sm:$0xff]  ;;  %558 = vmatprep.subr.mxu0 %v416_v8  ;;  %v411_v13 = vld [vmem:[%s10499_s2 + $0x1a0] sm:$0xff]  ;;  %137 = vmatprep.subr.mxu1 %v100_v7  ;;  %v105_v6 = vld [vmem:[%s10498_s1 + $0x1d0] sm:$0xff] }
   0x7   :  { %v96_v12 = vld [vmem:[%s10498_s1 + $0x188] sm:$0xff]  ;;  %559 = vmatpush1.msra.mxu0 %v415_v10  ;;  %v95_v14 = vld [vmem:[%s10498_s1 + $0x180] sm:$0xff]  ;;  %138 = vmatpush1.msra.mxu1 %v99_v9  ;;  %v102_v8 = vld [vmem:[%s10498_s1 + $0x1b8] sm:$0xff] }
   0x8   :  { %v408_v15 = vld [vmem:[%s10499_s2 + $0x188] sm:$0xff]  ;;  %560 = vmatprep.subr.mxu0 %v412_v11  ;;  %v407_v17 = vld [vmem:[%s10499_s2 + $0x180] sm:$0xff]  ;;  %139 = vmatprep.subr.mxu1 %v96_v12  ;;  %v101_v9 = vld [vmem:[%s10498_s1 + $0x1b0] sm:$0xff] }
   0x9   :  { %v92_v16 = vld [vmem:[%s10498_s1 + $0x168] sm:$0xff]  ;;  %561 = vmatpush1.msra.mxu0 %v411_v13  ;;  %v91_v18 = vld [vmem:[%s10498_s1 + $0x160] sm:$0xff]  ;;  %140 = vmatpush1.msra.mxu1 %v95_v14  ;;  %v98_v10 = vld [vmem:[%s10498_s1 + $0x198] sm:$0xff] }
   0xa   :  { %v404_v19 = vld [vmem:[%s10499_s2 + $0x168] sm:$0xff]  ;;  %562 = vmatprep.subr.mxu0 %v408_v15  ;;  %v403_v21 = vld [vmem:[%s10499_s2 + $0x160] sm:$0xff]  ;;  %141 = vmatprep.subr.mxu1 %v92_v16  ;;  %v97_v11 = vld [vmem:[%s10498_s1 + $0x190] sm:$0xff] }
   0xb   :  { %v88_v20 = vld [vmem:[%s10498_s1 + $0x148] sm:$0xff]  ;;  %563 = vmatpush1.msra.mxu0 %v407_v17  ;;  %v87_v22 = vld [vmem:[%s10498_s1 + $0x140] sm:$0xff]  ;;  %142 = vmatpush1.msra.mxu1 %v91_v18  ;;  %v4726_v12 = vld [vmem:[%s10500_s0 + $0x10] sm:$0xff] }
   0xc   :  { %v400_v23 = vld [vmem:[%s10499_s2 + $0x148] sm:$0xff]  ;;  %564 = vmatprep.subr.mxu0 %v404_v19  ;;  %v399_v25 = vld [vmem:[%s10499_s2 + $0x140] sm:$0xff]  ;;  %143 = vmatprep.subr.mxu1 %v88_v20  ;;  %v94_v13 = vld [vmem:[%s10498_s1 + $0x178] sm:$0xff] }
   0xd   :  { %v84_v24 = vld [vmem:[%s10498_s1 + $0x128] sm:$0xff]  ;;  %565 = vmatpush1.msra.mxu0 %v403_v21  ;;  %v83_v26 = vld [vmem:[%s10498_s1 + $0x120] sm:$0xff]  ;;  %144 = vmatpush1.msra.mxu1 %v87_v22  ;;  %v93_v14 = vld [vmem:[%s10498_s1 + $0x170] sm:$0xff] }
   0xe   :  { %v396_v27 = vld [vmem:[%s10499_s2 + $0x128] sm:$0xff]  ;;  %566 = vmatprep.subr.mxu0 %v400_v23  ;;  %v395_v29 = vld [vmem:[%s10499_s2 + $0x120] sm:$0xff]  ;;  %145 = vmatprep.subr.mxu1 %v84_v24  ;;  %v90_v15 = vld [vmem:[%s10498_s1 + $0x158] sm:$0xff] }
   0xf   :  { %v80_v28 = vld [vmem:[%s10498_s1 + $0x108] sm:$0xff]  ;;  %567 = vmatpush1.msra.mxu0 %v399_v25  ;;  %v79_v30 = vld [vmem:[%s10498_s1 + $0x100] sm:$0xff]  ;;  %146 = vmatpush1.msra.mxu1 %v83_v26  ;;  %v89_v16 = vld [vmem:[%s10498_s1 + $0x150] sm:$0xff] }
  0x10   :  { %v392_v31 = vld [vmem:[%s10499_s2 + $0x108] sm:$0xff]  ;;  %568 = vmatprep.subr.mxu0 %v396_v27  ;;  %v391_v33 = vld [vmem:[%s10499_s2 + $0x100] sm:$0xff]  ;;  %147 = vmatprep.subr.mxu1 %v80_v28  ;;  %v4746_v17 = vld [vmem:[%s10500_s0 + $0x18] sm:$0xff] }
  0x11   :  { %v76_v32 = vld [vmem:[%s10498_s1 + $0xe8] sm:$0xff]  ;;  %569 = vmatpush1.msra.mxu0 %v395_v29  ;;  %v75_v34 = vld [vmem:[%s10498_s1 + $0xe0] sm:$0xff]  ;;  %148 = vmatpush1.msra.mxu1 %v79_v30  ;;  %v86_v18 = vld [vmem:[%s10498_s1 + $0x138] sm:$0xff] }
  0x12   :  { %v388_v35 = vld [vmem:[%s10499_s2 + $0xe8] sm:$0xff]  ;;  %570 = vmatprep.subr.mxu0 %v392_v31  ;;  %v387_v37 = vld [vmem:[%s10499_s2 + $0xe0] sm:$0xff]  ;;  %149 = vmatprep.subr.mxu1 %v76_v32  ;;  %v85_v19 = vld [vmem:[%s10498_s1 + $0x130] sm:$0xff] }
  0x13   :  { %v72_v36 = vld [vmem:[%s10498_s1 + $0xc8] sm:$0xff]  ;;  %571 = vmatpush1.msra.mxu0 %v391_v33  ;;  %v71_v38 = vld [vmem:[%s10498_s1 + $0xc0] sm:$0xff]  ;;  %150 = vmatpush1.msra.mxu1 %v75_v34  ;;  %v82_v20 = vld [vmem:[%s10498_s1 + $0x118] sm:$0xff] }
  0x14   :  { %v384_v39 = vld [vmem:[%s10499_s2 + $0xc8] sm:$0xff]  ;;  %572 = vmatprep.subr.mxu0 %v388_v35  ;;  %v383_v41 = vld [vmem:[%s10499_s2 + $0xc0] sm:$0xff]  ;;  %151 = vmatprep.subr.mxu1 %v72_v36  ;;  %v81_v21 = vld [vmem:[%s10498_s1 + $0x110] sm:$0xff] }
  0x15   :  { %v68_v40 = vld [vmem:[%s10498_s1 + $0xa8] sm:$0xff]  ;;  %573 = vmatpush1.msra.mxu0 %v387_v37  ;;  %v67_v42 = vld [vmem:[%s10498_s1 + $0xa0] sm:$0xff]  ;;  %152 = vmatpush1.msra.mxu1 %v71_v38  ;;  %v78_v23 = vld [vmem:[%s10498_s1 + $0xf8] sm:$0xff] }
  0x16   :  { %v380_v43 = vld [vmem:[%s10499_s2 + $0xa8] sm:$0xff]  ;;  %574 = vmatprep.subr.mxu0 %v384_v39  ;;  %v379_v45 = vld [vmem:[%s10499_s2 + $0xa0] sm:$0xff]  ;;  %153 = vmatprep.subr.mxu1 %v68_v40  ;;  %v77_v24 = vld [vmem:[%s10498_s1 + $0xf0] sm:$0xff] }
  0x17   :  { %v64_v44 = vld [vmem:[%s10498_s1 + $0x88] sm:$0xff]  ;;  %575 = vmatpush1.msra.mxu0 %v383_v41  ;;  %v63_v46 = vld [vmem:[%s10498_s1 + $0x80] sm:$0xff]  ;;  %154 = vmatpush1.msra.mxu1 %v67_v42  ;;  %v74_v25 = vld [vmem:[%s10498_s1 + $0xd8] sm:$0xff] }
  0x18   :  { %v376_v47 = vld [vmem:[%s10499_s2 + $0x88] sm:$0xff]  ;;  %576 = vmatprep.subr.mxu0 %v380_v43  ;;  %v375_v49 = vld [vmem:[%s10499_s2 + $0x80] sm:$0xff]  ;;  %155 = vmatprep.subr.mxu1 %v64_v44  ;;  %v73_v26 = vld [vmem:[%s10498_s1 + $0xd0] sm:$0xff] }
  0x19   :  { %v60_v48 = vld [vmem:[%s10498_s1 + $0x68] sm:$0xff]  ;;  %577 = vmatpush1.msra.mxu0 %v379_v45  ;;  %v59_v50 = vld [vmem:[%s10498_s1 + $0x60] sm:$0xff]  ;;  %156 = vmatpush1.msra.mxu1 %v63_v46  ;;  %v70_v28 = vld [vmem:[%s10498_s1 + $0xb8] sm:$0xff] }
  0x1a   :  { %v372_v51 = vld [vmem:[%s10499_s2 + $0x68] sm:$0xff]  ;;  %578 = vmatprep.subr.mxu0 %v376_v47  ;;  %v371_v53 = vld [vmem:[%s10499_s2 + $0x60] sm:$0xff]  ;;  %157 = vmatprep.subr.mxu1 %v60_v48  ;;  %v69_v29 = vld [vmem:[%s10498_s1 + $0xb0] sm:$0xff] }
  0x1b   :  { %v56_v52 = vld [vmem:[%s10498_s1 + $0x48] sm:$0xff]  ;;  %579 = vmatpush1.msra.mxu0 %v375_v49  ;;  %v55_v54 = vld [vmem:[%s10498_s1 + $0x40] sm:$0xff]  ;;  %158 = vmatpush1.msra.mxu1 %v59_v50  ;;  %v66_v30 = vld [vmem:[%s10498_s1 + $0x98] sm:$0xff] }
  0x1c   :  { %v368_v55 = vld [vmem:[%s10499_s2 + $0x48] sm:$0xff]  ;;  %580 = vmatprep.subr.mxu0 %v372_v51  ;;  %v367_v57 = vld [vmem:[%s10499_s2 + $0x40] sm:$0xff]  ;;  %159 = vmatprep.subr.mxu1 %v56_v52  ;;  %v65_v31 = vld [vmem:[%s10498_s1 + $0x90] sm:$0xff] }
  0x1d   :  { %v52_v56 = vld [vmem:[%s10498_s1 + $0x28] sm:$0xff]  ;;  %581 = vmatpush1.msra.mxu0 %v371_v53  ;;  %v51_v58 = vld [vmem:[%s10498_s1 + $0x20] sm:$0xff]  ;;  %160 = vmatpush1.msra.mxu1 %v55_v54  ;;  %v4803_v32 = vld [vmem:[%s10500_s0 + $0x30] sm:$0xff] }
  0x1e   :  { %v364_v59 = vld [vmem:[%s10499_s2 + $0x28] sm:$0xff]  ;;  %582 = vmatprep.subr.mxu0 %v368_v55  ;;  %v363_v61 = vld [vmem:[%s10499_s2 + $0x20] sm:$0xff]  ;;  %161 = vmatprep.subr.mxu1 %v52_v56  ;;  %v62_v33 = vld [vmem:[%s10498_s1 + $0x78] sm:$0xff] }
  0x1f   :  { %v48_v60 = vld [vmem:[%s10498_s1 + $0x8] sm:$0xff]  ;;  %583 = vmatpush1.msra.mxu0 %v367_v57  ;;  %v47_v62 = vld [vmem:[%s10498_s1] sm:$0xff]  ;;  %162 = vmatpush1.msra.mxu1 %v51_v58  ;;  %v61_v34 = vld [vmem:[%s10498_s1 + $0x70] sm:$0xff] }
  0x20   :  { %v360_v63 = vld [vmem:[%s10499_s2 + $0x8] sm:$0xff]  ;;  %584 = vmatprep.subr.mxu0 %v364_v59  ;;  %v4684_v0 = vld [vmem:[%s10500_s0] sm:$0xff]  ;;  %163 = vmatprep.subr.mxu1 %v48_v60  ;;  %v58_v35 = vld [vmem:[%s10498_s1 + $0x58] sm:$0xff] }
  0x21   :  { %585 = vmatpush1.msra.mxu0 %v363_v61  ;;  %v359_v4 = vld [vmem:[%s10499_s2] sm:$0xff]  ;;  %164 = vmatpush1.msra.mxu1 %v47_v62  ;;  %v4705_v7 = vld [vmem:[%s10500_s0 + $0x8] sm:$0xff]  ;;  %v57_v36 = vld [vmem:[%s10498_s1 + $0x50] sm:$0xff] }
  0x22   :  { %586 = vmatprep.subr.mxu0 %v360_v63  ;;  %198 = vmatmul.mubr.f32.vlgmr.msra.gmra.mxu1 %v4684_v0  ;;  %v4765_v22 = vld [vmem:[%s10500_s0 + $0x20] sm:$0xff]  ;;  %v4784_v27 = vld [vmem:[%s10500_s0 + $0x28] sm:$0xff]  ;;  %v4822_v37 = vld [vmem:[%s10500_s0 + $0x38] sm:$0xff] }
  0x23   :  { %246 = vmatprep.subr.mxu1 %v110_v1  ;;  %587 = vmatpush1.msra.mxu0 %v359_v4  ;;  %v54_v38 = vld [vmem:[%s10498_s1 + $0x38] sm:$0xff]  ;;  %v53_v39 = vld [vmem:[%s10498_s1 + $0x30] sm:$0xff] }
  0x24   :  { %247 = vmatpush1.msra.mxu1 %v109_v2  ;;  %621 = vmatmul.mubr.f32.vlgmr.msra.gmra.mxu0 %v10508_v3  ;;  %v50_v40 = vld [vmem:[%s10498_s1 + $0x18] sm:$0xff]  ;;  %v49_v41 = vld [vmem:[%s10498_s1 + $0x10] sm:$0xff] }
  0x25   :  { %248 = vmatprep.subr.mxu1 %v106_v5  ;;  %203 = vmatprep.mubr.f32.mxu1 %v10508_v3  ;;  %v4841_v42 = vld [vmem:[%s10499_s2 + $0x1f8] sm:$0xff]  ;;  %v4846_v43 = vld [vmem:[%s10499_s2 + $0x1f0] sm:$0xff] }
  0x26   :  { %249 = vmatpush1.msra.mxu1 %v105_v6  ;;  %811 = vmatprep.mubr.f32.mxu0 %v10508_v3  ;;  %v4851_v44 = vld [vmem:[%s10499_s2 + $0x1d8] sm:$0xff]  ;;  %v4858_v45 = vld [vmem:[%s10499_s2 + $0x1d0] sm:$0xff] }
  0x27   :  { %204 = vmatmul.mubr.f32.gmra.mxu1 %v4705_v7  ;;  %250 = vmatprep.subr.mxu1 %v102_v8  ;;  %v4865_v46 = vld [vmem:[%s10499_s2 + $0x1b8] sm:$0xff]  ;;  %v4871_v47 = vld [vmem:[%s10499_s2 + $0x1b0] sm:$0xff] }
  0x28   :  { %251 = vmatpush1.msra.mxu1 %v101_v9  ;;  %209 = vmatprep.mubr.f32.mxu1 %v10508_v3  ;;  %v4877_v48 = vld [vmem:[%s10499_s2 + $0x198] sm:$0xff]  ;;  %v4884_v49 = vld [vmem:[%s10499_s2 + $0x190] sm:$0xff] }
  0x29   :  { %252 = vmatprep.subr.mxu1 %v98_v10  ;;  %v4891_v50 = vld [vmem:[%s10499_s2 + $0x178] sm:$0xff]  ;;  %v4897_v51 = vld [vmem:[%s10499_s2 + $0x170] sm:$0xff] }
  0x2a   :  { %253 = vmatpush1.msra.mxu1 %v97_v11  ;;  %v4903_v52 = vld [vmem:[%s10499_s2 + $0x158] sm:$0xff]  ;;  %v4910_v53 = vld [vmem:[%s10499_s2 + $0x150] sm:$0xff]  ;;  %v5051_v11 = vld [vmem:[%s10501_s4 + $0x1e8] sm:$0xff] }
  0x2b   :  { %210 = vmatmul.mubr.f32.gmra.mxu1 %v4726_v12  ;;  %254 = vmatprep.subr.mxu1 %v94_v13  ;;  %v4917_v54 = vld [vmem:[%s10499_s2 + $0x138] sm:$0xff]  ;;  %v4923_v55 = vld [vmem:[%s10499_s2 + $0x130] sm:$0xff]  ;;  %v5063_v13 = vld [vmem:[%s10501_s4 + $0x1e0] sm:$0xff] }
  0x2c   :  { %255 = vmatpush1.msra.mxu1 %v93_v14  ;;  %215 = vmatprep.mubr.f32.mxu1 %v10508_v3  ;;  %v4929_v56 = vld [vmem:[%s10499_s2 + $0x118] sm:$0xff]  ;;  %v4936_v57 = vld [vmem:[%s10499_s2 + $0x110] sm:$0xff] }
  0x2d   :  { %256 = vmatprep.subr.mxu1 %v90_v15  ;;  %v4943_v58 = vld [vmem:[%s10499_s2 + $0xf8] sm:$0xff]  ;;  %v4949_v59 = vld [vmem:[%s10499_s2 + $0xf0] sm:$0xff]  ;;  %747 = vmatprep.subr.mxu0 %v5051_v11  ;;  %v5075_v15 = vld [vmem:[%s10501_s4 + $0x1c8] sm:$0xff] }
  0x2e   :  { %257 = vmatpush1.msra.mxu1 %v89_v16  ;;  %v4955_v60 = vld [vmem:[%s10499_s2 + $0xd8] sm:$0xff]  ;;  %v4962_v61 = vld [vmem:[%s10499_s2 + $0xd0] sm:$0xff]  ;;  %748 = vmatpush1.msra.mxu0 %v5063_v13 }
  0x2f   :  { %216 = vmatmul.mubr.f32.gmra.mxu1 %v4746_v17  ;;  %258 = vmatprep.subr.mxu1 %v86_v18  ;;  %v4969_v62 = vld [vmem:[%s10499_s2 + $0xb8] sm:$0xff]  ;;  %v4975_v63 = vld [vmem:[%s10499_s2 + $0xb0] sm:$0xff] }
  0x30   :  { %259 = vmatpush1.msra.mxu1 %v85_v19  ;;  %221 = vmatprep.mubr.f32.mxu1 %v10508_v3  ;;  %v4988_v1 = vld [vmem:[%s10499_s2 + $0x90] sm:$0xff]  ;;  %v4995_v2 = vld [vmem:[%s10499_s2 + $0x78] sm:$0xff]  ;;  %v5099_v19 = vld [vmem:[%s10501_s4 + $0x1a8] sm:$0xff] }
  0x31   :  { %260 = vmatprep.subr.mxu1 %v82_v20  ;;  %v5001_v4 = vld [vmem:[%s10499_s2 + $0x70] sm:$0xff]  ;;  %v5007_v5 = vld [vmem:[%s10499_s2 + $0x58] sm:$0xff]  ;;  %749 = vmatprep.subr.mxu0 %v5075_v15 }
  0x32   :  { %261 = vmatpush1.msra.mxu1 %v81_v21  ;;  %v5014_v6 = vld [vmem:[%s10499_s2 + $0x50] sm:$0xff]  ;;  %v5033_v9 = vld [vmem:[%s10499_s2 + $0x18] sm:$0xff]  ;;  %v5111_v21 = vld [vmem:[%s10501_s4 + $0x1a0] sm:$0xff] }
  0x33   :  { %222 = vmatmul.mubr.f32.gmra.mxu1 %v4765_v22  ;;  %262 = vmatprep.subr.mxu1 %v78_v23  ;;  %v5027_v8 = vld [vmem:[%s10499_s2 + $0x30] sm:$0xff]  ;;  %v5080_v16 = vld [vmem:[%s10501_s4 + $0x1d8] sm:$0xff]  ;;  %11007 = vst [vmem:[#allocation8_spill] sm:$0xff] %v5111_v21  ;;  %v5123_v23 = vld [vmem:[%s10501_s4 + $0x188] sm:$0xff] }
  0x34   :  { %263 = vmatpush1.msra.mxu1 %v77_v24  ;;  %227 = vmatprep.mubr.f32.mxu1 %v10508_v3  ;;  %v5040_v10 = vld [vmem:[%s10499_s2 + $0x10] sm:$0xff]  ;;  %v5104_v20 = vld [vmem:[%s10501_s4 + $0x1b8] sm:$0xff]  ;;  %11009 = vst [vmem:[#allocation10_spill] sm:$0xff] %v5123_v23 }
  0x35   :  { %264 = vmatprep.subr.mxu1 %v74_v25  ;;  %v5068_v14 = vld [vmem:[%s10501_s4 + $0x1f0] sm:$0xff]  ;;  %11006 = vst [vmem:[#allocation7_spill] sm:$0xff] %v5104_v20  ;;  %v5128_v24 = vld [vmem:[%s10501_s4 + $0x198] sm:$0xff]  ;;  %v5135_v25 = vld [vmem:[%s10501_s4 + $0x180] sm:$0xff] }
  0x36   :  { %265 = vmatpush1.msra.mxu1 %v73_v26  ;;  %v5092_v18 = vld [vmem:[%s10501_s4 + $0x1d0] sm:$0xff]  ;;  %11010 = vst [vmem:[#allocation11_spill] sm:$0xff] %v5128_v24  ;;  %11011 = vst [vmem:[#allocation12_spill] sm:$0xff] %v5135_v25 }
  0x37   :  { %228 = vmatmul.mubr.f32.gmra.mxu1 %v4784_v27  ;;  %266 = vmatprep.subr.mxu1 %v70_v28  ;;  %v5140_v26 = vld [vmem:[%s10501_s4 + $0x190] sm:$0xff]  ;;  %v5152_v28 = vld [vmem:[%s10501_s4 + $0x178] sm:$0xff] }
  0x38   :  { %267 = vmatpush1.msra.mxu1 %v69_v29  ;;  %233 = vmatprep.mubr.f32.mxu1 %v10508_v3  ;;  %11012 = vst [vmem:[#allocation13_spill] sm:$0xff] %v5140_v26  ;;  %11014 = vst [vmem:[#allocation15_spill] sm:$0xff] %v5152_v28  ;;  %v5159_v29 = vld [vmem:[%s10501_s4 + $0x160] sm:$0xff] }
  0x39   :  { %268 = vmatprep.subr.mxu1 %v66_v30  ;;  %11015 = vst [vmem:[#allocation16_spill] sm:$0xff] %v5159_v29  ;;  %v5164_v30 = vld [vmem:[%s10501_s4 + $0x170] sm:$0xff] }
  0x3a   :  { %269 = vmatpush1.msra.mxu1 %v65_v31  ;;  %11016 = vst [vmem:[#allocation17_spill] sm:$0xff] %v5164_v30  ;;  %v5171_v31 = vld [vmem:[%s10501_s4 + $0x148] sm:$0xff] }
  0x3b   :  { %234 = vmatmul.mubr.f32.gmra.mxu1 %v4803_v32  ;;  %270 = vmatprep.subr.mxu1 %v62_v33  ;;  %11017 = vst [vmem:[#allocation18_spill] sm:$0xff] %v5171_v31  ;;  %v5183_v33 = vld [vmem:[%s10501_s4 + $0x140] sm:$0xff] }
  0x3c   :  { %271 = vmatpush1.msra.mxu1 %v61_v34  ;;  %239 = vmatprep.mubr.f32.mxu1 %v10508_v3  ;;  %11019 = vst [vmem:[#allocation20_spill] sm:$0xff] %v5183_v33  ;;  %v5188_v34 = vld [vmem:[%s10501_s4 + $0x150] sm:$0xff] }
  0x3d   :  { %272 = vmatprep.subr.mxu1 %v58_v35  ;;  %11020 = vst [vmem:[#allocation21_spill] sm:$0xff] %v5188_v34  ;;  %v5195_v35 = vld [vmem:[%s10501_s4 + $0x128] sm:$0xff] }
  0x3e   :  { %273 = vmatpush1.msra.mxu1 %v57_v36  ;;  %11021 = vst [vmem:[#allocation22_spill] sm:$0xff] %v5195_v35  ;;  %v5200_v36 = vld [vmem:[%s10501_s4 + $0x138] sm:$0xff] }
  0x3f   :  { %240 = vmatmul.mubr.f32.gmra.mxu1 %v4822_v37  ;;  %274 = vmatprep.subr.mxu1 %v54_v38  ;;  %11022 = vst [vmem:[#allocation23_spill] sm:$0xff] %v5200_v36  ;;  %v5212_v38 = vld [vmem:[%s10501_s4 + $0x130] sm:$0xff] }
  0x40   :  { %275 = vmatpush1.msra.mxu1 %v53_v39  ;;  %310 = vmatprep.mubr.f32.mxu1 %v10508_v3  ;;  %11024 = vst [vmem:[#allocation25_spill] sm:$0xff] %v5212_v38  ;;  %v5219_v39 = vld [vmem:[%s10501_s4 + $0x108] sm:$0xff] }
  0x41   :  { %276 = vmatprep.subr.mxu1 %v50_v40  ;;  %11025 = vst [vmem:[#allocation26_spill] sm:$0xff] %v5219_v39  ;;  %v5224_v40 = vld [vmem:[%s10501_s4 + $0x118] sm:$0xff] }
  0x42   :  { %277 = vmatpush1.msra.mxu1 %v49_v41  ;;  %11026 = vst [vmem:[#allocation27_spill] sm:$0xff] %v5224_v40  ;;  %v5231_v41 = vld [vmem:[%s10501_s4 + $0x100] sm:$0xff] }
  0x43   :  { %311 = vmatmul.mubr.f32.vlgmr.msra.gmra.mxu1 %v4684_v0  ;;  %627 = vmatprep.subr.mxu1 %v4841_v42  ;;  %v4981_v0 = vld [vmem:[%s10499_s2 + $0x98] sm:$0xff]  ;;  %11027 = vst [vmem:[#allocation28_spill] sm:$0xff] %v5231_v41 }
  0x44   :  { %628 = vmatpush1.msra.mxu1 %v4846_v43  ;;  %316 = vmatprep.mubr.f32.mxu1 %v10508_v3 }
  0x45   :  { %629 = vmatprep.subr.mxu1 %v4851_v44 }
  0x46   :  { %630 = vmatpush1.msra.mxu1 %v4858_v45 }
  0x47   :  { %317 = vmatmul.mubr.f32.gmra.mxu1 %v4705_v7  ;;  %631 = vmatprep.subr.mxu1 %v4865_v46  ;;  %v5021_v7 = vld [vmem:[%s10499_s2 + $0x38] sm:$0xff] }
  0x48   :  { %632 = vmatpush1.msra.mxu1 %v4871_v47  ;;  %322 = vmatprep.mubr.f32.mxu1 %v10508_v3 }
  0x49   :  { %633 = vmatprep.subr.mxu1 %v4877_v48 }
  0x4a   :  { %634 = vmatpush1.msra.mxu1 %v4884_v49 }
  0x4b   :  { %323 = vmatmul.mubr.f32.gmra.mxu1 %v4726_v12  ;;  %635 = vmatprep.subr.mxu1 %v4891_v50  ;;  %v5056_v12 = vld [vmem:[%s10501_s4 + $0x1f8] sm:$0xff] }
  0x4c   :  { %636 = vmatpush1.msra.mxu1 %v4897_v51  ;;  %328 = vmatprep.mubr.f32.mxu1 %v10508_v3 }
  0x4d   :  { %637 = vmatprep.subr.mxu1 %v4903_v52 }
  0x4e   :  { %638 = vmatpush1.msra.mxu1 %v4910_v53 }
  0x4f   :  { %329 = vmatmul.mubr.f32.gmra.mxu1 %v4746_v17  ;;  %639 = vmatprep.subr.mxu1 %v4917_v54  ;;  %v5087_v17 = vld [vmem:[%s10501_s4 + $0x1c0] sm:$0xff] }
  0x50   :  { %640 = vmatpush1.msra.mxu1 %v4923_v55  ;;  %334 = vmatprep.mubr.f32.mxu1 %v10508_v3 }
  0x51   :  { %641 = vmatprep.subr.mxu1 %v4929_v56  ;;  %750 = vmatpush1.msra.mxu0 %v5087_v17 }
  0x52   :  { %642 = vmatpush1.msra.mxu1 %v4936_v57  ;;  %751 = vmatprep.subr.mxu0 %v5099_v19 }
  0x53   :  { %335 = vmatmul.mubr.f32.gmra.mxu1 %v4765_v22  ;;  %643 = vmatprep.subr.mxu1 %v4943_v58  ;;  %v5116_v22 = vld [vmem:[%s10501_s4 + $0x1b0] sm:$0xff] }
  0x54   :  { %644 = vmatpush1.msra.mxu1 %v4949_v59  ;;  %340 = vmatprep.mubr.f32.mxu1 %v10508_v3  ;;  %11008 = vst [vmem:[#allocation9_spill] sm:$0xff] %v5116_v22 }
  0x55   :  { %645 = vmatprep.subr.mxu1 %v4955_v60  ;;  %752 = vmatpush1.msra.mxu0 %v5111_v21 }
  0x56   :  { %646 = vmatpush1.msra.mxu1 %v4962_v61  ;;  %753 = vmatprep.subr.mxu0 %v5123_v23 }
  0x57   :  { %341 = vmatmul.mubr.f32.gmra.mxu1 %v4784_v27  ;;  %647 = vmatprep.subr.mxu1 %v4969_v62  ;;  %v5147_v27 = vld [vmem:[%s10501_s4 + $0x168] sm:$0xff] }
  0x58   :  { %648 = vmatpush1.msra.mxu1 %v4975_v63  ;;  %346 = vmatprep.mubr.f32.mxu1 %v10508_v3  ;;  %11013 = vst [vmem:[#allocation14_spill] sm:$0xff] %v5147_v27 }
  0x59   :  { %649 = vmatprep.subr.mxu1 %v4981_v0  ;;  %754 = vmatpush1.msra.mxu0 %v5135_v25 }
  0x5a   :  { %650 = vmatpush1.msra.mxu1 %v4988_v1  ;;  %755 = vmatprep.subr.mxu0 %v5147_v27 }
  0x5b   :  { %347 = vmatmul.mubr.f32.gmra.mxu1 %v4803_v32  ;;  %651 = vmatprep.subr.mxu1 %v4995_v2  ;;  %v5176_v32 = vld [vmem:[%s10501_s4 + $0x158] sm:$0xff] }
  0x5c   :  { %652 = vmatpush1.msra.mxu1 %v5001_v4  ;;  %352 = vmatprep.mubr.f32.mxu1 %v10508_v3  ;;  %11018 = vst [vmem:[#allocation19_spill] sm:$0xff] %v5176_v32 }
  0x5d   :  { %653 = vmatprep.subr.mxu1 %v5007_v5  ;;  %756 = vmatpush1.msra.mxu0 %v5159_v29 }
  0x5e   :  { %654 = vmatpush1.msra.mxu1 %v5014_v6  ;;  %757 = vmatprep.subr.mxu0 %v5171_v31 }
  0x5f   :  { %353 = vmatmul.mubr.f32.gmra.mxu1 %v4822_v37  ;;  %655 = vmatprep.subr.mxu1 %v5021_v7  ;;  %v5207_v37 = vld [vmem:[%s10501_s4 + $0x120] sm:$0xff] }
  0x60   :  { %656 = vmatpush1.msra.mxu1 %v5027_v8  ;;  %691 = vmatprep.mubr.f32.mxu1 %v10508_v3  ;;  %11023 = vst [vmem:[#allocation24_spill] sm:$0xff] %v5207_v37 }
  0x61   :  { %657 = vmatprep.subr.mxu1 %v5033_v9  ;;  %758 = vmatpush1.msra.mxu0 %v5183_v33 }
  0x62   :  { %658 = vmatpush1.msra.mxu1 %v5040_v10  ;;  %759 = vmatprep.subr.mxu0 %v5195_v35  ;;  %v5712_v35 = vld [vmem:[%s10501_s4 + $0x290] sm:$0xff] }
  0x63   :  { %692 = vmatmul.mubr.f32.vlgmr.msra.gmra.mxu1 %v10508_v3  ;;  %818 = vmatprep.subr.mxu1 %v5056_v12  ;;  %11108 = vst [vmem:[#allocation109_spill] sm:$0xff] %v5712_v35 }
  0x64   :  { %882 = vmatprep.mubr.f32.mxu1 %v10508_v3  ;;  %819 = vmatpush1.msra.mxu1 %v5068_v14  ;;  %v5236_v3 = vld [vmem:[%s10501_s4 + $0x110] sm:$0xff] }
  0x65   :  { %820 = vmatprep.subr.mxu1 %v5080_v16  ;;  %760 = vmatpush1.msra.mxu0 %v5207_v37  ;;  %11028 = vst [vmem:[#allocation29_spill] sm:$0xff] %v5236_v3  ;;  %v5678_v37 = vld [vmem:[%s10501_s4 + $0x2b8] sm:$0xff] }
  0x66   :  { %821 = vmatpush1.msra.mxu1 %v5092_v18  ;;  %761 = vmatprep.subr.mxu0 %v5219_v39  ;;  %v5243_v39 = vld [vmem:[%s10501_s4 + $0xe8] sm:$0xff]  ;;  %11102 = vst [vmem:[#allocation103_spill] sm:$0xff] %v5678_v37 }
  0x67   :  { %822 = vmatprep.subr.mxu1 %v5104_v20  ;;  %762 = vmatpush1.msra.mxu0 %v5231_v41  ;;  %11029 = vst [vmem:[#allocation30_spill] sm:$0xff] %v5243_v39  ;;  %v5255_v41 = vld [vmem:[%s10501_s4 + $0xe0] sm:$0xff] }
  0x68   :  { %823 = vmatpush1.msra.mxu1 %v5116_v22  ;;  %763 = vmatprep.subr.mxu0 %v5243_v39  ;;  %11031 = vst [vmem:[#allocation32_spill] sm:$0xff] %v5255_v41  ;;  %v5267_v39 = vld [vmem:[%s10501_s4 + $0xc8] sm:$0xff] }
  0x69   :  { %824 = vmatprep.subr.mxu1 %v5128_v24  ;;  %764 = vmatpush1.msra.mxu0 %v5255_v41  ;;  %11033 = vst [vmem:[#allocation34_spill] sm:$0xff] %v5267_v39  ;;  %v5279_v41 = vld [vmem:[%s10501_s4 + $0xc0] sm:$0xff] }
  0x6a   :  { %825 = vmatpush1.msra.mxu1 %v5140_v26  ;;  %765 = vmatprep.subr.mxu0 %v5267_v39  ;;  %11035 = vst [vmem:[#allocation36_spill] sm:$0xff] %v5279_v41  ;;  %v5291_v39 = vld [vmem:[%s10501_s4 + $0xa8] sm:$0xff] }
  0x6b   :  { %826 = vmatprep.subr.mxu1 %v5152_v28  ;;  %766 = vmatpush1.msra.mxu0 %v5279_v41  ;;  %11037 = vst [vmem:[#allocation38_spill] sm:$0xff] %v5291_v39  ;;  %v5303_v41 = vld [vmem:[%s10501_s4 + $0xa0] sm:$0xff] }
  0x6c   :  { %827 = vmatpush1.msra.mxu1 %v5164_v30  ;;  %767 = vmatprep.subr.mxu0 %v5291_v39  ;;  %11039 = vst [vmem:[#allocation40_spill] sm:$0xff] %v5303_v41  ;;  %v5315_v39 = vld [vmem:[%s10501_s4 + $0x88] sm:$0xff] }
  0x6d   :  { %828 = vmatprep.subr.mxu1 %v5176_v32  ;;  %768 = vmatpush1.msra.mxu0 %v5303_v41  ;;  %11041 = vst [vmem:[#allocation42_spill] sm:$0xff] %v5315_v39  ;;  %v5327_v41 = vld [vmem:[%s10501_s4 + $0x80] sm:$0xff] }
  0x6e   :  { %829 = vmatpush1.msra.mxu1 %v5188_v34  ;;  %769 = vmatprep.subr.mxu0 %v5315_v39  ;;  %11043 = vst [vmem:[#allocation44_spill] sm:$0xff] %v5327_v41  ;;  %v5339_v39 = vld [vmem:[%s10501_s4 + $0x68] sm:$0xff] }
  0x6f   :  { %830 = vmatprep.subr.mxu1 %v5200_v36  ;;  %770 = vmatpush1.msra.mxu0 %v5327_v41  ;;  %11045 = vst [vmem:[#allocation46_spill] sm:$0xff] %v5339_v39  ;;  %v5351_v41 = vld [vmem:[%s10501_s4 + $0x60] sm:$0xff]  ;;  %v5695_v36 = vld [vmem:[%s10501_s4 + $0x288] sm:$0xff] }
  0x70   :  { %831 = vmatpush1.msra.mxu1 %v5212_v38  ;;  %771 = vmatprep.subr.mxu0 %v5339_v39  ;;  %11047 = vst [vmem:[#allocation48_spill] sm:$0xff] %v5351_v41  ;;  %v5363_v39 = vld [vmem:[%s10501_s4 + $0x48] sm:$0xff]  ;;  %v5661_v38 = vld [vmem:[%s10501_s4 + $0x2c0] sm:$0xff]  ;;  %11105 = vst [vmem:[#allocation106_spill] sm:$0xff] %v5695_v36 }
  0x71   :  { %832 = vmatprep.subr.mxu1 %v5224_v40  ;;  %v5248_v40 = vld [vmem:[%s10501_s4 + $0xf8] sm:$0xff]  ;;  %772 = vmatpush1.msra.mxu0 %v5351_v41  ;;  %11049 = vst [vmem:[#allocation50_spill] sm:$0xff] %v5363_v39  ;;  %v5375_v41 = vld [vmem:[%s10501_s4 + $0x40] sm:$0xff]  ;;  %11099 = vst [vmem:[#allocation100_spill] sm:$0xff] %v5661_v38 }
  0x72   :  { %833 = vmatpush1.msra.mxu1 %v5236_v3  ;;  %11030 = vst [vmem:[#allocation31_spill] sm:$0xff] %v5248_v40  ;;  %v5260_v3 = vld [vmem:[%s10501_s4 + $0xf0] sm:$0xff]  ;;  %773 = vmatprep.subr.mxu0 %v5363_v39  ;;  %11051 = vst [vmem:[#allocation52_spill] sm:$0xff] %v5375_v41  ;;  %v5387_v39 = vld [vmem:[%s10501_s4 + $0x28] sm:$0xff] }
  0x73   :  { %834 = vmatprep.subr.mxu1 %v5248_v40  ;;  %11032 = vst [vmem:[#allocation33_spill] sm:$0xff] %v5260_v3  ;;  %v5272_v40 = vld [vmem:[%s10501_s4 + $0xd8] sm:$0xff]  ;;  %774 = vmatpush1.msra.mxu0 %v5375_v41  ;;  %11053 = vst [vmem:[#allocation54_spill] sm:$0xff] %v5387_v39  ;;  %v5399_v41 = vld [vmem:[%s10501_s4 + $0x20] sm:$0xff] }
  0x74   :  { %835 = vmatpush1.msra.mxu1 %v5260_v3  ;;  %11034 = vst [vmem:[#allocation35_spill] sm:$0xff] %v5272_v40  ;;  %v5284_v3 = vld [vmem:[%s10501_s4 + $0xd0] sm:$0xff]  ;;  %775 = vmatprep.subr.mxu0 %v5387_v39  ;;  %11055 = vst [vmem:[#allocation56_spill] sm:$0xff] %v5399_v41  ;;  %v5411_v39 = vld [vmem:[%s10501_s4 + $0x8] sm:$0xff] }
  0x75   :  { %836 = vmatprep.subr.mxu1 %v5272_v40  ;;  %11036 = vst [vmem:[#allocation37_spill] sm:$0xff] %v5284_v3  ;;  %v5296_v40 = vld [vmem:[%s10501_s4 + $0xb8] sm:$0xff]  ;;  %776 = vmatpush1.msra.mxu0 %v5399_v41  ;;  %11057 = vst [vmem:[#allocation58_spill] sm:$0xff] %v5411_v39  ;;  %v5423_v41 = vld [vmem:[%s10501_s4] sm:$0xff] }
  0x76   :  { %837 = vmatpush1.msra.mxu1 %v5284_v3  ;;  %11038 = vst [vmem:[#allocation39_spill] sm:$0xff] %v5296_v40  ;;  %v5308_v3 = vld [vmem:[%s10501_s4 + $0xb0] sm:$0xff]  ;;  %777 = vmatprep.subr.mxu0 %v5411_v39  ;;  %11059 = vst [vmem:[#allocation60_spill] sm:$0xff] %v5423_v41  ;;  %v5435_v39 = vld [vmem:[%s10501_s4 + $0x3e8] sm:$0xff] }
  0x77   :  { %838 = vmatprep.subr.mxu1 %v5296_v40  ;;  %11040 = vst [vmem:[#allocation41_spill] sm:$0xff] %v5308_v3  ;;  %v5320_v40 = vld [vmem:[%s10501_s4 + $0x98] sm:$0xff]  ;;  %778 = vmatpush1.msra.mxu0 %v5423_v41  ;;  %11061 = vst [vmem:[#allocation62_spill] sm:$0xff] %v5435_v39  ;;  %v5447_v41 = vld [vmem:[%s10501_s4 + $0x3e0] sm:$0xff] }
  0x78   :  { %839 = vmatpush1.msra.mxu1 %v5308_v3  ;;  %11042 = vst [vmem:[#allocation43_spill] sm:$0xff] %v5320_v40  ;;  %v5332_v3 = vld [vmem:[%s10501_s4 + $0x90] sm:$0xff]  ;;  %779 = vmatprep.subr.mxu0 %v5435_v39  ;;  %11063 = vst [vmem:[#allocation64_spill] sm:$0xff] %v5447_v41  ;;  %v5459_v39 = vld [vmem:[%s10501_s4 + $0x3c8] sm:$0xff] }
  0x79   :  { %840 = vmatprep.subr.mxu1 %v5320_v40  ;;  %11044 = vst [vmem:[#allocation45_spill] sm:$0xff] %v5332_v3  ;;  %v5344_v40 = vld [vmem:[%s10501_s4 + $0x78] sm:$0xff]  ;;  %780 = vmatpush2.msra.mxu0 %v5447_v41  ;;  %11065 = vst [vmem:[#allocation66_spill] sm:$0xff] %v5459_v39  ;;  %v5471_v41 = vld [vmem:[%s10501_s4 + $0x3c0] sm:$0xff] }
  0x7a   :  { %841 = vmatpush1.msra.mxu1 %v5332_v3  ;;  %11046 = vst [vmem:[#allocation47_spill] sm:$0xff] %v5344_v40  ;;  %v5356_v3 = vld [vmem:[%s10501_s4 + $0x70] sm:$0xff]  ;;  %781 = vmatprep.subr.mxu0 %v5459_v39  ;;  %11067 = vst [vmem:[#allocation68_spill] sm:$0xff] %v5471_v41  ;;  %v5483_v39 = vld [vmem:[%s10501_s4 + $0x3a8] sm:$0xff] }
  0x7b   :  { %842 = vmatprep.subr.mxu1 %v5344_v40  ;;  %11048 = vst [vmem:[#allocation49_spill] sm:$0xff] %v5356_v3  ;;  %v5368_v40 = vld [vmem:[%s10501_s4 + $0x58] sm:$0xff]  ;;  %782 = vmatpush2.msra.mxu0 %v5471_v41  ;;  %11069 = vst [vmem:[#allocation70_spill] sm:$0xff] %v5483_v39  ;;  %v5495_v41 = vld [vmem:[%s10501_s4 + $0x3a0] sm:$0xff] }
  0x7c   :  { %843 = vmatpush1.msra.mxu1 %v5356_v3  ;;  %11050 = vst [vmem:[#allocation51_spill] sm:$0xff] %v5368_v40  ;;  %v5380_v3 = vld [vmem:[%s10501_s4 + $0x50] sm:$0xff]  ;;  %783 = vmatprep.subr.mxu0 %v5483_v39  ;;  %11071 = vst [vmem:[#allocation72_spill] sm:$0xff] %v5495_v41  ;;  %v5507_v39 = vld [vmem:[%s10501_s4 + $0x388] sm:$0xff] }
  0x7d   :  { %844 = vmatprep.subr.mxu1 %v5368_v40  ;;  %11052 = vst [vmem:[#allocation53_spill] sm:$0xff] %v5380_v3  ;;  %v5392_v40 = vld [vmem:[%s10501_s4 + $0x38] sm:$0xff]  ;;  %784 = vmatpush2.msra.mxu0 %v5495_v41  ;;  %11073 = vst [vmem:[#allocation74_spill] sm:$0xff] %v5507_v39  ;;  %v5519_v41 = vld [vmem:[%s10501_s4 + $0x380] sm:$0xff] }
  0x7e   :  { %845 = vmatpush1.msra.mxu1 %v5380_v3  ;;  %11054 = vst [vmem:[#allocation55_spill] sm:$0xff] %v5392_v40  ;;  %v5404_v3 = vld [vmem:[%s10501_s4 + $0x30] sm:$0xff]  ;;  %785 = vmatprep.subr.mxu0 %v5507_v39  ;;  %11075 = vst [vmem:[#allocation76_spill] sm:$0xff] %v5519_v41  ;;  %v5531_v39 = vld [vmem:[%s10501_s4 + $0x368] sm:$0xff] }
  0x7f   :  { %846 = vmatprep.subr.mxu1 %v5392_v40  ;;  %11056 = vst [vmem:[#allocation57_spill] sm:$0xff] %v5404_v3  ;;  %v5416_v40 = vld [vmem:[%s10501_s4 + $0x18] sm:$0xff]  ;;  %786 = vmatpush2.msra.mxu0 %v5519_v41  ;;  %11077 = vst [vmem:[#allocation78_spill] sm:$0xff] %v5531_v39  ;;  %v5543_v41 = vld [vmem:[%s10501_s4 + $0x360] sm:$0xff] }
  0x80   :  { %847 = vmatpush1.msra.mxu1 %v5404_v3  ;;  %11058 = vst [vmem:[#allocation59_spill] sm:$0xff] %v5416_v40  ;;  %v5428_v3 = vld [vmem:[%s10501_s4 + $0x10] sm:$0xff]  ;;  %787 = vmatprep.subr.mxu0 %v5531_v39  ;;  %11079 = vst [vmem:[#allocation80_spill] sm:$0xff] %v5543_v41  ;;  %v5555_v39 = vld [vmem:[%s10501_s4 + $0x348] sm:$0xff] }
  0x81   :  { %848 = vmatprep.subr.mxu1 %v5416_v40  ;;  %11060 = vst [vmem:[#allocation61_spill] sm:$0xff] %v5428_v3  ;;  %v5440_v40 = vld [vmem:[%s10501_s4 + $0x3f8] sm:$0xff]  ;;  %788 = vmatpush2.msra.mxu0 %v5543_v41  ;;  %11081 = vst [vmem:[#allocation82_spill] sm:$0xff] %v5555_v39  ;;  %v5567_v41 = vld [vmem:[%s10501_s4 + $0x340] sm:$0xff] }
  0x82   :  { %849 = vmatpush1.msra.mxu1 %v5428_v3  ;;  %11062 = vst [vmem:[#allocation63_spill] sm:$0xff] %v5440_v40  ;;  %v5452_v3 = vld [vmem:[%s10501_s4 + $0x3f0] sm:$0xff]  ;;  %789 = vmatprep.subr.mxu0 %v5555_v39  ;;  %11083 = vst [vmem:[#allocation84_spill] sm:$0xff] %v5567_v41  ;;  %v5579_v39 = vld [vmem:[%s10501_s4 + $0x328] sm:$0xff] }
  0x83   :  { %850 = vmatprep.subr.mxu1 %v5440_v40  ;;  %11064 = vst [vmem:[#allocation65_spill] sm:$0xff] %v5452_v3  ;;  %v5464_v40 = vld [vmem:[%s10501_s4 + $0x3d8] sm:$0xff]  ;;  %790 = vmatpush2.msra.mxu0 %v5567_v41  ;;  %11085 = vst [vmem:[#allocation86_spill] sm:$0xff] %v5579_v39  ;;  %v5591_v41 = vld [vmem:[%s10501_s4 + $0x320] sm:$0xff] }
  0x84   :  { %851 = vmatpush2.msra.mxu1 %v5452_v3  ;;  %11066 = vst [vmem:[#allocation67_spill] sm:$0xff] %v5464_v40  ;;  %v5476_v3 = vld [vmem:[%s10501_s4 + $0x3d0] sm:$0xff]  ;;  %791 = vmatprep.subr.mxu0 %v5579_v39  ;;  %11087 = vst [vmem:[#allocation88_spill] sm:$0xff] %v5591_v41  ;;  %v5603_v39 = vld [vmem:[%s10501_s4 + $0x308] sm:$0xff] }
  0x85   :  { %852 = vmatprep.subr.mxu1 %v5464_v40  ;;  %11068 = vst [vmem:[#allocation69_spill] sm:$0xff] %v5476_v3  ;;  %v5488_v40 = vld [vmem:[%s10501_s4 + $0x3b8] sm:$0xff]  ;;  %792 = vmatpush2.msra.mxu0 %v5591_v41  ;;  %11089 = vst [vmem:[#allocation90_spill] sm:$0xff] %v5603_v39  ;;  %v5615_v41 = vld [vmem:[%s10501_s4 + $0x300] sm:$0xff] }
  0x86   :  { %853 = vmatpush2.msra.mxu1 %v5476_v3  ;;  %11070 = vst [vmem:[#allocation71_spill] sm:$0xff] %v5488_v40  ;;  %v5500_v3 = vld [vmem:[%s10501_s4 + $0x3b0] sm:$0xff]  ;;  %793 = vmatprep.subr.mxu0 %v5603_v39  ;;  %11091 = vst [vmem:[#allocation92_spill] sm:$0xff] %v5615_v41  ;;  %v5627_v39 = vld [vmem:[%s10501_s4 + $0x2e8] sm:$0xff] }
  0x87   :  { %854 = vmatprep.subr.mxu1 %v5488_v40  ;;  %11072 = vst [vmem:[#allocation73_spill] sm:$0xff] %v5500_v3  ;;  %v5512_v40 = vld [vmem:[%s10501_s4 + $0x398] sm:$0xff]  ;;  %794 = vmatpush2.msra.mxu0 %v5615_v41  ;;  %11093 = vst [vmem:[#allocation94_spill] sm:$0xff] %v5627_v39  ;;  %v5639_v41 = vld [vmem:[%s10501_s4 + $0x2e0] sm:$0xff] }
  0x88   :  { %855 = vmatpush2.msra.mxu1 %v5500_v3  ;;  %11074 = vst [vmem:[#allocation75_spill] sm:$0xff] %v5512_v40  ;;  %v5524_v3 = vld [vmem:[%s10501_s4 + $0x390] sm:$0xff]  ;;  %795 = vmatprep.subr.mxu0 %v5627_v39  ;;  %11095 = vst [vmem:[#allocation96_spill] sm:$0xff] %v5639_v41  ;;  %v5651_v39 = vld [vmem:[%s10501_s4 + $0x2c8] sm:$0xff] }
  0x89   :  { %856 = vmatprep.subr.mxu1 %v5512_v40  ;;  %11076 = vst [vmem:[#allocation77_spill] sm:$0xff] %v5524_v3  ;;  %v5536_v40 = vld [vmem:[%s10501_s4 + $0x378] sm:$0xff]  ;;  %796 = vmatpush2.msra.mxu0 %v5639_v41  ;;  %11097 = vst [vmem:[#allocation98_spill] sm:$0xff] %v5651_v39  ;;  %v5673_v41 = vld [vmem:[%s10501_s4 + $0x2a8] sm:$0xff] }
  0x8a   :  { %857 = vmatpush2.msra.mxu1 %v5524_v3  ;;  %11078 = vst [vmem:[#allocation79_spill] sm:$0xff] %v5536_v40  ;;  %v5548_v3 = vld [vmem:[%s10501_s4 + $0x370] sm:$0xff]  ;;  %797 = vmatprep.subr.mxu0 %v5651_v39  ;;  %11101 = vst [vmem:[#allocation102_spill] sm:$0xff] %v5673_v41 }
  0x8b   :  { %858 = vmatprep.subr.mxu1 %v5536_v40  ;;  %11080 = vst [vmem:[#allocation81_spill] sm:$0xff] %v5548_v3  ;;  %v5560_v40 = vld [vmem:[%s10501_s4 + $0x358] sm:$0xff]  ;;  %798 = vmatpush2.msra.mxu0 %v5661_v38  ;;  %v5690_v39 = vld [vmem:[%s10501_s4 + $0x2b0] sm:$0xff]  ;;  %v5707_v38 = vld [vmem:[%s10501_s4 + $0x280] sm:$0xff] }
  0x8c   :  { %859 = vmatpush2.msra.mxu1 %v5548_v3  ;;  %11082 = vst [vmem:[#allocation83_spill] sm:$0xff] %v5560_v40  ;;  %v5572_v3 = vld [vmem:[%s10501_s4 + $0x350] sm:$0xff]  ;;  %11104 = vst [vmem:[#allocation105_spill] sm:$0xff] %v5690_v39  ;;  %799 = vmatprep.subr.mxu0 %v5673_v41  ;;  %v5724_v41 = vld [vmem:[%s10501_s4 + $0x278] sm:$0xff] }
  0x8d   :  { %860 = vmatprep.subr.mxu1 %v5560_v40  ;;  %11084 = vst [vmem:[#allocation85_spill] sm:$0xff] %v5572_v3  ;;  %v5584_v40 = vld [vmem:[%s10501_s4 + $0x338] sm:$0xff]  ;;  %11107 = vst [vmem:[#allocation108_spill] sm:$0xff] %v5707_v38 }
  0x8e   :  { %861 = vmatpush2.msra.mxu1 %v5572_v3  ;;  %11086 = vst [vmem:[#allocation87_spill] sm:$0xff] %v5584_v40  ;;  %v5596_v3 = vld [vmem:[%s10501_s4 + $0x330] sm:$0xff]  ;;  %11110 = vst [vmem:[#allocation111_spill] sm:$0xff] %v5724_v41 }
  0x8f   :  { %862 = vmatprep.subr.mxu1 %v5584_v40  ;;  %11088 = vst [vmem:[#allocation89_spill] sm:$0xff] %v5596_v3  ;;  %v5608_v40 = vld [vmem:[%s10501_s4 + $0x318] sm:$0xff] }
  0x90   :  { %863 = vmatpush2.msra.mxu1 %v5596_v3  ;;  %11090 = vst [vmem:[#allocation91_spill] sm:$0xff] %v5608_v40  ;;  %v5620_v3 = vld [vmem:[%s10501_s4 + $0x310] sm:$0xff] }
  0x91   :  { %864 = vmatprep.subr.mxu1 %v5608_v40  ;;  %11092 = vst [vmem:[#allocation93_spill] sm:$0xff] %v5620_v3  ;;  %v5632_v40 = vld [vmem:[%s10501_s4 + $0x2f8] sm:$0xff] }
  0x92   :  { %865 = vmatpush2.msra.mxu1 %v5620_v3  ;;  %11094 = vst [vmem:[#allocation95_spill] sm:$0xff] %v5632_v40  ;;  %v5644_v3 = vld [vmem:[%s10501_s4 + $0x2f0] sm:$0xff] }
  0x93   :  { %866 = vmatprep.subr.mxu1 %v5632_v40  ;;  %11096 = vst [vmem:[#allocation97_spill] sm:$0xff] %v5644_v3  ;;  %v5656_v40 = vld [vmem:[%s10501_s4 + $0x2d8] sm:$0xff] }
  0x94   :  { %867 = vmatpush2.msra.mxu1 %v5644_v3  ;;  %11098 = vst [vmem:[#allocation99_spill] sm:$0xff] %v5656_v40  ;;  %v5668_v3 = vld [vmem:[%s10501_s4 + $0x2d0] sm:$0xff] }
  0x95   :  { %868 = vmatprep.subr.mxu1 %v5656_v40  ;;  %11100 = vst [vmem:[#allocation101_spill] sm:$0xff] %v5668_v3  ;;  %v5685_v40 = vld [vmem:[%s10501_s4 + $0x2a0] sm:$0xff] }
  0x96   :  { %869 = vmatpush2.msra.mxu1 %v5668_v3  ;;  %11103 = vst [vmem:[#allocation104_spill] sm:$0xff] %v5685_v40  ;;  %v5702_v3 = vld [vmem:[%s10501_s4 + $0x298] sm:$0xff]  ;;  %800 = vmatpush2.msra.mxu0 %v5685_v40  ;;  %v5731_v40 = vld [vmem:[%s10501_s4 + $0x260] sm:$0xff] }
  0x97   :  { %870 = vmatprep.subr.mxu1 %v5678_v37  ;;  %11106 = vst [vmem:[#allocation107_spill] sm:$0xff] %v5702_v3  ;;  %v5719_v37 = vld [vmem:[%s10501_s4 + $0x268] sm:$0xff]  ;;  %801 = vmatprep.subr.mxu0 %v5695_v36  ;;  %11111 = vst [vmem:[#allocation112_spill] sm:$0xff] %v5731_v40 }
  0x98   :  { %871 = vmatpush2.msra.mxu1 %v5690_v39  ;;  %11109 = vst [vmem:[#allocation110_spill] sm:$0xff] %v5719_v37  ;;  %v5736_v39 = vld [vmem:[%s10501_s4 + $0x270] sm:$0xff]  ;;  %802 = vmatpush2.msra.mxu0 %v5707_v38  ;;  %v5743_v36 = vld [vmem:[%s10501_s4 + $0x248] sm:$0xff]  ;;  %v5755_v38 = vld [vmem:[%s10501_s4 + $0x240] sm:$0xff] }
  0x99   :  { %872 = vmatprep.subr.mxu1 %v5702_v3  ;;  %11112 = vst [vmem:[#allocation113_spill] sm:$0xff] %v5736_v39  ;;  %11113 = vst [vmem:[#allocation114_spill] sm:$0xff] %v5743_v36  ;;  %v5748_v3 = vld [vmem:[%s10501_s4 + $0x258] sm:$0xff]  ;;  %803 = vmatprep.subr.mxu0 %v5719_v37  ;;  %v5767_v37 = vld [vmem:[%s10501_s4 + $0x228] sm:$0xff] }
  0x9a   :  { %873 = vmatpush2.msra.mxu1 %v5712_v35  ;;  %11114 = vst [vmem:[#allocation115_spill] sm:$0xff] %v5748_v3  ;;  %11115 = vst [vmem:[#allocation116_spill] sm:$0xff] %v5755_v38  ;;  %v5760_v35 = vld [vmem:[%s10501_s4 + $0x250] sm:$0xff]  ;;  %804 = vmatpush2.msra.mxu0 %v5731_v40  ;;  %v5779_v40 = vld [vmem:[%s10501_s4 + $0x220] sm:$0xff] }
  0x9b   :  { %874 = vmatprep.subr.mxu1 %v5724_v41  ;;  %11116 = vst [vmem:[#allocation117_spill] sm:$0xff] %v5760_v35  ;;  %11117 = vst [vmem:[#allocation118_spill] sm:$0xff] %v5767_v37  ;;  %v5772_v41 = vld [vmem:[%s10501_s4 + $0x238] sm:$0xff]  ;;  %805 = vmatprep.subr.mxu0 %v5743_v36  ;;  %v5791_v36 = vld [vmem:[%s10501_s4 + $0x208] sm:$0xff] }
  0x9c   :  { %875 = vmatpush2.msra.mxu1 %v5736_v39  ;;  %11118 = vst [vmem:[#allocation119_spill] sm:$0xff] %v5772_v41  ;;  %11119 = vst [vmem:[#allocation120_spill] sm:$0xff] %v5779_v40  ;;  %v5784_v39 = vld [vmem:[%s10501_s4 + $0x230] sm:$0xff]  ;;  %806 = vmatpush2.msra.mxu0 %v5755_v38  ;;  %v5803_v38 = vld [vmem:[%s10501_s4 + $0x200] sm:$0xff] }
  0x9d   :  { %876 = vmatprep.subr.mxu1 %v5748_v3  ;;  %11120 = vst [vmem:[#allocation121_spill] sm:$0xff] %v5784_v39  ;;  %11121 = vst [vmem:[#allocation122_spill] sm:$0xff] %v5791_v36  ;;  %v5796_v3 = vld [vmem:[%s10501_s4 + $0x218] sm:$0xff]  ;;  %807 = vmatprep.subr.mxu0 %v5767_v37 }
  0x9e   :  { %877 = vmatpush2.msra.mxu1 %v5760_v35  ;;  %11122 = vst [vmem:[#allocation123_spill] sm:$0xff] %v5796_v3  ;;  %11123 = vst [vmem:[#allocation124_spill] sm:$0xff] %v5803_v38  ;;  %v5808_v35 = vld [vmem:[%s10501_s4 + $0x210] sm:$0xff]  ;;  %808 = vmatpush2.msra.mxu0 %v5779_v40  ;;  %v113_v40 = vlaneseq }
  0x9f   :  { %878 = vmatprep.subr.mxu1 %v5772_v41  ;;  %11124 = vst [vmem:[#allocation125_spill] sm:$0xff] %v5808_v35  ;;  %809 = vmatprep.subr.mxu0 %v5791_v36  ;;  %v5819_v41 = vld [vmem:[%s10499_s2 + $0x1e8] sm:$0xff] }
  0xa0   :  { %879 = vmatpush2.msra.mxu1 %v5784_v39  ;;  %810 = vmatpush2.msra.mxu0 %v5803_v38  ;;  %11125 = vst [vmem:[#allocation126_spill] sm:$0xff] %v5819_v41  ;;  %v5823_v37 = vshrl.u32 %v113_v40, 7  ;;  %v111_v38 = vld [vmem:[%s10502_s3] sm:$0xf] }
  0xa1   :  { %880 = vmatprep.subr.mxu1 %v5796_v3  ;;  %914 = vmatprep.subr.mxu0 %v5819_v41 }
  0xa2   :  { %881 = vmatpush2.msra.mxu1 %v5808_v35  ;;  %v10625_v36 = vsub.s32 0, %v5823_v37  ;;  %v10628_v35 = vsub.s32 1, %v5823_v37 }
  0xa3   :  { %985 = vmatprep.subr.mxu1 %v4841_v42 }
  0xa4   :  { %v116_v34 = vrot.slane %v111_v38, %v10625_v36  ;;  %v120_v42 = vrot.slane %v111_v38, %v10628_v35 }
  0xe2   :  { %v199_v3 = vpop.f32.mrf.mxu1 }
  0xe4   :  { %v201_v39 = vpop.f32.mrf.mxu1 }
  0xe7   :  { %v205_v33 = vpop.f32.mrf.mxu1 }
  0xe8   :  { %v5834_v41 = vadd.f32 %v205_v33, %v116_v34 }
  0xe9   :  { %v207_v40 = vpop.f32.mrf.mxu1 }
  0xea   :  { %11126 = vst [vmem:[#allocation127_spill] sm:$0xff] %v5834_v41  ;;  %v5836_v32 = vadd.f32 %v207_v40, %v120_v42 }
  0xeb   :  { %v211_v31 = vpop.f32.mrf.mxu1 }
  0xec   :  { %11127 = vst [vmem:[#allocation128_spill] sm:$0xff] %v5836_v32  ;;  %v5838_v30 = vadd.f32 %v211_v31, %v116_v34 }
  0xed   :  { %v213_v29 = vpop.f32.mrf.mxu1 }
  0xee   :  { %11128 = vst [vmem:[#allocation129_spill] sm:$0xff] %v5838_v30  ;;  %v5840_v28 = vadd.f32 %v213_v29, %v120_v42 }
  0xef   :  { %v217_v27 = vpop.f32.mrf.mxu1 }
  0xf0   :  { %11129 = vst [vmem:[#allocation130_spill] sm:$0xff] %v5840_v28  ;;  %v5842_v26 = vadd.f32 %v217_v27, %v116_v34 }
  0xf1   :  { %v219_v25 = vpop.f32.mrf.mxu1 }
  0xf2   :  { %11130 = vst [vmem:[#allocation131_spill] sm:$0xff] %v5842_v26  ;;  %v5844_v36 = vadd.f32 %v219_v25, %v120_v42 }
  0xf3   :  { %v223_v24 = vpop.f32.mrf.mxu1 }
  0xf4   :  { %11131 = vst [vmem:[#allocation132_spill] sm:$0xff] %v5844_v36  ;;  %v5846_v23 = vadd.f32 %v223_v24, %v116_v34  ;;  %v622_v24 = vpop.f32.mrf.mxu0 }
  0xf5   :  { %v225_v33 = vpop.f32.mrf.mxu1 }
  0xf6   :  { %11132 = vst [vmem:[#allocation133_spill] sm:$0xff] %v5846_v23  ;;  %v5848_v35 = vadd.f32 %v225_v33, %v120_v42  ;;  %v10632_v33 = vsub.s32 2, %v5823_v37 }
  0xf7   :  { %v229_v40 = vpop.f32.mrf.mxu1 }
  0xf8   :  { %11133 = vst [vmem:[#allocation134_spill] sm:$0xff] %v5848_v35  ;;  %v5850_v32 = vadd.f32 %v229_v40, %v116_v34  ;;  %v624_v35 = vpop.f32.mrf.mxu0 }
  0xf9   :  { %v231_v31 = vpop.f32.mrf.mxu1 }
  0xfa   :  { %11134 = vst [vmem:[#allocation135_spill] sm:$0xff] %v5850_v32  ;;  %v5852_v30 = vadd.f32 %v231_v31, %v120_v42  ;;  %v202_v32 = vadd.f32 %v201_v39, %v120_v42  ;;  %v10633_v31 = vsub.s32 3, %v5823_v37 }
  0xfb   :  { %v235_v29 = vpop.f32.mrf.mxu1 }
  0xfc   :  { %11135 = vst [vmem:[#allocation136_spill] sm:$0xff] %v5852_v30  ;;  %v5854_v28 = vadd.f32 %v235_v29, %v116_v34  ;;  %v200_v30 = vadd.f32 %v199_v3, %v116_v34 }
  0xfd   :  { %v237_v27 = vpop.f32.mrf.mxu1 }
  0xfe   :  { %11136 = vst [vmem:[#allocation137_spill] sm:$0xff] %v5854_v28  ;;  %v5856_v26 = vadd.f32 %v237_v27, %v120_v42  ;;  %v124_v27 = vrot.slane %v111_v38, %v10632_v33  ;;  %v699_v28 = vadd.f32 %v624_v35, %v202_v32 }
  0xff   :  { %v241_v25 = vpop.f32.mrf.mxu1 }
 0x100   :  { %11137 = vst [vmem:[#allocation138_spill] sm:$0xff] %v5856_v26  ;;  %v5858_v36 = vadd.f32 %v241_v25, %v116_v34  ;;  %v128_v25 = vrot.slane %v111_v38, %v10633_v31 }
 0x101   :  { %v243_v23 = vpop.f32.mrf.mxu1 }
 0x102   :  { %11138 = vst [vmem:[#allocation139_spill] sm:$0xff] %v5858_v36  ;;  %v5860_v41 = vadd.f32 %v243_v23, %v120_v42  ;;  %v698_v23 = vadd.f32 %v622_v24, %v200_v30  ;;  %v3453_v42 = vmul.f32 -1.442695, %v699_v28 }
 0x103   :  { %v312_v40 = vpop.f32.mrf.mxu1 }
 0x104   :  { %11139 = vst [vmem:[#allocation140_spill] sm:$0xff] %v5860_v41  ;;  %v3452_v3 = vmul.f32 -1.442695, %v698_v23  ;;  %3570 = vpow2.f32 %v3453_v42 }
 0x105   :  { %v314_v29 = vpop.f32.mrf.mxu1 }
 0x106   :  { %3572 = vpow2.f32 %v3452_v3 }
 0x107   :  { %v318_v26 = vpop.f32.mrf.mxu1 }
 0x108   :  { %v5868_v36 = vadd.f32 %v318_v26, %v124_v27 }
 0x109   :  { %v320_v41 = vpop.f32.mrf.mxu1 }
 0x10a   :  { %v5870_v22 = vadd.f32 %v320_v41, %v128_v25 }
 0x10b   :  { %v324_v39 = vpop.f32.mrf.mxu1 }
 0x10c   :  { %v5872_v21 = vadd.f32 %v324_v39, %v124_v27 }
 0x10d   :  { %v326_v34 = vpop.f32.mrf.mxu1 }
 0x10e   :  { %11140 = vst [vmem:[#allocation141_spill] sm:$0xff] %v5872_v21  ;;  %v5874_v20 = vadd.f32 %v326_v34, %v128_v25  ;;  %v313_v21 = vadd.f32 %v312_v40, %v124_v27 }
 0x10f   :  { %v330_v33 = vpop.f32.mrf.mxu1 }
 0x110   :  { %11141 = vst [vmem:[#allocation142_spill] sm:$0xff] %v5874_v20  ;;  %v5876_v32 = vadd.f32 %v330_v33, %v124_v27 }
 0x111   :  { %v332_v35 = vpop.f32.mrf.mxu1  ;;  %v3571_v33 = vpop.eup %3570 }
 0x112   :  { %11142 = vst [vmem:[#allocation143_spill] sm:$0xff] %v5876_v32  ;;  %v5878_v26 = vadd.f32 %v332_v35, %v128_v25 }
 0x113   :  { %v336_v30 = vpop.f32.mrf.mxu1  ;;  %v3573_v32 = vpop.eup %3572 }
 0x114   :  { %11143 = vst [vmem:[#allocation144_spill] sm:$0xff] %v5878_v26  ;;  %v5880_v38 = vadd.f32 %v336_v30, %v124_v27  ;;  %v711_v30 = vadd.f32 1.0, %v3571_v33 }
 0x115   :  { %v338_v41 = vpop.f32.mrf.mxu1 }
 0x116   :  { %11144 = vst [vmem:[#allocation145_spill] sm:$0xff] %v5880_v38  ;;  %v5882_v24 = vadd.f32 %v338_v41, %v128_v25  ;;  %v705_v41 = vadd.f32 1.0, %v3573_v32  ;;  %3574 = vrcp.f32 %v711_v30  ;;  %v11168_v30 = vld [vmem:[#allocation22_spill] sm:$0xff] }
 0x117   :  { %v342_v28 = vpop.f32.mrf.mxu1 }
 0x118   :  { %11145 = vst [vmem:[#allocation146_spill] sm:$0xff] %v5882_v24  ;;  %v5884_v39 = vadd.f32 %v342_v28, %v124_v27  ;;  %3576 = vrcp.f32 %v705_v41  ;;  %v11169_v41 = vld [vmem:[#allocation23_spill] sm:$0xff] }
 0x119   :  { %v344_v23 = vpop.f32.mrf.mxu1 }
 0x11a   :  { %11146 = vst [vmem:[#allocation147_spill] sm:$0xff] %v5884_v39  ;;  %v5886_v34 = vadd.f32 %v344_v23, %v128_v25  ;;  %v315_v23 = vadd.f32 %v314_v29, %v128_v25 }
 0x11b   :  { %v348_v31 = vpop.f32.mrf.mxu1 }
 0x11c   :  { %11147 = vst [vmem:[#allocation148_spill] sm:$0xff] %v5886_v34  ;;  %v5888_v42 = vadd.f32 %v348_v31, %v124_v27 }
 0x11d   :  { %v350_v3 = vpop.f32.mrf.mxu1 }
 0x11e   :  { %11148 = vst [vmem:[#allocation149_spill] sm:$0xff] %v5888_v42  ;;  %v5890_v35 = vadd.f32 %v350_v3, %v128_v25 }
 0x11f   :  { %v354_v26 = vpop.f32.mrf.mxu1 }
 0x120   :  { %11149 = vst [vmem:[#allocation150_spill] sm:$0xff] %v5890_v35  ;;  %v5892_v38 = vadd.f32 %v354_v26, %v124_v27 }
 0x121   :  { %v356_v24 = vpop.f32.mrf.mxu1 }
 0x122   :  { %11150 = vst [vmem:[#allocation151_spill] sm:$0xff] %v5892_v38  ;;  %v5894_v28 = vadd.f32 %v356_v24, %v128_v25  ;;  %v5920_v24 = vld [vmem:[%s10499_s2 + $0x1c0] sm:$0xff] }
 0x123   :  { %v693_v39 = vpop.f32.mrf.mxu1  ;;  %v3575_v3 = vpop.eup %3574 }
 0x124   :  { %11151 = vst [vmem:[#allocation152_spill] sm:$0xff] %v5894_v28  ;;  %v700_v34 = vadd.f32 %v693_v39, %v313_v21  ;;  %v721_v26 = vmul.f32 0.0, %v3575_v3  ;;  %v11152_v39 = vmov 0.0   ;;  %v11172_v3 = vld [vmem:[#allocation26_spill] sm:$0xff]  ;;  %v6668_v28 = vld [vmem:[%s10501_s4 + $0x128] sm:$0xff] }
 0x125   :  { %v695_v31 = vpop.f32.mrf.mxu1  ;;  %v3577_v35 = vpop.eup %3576 }
 0x126   :  { %3578 = vtanh.f32 %v700_v34  ;;  %v701_v42 = vadd.f32 %v695_v31, %v315_v23  ;;  %v11165_v34 = vld [vmem:[#allocation19_spill] sm:$0xff]  ;;  %v11170_v23 = vld [vmem:[#allocation24_spill] sm:$0xff]  ;;  %v11171_v31 = vld [vmem:[#allocation25_spill] sm:$0xff] }
 0x127   :  { %11297 = vst [vmem:[#allocation25_spill] sm:$0xff] %v6668_v28 }
 0x128   :  { %v3454_v20 = vmul.f32 -1.442695, %v701_v42  ;;  %v11166_v42 = vld [vmem:[#allocation20_spill] sm:$0xff] }
 0x12a   :  { %3580 = vpow2.f32 %v3454_v20  ;;  %v5906_v20 = vld [vmem:[%s10499_s2 + $0x1e0] sm:$0xff] }
 0x133   :  { %v3579_v33 = vpop.eup %3578 }
 0x134   :  { %v722_v38 = vmul.f32 %v3579_v33, %v3577_v35  ;;  %v11167_v35 = vld [vmem:[#allocation21_spill] sm:$0xff]  ;;  %v11173_v33 = vld [vmem:[#allocation27_spill] sm:$0xff] }
 0x136   :  { %v5896_v32 = vadd.f32 %v722_v38, %v721_v26  ;;  %v5913_v38 = vld [vmem:[%s10499_s2 + $0x1c8] sm:$0xff] }
 0x137   :  { %v3581_v40 = vpop.eup %3580  ;;  %v11174_v26 = vld [vmem:[#allocation28_spill] sm:$0xff] }
 0x138   :  { %v718_v27 = vadd.f32 1.0, %v3581_v40  ;;  %3582 = vtanh.f32 %v5896_v32  ;;  %v11175_v40 = vld [vmem:[#allocation29_spill] sm:$0xff] }
 0x13a   :  { %3584 = vrcp.f32 %v718_v27  ;;  %v11176_v27 = vld [vmem:[#allocation30_spill] sm:$0xff] }
 0x145   :  { %v3583_v29 = vpop.eup %3582 }
 0x147   :  { %v3585_v21 = vpop.eup %3584 }
 0x148   :  { %v5899_v25 = vmul.f32 %v3585_v21, %v3583_v29  ;;  %v11177_v29 = vld [vmem:[#allocation31_spill] sm:$0xff]  ;;  %v11178_v21 = vld [vmem:[#allocation32_spill] sm:$0xff] }
 0x14a   :  { %812 = vmatmul.mubr.f32.vlgmr.msra.gmra.mxu0 %v5899_v25  ;;  %883 = vmatmul.mubr.f32.vlgmr.msra.gmra.mxu1 %v5899_v25 }
 0x14b   :  { %915 = vmatpush1.msra.mxu0 %v5906_v20  ;;  %986 = vmatpush1.msra.mxu1 %v4846_v43  ;;  %v5927_v43 = vld [vmem:[%s10499_s2 + $0x1a8] sm:$0xff] }
 0x14c   :  { %916 = vmatprep.subr.mxu0 %v5913_v38  ;;  %987 = vmatprep.subr.mxu1 %v4851_v44  ;;  %v5934_v44 = vld [vmem:[%s10499_s2 + $0x1a0] sm:$0xff] }
 0x14d   :  { %917 = vmatpush1.msra.mxu0 %v5920_v24  ;;  %988 = vmatpush1.msra.mxu1 %v4858_v45  ;;  %v5941_v45 = vld [vmem:[%s10499_s2 + $0x188] sm:$0xff] }
 0x14e   :  { %918 = vmatprep.subr.mxu0 %v5927_v43  ;;  %989 = vmatprep.subr.mxu1 %v4865_v46  ;;  %v5948_v46 = vld [vmem:[%s10499_s2 + $0x180] sm:$0xff] }
 0x14f   :  { %919 = vmatpush1.msra.mxu0 %v5934_v44  ;;  %990 = vmatpush1.msra.mxu1 %v4871_v47  ;;  %v5955_v47 = vld [vmem:[%s10499_s2 + $0x168] sm:$0xff] }
 0x150   :  { %920 = vmatprep.subr.mxu0 %v5941_v45  ;;  %991 = vmatprep.subr.mxu1 %v4877_v48  ;;  %v5962_v48 = vld [vmem:[%s10499_s2 + $0x160] sm:$0xff] }
 0x151   :  { %921 = vmatpush1.msra.mxu0 %v5948_v46  ;;  %992 = vmatpush1.msra.mxu1 %v4884_v49  ;;  %v5969_v49 = vld [vmem:[%s10499_s2 + $0x148] sm:$0xff] }
 0x152   :  { %922 = vmatprep.subr.mxu0 %v5955_v47  ;;  %993 = vmatprep.subr.mxu1 %v4891_v50  ;;  %v5976_v50 = vld [vmem:[%s10499_s2 + $0x140] sm:$0xff] }
 0x153   :  { %923 = vmatpush1.msra.mxu0 %v5962_v48  ;;  %994 = vmatpush1.msra.mxu1 %v4897_v51  ;;  %v5983_v51 = vld [vmem:[%s10499_s2 + $0x128] sm:$0xff] }
 0x154   :  { %924 = vmatprep.subr.mxu0 %v5969_v49  ;;  %995 = vmatprep.subr.mxu1 %v4903_v52  ;;  %v5990_v52 = vld [vmem:[%s10499_s2 + $0x120] sm:$0xff] }
 0x155   :  { %925 = vmatpush1.msra.mxu0 %v5976_v50  ;;  %996 = vmatpush1.msra.mxu1 %v4910_v53  ;;  %v5997_v53 = vld [vmem:[%s10499_s2 + $0x108] sm:$0xff] }
 0x156   :  { %926 = vmatprep.subr.mxu0 %v5983_v51  ;;  %997 = vmatprep.subr.mxu1 %v4917_v54  ;;  %v6004_v54 = vld [vmem:[%s10499_s2 + $0x100] sm:$0xff] }
 0x157   :  { %927 = vmatpush1.msra.mxu0 %v5990_v52  ;;  %998 = vmatpush1.msra.mxu1 %v4923_v55  ;;  %v6011_v55 = vld [vmem:[%s10499_s2 + $0xe8] sm:$0xff] }
 0x158   :  { %928 = vmatprep.subr.mxu0 %v5997_v53  ;;  %999 = vmatprep.subr.mxu1 %v4929_v56  ;;  %v6018_v56 = vld [vmem:[%s10499_s2 + $0xe0] sm:$0xff] }
 0x159   :  { %929 = vmatpush1.msra.mxu0 %v6004_v54  ;;  %1000 = vmatpush1.msra.mxu1 %v4936_v57  ;;  %v6025_v57 = vld [vmem:[%s10499_s2 + $0xc8] sm:$0xff] }
 0x15a   :  { %930 = vmatprep.subr.mxu0 %v6011_v55  ;;  %1001 = vmatprep.subr.mxu1 %v4943_v58  ;;  %v6032_v58 = vld [vmem:[%s10499_s2 + $0xc0] sm:$0xff] }
 0x15b   :  { %931 = vmatpush1.msra.mxu0 %v6018_v56  ;;  %1002 = vmatpush1.msra.mxu1 %v4949_v59  ;;  %v6039_v59 = vld [vmem:[%s10499_s2 + $0xa8] sm:$0xff] }
 0x15c   :  { %932 = vmatprep.subr.mxu0 %v6025_v57  ;;  %1003 = vmatprep.subr.mxu1 %v4955_v60  ;;  %v6046_v60 = vld [vmem:[%s10499_s2 + $0xa0] sm:$0xff] }
 0x15d   :  { %933 = vmatpush1.msra.mxu0 %v6032_v58  ;;  %1004 = vmatpush1.msra.mxu1 %v4962_v61  ;;  %v6053_v61 = vld [vmem:[%s10499_s2 + $0x88] sm:$0xff] }
 0x15e   :  { %934 = vmatprep.subr.mxu0 %v6039_v59  ;;  %1005 = vmatprep.subr.mxu1 %v4969_v62  ;;  %v6060_v62 = vld [vmem:[%s10499_s2 + $0x80] sm:$0xff] }
 0x15f   :  { %935 = vmatpush1.msra.mxu0 %v6046_v60  ;;  %1006 = vmatpush1.msra.mxu1 %v4975_v63  ;;  %v6067_v63 = vld [vmem:[%s10499_s2 + $0x68] sm:$0xff] }
 0x160   :  { %936 = vmatprep.subr.mxu0 %v6053_v61  ;;  %1007 = vmatprep.subr.mxu1 %v4981_v0  ;;  %v6074_v0 = vld [vmem:[%s10499_s2 + $0x60] sm:$0xff] }
 0x161   :  { %937 = vmatpush1.msra.mxu0 %v6060_v62  ;;  %1008 = vmatpush1.msra.mxu1 %v4988_v1  ;;  %v6081_v1 = vld [vmem:[%s10499_s2 + $0x48] sm:$0xff] }
 0x162   :  { %938 = vmatprep.subr.mxu0 %v6067_v63  ;;  %1009 = vmatprep.subr.mxu1 %v4995_v2  ;;  %v6088_v2 = vld [vmem:[%s10499_s2 + $0x40] sm:$0xff] }
 0x163   :  { %939 = vmatpush1.msra.mxu0 %v6074_v0  ;;  %1010 = vmatpush1.msra.mxu1 %v5001_v4  ;;  %v6095_v4 = vld [vmem:[%s10499_s2 + $0x28] sm:$0xff] }
 0x164   :  { %940 = vmatprep.subr.mxu0 %v6081_v1  ;;  %1011 = vmatprep.subr.mxu1 %v5007_v5  ;;  %v6102_v5 = vld [vmem:[%s10499_s2 + $0x20] sm:$0xff] }
 0x165   :  { %941 = vmatpush1.msra.mxu0 %v6088_v2  ;;  %1012 = vmatpush1.msra.mxu1 %v5014_v6  ;;  %v6109_v6 = vld [vmem:[%s10499_s2 + $0x8] sm:$0xff] }
 0x166   :  { %942 = vmatprep.subr.mxu0 %v6095_v4  ;;  %1013 = vmatprep.subr.mxu1 %v5021_v7  ;;  %v6116_v7 = vld [vmem:[%s10499_s2] sm:$0xff] }
 0x167   :  { %943 = vmatpush1.msra.mxu0 %v6102_v5  ;;  %1014 = vmatpush1.msra.mxu1 %v5027_v8  ;;  %v11153_v8 = vld [vmem:[#allocation7_spill] sm:$0xff] }
 0x168   :  { %944 = vmatprep.subr.mxu0 %v6109_v6  ;;  %1015 = vmatprep.subr.mxu1 %v5033_v9  ;;  %v11154_v9 = vld [vmem:[#allocation8_spill] sm:$0xff] }
 0x169   :  { %945 = vmatpush1.msra.mxu0 %v6116_v7  ;;  %978 = vmatprep.mubr.f32.mxu0 %v11152_v39 }
 0x16a   :  { %1016 = vmatpush1.msra.mxu1 %v5040_v10  ;;  %1049 = vmatprep.mubr.f32.mxu1 %v11152_v39  ;;  %v11155_v10 = vld [vmem:[#allocation9_spill] sm:$0xff] }
 0x16b   :  { %979 = vmatmul.mubr.f32.vlgmr.msra.gmra.mxu0 %v5899_v25  ;;  %1050 = vmatmul.mubr.f32.vlgmr.msra.gmra.mxu1 %v5899_v25  ;;  %v11179_v25 = vld [vmem:[#allocation33_spill] sm:$0xff] }
 0x16c   :  { %1084 = vmatprep.subr.mxu0 %v5051_v11  ;;  %1155 = vmatprep.subr.mxu1 %v5056_v12  ;;  %v11156_v11 = vld [vmem:[#allocation10_spill] sm:$0xff]  ;;  %v11157_v12 = vld [vmem:[#allocation11_spill] sm:$0xff] }
 0x16d   :  { %1085 = vmatpush1.msra.mxu0 %v5063_v13  ;;  %1156 = vmatpush1.msra.mxu1 %v5068_v14  ;;  %v11158_v13 = vld [vmem:[#allocation12_spill] sm:$0xff]  ;;  %v11159_v14 = vld [vmem:[#allocation13_spill] sm:$0xff] }
 0x16e   :  { %1086 = vmatprep.subr.mxu0 %v5075_v15  ;;  %1157 = vmatprep.subr.mxu1 %v5080_v16  ;;  %v11160_v15 = vld [vmem:[#allocation14_spill] sm:$0xff]  ;;  %v11161_v16 = vld [vmem:[#allocation15_spill] sm:$0xff] }
 0x16f   :  { %1087 = vmatpush1.msra.mxu0 %v5087_v17  ;;  %1158 = vmatpush1.msra.mxu1 %v5092_v18  ;;  %v11162_v17 = vld [vmem:[#allocation16_spill] sm:$0xff]  ;;  %v11163_v18 = vld [vmem:[#allocation17_spill] sm:$0xff] }
 0x170   :  { %1088 = vmatprep.subr.mxu0 %v5099_v19  ;;  %1159 = vmatprep.subr.mxu1 %v11153_v8  ;;  %v11164_v19 = vld [vmem:[#allocation18_spill] sm:$0xff] }
 0x171   :  { %1089 = vmatpush1.msra.mxu0 %v11154_v9  ;;  %1160 = vmatpush1.msra.mxu1 %v11155_v10  ;;  %v11180_v8 = vld [vmem:[#allocation34_spill] sm:$0xff]  ;;  %v11181_v9 = vld [vmem:[#allocation35_spill] sm:$0xff]  ;;  %v11182_v10 = vld [vmem:[#allocation36_spill] sm:$0xff] }
 0x172   :  { %1090 = vmatprep.subr.mxu0 %v11156_v11  ;;  %1161 = vmatprep.subr.mxu1 %v11157_v12  ;;  %v11183_v11 = vld [vmem:[#allocation37_spill] sm:$0xff]  ;;  %v11184_v12 = vld [vmem:[#allocation38_spill] sm:$0xff] }
 0x173   :  { %1091 = vmatpush1.msra.mxu0 %v11158_v13  ;;  %1162 = vmatpush1.msra.mxu1 %v11159_v14  ;;  %v11185_v13 = vld [vmem:[#allocation39_spill] sm:$0xff]  ;;  %v11186_v14 = vld [vmem:[#allocation40_spill] sm:$0xff] }
 0x174   :  { %1092 = vmatprep.subr.mxu0 %v11160_v15  ;;  %1163 = vmatprep.subr.mxu1 %v11161_v16  ;;  %v11187_v15 = vld [vmem:[#allocation41_spill] sm:$0xff]  ;;  %v11188_v16 = vld [vmem:[#allocation42_spill] sm:$0xff] }
 0x175   :  { %1093 = vmatpush1.msra.mxu0 %v11162_v17  ;;  %1164 = vmatpush1.msra.mxu1 %v11163_v18  ;;  %v11189_v17 = vld [vmem:[#allocation43_spill] sm:$0xff]  ;;  %v11190_v18 = vld [vmem:[#allocation44_spill] sm:$0xff] }
 0x176   :  { %1094 = vmatprep.subr.mxu0 %v11164_v19  ;;  %1165 = vmatprep.subr.mxu1 %v11165_v34  ;;  %v11191_v19 = vld [vmem:[#allocation45_spill] sm:$0xff]  ;;  %v11192_v34 = vld [vmem:[#allocation46_spill] sm:$0xff] }
 0x177   :  { %1095 = vmatpush1.msra.mxu0 %v11166_v42  ;;  %1166 = vmatpush1.msra.mxu1 %v11167_v35  ;;  %v11193_v42 = vld [vmem:[#allocation47_spill] sm:$0xff]  ;;  %v11194_v35 = vld [vmem:[#allocation48_spill] sm:$0xff] }
 0x178   :  { %1096 = vmatprep.subr.mxu0 %v11168_v30  ;;  %1167 = vmatprep.subr.mxu1 %v11169_v41  ;;  %v11195_v30 = vld [vmem:[#allocation49_spill] sm:$0xff]  ;;  %v11196_v41 = vld [vmem:[#allocation50_spill] sm:$0xff] }
 0x179   :  { %1097 = vmatpush1.msra.mxu0 %v11170_v23  ;;  %1168 = vmatpush1.msra.mxu1 %v11171_v31  ;;  %v11197_v23 = vld [vmem:[#allocation51_spill] sm:$0xff]  ;;  %v11198_v31 = vld [vmem:[#allocation52_spill] sm:$0xff] }
 0x17a   :  { %1098 = vmatprep.subr.mxu0 %v11172_v3  ;;  %1169 = vmatprep.subr.mxu1 %v11173_v33  ;;  %v11199_v3 = vld [vmem:[#allocation53_spill] sm:$0xff]  ;;  %v11200_v33 = vld [vmem:[#allocation54_spill] sm:$0xff] }
 0x17b   :  { %1099 = vmatpush1.msra.mxu0 %v11174_v26  ;;  %1170 = vmatpush1.msra.mxu1 %v11175_v40  ;;  %v11201_v26 = vld [vmem:[#allocation55_spill] sm:$0xff]  ;;  %v11202_v40 = vld [vmem:[#allocation56_spill] sm:$0xff] }
 0x17c   :  { %1100 = vmatprep.subr.mxu0 %v11176_v27  ;;  %1171 = vmatprep.subr.mxu1 %v11177_v29  ;;  %v11203_v27 = vld [vmem:[#allocation57_spill] sm:$0xff]  ;;  %v11204_v29 = vld [vmem:[#allocation58_spill] sm:$0xff] }
 0x17d   :  { %1101 = vmatpush1.msra.mxu0 %v11178_v21  ;;  %1172 = vmatpush1.msra.mxu1 %v11179_v25  ;;  %v11205_v21 = vld [vmem:[#allocation59_spill] sm:$0xff]  ;;  %v11206_v25 = vld [vmem:[#allocation60_spill] sm:$0xff] }
 0x17e   :  { %1102 = vmatprep.subr.mxu0 %v11180_v8  ;;  %1173 = vmatprep.subr.mxu1 %v11181_v9  ;;  %v11207_v8 = vld [vmem:[#allocation61_spill] sm:$0xff]  ;;  %v11208_v9 = vld [vmem:[#allocation62_spill] sm:$0xff] }
 0x17f   :  { %1103 = vmatpush1.msra.mxu0 %v11182_v10  ;;  %1174 = vmatpush1.msra.mxu1 %v11183_v11  ;;  %v11209_v10 = vld [vmem:[#allocation63_spill] sm:$0xff]  ;;  %v11210_v11 = vld [vmem:[#allocation64_spill] sm:$0xff] }
 0x180   :  { %1104 = vmatprep.subr.mxu0 %v11184_v12  ;;  %1175 = vmatprep.subr.mxu1 %v11185_v13  ;;  %v11211_v12 = vld [vmem:[#allocation65_spill] sm:$0xff]  ;;  %v11212_v13 = vld [vmem:[#allocation66_spill] sm:$0xff] }
 0x181   :  { %1105 = vmatpush1.msra.mxu0 %v11186_v14  ;;  %1176 = vmatpush1.msra.mxu1 %v11187_v15  ;;  %v11213_v14 = vld [vmem:[#allocation67_spill] sm:$0xff]  ;;  %v11214_v15 = vld [vmem:[#allocation68_spill] sm:$0xff] }
 0x182   :  { %1106 = vmatprep.subr.mxu0 %v11188_v16  ;;  %1177 = vmatprep.subr.mxu1 %v11189_v17  ;;  %v11215_v16 = vld [vmem:[#allocation69_spill] sm:$0xff]  ;;  %v11216_v17 = vld [vmem:[#allocation70_spill] sm:$0xff] }
 0x183   :  { %1107 = vmatpush1.msra.mxu0 %v11190_v18  ;;  %1178 = vmatpush1.msra.mxu1 %v11191_v19  ;;  %v11217_v18 = vld [vmem:[#allocation71_spill] sm:$0xff]  ;;  %v11218_v19 = vld [vmem:[#allocation72_spill] sm:$0xff] }
 0x184   :  { %1108 = vmatprep.subr.mxu0 %v11192_v34  ;;  %1179 = vmatprep.subr.mxu1 %v11193_v42  ;;  %v11219_v34 = vld [vmem:[#allocation73_spill] sm:$0xff]  ;;  %v11220_v42 = vld [vmem:[#allocation74_spill] sm:$0xff] }
 0x185   :  { %1109 = vmatpush1.msra.mxu0 %v11194_v35  ;;  %1180 = vmatpush1.msra.mxu1 %v11195_v30  ;;  %v11221_v35 = vld [vmem:[#allocation75_spill] sm:$0xff]  ;;  %v11222_v30 = vld [vmem:[#allocation76_spill] sm:$0xff] }
 0x186   :  { %1110 = vmatprep.subr.mxu0 %v11196_v41  ;;  %1181 = vmatprep.subr.mxu1 %v11197_v23  ;;  %v11223_v41 = vld [vmem:[#allocation77_spill] sm:$0xff]  ;;  %v11224_v23 = vld [vmem:[#allocation78_spill] sm:$0xff] }
 0x187   :  { %1111 = vmatpush1.msra.mxu0 %v11198_v31  ;;  %1182 = vmatpush1.msra.mxu1 %v11199_v3  ;;  %v11225_v31 = vld [vmem:[#allocation79_spill] sm:$0xff]  ;;  %v11226_v3 = vld [vmem:[#allocation80_spill] sm:$0xff] }
 0x188   :  { %1112 = vmatprep.subr.mxu0 %v11200_v33  ;;  %1183 = vmatprep.subr.mxu1 %v11201_v26  ;;  %v11227_v33 = vld [vmem:[#allocation81_spill] sm:$0xff]  ;;  %v11228_v26 = vld [vmem:[#allocation82_spill] sm:$0xff] }
 0x189   :  { %1113 = vmatpush1.msra.mxu0 %v11202_v40  ;;  %1184 = vmatpush1.msra.mxu1 %v11203_v27  ;;  %v11229_v40 = vld [vmem:[#allocation83_spill] sm:$0xff]  ;;  %v11230_v27 = vld [vmem:[#allocation84_spill] sm:$0xff] }
 0x18a   :  { %1114 = vmatprep.subr.mxu0 %v11204_v29  ;;  %1185 = vmatprep.subr.mxu1 %v11205_v21  ;;  %v11231_v29 = vld [vmem:[#allocation85_spill] sm:$0xff]  ;;  %v11232_v21 = vld [vmem:[#allocation86_spill] sm:$0xff] }
 0x18b   :  { %1115 = vmatpush1.msra.mxu0 %v11206_v25  ;;  %1186 = vmatpush1.msra.mxu1 %v11207_v8  ;;  %v11233_v25 = vld [vmem:[#allocation87_spill] sm:$0xff]  ;;  %v11234_v8 = vld [vmem:[#allocation88_spill] sm:$0xff] }
 0x18c   :  { %1116 = vmatprep.subr.mxu0 %v11208_v9  ;;  %1187 = vmatprep.subr.mxu1 %v11209_v10  ;;  %v11235_v9 = vld [vmem:[#allocation89_spill] sm:$0xff]  ;;  %v11236_v10 = vld [vmem:[#allocation90_spill] sm:$0xff] }
 0x18d   :  { %1117 = vmatpush2.msra.mxu0 %v11210_v11  ;;  %1188 = vmatpush2.msra.mxu1 %v11211_v12  ;;  %v11237_v11 = vld [vmem:[#allocation91_spill] sm:$0xff]  ;;  %v11238_v12 = vld [vmem:[#allocation92_spill] sm:$0xff] }
 0x18e   :  { %1118 = vmatprep.subr.mxu0 %v11212_v13  ;;  %1189 = vmatprep.subr.mxu1 %v11213_v14  ;;  %v11239_v13 = vld [vmem:[#allocation93_spill] sm:$0xff]  ;;  %v11240_v14 = vld [vmem:[#allocation94_spill] sm:$0xff] }
 0x18f   :  { %1119 = vmatpush2.msra.mxu0 %v11214_v15  ;;  %1190 = vmatpush2.msra.mxu1 %v11215_v16  ;;  %v11241_v15 = vld [vmem:[#allocation95_spill] sm:$0xff]  ;;  %v11242_v16 = vld [vmem:[#allocation96_spill] sm:$0xff] }
 0x190   :  { %1120 = vmatprep.subr.mxu0 %v11216_v17  ;;  %1191 = vmatprep.subr.mxu1 %v11217_v18  ;;  %v11243_v17 = vld [vmem:[#allocation97_spill] sm:$0xff]  ;;  %v11244_v18 = vld [vmem:[#allocation98_spill] sm:$0xff] }
 0x191   :  { %1121 = vmatpush2.msra.mxu0 %v11218_v19  ;;  %1192 = vmatpush2.msra.mxu1 %v11219_v34  ;;  %v11245_v19 = vld [vmem:[#allocation99_spill] sm:$0xff]  ;;  %v11246_v34 = vld [vmem:[#allocation100_spill] sm:$0xff] }
 0x192   :  { %1122 = vmatprep.subr.mxu0 %v11220_v42  ;;  %1193 = vmatprep.subr.mxu1 %v11221_v35  ;;  %v11247_v42 = vld [vmem:[#allocation101_spill] sm:$0xff]  ;;  %v11248_v35 = vld [vmem:[#allocation102_spill] sm:$0xff] }
 0x193   :  { %1123 = vmatpush2.msra.mxu0 %v11222_v30  ;;  %1194 = vmatpush2.msra.mxu1 %v11223_v41  ;;  %v11249_v30 = vld [vmem:[#allocation103_spill] sm:$0xff]  ;;  %v11250_v41 = vld [vmem:[#allocation104_spill] sm:$0xff] }
 0x194   :  { %1124 = vmatprep.subr.mxu0 %v11224_v23  ;;  %1195 = vmatprep.subr.mxu1 %v11225_v31  ;;  %v11251_v23 = vld [vmem:[#allocation105_spill] sm:$0xff]  ;;  %v11252_v31 = vld [vmem:[#allocation106_spill] sm:$0xff] }
 0x195   :  { %1125 = vmatpush2.msra.mxu0 %v11226_v3  ;;  %1196 = vmatpush2.msra.mxu1 %v11227_v33  ;;  %v11253_v3 = vld [vmem:[#allocation107_spill] sm:$0xff]  ;;  %v11254_v33 = vld [vmem:[#allocation108_spill] sm:$0xff] }
 0x196   :  { %1126 = vmatprep.subr.mxu0 %v11228_v26  ;;  %1197 = vmatprep.subr.mxu1 %v11229_v40  ;;  %v11255_v26 = vld [vmem:[#allocation109_spill] sm:$0xff]  ;;  %v11256_v40 = vld [vmem:[#allocation110_spill] sm:$0xff] }
 0x197   :  { %1127 = vmatpush2.msra.mxu0 %v11230_v27  ;;  %1198 = vmatpush2.msra.mxu1 %v11231_v29  ;;  %v11257_v27 = vld [vmem:[#allocation111_spill] sm:$0xff]  ;;  %v11258_v29 = vld [vmem:[#allocation112_spill] sm:$0xff] }
 0x198   :  { %1128 = vmatprep.subr.mxu0 %v11232_v21  ;;  %1199 = vmatprep.subr.mxu1 %v11233_v25  ;;  %v11259_v21 = vld [vmem:[#allocation113_spill] sm:$0xff]  ;;  %v11260_v25 = vld [vmem:[#allocation114_spill] sm:$0xff] }
 0x199   :  { %1129 = vmatpush2.msra.mxu0 %v11234_v8  ;;  %1200 = vmatpush2.msra.mxu1 %v11235_v9  ;;  %v11261_v8 = vld [vmem:[#allocation115_spill] sm:$0xff]  ;;  %v11262_v9 = vld [vmem:[#allocation116_spill] sm:$0xff] }
 0x19a   :  { %1130 = vmatprep.subr.mxu0 %v11236_v10  ;;  %1201 = vmatprep.subr.mxu1 %v11237_v11  ;;  %v11263_v10 = vld [vmem:[#allocation117_spill] sm:$0xff]  ;;  %v11264_v11 = vld [vmem:[#allocation118_spill] sm:$0xff] }
 0x19b   :  { %1131 = vmatpush2.msra.mxu0 %v11238_v12  ;;  %1202 = vmatpush2.msra.mxu1 %v11239_v13  ;;  %v11265_v12 = vld [vmem:[#allocation119_spill] sm:$0xff]  ;;  %v11266_v13 = vld [vmem:[#allocation120_spill] sm:$0xff] }
 0x19c   :  { %1132 = vmatprep.subr.mxu0 %v11240_v14  ;;  %1203 = vmatprep.subr.mxu1 %v11241_v15  ;;  %v11267_v14 = vld [vmem:[#allocation121_spill] sm:$0xff]  ;;  %v11268_v15 = vld [vmem:[#allocation122_spill] sm:$0xff] }
 0x19d   :  { %1133 = vmatpush2.msra.mxu0 %v11242_v16  ;;  %1204 = vmatpush2.msra.mxu1 %v11243_v17  ;;  %v11269_v16 = vld [vmem:[#allocation123_spill] sm:$0xff]  ;;  %v11270_v17 = vld [vmem:[#allocation124_spill] sm:$0xff] }
 0x19e   :  { %1134 = vmatprep.subr.mxu0 %v11244_v18  ;;  %1205 = vmatprep.subr.mxu1 %v11245_v19  ;;  %v11271_v18 = vld [vmem:[#allocation125_spill] sm:$0xff]  ;;  %v11272_v19 = vld [vmem:[#allocation126_spill] sm:$0xff] }
 0x19f   :  { %1135 = vmatpush2.msra.mxu0 %v11246_v34  ;;  %1206 = vmatpush2.msra.mxu1 %v11247_v42  ;;  %v6256_v34 = vld [vmem:[%s10499_s2 + $0x1f8] sm:$0xff]  ;;  %v551_v42 = vld [vmem:[%s10503_s5] sm:$0xf] }
 0x1a0   :  { %1136 = vmatprep.subr.mxu0 %v11248_v35  ;;  %1207 = vmatprep.subr.mxu1 %v11249_v30  ;;  %v11273_v35 = vsub.s32 0, %v5823_v37 }
 0x1a1   :  { %1137 = vmatpush2.msra.mxu0 %v11250_v41  ;;  %1208 = vmatpush2.msra.mxu1 %v11251_v23  ;;  %v11275_v41 = vsub.s32 1, %v5823_v37 }
 0x1a2   :  { %1138 = vmatprep.subr.mxu0 %v11252_v31  ;;  %1209 = vmatprep.subr.mxu1 %v11253_v3  ;;  %v6264_v30 = vrot.slane %v551_v42, %v11273_v35 }
 0x1a3   :  { %1139 = vmatpush2.msra.mxu0 %v11254_v33  ;;  %1210 = vmatpush2.msra.mxu1 %v11255_v26  ;;  %v6268_v23 = vrot.slane %v551_v42, %v11275_v41  ;;  %v11281_v41 = vld [vmem:[#allocation127_spill] sm:$0xff] }
 0x1a4   :  { %1140 = vmatprep.subr.mxu0 %v11256_v40  ;;  %1211 = vmatprep.subr.mxu1 %v11257_v27  ;;  %11274 = vst [vmem:[#allocation7_spill] sm:$0xff] %v6264_v30 }
 0x1a5   :  { %1141 = vmatpush2.msra.mxu0 %v11258_v29  ;;  %1212 = vmatpush2.msra.mxu1 %v11259_v21  ;;  %11276 = vst [vmem:[#allocation8_spill] sm:$0xff] %v6268_v23  ;;  %v11277_v21 = vsub.s32 3, %v5823_v37 }
 0x1a6   :  { %1142 = vmatprep.subr.mxu0 %v11260_v25  ;;  %1213 = vmatprep.subr.mxu1 %v11261_v8 }
 0x1a7   :  { %1143 = vmatpush2.msra.mxu0 %v11262_v9  ;;  %1214 = vmatpush2.msra.mxu1 %v11263_v10  ;;  %v6274_v25 = vrot.slane %v551_v42, %v11277_v21  ;;  %v11279_v10 = vsub.s32 2, %v5823_v37 }
 0x1a8   :  { %1144 = vmatprep.subr.mxu0 %v11264_v11  ;;  %1215 = vmatprep.subr.mxu1 %v11265_v12 }
 0x1a9   :  { %1145 = vmatpush2.msra.mxu0 %v11266_v13  ;;  %1216 = vmatpush2.msra.mxu1 %v11267_v14  ;;  %11278 = vst [vmem:[#allocation9_spill] sm:$0xff] %v6274_v25  ;;  %v6279_v11 = vrot.slane %v551_v42, %v11279_v10 }
 0x1aa   :  { %1146 = vmatprep.subr.mxu0 %v11268_v15  ;;  %1217 = vmatprep.subr.mxu1 %v11269_v16 }
 0x1ab   :  { %1147 = vmatpush2.msra.mxu0 %v11270_v17  ;;  %1218 = vmatpush2.msra.mxu1 %v11271_v18  ;;  %11280 = vst [vmem:[#allocation10_spill] sm:$0xff] %v6279_v11 }
 0x1ac   :  { %1252 = vmatprep.subr.mxu0 %v11272_v19  ;;  %1323 = vmatprep.subr.mxu1 %v6256_v34 }
 0x20a   :  { %v813_v31 = vpop.f32.mrf.mxu0  ;;  %v884_v27 = vpop.f32.mrf.mxu1 }
 0x20b   :  { %v814_v3 = vadd.f32 %v813_v31, %v6264_v30  ;;  %v885_v14 = vadd.f32 %v884_v27, %v6279_v11 }
 0x20c   :  { %v815_v33 = vpop.f32.mrf.mxu0  ;;  %v886_v8 = vpop.f32.mrf.mxu1 }
 0x20d   :  { %v3455_v26 = vmul.f32 -1.442695, %v814_v3  ;;  %v816_v40 = vadd.f32 %v815_v33, %v6268_v23  ;;  %v887_v9 = vadd.f32 %v886_v8, %v6274_v25 }
 0x20f   :  { %3586 = vpow2.f32 %v3455_v26  ;;  %v3456_v29 = vmul.f32 -1.442695, %v816_v40  ;;  %v3457_v12 = vmul.f32 -1.442695, %v887_v9  ;;  %v11282_v40 = vld [vmem:[#allocation128_spill] sm:$0xff] }
 0x211   :  { %3588 = vpow2.f32 %v3456_v29 }
 0x212   :  { %3590 = vpow2.f32 %v3457_v12 }
 0x21c   :  { %v3587_v13 = vpop.eup %3586 }
 0x21d   :  { %v892_v15 = vadd.f32 1.0, %v3587_v13 }
 0x21e   :  { %v3589_v16 = vpop.eup %3588 }
 0x21f   :  { %3592 = vrcp.f32 %v892_v15  ;;  %v898_v17 = vadd.f32 1.0, %v3589_v16  ;;  %v3591_v18 = vpop.eup %3590 }
 0x220   :  { %3594 = vtanh.f32 %v885_v14  ;;  %v905_v37 = vadd.f32 1.0, %v3591_v18 }
 0x221   :  { %3596 = vrcp.f32 %v898_v17 }
 0x22b   :  { %v980_v19 = vpop.f32.mrf.mxu0  ;;  %v1051_v8 = vpop.f32.mrf.mxu1 }
 0x22c   :  { %v3593_v35 = vpop.eup %3592  ;;  %v1056_v31 = vadd.f32 %v980_v19, %v11281_v41  ;;  %v1058_v14 = vadd.f32 %v1051_v8, %v5868_v36  ;;  %v6304_v8 = vld [vmem:[%s10499_s2 + $0x1f0] sm:$0xff] }
 0x22d   :  { %v3595_v3 = vpop.eup %3594  ;;  %v982_v42 = vpop.f32.mrf.mxu0 }
 0x22e   :  { %v3597_v33 = vpop.eup %3596  ;;  %v3458_v26 = vmul.f32 -1.442695, %v1056_v31  ;;  %v1057_v29 = vadd.f32 %v982_v42, %v11282_v40  ;;  %v909_v21 = vmul.f32 %v3595_v3, %v3593_v35  ;;  %v1053_v12 = vpop.f32.mrf.mxu1 }
 0x22f   :  { %v908_v27 = vmul.f32 0.0, %v3597_v33  ;;  %v1059_v13 = vadd.f32 %v1053_v12, %v5870_v22  ;;  %v6542_v12 = vld [vmem:[%s10501_s4 + $0x1f0] sm:$0xff] }
 0x230   :  { %3598 = vpow2.f32 %v3458_v26  ;;  %v3459_v9 = vmul.f32 -1.442695, %v1057_v29 }
 0x231   :  { %v6284_v10 = vadd.f32 %v909_v21, %v908_v27  ;;  %3600 = vrcp.f32 %v905_v37  ;;  %v3460_v15 = vmul.f32 -1.442695, %v1059_v13  ;;  %v6548_v13 = vld [vmem:[%s10501_s4 + $0x1c8] sm:$0xff] }
 0x232   :  { %3602 = vpow2.f32 %v3459_v9  ;;  %v6536_v9 = vld [vmem:[%s10501_s4 + $0x1e0] sm:$0xff] }
 0x233   :  { %3604 = vtanh.f32 %v6284_v10 }
 0x234   :  { %3606 = vtanh.f32 %v1058_v14  ;;  %v6554_v14 = vld [vmem:[%s10501_s4 + $0x1d8] sm:$0xff] }
 0x235   :  { %3608 = vpow2.f32 %v3460_v15  ;;  %v6560_v15 = vld [vmem:[%s10501_s4 + $0x1c0] sm:$0xff] }
 0x23d   :  { %v3599_v16 = vpop.eup %3598 }
 0x23e   :  { %v3601_v17 = vpop.eup %3600  ;;  %v1063_v18 = vadd.f32 1.0, %v3599_v16  ;;  %v6566_v16 = vld [vmem:[%s10501_s4 + $0x1d0] sm:$0xff] }
 0x23f   :  { %v3603_v19 = vpop.eup %3602 }
 0x240   :  { %v3605_v35 = vpop.eup %3604  ;;  %3610 = vrcp.f32 %v1063_v18  ;;  %v1069_v41 = vadd.f32 1.0, %v3603_v19  ;;  %v6578_v18 = vld [vmem:[%s10501_s4 + $0x1b8] sm:$0xff]  ;;  %v6584_v19 = vld [vmem:[%s10501_s4 + $0x1a0] sm:$0xff] }
 0x241   :  { %v912_v31 = vmul.f32 %v3605_v35, %v3601_v17  ;;  %v3607_v22 = vpop.eup %3606  ;;  %v6572_v17 = vld [vmem:[%s10501_s4 + $0x1a8] sm:$0xff]  ;;  %11283 = vst [vmem:[#allocation11_spill] sm:$0xff] %v6584_v19  ;;  %v6590_v35 = vld [vmem:[%s10501_s4 + $0x1b0] sm:$0xff] }
 0x242   :  { %3612 = vrcp.f32 %v1069_v41  ;;  %v3609_v36 = vpop.eup %3608  ;;  %11284 = vst [vmem:[#allocation12_spill] sm:$0xff] %v6590_v35  ;;  %v6596_v41 = vld [vmem:[%s10501_s4 + $0x188] sm:$0xff] }
 0x243   :  { %1148 = vmatprep.mubr.f32.mxu0 %v912_v31  ;;  %3292 = vst [vmem:[%s10504_s9] sm:$0xff] %v912_v31  ;;  %1219 = vmatprep.mubr.f32.mxu1 %v912_v31  ;;  %v1076_v33 = vadd.f32 1.0, %v3609_v36  ;;  %11285 = vst [vmem:[#allocation13_spill] sm:$0xff] %v6596_v41  ;;  %v6602_v31 = vld [vmem:[%s10501_s4 + $0x198] sm:$0xff]  ;;  %v6614_v36 = vld [vmem:[%s10501_s4 + $0x190] sm:$0xff] }
 0x244   :  { %11286 = vst [vmem:[#allocation14_spill] sm:$0xff] %v6602_v31  ;;  %11288 = vst [vmem:[#allocation16_spill] sm:$0xff] %v6614_v36 }
 0x245   :  { %3614 = vrcp.f32 %v1076_v33  ;;  %v6638_v33 = vld [vmem:[%s10501_s4 + $0x170] sm:$0xff] }
 0x246   :  { %11292 = vst [vmem:[#allocation20_spill] sm:$0xff] %v6638_v33 }
 0x24d   :  { %v3611_v3 = vpop.eup %3610 }
 0x24e   :  { %v1080_v37 = vmul.f32 %v3611_v3, %v3607_v22  ;;  %v6608_v22 = vld [vmem:[%s10501_s4 + $0x180] sm:$0xff]  ;;  %v6620_v3 = vld [vmem:[%s10501_s4 + $0x168] sm:$0xff] }
 0x24f   :  { %v3613_v42 = vpop.eup %3612  ;;  %11287 = vst [vmem:[#allocation15_spill] sm:$0xff] %v6608_v22  ;;  %11289 = vst [vmem:[#allocation17_spill] sm:$0xff] %v6620_v3 }
 0x250   :  { %v1079_v26 = vmul.f32 %v3613_v42, %v5896_v32  ;;  %v6311_v32 = vld [vmem:[%s10499_s2 + $0x1d8] sm:$0xff]  ;;  %v6632_v42 = vld [vmem:[%s10501_s4 + $0x160] sm:$0xff] }
 0x251   :  { %11291 = vst [vmem:[#allocation19_spill] sm:$0xff] %v6632_v42 }
 0x252   :  { %v6293_v40 = vadd.f32 %v1080_v37, %v1079_v26  ;;  %v3615_v29 = vpop.eup %3614  ;;  %v6626_v37 = vld [vmem:[%s10501_s4 + $0x178] sm:$0xff]  ;;  %v6644_v26 = vld [vmem:[%s10501_s4 + $0x148] sm:$0xff] }
 0x253   :  { %11290 = vst [vmem:[#allocation18_spill] sm:$0xff] %v6626_v37  ;;  %11293 = vst [vmem:[#allocation21_spill] sm:$0xff] %v6644_v26 }
 0x254   :  { %3616 = vtanh.f32 %v6293_v40 }
 0x261   :  { %v3617_v27 = vpop.eup %3616 }
 0x262   :  { %v6296_v21 = vmul.f32 %v3617_v27, %v3615_v29  ;;  %v6650_v29 = vld [vmem:[%s10501_s4 + $0x158] sm:$0xff]  ;;  %v6656_v27 = vld [vmem:[%s10501_s4 + $0x140] sm:$0xff] }
 0x263   :  { %11294 = vst [vmem:[#allocation22_spill] sm:$0xff] %v6650_v29  ;;  %11295 = vst [vmem:[#allocation23_spill] sm:$0xff] %v6656_v27 }
 0x264   :  { %1149 = vmatmul.mubr.f32.vlgmr.msra.gmra.mxu0 %v6296_v21  ;;  %1220 = vmatmul.mubr.f32.vlgmr.msra.gmra.mxu1 %v6296_v21 }
 0x265   :  { %1253 = vmatpush1.msra.mxu0 %v5906_v20  ;;  %1324 = vmatpush1.msra.mxu1 %v6304_v8  ;;  %v6318_v20 = vld [vmem:[%s10499_s2 + $0x1d0] sm:$0xff] }
 0x266   :  { %1254 = vmatprep.subr.mxu0 %v5913_v38  ;;  %1325 = vmatprep.subr.mxu1 %v6311_v32  ;;  %v6325_v38 = vld [vmem:[%s10499_s2 + $0x1b8] sm:$0xff] }
 0x267   :  { %1255 = vmatpush1.msra.mxu0 %v5920_v24  ;;  %1326 = vmatpush1.msra.mxu1 %v6318_v20  ;;  %v6332_v24 = vld [vmem:[%s10499_s2 + $0x1b0] sm:$0xff] }
 0x268   :  { %1256 = vmatprep.subr.mxu0 %v5927_v43  ;;  %1327 = vmatprep.subr.mxu1 %v6325_v38  ;;  %v6339_v43 = vld [vmem:[%s10499_s2 + $0x198] sm:$0xff] }
 0x269   :  { %1257 = vmatpush1.msra.mxu0 %v5934_v44  ;;  %1328 = vmatpush1.msra.mxu1 %v6332_v24  ;;  %v6346_v44 = vld [vmem:[%s10499_s2 + $0x190] sm:$0xff] }
 0x26a   :  { %1258 = vmatprep.subr.mxu0 %v5941_v45  ;;  %1329 = vmatprep.subr.mxu1 %v6339_v43  ;;  %v6353_v45 = vld [vmem:[%s10499_s2 + $0x178] sm:$0xff] }
 0x26b   :  { %1259 = vmatpush1.msra.mxu0 %v5948_v46  ;;  %1330 = vmatpush1.msra.mxu1 %v6346_v44  ;;  %v6360_v46 = vld [vmem:[%s10499_s2 + $0x170] sm:$0xff] }
 0x26c   :  { %1260 = vmatprep.subr.mxu0 %v5955_v47  ;;  %1331 = vmatprep.subr.mxu1 %v6353_v45  ;;  %v6367_v47 = vld [vmem:[%s10499_s2 + $0x158] sm:$0xff] }
 0x26d   :  { %1261 = vmatpush1.msra.mxu0 %v5962_v48  ;;  %1332 = vmatpush1.msra.mxu1 %v6360_v46  ;;  %v6374_v48 = vld [vmem:[%s10499_s2 + $0x150] sm:$0xff] }
 0x26e   :  { %1262 = vmatprep.subr.mxu0 %v5969_v49  ;;  %1333 = vmatprep.subr.mxu1 %v6367_v47  ;;  %v6381_v49 = vld [vmem:[%s10499_s2 + $0x138] sm:$0xff] }
 0x26f   :  { %1263 = vmatpush1.msra.mxu0 %v5976_v50  ;;  %1334 = vmatpush1.msra.mxu1 %v6374_v48  ;;  %v6388_v50 = vld [vmem:[%s10499_s2 + $0x130] sm:$0xff] }
 0x270   :  { %1264 = vmatprep.subr.mxu0 %v5983_v51  ;;  %1335 = vmatprep.subr.mxu1 %v6381_v49  ;;  %v6395_v51 = vld [vmem:[%s10499_s2 + $0x118] sm:$0xff] }
 0x271   :  { %1265 = vmatpush1.msra.mxu0 %v5990_v52  ;;  %1336 = vmatpush1.msra.mxu1 %v6388_v50  ;;  %v6402_v52 = vld [vmem:[%s10499_s2 + $0x110] sm:$0xff] }
 0x272   :  { %1266 = vmatprep.subr.mxu0 %v5997_v53  ;;  %1337 = vmatprep.subr.mxu1 %v6395_v51  ;;  %v6409_v53 = vld [vmem:[%s10499_s2 + $0xf8] sm:$0xff] }
 0x273   :  { %1267 = vmatpush1.msra.mxu0 %v6004_v54  ;;  %1338 = vmatpush1.msra.mxu1 %v6402_v52  ;;  %v6416_v54 = vld [vmem:[%s10499_s2 + $0xf0] sm:$0xff] }
 0x274   :  { %1268 = vmatprep.subr.mxu0 %v6011_v55  ;;  %1339 = vmatprep.subr.mxu1 %v6409_v53  ;;  %v6423_v55 = vld [vmem:[%s10499_s2 + $0xd8] sm:$0xff] }
 0x275   :  { %1269 = vmatpush1.msra.mxu0 %v6018_v56  ;;  %1340 = vmatpush1.msra.mxu1 %v6416_v54  ;;  %v6430_v56 = vld [vmem:[%s10499_s2 + $0xd0] sm:$0xff] }
 0x276   :  { %1270 = vmatprep.subr.mxu0 %v6025_v57  ;;  %1341 = vmatprep.subr.mxu1 %v6423_v55  ;;  %v6437_v57 = vld [vmem:[%s10499_s2 + $0xb8] sm:$0xff] }
 0x277   :  { %1271 = vmatpush1.msra.mxu0 %v6032_v58  ;;  %1342 = vmatpush1.msra.mxu1 %v6430_v56  ;;  %v6444_v58 = vld [vmem:[%s10499_s2 + $0xb0] sm:$0xff] }
 0x278   :  { %1272 = vmatprep.subr.mxu0 %v6039_v59  ;;  %1343 = vmatprep.subr.mxu1 %v6437_v57  ;;  %v6451_v59 = vld [vmem:[%s10499_s2 + $0x98] sm:$0xff] }
 0x279   :  { %1273 = vmatpush1.msra.mxu0 %v6046_v60  ;;  %1344 = vmatpush1.msra.mxu1 %v6444_v58  ;;  %v6458_v60 = vld [vmem:[%s10499_s2 + $0x90] sm:$0xff] }
 0x27a   :  { %1274 = vmatprep.subr.mxu0 %v6053_v61  ;;  %1345 = vmatprep.subr.mxu1 %v6451_v59  ;;  %v6465_v61 = vld [vmem:[%s10499_s2 + $0x78] sm:$0xff] }
 0x27b   :  { %1275 = vmatpush1.msra.mxu0 %v6060_v62  ;;  %1346 = vmatpush1.msra.mxu1 %v6458_v60  ;;  %v6472_v62 = vld [vmem:[%s10499_s2 + $0x70] sm:$0xff] }
 0x27c   :  { %1276 = vmatprep.subr.mxu0 %v6067_v63  ;;  %1347 = vmatprep.subr.mxu1 %v6465_v61  ;;  %v6479_v63 = vld [vmem:[%s10499_s2 + $0x58] sm:$0xff] }
 0x27d   :  { %1277 = vmatpush1.msra.mxu0 %v6074_v0  ;;  %1348 = vmatpush1.msra.mxu1 %v6472_v62  ;;  %v6486_v0 = vld [vmem:[%s10499_s2 + $0x50] sm:$0xff] }
 0x27e   :  { %1278 = vmatprep.subr.mxu0 %v6081_v1  ;;  %1349 = vmatprep.subr.mxu1 %v6479_v63  ;;  %v6493_v1 = vld [vmem:[%s10499_s2 + $0x38] sm:$0xff] }
 0x27f   :  { %1279 = vmatpush1.msra.mxu0 %v6088_v2  ;;  %1350 = vmatpush1.msra.mxu1 %v6486_v0  ;;  %v6500_v2 = vld [vmem:[%s10499_s2 + $0x30] sm:$0xff] }
 0x280   :  { %1280 = vmatprep.subr.mxu0 %v6095_v4  ;;  %1351 = vmatprep.subr.mxu1 %v6493_v1  ;;  %v6507_v4 = vld [vmem:[%s10499_s2 + $0x18] sm:$0xff] }
 0x281   :  { %1281 = vmatpush1.msra.mxu0 %v6102_v5  ;;  %1352 = vmatpush1.msra.mxu1 %v6500_v2  ;;  %v6515_v5 = vld [vmem:[%s10499_s2 + $0x10] sm:$0xff] }
 0x282   :  { %1282 = vmatprep.subr.mxu0 %v6109_v6  ;;  %1353 = vmatprep.subr.mxu1 %v6507_v4  ;;  %v6524_v6 = vld [vmem:[%s10501_s4 + $0x1e8] sm:$0xff] }
 0x283   :  { %1283 = vmatpush1.msra.mxu0 %v6116_v7  ;;  %1316 = vmatprep.mubr.f32.mxu0 %v11152_v39  ;;  %v6530_v7 = vld [vmem:[%s10501_s4 + $0x1f8] sm:$0xff] }
 0x284   :  { %1354 = vmatpush1.msra.mxu1 %v6515_v5  ;;  %1387 = vmatprep.mubr.f32.mxu1 %v11152_v39 }
 0x285   :  { %1317 = vmatmul.mubr.f32.vlgmr.msra.gmra.mxu0 %v6296_v21  ;;  %1388 = vmatmul.mubr.f32.vlgmr.msra.gmra.mxu1 %v6296_v21  ;;  %v6662_v21 = vld [vmem:[%s10501_s4 + $0x150] sm:$0xff] }
 0x286   :  { %1422 = vmatprep.subr.mxu0 %v6524_v6  ;;  %1493 = vmatprep.subr.mxu1 %v6530_v7  ;;  %11296 = vst [vmem:[#allocation24_spill] sm:$0xff] %v6662_v21 }
 0x287   :  { %1423 = vmatpush1.msra.mxu0 %v6536_v9  ;;  %1494 = vmatpush1.msra.mxu1 %v6542_v12 }
 0x288   :  { %1424 = vmatprep.subr.mxu0 %v6548_v13  ;;  %1495 = vmatprep.subr.mxu1 %v6554_v14 }
 0x289   :  { %1425 = vmatpush1.msra.mxu0 %v6560_v15  ;;  %1496 = vmatpush1.msra.mxu1 %v6566_v16 }
 0x28a   :  { %1426 = vmatprep.subr.mxu0 %v6572_v17  ;;  %1497 = vmatprep.subr.mxu1 %v6578_v18 }
 0x28b   :  { %1427 = vmatpush1.msra.mxu0 %v6584_v19  ;;  %1498 = vmatpush1.msra.mxu1 %v6590_v35 }
 0x28c   :  { %1428 = vmatprep.subr.mxu0 %v6596_v41  ;;  %1499 = vmatprep.subr.mxu1 %v6602_v31 }
 0x28d   :  { %1429 = vmatpush1.msra.mxu0 %v6608_v22  ;;  %1500 = vmatpush1.msra.mxu1 %v6614_v36 }
 0x28e   :  { %1430 = vmatprep.subr.mxu0 %v6620_v3  ;;  %1501 = vmatprep.subr.mxu1 %v6626_v37 }
 0x28f   :  { %1431 = vmatpush1.msra.mxu0 %v6632_v42  ;;  %1502 = vmatpush1.msra.mxu1 %v6638_v33 }
 0x290   :  { %1432 = vmatprep.subr.mxu0 %v6644_v26  ;;  %1503 = vmatprep.subr.mxu1 %v6650_v29  ;;  %v6674_v29 = vld [vmem:[%s10501_s4 + $0x138] sm:$0xff] }
 0x291   :  { %1433 = vmatpush1.msra.mxu0 %v6656_v27  ;;  %1504 = vmatpush1.msra.mxu1 %v6662_v21  ;;  %11298 = vst [vmem:[#allocation26_spill] sm:$0xff] %v6674_v29  ;;  %v6680_v27 = vld [vmem:[%s10501_s4 + $0x120] sm:$0xff]  ;;  %v6686_v21 = vld [vmem:[%s10501_s4 + $0x130] sm:$0xff] }
 0x292   :  { %1434 = vmatprep.subr.mxu0 %v6668_v28  ;;  %1505 = vmatprep.subr.mxu1 %v6674_v29  ;;  %11299 = vst [vmem:[#allocation27_spill] sm:$0xff] %v6680_v27  ;;  %11300 = vst [vmem:[#allocation28_spill] sm:$0xff] %v6686_v21  ;;  %v6692_v28 = vld [vmem:[%s10501_s4 + $0x108] sm:$0xff]  ;;  %v6698_v29 = vld [vmem:[%s10501_s4 + $0x118] sm:$0xff] }
 0x293   :  { %1435 = vmatpush1.msra.mxu0 %v6680_v27  ;;  %1506 = vmatpush1.msra.mxu1 %v6686_v21  ;;  %11301 = vst [vmem:[#allocation29_spill] sm:$0xff] %v6692_v28  ;;  %11302 = vst [vmem:[#allocation30_spill] sm:$0xff] %v6698_v29  ;;  %v6704_v27 = vld [vmem:[%s10501_s4 + $0x100] sm:$0xff]  ;;  %v6710_v21 = vld [vmem:[%s10501_s4 + $0x110] sm:$0xff] }
 0x294   :  { %1436 = vmatprep.subr.mxu0 %v6692_v28  ;;  %1507 = vmatprep.subr.mxu1 %v6698_v29  ;;  %11303 = vst [vmem:[#allocation31_spill] sm:$0xff] %v6704_v27  ;;  %11304 = vst [vmem:[#allocation32_spill] sm:$0xff] %v6710_v21  ;;  %v6716_v28 = vld [vmem:[%s10501_s4 + $0xe8] sm:$0xff]  ;;  %v6722_v29 = vld [vmem:[%s10501_s4 + $0xf8] sm:$0xff] }
 0x295   :  { %1437 = vmatpush1.msra.mxu0 %v6704_v27  ;;  %1508 = vmatpush1.msra.mxu1 %v6710_v21  ;;  %11305 = vst [vmem:[#allocation33_spill] sm:$0xff] %v6716_v28  ;;  %11306 = vst [vmem:[#allocation34_spill] sm:$0xff] %v6722_v29  ;;  %v6728_v27 = vld [vmem:[%s10501_s4 + $0xe0] sm:$0xff]  ;;  %v6734_v21 = vld [vmem:[%s10501_s4 + $0xf0] sm:$0xff] }
 0x296   :  { %1438 = vmatprep.subr.mxu0 %v6716_v28  ;;  %1509 = vmatprep.subr.mxu1 %v6722_v29  ;;  %11307 = vst [vmem:[#allocation35_spill] sm:$0xff] %v6728_v27  ;;  %11308 = vst [vmem:[#allocation36_spill] sm:$0xff] %v6734_v21  ;;  %v6740_v28 = vld [vmem:[%s10501_s4 + $0xc8] sm:$0xff]  ;;  %v6746_v29 = vld [vmem:[%s10501_s4 + $0xd8] sm:$0xff] }
 0x297   :  { %1439 = vmatpush1.msra.mxu0 %v6728_v27  ;;  %1510 = vmatpush1.msra.mxu1 %v6734_v21  ;;  %11309 = vst [vmem:[#allocation37_spill] sm:$0xff] %v6740_v28  ;;  %11310 = vst [vmem:[#allocation38_spill] sm:$0xff] %v6746_v29  ;;  %v6752_v27 = vld [vmem:[%s10501_s4 + $0xc0] sm:$0xff]  ;;  %v6758_v21 = vld [vmem:[%s10501_s4 + $0xd0] sm:$0xff] }
 0x298   :  { %1440 = vmatprep.subr.mxu0 %v6740_v28  ;;  %1511 = vmatprep.subr.mxu1 %v6746_v29  ;;  %11311 = vst [vmem:[#allocation39_spill] sm:$0xff] %v6752_v27  ;;  %11312 = vst [vmem:[#allocation40_spill] sm:$0xff] %v6758_v21  ;;  %v6764_v28 = vld [vmem:[%s10501_s4 + $0xa8] sm:$0xff]  ;;  %v6770_v29 = vld [vmem:[%s10501_s4 + $0xb8] sm:$0xff] }
 0x299   :  { %1441 = vmatpush1.msra.mxu0 %v6752_v27  ;;  %1512 = vmatpush1.msra.mxu1 %v6758_v21  ;;  %11313 = vst [vmem:[#allocation41_spill] sm:$0xff] %v6764_v28  ;;  %11314 = vst [vmem:[#allocation42_spill] sm:$0xff] %v6770_v29  ;;  %v6776_v27 = vld [vmem:[%s10501_s4 + $0xa0] sm:$0xff]  ;;  %v6782_v21 = vld [vmem:[%s10501_s4 + $0xb0] sm:$0xff] }
 0x29a   :  { %1442 = vmatprep.subr.mxu0 %v6764_v28  ;;  %1513 = vmatprep.subr.mxu1 %v6770_v29  ;;  %11315 = vst [vmem:[#allocation43_spill] sm:$0xff] %v6776_v27  ;;  %11316 = vst [vmem:[#allocation44_spill] sm:$0xff] %v6782_v21  ;;  %v6788_v28 = vld [vmem:[%s10501_s4 + $0x88] sm:$0xff]  ;;  %v6794_v29 = vld [vmem:[%s10501_s4 + $0x98] sm:$0xff] }
 0x29b   :  { %1443 = vmatpush1.msra.mxu0 %v6776_v27  ;;  %1514 = vmatpush1.msra.mxu1 %v6782_v21  ;;  %11317 = vst [vmem:[#allocation45_spill] sm:$0xff] %v6788_v28  ;;  %11318 = vst [vmem:[#allocation46_spill] sm:$0xff] %v6794_v29  ;;  %v6800_v27 = vld [vmem:[%s10501_s4 + $0x80] sm:$0xff]  ;;  %v6806_v21 = vld [vmem:[%s10501_s4 + $0x90] sm:$0xff] }
 0x29c   :  { %1444 = vmatprep.subr.mxu0 %v6788_v28  ;;  %1515 = vmatprep.subr.mxu1 %v6794_v29  ;;  %11319 = vst [vmem:[#allocation47_spill] sm:$0xff] %v6800_v27  ;;  %11320 = vst [vmem:[#allocation48_spill] sm:$0xff] %v6806_v21  ;;  %v6812_v28 = vld [vmem:[%s10501_s4 + $0x68] sm:$0xff]  ;;  %v6818_v29 = vld [vmem:[%s10501_s4 + $0x78] sm:$0xff] }
 0x29d   :  { %1445 = vmatpush1.msra.mxu0 %v6800_v27  ;;  %1516 = vmatpush1.msra.mxu1 %v6806_v21  ;;  %11321 = vst [vmem:[#allocation49_spill] sm:$0xff] %v6812_v28  ;;  %11322 = vst [vmem:[#allocation50_spill] sm:$0xff] %v6818_v29  ;;  %v6824_v27 = vld [vmem:[%s10501_s4 + $0x60] sm:$0xff]  ;;  %v6830_v21 = vld [vmem:[%s10501_s4 + $0x70] sm:$0xff] }
 0x29e   :  { %1446 = vmatprep.subr.mxu0 %v6812_v28  ;;  %1517 = vmatprep.subr.mxu1 %v6818_v29  ;;  %11323 = vst [vmem:[#allocation51_spill] sm:$0xff] %v6824_v27  ;;  %11324 = vst [vmem:[#allocation52_spill] sm:$0xff] %v6830_v21  ;;  %v6836_v28 = vld [vmem:[%s10501_s4 + $0x48] sm:$0xff]  ;;  %v6842_v29 = vld [vmem:[%s10501_s4 + $0x58] sm:$0xff] }
 0x29f   :  { %1447 = vmatpush1.msra.mxu0 %v6824_v27  ;;  %1518 = vmatpush1.msra.mxu1 %v6830_v21  ;;  %11325 = vst [vmem:[#allocation53_spill] sm:$0xff] %v6836_v28  ;;  %11326 = vst [vmem:[#allocation54_spill] sm:$0xff] %v6842_v29  ;;  %v6848_v27 = vld [vmem:[%s10501_s4 + $0x40] sm:$0xff]  ;;  %v6854_v21 = vld [vmem:[%s10501_s4 + $0x50] sm:$0xff] }
 0x2a0   :  { %1448 = vmatprep.subr.mxu0 %v6836_v28  ;;  %1519 = vmatprep.subr.mxu1 %v6842_v29  ;;  %11327 = vst [vmem:[#allocation55_spill] sm:$0xff] %v6848_v27  ;;  %11328 = vst [vmem:[#allocation56_spill] sm:$0xff] %v6854_v21  ;;  %v6860_v28 = vld [vmem:[%s10501_s4 + $0x28] sm:$0xff]  ;;  %v6866_v29 = vld [vmem:[%s10501_s4 + $0x38] sm:$0xff] }
 0x2a1   :  { %1449 = vmatpush1.msra.mxu0 %v6848_v27  ;;  %1520 = vmatpush1.msra.mxu1 %v6854_v21  ;;  %11329 = vst [vmem:[#allocation57_spill] sm:$0xff] %v6860_v28  ;;  %11330 = vst [vmem:[#allocation58_spill] sm:$0xff] %v6866_v29  ;;  %v6872_v27 = vld [vmem:[%s10501_s4 + $0x20] sm:$0xff]  ;;  %v6878_v21 = vld [vmem:[%s10501_s4 + $0x30] sm:$0xff] }
 0x2a2   :  { %1450 = vmatprep.subr.mxu0 %v6860_v28  ;;  %1521 = vmatprep.subr.mxu1 %v6866_v29  ;;  %11331 = vst [vmem:[#allocation59_spill] sm:$0xff] %v6872_v27  ;;  %11332 = vst [vmem:[#allocation60_spill] sm:$0xff] %v6878_v21  ;;  %v6884_v28 = vld [vmem:[%s10501_s4 + $0x8] sm:$0xff]  ;;  %v6890_v29 = vld [vmem:[%s10501_s4 + $0x18] sm:$0xff] }
 0x2a3   :  { %1451 = vmatpush1.msra.mxu0 %v6872_v27  ;;  %1522 = vmatpush1.msra.mxu1 %v6878_v21  ;;  %11333 = vst [vmem:[#allocation61_spill] sm:$0xff] %v6884_v28  ;;  %11334 = vst [vmem:[#allocation62_spill] sm:$0xff] %v6890_v29  ;;  %v6896_v27 = vld [vmem:[%s10501_s4] sm:$0xff]  ;;  %v6902_v21 = vld [vmem:[%s10501_s4 + $0x10] sm:$0xff] }
 0x2a4   :  { %1452 = vmatprep.subr.mxu0 %v6884_v28  ;;  %1523 = vmatprep.subr.mxu1 %v6890_v29  ;;  %11335 = vst [vmem:[#allocation63_spill] sm:$0xff] %v6896_v27  ;;  %11336 = vst [vmem:[#allocation64_spill] sm:$0xff] %v6902_v21  ;;  %v6908_v28 = vld [vmem:[%s10501_s4 + $0x3e8] sm:$0xff]  ;;  %v6914_v29 = vld [vmem:[%s10501_s4 + $0x3f8] sm:$0xff] }
 0x2a5   :  { %1453 = vmatpush1.msra.mxu0 %v6896_v27  ;;  %1524 = vmatpush1.msra.mxu1 %v6902_v21  ;;  %11337 = vst [vmem:[#allocation65_spill] sm:$0xff] %v6908_v28  ;;  %11338 = vst [vmem:[#allocation66_spill] sm:$0xff] %v6914_v29  ;;  %v6920_v27 = vld [vmem:[%s10501_s4 + $0x3e0] sm:$0xff]  ;;  %v6926_v21 = vld [vmem:[%s10501_s4 + $0x3f0] sm:$0xff] }
 0x2a6   :  { %1454 = vmatprep.subr.mxu0 %v6908_v28  ;;  %1525 = vmatprep.subr.mxu1 %v6914_v29  ;;  %11339 = vst [vmem:[#allocation67_spill] sm:$0xff] %v6920_v27  ;;  %11340 = vst [vmem:[#allocation68_spill] sm:$0xff] %v6926_v21  ;;  %v6932_v28 = vld [vmem:[%s10501_s4 + $0x3c8] sm:$0xff]  ;;  %v6938_v29 = vld [vmem:[%s10501_s4 + $0x3d8] sm:$0xff] }
 0x2a7   :  { %1455 = vmatpush2.msra.mxu0 %v6920_v27  ;;  %1526 = vmatpush2.msra.mxu1 %v6926_v21  ;;  %11341 = vst [vmem:[#allocation69_spill] sm:$0xff] %v6932_v28  ;;  %11342 = vst [vmem:[#allocation70_spill] sm:$0xff] %v6938_v29  ;;  %v6944_v27 = vld [vmem:[%s10501_s4 + $0x3c0] sm:$0xff]  ;;  %v6950_v21 = vld [vmem:[%s10501_s4 + $0x3d0] sm:$0xff] }
 0x2a8   :  { %1456 = vmatprep.subr.mxu0 %v6932_v28  ;;  %1527 = vmatprep.subr.mxu1 %v6938_v29  ;;  %11343 = vst [vmem:[#allocation71_spill] sm:$0xff] %v6944_v27  ;;  %11344 = vst [vmem:[#allocation72_spill] sm:$0xff] %v6950_v21  ;;  %v6956_v28 = vld [vmem:[%s10501_s4 + $0x3a8] sm:$0xff]  ;;  %v6962_v29 = vld [vmem:[%s10501_s4 + $0x3b8] sm:$0xff] }
 0x2a9   :  { %1457 = vmatpush2.msra.mxu0 %v6944_v27  ;;  %1528 = vmatpush2.msra.mxu1 %v6950_v21  ;;  %11345 = vst [vmem:[#allocation73_spill] sm:$0xff] %v6956_v28  ;;  %11346 = vst [vmem:[#allocation74_spill] sm:$0xff] %v6962_v29  ;;  %v6968_v27 = vld [vmem:[%s10501_s4 + $0x3a0] sm:$0xff]  ;;  %v6974_v21 = vld [vmem:[%s10501_s4 + $0x3b0] sm:$0xff] }
 0x2aa   :  { %1458 = vmatprep.subr.mxu0 %v6956_v28  ;;  %1529 = vmatprep.subr.mxu1 %v6962_v29  ;;  %11347 = vst [vmem:[#allocation75_spill] sm:$0xff] %v6968_v27  ;;  %11348 = vst [vmem:[#allocation76_spill] sm:$0xff] %v6974_v21  ;;  %v6980_v28 = vld [vmem:[%s10501_s4 + $0x388] sm:$0xff]  ;;  %v6986_v29 = vld [vmem:[%s10501_s4 + $0x398] sm:$0xff] }
 0x2ab   :  { %1459 = vmatpush2.msra.mxu0 %v6968_v27  ;;  %1530 = vmatpush2.msra.mxu1 %v6974_v21  ;;  %11349 = vst [vmem:[#allocation77_spill] sm:$0xff] %v6980_v28  ;;  %11350 = vst [vmem:[#allocation78_spill] sm:$0xff] %v6986_v29  ;;  %v6992_v27 = vld [vmem:[%s10501_s4 + $0x380] sm:$0xff]  ;;  %v6998_v21 = vld [vmem:[%s10501_s4 + $0x390] sm:$0xff] }
 0x2ac   :  { %1460 = vmatprep.subr.mxu0 %v6980_v28  ;;  %1531 = vmatprep.subr.mxu1 %v6986_v29  ;;  %11351 = vst [vmem:[#allocation79_spill] sm:$0xff] %v6992_v27  ;;  %11352 = vst [vmem:[#allocation80_spill] sm:$0xff] %v6998_v21  ;;  %v7004_v28 = vld [vmem:[%s10501_s4 + $0x368] sm:$0xff]  ;;  %v7010_v29 = vld [vmem:[%s10501_s4 + $0x378] sm:$0xff] }
 0x2ad   :  { %1461 = vmatpush2.msra.mxu0 %v6992_v27  ;;  %1532 = vmatpush2.msra.mxu1 %v6998_v21  ;;  %11353 = vst [vmem:[#allocation81_spill] sm:$0xff] %v7004_v28  ;;  %11354 = vst [vmem:[#allocation82_spill] sm:$0xff] %v7010_v29  ;;  %v7016_v27 = vld [vmem:[%s10501_s4 + $0x360] sm:$0xff]  ;;  %v7022_v21 = vld [vmem:[%s10501_s4 + $0x370] sm:$0xff] }
 0x2ae   :  { %1462 = vmatprep.subr.mxu0 %v7004_v28  ;;  %1533 = vmatprep.subr.mxu1 %v7010_v29  ;;  %11355 = vst [vmem:[#allocation83_spill] sm:$0xff] %v7016_v27  ;;  %11356 = vst [vmem:[#allocation84_spill] sm:$0xff] %v7022_v21  ;;  %v7028_v28 = vld [vmem:[%s10501_s4 + $0x348] sm:$0xff]  ;;  %v7034_v29 = vld [vmem:[%s10501_s4 + $0x358] sm:$0xff] }
 0x2af   :  { %1463 = vmatpush2.msra.mxu0 %v7016_v27  ;;  %1534 = vmatpush2.msra.mxu1 %v7022_v21  ;;  %11357 = vst [vmem:[#allocation85_spill] sm:$0xff] %v7028_v28  ;;  %11358 = vst [vmem:[#allocation86_spill] sm:$0xff] %v7034_v29  ;;  %v7040_v27 = vld [vmem:[%s10501_s4 + $0x340] sm:$0xff]  ;;  %v7046_v21 = vld [vmem:[%s10501_s4 + $0x350] sm:$0xff] }
 0x2b0   :  { %1464 = vmatprep.subr.mxu0 %v7028_v28  ;;  %1535 = vmatprep.subr.mxu1 %v7034_v29  ;;  %11359 = vst [vmem:[#allocation87_spill] sm:$0xff] %v7040_v27  ;;  %11360 = vst [vmem:[#allocation88_spill] sm:$0xff] %v7046_v21  ;;  %v7052_v28 = vld [vmem:[%s10501_s4 + $0x328] sm:$0xff]  ;;  %v7058_v29 = vld [vmem:[%s10501_s4 + $0x338] sm:$0xff] }
 0x2b1   :  { %1465 = vmatpush2.msra.mxu0 %v7040_v27  ;;  %1536 = vmatpush2.msra.mxu1 %v7046_v21  ;;  %11361 = vst [vmem:[#allocation89_spill] sm:$0xff] %v7052_v28  ;;  %11362 = vst [vmem:[#allocation90_spill] sm:$0xff] %v7058_v29  ;;  %v7064_v27 = vld [vmem:[%s10501_s4 + $0x320] sm:$0xff]  ;;  %v7070_v21 = vld [vmem:[%s10501_s4 + $0x330] sm:$0xff] }
 0x2b2   :  { %1466 = vmatprep.subr.mxu0 %v7052_v28  ;;  %1537 = vmatprep.subr.mxu1 %v7058_v29  ;;  %11363 = vst [vmem:[#allocation91_spill] sm:$0xff] %v7064_v27  ;;  %11364 = vst [vmem:[#allocation92_spill] sm:$0xff] %v7070_v21  ;;  %v7076_v28 = vld [vmem:[%s10501_s4 + $0x308] sm:$0xff]  ;;  %v7082_v29 = vld [vmem:[%s10501_s4 + $0x318] sm:$0xff] }
 0x2b3   :  { %1467 = vmatpush2.msra.mxu0 %v7064_v27  ;;  %1538 = vmatpush2.msra.mxu1 %v7070_v21  ;;  %11365 = vst [vmem:[#allocation93_spill] sm:$0xff] %v7076_v28  ;;  %11366 = vst [vmem:[#allocation94_spill] sm:$0xff] %v7082_v29  ;;  %v7088_v27 = vld [vmem:[%s10501_s4 + $0x300] sm:$0xff]  ;;  %v7094_v21 = vld [vmem:[%s10501_s4 + $0x310] sm:$0xff] }
 0x2b4   :  { %1468 = vmatprep.subr.mxu0 %v7076_v28  ;;  %1539 = vmatprep.subr.mxu1 %v7082_v29  ;;  %11367 = vst [vmem:[#allocation95_spill] sm:$0xff] %v7088_v27  ;;  %11368 = vst [vmem:[#allocation96_spill] sm:$0xff] %v7094_v21  ;;  %v7100_v28 = vld [vmem:[%s10501_s4 + $0x2e8] sm:$0xff]  ;;  %v7106_v29 = vld [vmem:[%s10501_s4 + $0x2f8] sm:$0xff] }
 0x2b5   :  { %1469 = vmatpush2.msra.mxu0 %v7088_v27  ;;  %1540 = vmatpush2.msra.mxu1 %v7094_v21  ;;  %11369 = vst [vmem:[#allocation97_spill] sm:$0xff] %v7100_v28  ;;  %11370 = vst [vmem:[#allocation98_spill] sm:$0xff] %v7106_v29  ;;  %v7112_v27 = vld [vmem:[%s10501_s4 + $0x2e0] sm:$0xff]  ;;  %v7118_v21 = vld [vmem:[%s10501_s4 + $0x2f0] sm:$0xff] }
 0x2b6   :  { %1470 = vmatprep.subr.mxu0 %v7100_v28  ;;  %1541 = vmatprep.subr.mxu1 %v7106_v29  ;;  %11371 = vst [vmem:[#allocation99_spill] sm:$0xff] %v7112_v27  ;;  %11372 = vst [vmem:[#allocation100_spill] sm:$0xff] %v7118_v21  ;;  %v7124_v28 = vld [vmem:[%s10501_s4 + $0x2c8] sm:$0xff]  ;;  %v7130_v29 = vld [vmem:[%s10501_s4 + $0x2d8] sm:$0xff] }
 0x2b7   :  { %1471 = vmatpush2.msra.mxu0 %v7112_v27  ;;  %1542 = vmatpush2.msra.mxu1 %v7118_v21  ;;  %11373 = vst [vmem:[#allocation101_spill] sm:$0xff] %v7124_v28  ;;  %11374 = vst [vmem:[#allocation102_spill] sm:$0xff] %v7130_v29  ;;  %v7136_v27 = vld [vmem:[%s10501_s4 + $0x2c0] sm:$0xff]  ;;  %v7142_v21 = vld [vmem:[%s10501_s4 + $0x2d0] sm:$0xff] }
 0x2b8   :  { %1472 = vmatprep.subr.mxu0 %v7124_v28  ;;  %1543 = vmatprep.subr.mxu1 %v7130_v29  ;;  %11375 = vst [vmem:[#allocation103_spill] sm:$0xff] %v7136_v27  ;;  %11376 = vst [vmem:[#allocation104_spill] sm:$0xff] %v7142_v21  ;;  %v7148_v28 = vld [vmem:[%s10501_s4 + $0x2a8] sm:$0xff]  ;;  %v7154_v29 = vld [vmem:[%s10501_s4 + $0x2b8] sm:$0xff] }
 0x2b9   :  { %1473 = vmatpush2.msra.mxu0 %v7136_v27  ;;  %1544 = vmatpush2.msra.mxu1 %v7142_v21  ;;  %11377 = vst [vmem:[#allocation105_spill] sm:$0xff] %v7148_v28  ;;  %11378 = vst [vmem:[#allocation106_spill] sm:$0xff] %v7154_v29  ;;  %v7160_v27 = vld [vmem:[%s10501_s4 + $0x2a0] sm:$0xff]  ;;  %v7166_v21 = vld [vmem:[%s10501_s4 + $0x2b0] sm:$0xff] }
 0x2ba   :  { %1474 = vmatprep.subr.mxu0 %v7148_v28  ;;  %1545 = vmatprep.subr.mxu1 %v7154_v29  ;;  %11379 = vst [vmem:[#allocation107_spill] sm:$0xff] %v7160_v27  ;;  %11380 = vst [vmem:[#allocation108_spill] sm:$0xff] %v7166_v21  ;;  %v7172_v28 = vld [vmem:[%s10501_s4 + $0x288] sm:$0xff]  ;;  %v7178_v29 = vld [vmem:[%s10501_s4 + $0x298] sm:$0xff] }
 0x2bb   :  { %1475 = vmatpush2.msra.mxu0 %v7160_v27  ;;  %1546 = vmatpush2.msra.mxu1 %v7166_v21  ;;  %11381 = vst [vmem:[#allocation109_spill] sm:$0xff] %v7172_v28  ;;  %11382 = vst [vmem:[#allocation110_spill] sm:$0xff] %v7178_v29  ;;  %v7184_v27 = vld [vmem:[%s10501_s4 + $0x280] sm:$0xff]  ;;  %v7190_v21 = vld [vmem:[%s10501_s4 + $0x290] sm:$0xff] }
 0x2bc   :  { %1476 = vmatprep.subr.mxu0 %v7172_v28  ;;  %1547 = vmatprep.subr.mxu1 %v7178_v29  ;;  %11383 = vst [vmem:[#allocation111_spill] sm:$0xff] %v7184_v27  ;;  %11384 = vst [vmem:[#allocation112_spill] sm:$0xff] %v7190_v21  ;;  %v7196_v28 = vld [vmem:[%s10501_s4 + $0x268] sm:$0xff]  ;;  %v7202_v29 = vld [vmem:[%s10501_s4 + $0x278] sm:$0xff] }
 0x2bd   :  { %1477 = vmatpush2.msra.mxu0 %v7184_v27  ;;  %1548 = vmatpush2.msra.mxu1 %v7190_v21  ;;  %11385 = vst [vmem:[#allocation113_spill] sm:$0xff] %v7196_v28  ;;  %11386 = vst [vmem:[#allocation114_spill] sm:$0xff] %v7202_v29  ;;  %v7208_v27 = vld [vmem:[%s10501_s4 + $0x260] sm:$0xff]  ;;  %v7214_v21 = vld [vmem:[%s10501_s4 + $0x270] sm:$0xff] }
 0x2be   :  { %1478 = vmatprep.subr.mxu0 %v7196_v28  ;;  %1549 = vmatprep.subr.mxu1 %v7202_v29  ;;  %11387 = vst [vmem:[#allocation115_spill] sm:$0xff] %v7208_v27  ;;  %11388 = vst [vmem:[#allocation116_spill] sm:$0xff] %v7214_v21  ;;  %v7220_v28 = vld [vmem:[%s10501_s4 + $0x248] sm:$0xff]  ;;  %v7226_v29 = vld [vmem:[%s10501_s4 + $0x258] sm:$0xff] }
 0x2bf   :  { %1479 = vmatpush2.msra.mxu0 %v7208_v27  ;;  %1550 = vmatpush2.msra.mxu1 %v7214_v21  ;;  %11389 = vst [vmem:[#allocation117_spill] sm:$0xff] %v7220_v28  ;;  %11390 = vst [vmem:[#allocation118_spill] sm:$0xff] %v7226_v29  ;;  %v7232_v27 = vld [vmem:[%s10501_s4 + $0x240] sm:$0xff]  ;;  %v7238_v21 = vld [vmem:[%s10501_s4 + $0x250] sm:$0xff] }
 0x2c0   :  { %1480 = vmatprep.subr.mxu0 %v7220_v28  ;;  %1551 = vmatprep.subr.mxu1 %v7226_v29  ;;  %11391 = vst [vmem:[#allocation119_spill] sm:$0xff] %v7232_v27  ;;  %11392 = vst [vmem:[#allocation120_spill] sm:$0xff] %v7238_v21  ;;  %v7244_v28 = vld [vmem:[%s10501_s4 + $0x228] sm:$0xff]  ;;  %v7250_v29 = vld [vmem:[%s10501_s4 + $0x238] sm:$0xff] }
 0x2c1   :  { %1481 = vmatpush2.msra.mxu0 %v7232_v27  ;;  %1552 = vmatpush2.msra.mxu1 %v7238_v21  ;;  %11393 = vst [vmem:[#allocation121_spill] sm:$0xff] %v7244_v28  ;;  %11394 = vst [vmem:[#allocation122_spill] sm:$0xff] %v7250_v29  ;;  %v7256_v27 = vld [vmem:[%s10501_s4 + $0x220] sm:$0xff]  ;;  %v7262_v21 = vld [vmem:[%s10501_s4 + $0x230] sm:$0xff] }
 0x2c2   :  { %1482 = vmatprep.subr.mxu0 %v7244_v28  ;;  %1553 = vmatprep.subr.mxu1 %v7250_v29  ;;  %11395 = vst [vmem:[#allocation123_spill] sm:$0xff] %v7256_v27  ;;  %11396 = vst [vmem:[#allocation124_spill] sm:$0xff] %v7262_v21  ;;  %v7268_v28 = vld [vmem:[%s10501_s4 + $0x208] sm:$0xff]  ;;  %v7274_v29 = vld [vmem:[%s10501_s4 + $0x218] sm:$0xff] }
 0x2c3   :  { %1483 = vmatpush2.msra.mxu0 %v7256_v27  ;;  %1554 = vmatpush2.msra.mxu1 %v7262_v21  ;;  %11397 = vst [vmem:[#allocation125_spill] sm:$0xff] %v7268_v28  ;;  %11398 = vst [vmem:[#allocation126_spill] sm:$0xff] %v7274_v29  ;;  %v7280_v27 = vld [vmem:[%s10501_s4 + $0x200] sm:$0xff]  ;;  %v7286_v21 = vld [vmem:[%s10501_s4 + $0x210] sm:$0xff] }
 0x2c4   :  { %1484 = vmatprep.subr.mxu0 %v7268_v28  ;;  %1555 = vmatprep.subr.mxu1 %v7274_v29  ;;  %11399 = vst [vmem:[#allocation127_spill] sm:$0xff] %v7280_v27  ;;  %11400 = vst [vmem:[#allocation128_spill] sm:$0xff] %v7286_v21  ;;  %v7292_v28 = vld [vmem:[%s10499_s2 + $0x1e8] sm:$0xff] }
 0x2c5   :  { %1485 = vmatpush2.msra.mxu0 %v7280_v27  ;;  %1556 = vmatpush2.msra.mxu1 %v7286_v21  ;;  %11401 = vst [vmem:[#allocation153_spill] sm:$0xff] %v7292_v28 }
 0x2c6   :  { %1590 = vmatprep.subr.mxu0 %v7292_v28  ;;  %1661 = vmatprep.subr.mxu1 %v6256_v34 }
 0x324   :  { %v1150_v29 = vpop.f32.mrf.mxu0  ;;  %v1221_v37 = vpop.f32.mrf.mxu1 }
 0x325   :  { %v1151_v26 = vadd.f32 %v1150_v29, %v6264_v30  ;;  %v1222_v28 = vadd.f32 %v1221_v37, %v6279_v11 }
 0x326   :  { %v1152_v27 = vpop.f32.mrf.mxu0  ;;  %v1223_v21 = vpop.f32.mrf.mxu1 }
 0x327   :  { %v3461_v33 = vmul.f32 -1.442695, %v1151_v26  ;;  %v1153_v42 = vadd.f32 %v1152_v27, %v6268_v23  ;;  %v1224_v36 = vadd.f32 %v1223_v21, %v6274_v25  ;;  %v11402_v23 = vld [vmem:[#allocation129_spill] sm:$0xff] }
 0x329   :  { %3618 = vpow2.f32 %v3461_v33  ;;  %v3462_v3 = vmul.f32 -1.442695, %v1153_v42  ;;  %v3463_v22 = vmul.f32 -1.442695, %v1224_v36  ;;  %v11403_v36 = vld [vmem:[#allocation130_spill] sm:$0xff] }
 0x32b   :  { %3620 = vpow2.f32 %v3462_v3 }
 0x32c   :  { %3622 = vpow2.f32 %v3463_v22 }
 0x336   :  { %v3619_v31 = vpop.eup %3618 }
 0x337   :  { %v1229_v41 = vadd.f32 1.0, %v3619_v31 }
 0x338   :  { %v3621_v34 = vpop.eup %3620 }
 0x339   :  { %3624 = vrcp.f32 %v1229_v41  ;;  %v1235_v29 = vadd.f32 1.0, %v3621_v34  ;;  %v3623_v26 = vpop.eup %3622 }
 0x33a   :  { %3626 = vtanh.f32 %v1222_v28  ;;  %v1242_v37 = vadd.f32 1.0, %v3623_v26 }
 0x33b   :  { %3628 = vrcp.f32 %v1235_v29 }
 0x345   :  { %v1318_v27 = vpop.f32.mrf.mxu0  ;;  %v1389_v41 = vpop.f32.mrf.mxu1 }
 0x346   :  { %v3625_v33 = vpop.eup %3624  ;;  %v1394_v42 = vadd.f32 %v1318_v27, %v11402_v23  ;;  %v11404_v23 = vld [vmem:[#allocation142_spill] sm:$0xff]  ;;  %v11405_v27 = vld [vmem:[#allocation141_spill] sm:$0xff] }
 0x347   :  { %v3627_v3 = vpop.eup %3626  ;;  %v1320_v30 = vpop.f32.mrf.mxu0 }
 0x348   :  { %v3629_v35 = vpop.eup %3628  ;;  %v3464_v21 = vmul.f32 -1.442695, %v1394_v42  ;;  %v1395_v25 = vadd.f32 %v1320_v30, %v11403_v36  ;;  %v1246_v19 = vmul.f32 %v3627_v3, %v3625_v33  ;;  %v1391_v34 = vpop.f32.mrf.mxu1  ;;  %v1396_v42 = vadd.f32 %v1389_v41, %v11405_v27  ;;  %v7322_v27 = vld [vmem:[%s10499_s2 + $0x1e0] sm:$0xff] }
 0x349   :  { %v1245_v31 = vmul.f32 %v3629_v35, %v6284_v10  ;;  %v1397_v29 = vadd.f32 %v1391_v34, %v11404_v23 }
 0x34a   :  { %3630 = vpow2.f32 %v3464_v21  ;;  %v3465_v22 = vmul.f32 -1.442695, %v1395_v25 }
 0x34b   :  { %v7303_v28 = vadd.f32 %v1246_v19, %v1245_v31  ;;  %v3466_v11 = vmul.f32 -1.442695, %v1397_v29 }
 0x34c   :  { %3632 = vpow2.f32 %v3465_v22 }
 0x34d   :  { %3634 = vrcp.f32 %v1242_v37 }
 0x34e   :  { %3636 = vtanh.f32 %v7303_v28 }
 0x34f   :  { %3638 = vtanh.f32 %v1396_v42  ;;  %v7336_v42 = vld [vmem:[%s10499_s2 + $0x1c0] sm:$0xff] }
 0x350   :  { %3640 = vpow2.f32 %v3466_v11 }
 0x357   :  { %v3631_v30 = vpop.eup %3630 }
 0x358   :  { %v1401_v33 = vadd.f32 1.0, %v3631_v30  ;;  %v11419_v30 = vld [vmem:[#allocation24_spill] sm:$0xff] }
 0x359   :  { %v3633_v10 = vpop.eup %3632 }
 0x35a   :  { %v3635_v35 = vpop.eup %3634  ;;  %3642 = vrcp.f32 %v1401_v33  ;;  %v1407_v25 = vadd.f32 1.0, %v3633_v10  ;;  %v11420_v33 = vld [vmem:[#allocation25_spill] sm:$0xff]  ;;  %v11421_v10 = vld [vmem:[#allocation26_spill] sm:$0xff] }
 0x35b   :  { %v3637_v19 = vpop.eup %3636 }
 0x35c   :  { %3644 = vrcp.f32 %v1407_v25  ;;  %v1249_v26 = vmul.f32 %v3637_v19, %v3635_v35  ;;  %v3639_v3 = vpop.eup %3638  ;;  %v11422_v35 = vld [vmem:[#allocation27_spill] sm:$0xff]  ;;  %v11423_v25 = vld [vmem:[#allocation28_spill] sm:$0xff]  ;;  %v11424_v19 = vld [vmem:[#allocation29_spill] sm:$0xff] }
 0x35d   :  { %v3641_v21 = vpop.eup %3640 }
 0x35e   :  { %1486 = vmatprep.mubr.f32.mxu0 %v1249_v26  ;;  %3293 = vst [vmem:[%s10504_s9 + $0x8] sm:$0xff] %v1249_v26  ;;  %1557 = vmatprep.mubr.f32.mxu1 %v1249_v26  ;;  %v1414_v41 = vadd.f32 1.0, %v3641_v21  ;;  %v11425_v26 = vld [vmem:[#allocation30_spill] sm:$0xff]  ;;  %v11427_v21 = vld [vmem:[#allocation32_spill] sm:$0xff] }
 0x360   :  { %3646 = vrcp.f32 %v1414_v41  ;;  %v11431_v41 = vld [vmem:[#allocation36_spill] sm:$0xff] }
 0x367   :  { %v3643_v36 = vpop.eup %3642 }
 0x368   :  { %v1418_v31 = vmul.f32 %v3643_v36, %v3639_v3  ;;  %v11426_v3 = vld [vmem:[#allocation31_spill] sm:$0xff]  ;;  %v11428_v36 = vld [vmem:[#allocation33_spill] sm:$0xff] }
 0x369   :  { %v3645_v37 = vpop.eup %3644 }
 0x36a   :  { %v1417_v11 = vmul.f32 %v3645_v37, %v6293_v40  ;;  %v7329_v40 = vld [vmem:[%s10499_s2 + $0x1c8] sm:$0xff]  ;;  %v11430_v37 = vld [vmem:[#allocation35_spill] sm:$0xff] }
 0x36c   :  { %v7312_v22 = vadd.f32 %v1418_v31, %v1417_v11  ;;  %v11429_v31 = vld [vmem:[#allocation34_spill] sm:$0xff]  ;;  %v11432_v11 = vld [vmem:[#allocation37_spill] sm:$0xff] }
 0x36d   :  { %v3647_v34 = vpop.eup %3646 }
 0x36e   :  { %3648 = vtanh.f32 %v7312_v22 }
 0x37b   :  { %v3649_v23 = vpop.eup %3648 }
 0x37c   :  { %v7315_v29 = vmul.f32 %v3649_v23, %v3647_v34  ;;  %v11433_v34 = vld [vmem:[#allocation38_spill] sm:$0xff]  ;;  %v11434_v23 = vld [vmem:[#allocation39_spill] sm:$0xff] }
 0x37e   :  { %1487 = vmatmul.mubr.f32.vlgmr.msra.gmra.mxu0 %v7315_v29  ;;  %1558 = vmatmul.mubr.f32.vlgmr.msra.gmra.mxu1 %v7315_v29 }
 0x37f   :  { %1591 = vmatpush1.msra.mxu0 %v7322_v27  ;;  %1662 = vmatpush1.msra.mxu1 %v6304_v8  ;;  %v7343_v8 = vld [vmem:[%s10499_s2 + $0x1a8] sm:$0xff] }
 0x380   :  { %1592 = vmatprep.subr.mxu0 %v7329_v40  ;;  %1663 = vmatprep.subr.mxu1 %v6311_v32  ;;  %v7350_v32 = vld [vmem:[%s10499_s2 + $0x1a0] sm:$0xff] }
 0x381   :  { %1593 = vmatpush1.msra.mxu0 %v7336_v42  ;;  %1664 = vmatpush1.msra.mxu1 %v6318_v20  ;;  %v7357_v20 = vld [vmem:[%s10499_s2 + $0x188] sm:$0xff] }
 0x382   :  { %1594 = vmatprep.subr.mxu0 %v7343_v8  ;;  %1665 = vmatprep.subr.mxu1 %v6325_v38  ;;  %v7364_v38 = vld [vmem:[%s10499_s2 + $0x180] sm:$0xff] }
 0x383   :  { %1595 = vmatpush1.msra.mxu0 %v7350_v32  ;;  %1666 = vmatpush1.msra.mxu1 %v6332_v24  ;;  %v7371_v24 = vld [vmem:[%s10499_s2 + $0x168] sm:$0xff] }
 0x384   :  { %1596 = vmatprep.subr.mxu0 %v7357_v20  ;;  %1667 = vmatprep.subr.mxu1 %v6339_v43  ;;  %v7378_v43 = vld [vmem:[%s10499_s2 + $0x160] sm:$0xff] }
 0x385   :  { %1597 = vmatpush1.msra.mxu0 %v7364_v38  ;;  %1668 = vmatpush1.msra.mxu1 %v6346_v44  ;;  %v7385_v44 = vld [vmem:[%s10499_s2 + $0x148] sm:$0xff] }
 0x386   :  { %1598 = vmatprep.subr.mxu0 %v7371_v24  ;;  %1669 = vmatprep.subr.mxu1 %v6353_v45  ;;  %v7392_v45 = vld [vmem:[%s10499_s2 + $0x140] sm:$0xff] }
 0x387   :  { %1599 = vmatpush1.msra.mxu0 %v7378_v43  ;;  %1670 = vmatpush1.msra.mxu1 %v6360_v46  ;;  %v7399_v46 = vld [vmem:[%s10499_s2 + $0x128] sm:$0xff] }
 0x388   :  { %1600 = vmatprep.subr.mxu0 %v7385_v44  ;;  %1671 = vmatprep.subr.mxu1 %v6367_v47  ;;  %v7406_v47 = vld [vmem:[%s10499_s2 + $0x120] sm:$0xff] }
 0x389   :  { %1601 = vmatpush1.msra.mxu0 %v7392_v45  ;;  %1672 = vmatpush1.msra.mxu1 %v6374_v48  ;;  %v7413_v48 = vld [vmem:[%s10499_s2 + $0x108] sm:$0xff] }
 0x38a   :  { %1602 = vmatprep.subr.mxu0 %v7399_v46  ;;  %1673 = vmatprep.subr.mxu1 %v6381_v49  ;;  %v7420_v49 = vld [vmem:[%s10499_s2 + $0x100] sm:$0xff] }
 0x38b   :  { %1603 = vmatpush1.msra.mxu0 %v7406_v47  ;;  %1674 = vmatpush1.msra.mxu1 %v6388_v50  ;;  %v7427_v50 = vld [vmem:[%s10499_s2 + $0xe8] sm:$0xff] }
 0x38c   :  { %1604 = vmatprep.subr.mxu0 %v7413_v48  ;;  %1675 = vmatprep.subr.mxu1 %v6395_v51  ;;  %v7434_v51 = vld [vmem:[%s10499_s2 + $0xe0] sm:$0xff] }
 0x38d   :  { %1605 = vmatpush1.msra.mxu0 %v7420_v49  ;;  %1676 = vmatpush1.msra.mxu1 %v6402_v52  ;;  %v7441_v52 = vld [vmem:[%s10499_s2 + $0xc8] sm:$0xff] }
 0x38e   :  { %1606 = vmatprep.subr.mxu0 %v7427_v50  ;;  %1677 = vmatprep.subr.mxu1 %v6409_v53  ;;  %v7448_v53 = vld [vmem:[%s10499_s2 + $0xc0] sm:$0xff] }
 0x38f   :  { %1607 = vmatpush1.msra.mxu0 %v7434_v51  ;;  %1678 = vmatpush1.msra.mxu1 %v6416_v54  ;;  %v7455_v54 = vld [vmem:[%s10499_s2 + $0xa8] sm:$0xff] }
 0x390   :  { %1608 = vmatprep.subr.mxu0 %v7441_v52  ;;  %1679 = vmatprep.subr.mxu1 %v6423_v55  ;;  %v7462_v55 = vld [vmem:[%s10499_s2 + $0xa0] sm:$0xff] }
 0x391   :  { %1609 = vmatpush1.msra.mxu0 %v7448_v53  ;;  %1680 = vmatpush1.msra.mxu1 %v6430_v56  ;;  %v7469_v56 = vld [vmem:[%s10499_s2 + $0x88] sm:$0xff] }
 0x392   :  { %1610 = vmatprep.subr.mxu0 %v7455_v54  ;;  %1681 = vmatprep.subr.mxu1 %v6437_v57  ;;  %v7476_v57 = vld [vmem:[%s10499_s2 + $0x80] sm:$0xff] }
 0x393   :  { %1611 = vmatpush1.msra.mxu0 %v7462_v55  ;;  %1682 = vmatpush1.msra.mxu1 %v6444_v58  ;;  %v7483_v58 = vld [vmem:[%s10499_s2 + $0x68] sm:$0xff] }
 0x394   :  { %1612 = vmatprep.subr.mxu0 %v7469_v56  ;;  %1683 = vmatprep.subr.mxu1 %v6451_v59  ;;  %v7490_v59 = vld [vmem:[%s10499_s2 + $0x60] sm:$0xff] }
 0x395   :  { %1613 = vmatpush1.msra.mxu0 %v7476_v57  ;;  %1684 = vmatpush1.msra.mxu1 %v6458_v60  ;;  %v7497_v60 = vld [vmem:[%s10499_s2 + $0x48] sm:$0xff] }
 0x396   :  { %1614 = vmatprep.subr.mxu0 %v7483_v58  ;;  %1685 = vmatprep.subr.mxu1 %v6465_v61  ;;  %v7504_v61 = vld [vmem:[%s10499_s2 + $0x40] sm:$0xff] }
 0x397   :  { %1615 = vmatpush1.msra.mxu0 %v7490_v59  ;;  %1686 = vmatpush1.msra.mxu1 %v6472_v62  ;;  %v7511_v62 = vld [vmem:[%s10499_s2 + $0x28] sm:$0xff] }
 0x398   :  { %1616 = vmatprep.subr.mxu0 %v7497_v60  ;;  %1687 = vmatprep.subr.mxu1 %v6479_v63  ;;  %v7518_v63 = vld [vmem:[%s10499_s2 + $0x20] sm:$0xff] }
 0x399   :  { %1617 = vmatpush1.msra.mxu0 %v7504_v61  ;;  %1688 = vmatpush1.msra.mxu1 %v6486_v0  ;;  %v7525_v0 = vld [vmem:[%s10499_s2 + $0x8] sm:$0xff] }
 0x39a   :  { %1618 = vmatprep.subr.mxu0 %v7511_v62  ;;  %1689 = vmatprep.subr.mxu1 %v6493_v1  ;;  %v7532_v1 = vld [vmem:[%s10499_s2] sm:$0xff] }
 0x39b   :  { %1619 = vmatpush1.msra.mxu0 %v7518_v63  ;;  %1690 = vmatpush1.msra.mxu1 %v6500_v2  ;;  %v11406_v2 = vld [vmem:[#allocation11_spill] sm:$0xff] }
 0x39c   :  { %1620 = vmatprep.subr.mxu0 %v7525_v0  ;;  %1691 = vmatprep.subr.mxu1 %v6507_v4  ;;  %v11407_v4 = vld [vmem:[#allocation12_spill] sm:$0xff] }
 0x39d   :  { %1621 = vmatpush1.msra.mxu0 %v7532_v1  ;;  %1654 = vmatprep.mubr.f32.mxu0 %v11152_v39 }
 0x39e   :  { %1692 = vmatpush1.msra.mxu1 %v6515_v5  ;;  %1725 = vmatprep.mubr.f32.mxu1 %v11152_v39  ;;  %v11408_v5 = vld [vmem:[#allocation13_spill] sm:$0xff] }
 0x39f   :  { %1655 = vmatmul.mubr.f32.vlgmr.msra.gmra.mxu0 %v7315_v29  ;;  %1726 = vmatmul.mubr.f32.vlgmr.msra.gmra.mxu1 %v7315_v29  ;;  %v11435_v29 = vld [vmem:[#allocation40_spill] sm:$0xff] }
 0x3a0   :  { %1760 = vmatprep.subr.mxu0 %v6524_v6  ;;  %1831 = vmatprep.subr.mxu1 %v6530_v7  ;;  %v11409_v6 = vld [vmem:[#allocation14_spill] sm:$0xff]  ;;  %v11410_v7 = vld [vmem:[#allocation15_spill] sm:$0xff] }
 0x3a1   :  { %1761 = vmatpush1.msra.mxu0 %v6536_v9  ;;  %1832 = vmatpush1.msra.mxu1 %v6542_v12  ;;  %v11411_v9 = vld [vmem:[#allocation16_spill] sm:$0xff]  ;;  %v11412_v12 = vld [vmem:[#allocation17_spill] sm:$0xff] }
 0x3a2   :  { %1762 = vmatprep.subr.mxu0 %v6548_v13  ;;  %1833 = vmatprep.subr.mxu1 %v6554_v14  ;;  %v11413_v13 = vld [vmem:[#allocation18_spill] sm:$0xff]  ;;  %v11414_v14 = vld [vmem:[#allocation19_spill] sm:$0xff] }
 0x3a3   :  { %1763 = vmatpush1.msra.mxu0 %v6560_v15  ;;  %1834 = vmatpush1.msra.mxu1 %v6566_v16  ;;  %v11415_v15 = vld [vmem:[#allocation20_spill] sm:$0xff]  ;;  %v11416_v16 = vld [vmem:[#allocation21_spill] sm:$0xff] }
 0x3a4   :  { %1764 = vmatprep.subr.mxu0 %v6572_v17  ;;  %1835 = vmatprep.subr.mxu1 %v6578_v18  ;;  %v11417_v17 = vld [vmem:[#allocation22_spill] sm:$0xff]  ;;  %v11418_v18 = vld [vmem:[#allocation23_spill] sm:$0xff] }
 0x3a5   :  { %1765 = vmatpush1.msra.mxu0 %v11406_v2  ;;  %1836 = vmatpush1.msra.mxu1 %v11407_v4  ;;  %v11436_v2 = vld [vmem:[#allocation41_spill] sm:$0xff]  ;;  %v11437_v4 = vld [vmem:[#allocation42_spill] sm:$0xff] }
 0x3a6   :  { %1766 = vmatprep.subr.mxu0 %v11408_v5  ;;  %1837 = vmatprep.subr.mxu1 %v11409_v6  ;;  %v11438_v5 = vld [vmem:[#allocation43_spill] sm:$0xff]  ;;  %v11439_v6 = vld [vmem:[#allocation44_spill] sm:$0xff] }
 0x3a7   :  { %1767 = vmatpush1.msra.mxu0 %v11410_v7  ;;  %1838 = vmatpush1.msra.mxu1 %v11411_v9  ;;  %v11440_v7 = vld [vmem:[#allocation45_spill] sm:$0xff]  ;;  %v11441_v9 = vld [vmem:[#allocation46_spill] sm:$0xff] }
 0x3a8   :  { %1768 = vmatprep.subr.mxu0 %v11412_v12  ;;  %1839 = vmatprep.subr.mxu1 %v11413_v13  ;;  %v11442_v12 = vld [vmem:[#allocation47_spill] sm:$0xff]  ;;  %v11443_v13 = vld [vmem:[#allocation48_spill] sm:$0xff] }
 0x3a9   :  { %1769 = vmatpush1.msra.mxu0 %v11414_v14  ;;  %1840 = vmatpush1.msra.mxu1 %v11415_v15  ;;  %v11444_v14 = vld [vmem:[#allocation49_spill] sm:$0xff]  ;;  %v11445_v15 = vld [vmem:[#allocation50_spill] sm:$0xff] }
 0x3aa   :  { %1770 = vmatprep.subr.mxu0 %v11416_v16  ;;  %1841 = vmatprep.subr.mxu1 %v11417_v17  ;;  %v11446_v16 = vld [vmem:[#allocation51_spill] sm:$0xff]  ;;  %v11447_v17 = vld [vmem:[#allocation52_spill] sm:$0xff] }
 0x3ab   :  { %1771 = vmatpush1.msra.mxu0 %v11418_v18  ;;  %1842 = vmatpush1.msra.mxu1 %v11419_v30  ;;  %v11448_v18 = vld [vmem:[#allocation53_spill] sm:$0xff]  ;;  %v11449_v30 = vld [vmem:[#allocation54_spill] sm:$0xff] }
 0x3ac   :  { %1772 = vmatprep.subr.mxu0 %v11420_v33  ;;  %1843 = vmatprep.subr.mxu1 %v11421_v10  ;;  %v11450_v33 = vld [vmem:[#allocation55_spill] sm:$0xff]  ;;  %v11451_v10 = vld [vmem:[#allocation56_spill] sm:$0xff] }
 0x3ad   :  { %1773 = vmatpush1.msra.mxu0 %v11422_v35  ;;  %1844 = vmatpush1.msra.mxu1 %v11423_v25  ;;  %v11452_v35 = vld [vmem:[#allocation57_spill] sm:$0xff]  ;;  %v11453_v25 = vld [vmem:[#allocation58_spill] sm:$0xff] }
 0x3ae   :  { %1774 = vmatprep.subr.mxu0 %v11424_v19  ;;  %1845 = vmatprep.subr.mxu1 %v11425_v26  ;;  %v11454_v19 = vld [vmem:[#allocation59_spill] sm:$0xff]  ;;  %v11455_v26 = vld [vmem:[#allocation60_spill] sm:$0xff] }
 0x3af   :  { %1775 = vmatpush1.msra.mxu0 %v11426_v3  ;;  %1846 = vmatpush1.msra.mxu1 %v11427_v21  ;;  %v11456_v3 = vld [vmem:[#allocation61_spill] sm:$0xff]  ;;  %v11457_v21 = vld [vmem:[#allocation62_spill] sm:$0xff] }
 0x3b0   :  { %1776 = vmatprep.subr.mxu0 %v11428_v36  ;;  %1847 = vmatprep.subr.mxu1 %v11429_v31  ;;  %v11458_v36 = vld [vmem:[#allocation63_spill] sm:$0xff]  ;;  %v11459_v31 = vld [vmem:[#allocation64_spill] sm:$0xff] }
 0x3b1   :  { %1777 = vmatpush1.msra.mxu0 %v11430_v37  ;;  %1848 = vmatpush1.msra.mxu1 %v11431_v41  ;;  %v11460_v37 = vld [vmem:[#allocation65_spill] sm:$0xff]  ;;  %v11461_v41 = vld [vmem:[#allocation66_spill] sm:$0xff] }
 0x3b2   :  { %1778 = vmatprep.subr.mxu0 %v11432_v11  ;;  %1849 = vmatprep.subr.mxu1 %v11433_v34  ;;  %v11462_v11 = vld [vmem:[#allocation67_spill] sm:$0xff]  ;;  %v11463_v34 = vld [vmem:[#allocation68_spill] sm:$0xff] }
 0x3b3   :  { %1779 = vmatpush1.msra.mxu0 %v11434_v23  ;;  %1850 = vmatpush1.msra.mxu1 %v11435_v29  ;;  %v11464_v23 = vld [vmem:[#allocation69_spill] sm:$0xff]  ;;  %v11465_v29 = vld [vmem:[#allocation70_spill] sm:$0xff] }
 0x3b4   :  { %1780 = vmatprep.subr.mxu0 %v11436_v2  ;;  %1851 = vmatprep.subr.mxu1 %v11437_v4  ;;  %v11466_v2 = vld [vmem:[#allocation71_spill] sm:$0xff]  ;;  %v11467_v4 = vld [vmem:[#allocation72_spill] sm:$0xff] }
 0x3b5   :  { %1781 = vmatpush1.msra.mxu0 %v11438_v5  ;;  %1852 = vmatpush1.msra.mxu1 %v11439_v6  ;;  %v11468_v5 = vld [vmem:[#allocation73_spill] sm:$0xff]  ;;  %v11469_v6 = vld [vmem:[#allocation74_spill] sm:$0xff] }
 0x3b6   :  { %1782 = vmatprep.subr.mxu0 %v11440_v7  ;;  %1853 = vmatprep.subr.mxu1 %v11441_v9  ;;  %v11470_v7 = vld [vmem:[#allocation75_spill] sm:$0xff]  ;;  %v11471_v9 = vld [vmem:[#allocation76_spill] sm:$0xff] }
 0x3b7   :  { %1783 = vmatpush1.msra.mxu0 %v11442_v12  ;;  %1854 = vmatpush1.msra.mxu1 %v11443_v13  ;;  %v11472_v12 = vld [vmem:[#allocation77_spill] sm:$0xff]  ;;  %v11473_v13 = vld [vmem:[#allocation78_spill] sm:$0xff] }
 0x3b8   :  { %1784 = vmatprep.subr.mxu0 %v11444_v14  ;;  %1855 = vmatprep.subr.mxu1 %v11445_v15  ;;  %v11474_v14 = vld [vmem:[#allocation79_spill] sm:$0xff]  ;;  %v11475_v15 = vld [vmem:[#allocation80_spill] sm:$0xff] }
 0x3b9   :  { %1785 = vmatpush1.msra.mxu0 %v11446_v16  ;;  %1856 = vmatpush1.msra.mxu1 %v11447_v17  ;;  %v11476_v16 = vld [vmem:[#allocation81_spill] sm:$0xff]  ;;  %v11477_v17 = vld [vmem:[#allocation82_spill] sm:$0xff] }
 0x3ba   :  { %1786 = vmatprep.subr.mxu0 %v11448_v18  ;;  %1857 = vmatprep.subr.mxu1 %v11449_v30  ;;  %v11478_v18 = vld [vmem:[#allocation83_spill] sm:$0xff]  ;;  %v11479_v30 = vld [vmem:[#allocation84_spill] sm:$0xff] }
 0x3bb   :  { %1787 = vmatpush1.msra.mxu0 %v11450_v33  ;;  %1858 = vmatpush1.msra.mxu1 %v11451_v10  ;;  %v11480_v33 = vld [vmem:[#allocation85_spill] sm:$0xff]  ;;  %v11481_v10 = vld [vmem:[#allocation86_spill] sm:$0xff] }
 0x3bc   :  { %1788 = vmatprep.subr.mxu0 %v11452_v35  ;;  %1859 = vmatprep.subr.mxu1 %v11453_v25  ;;  %v11482_v35 = vld [vmem:[#allocation87_spill] sm:$0xff]  ;;  %v11483_v25 = vld [vmem:[#allocation88_spill] sm:$0xff] }
 0x3bd   :  { %1789 = vmatpush1.msra.mxu0 %v11454_v19  ;;  %1860 = vmatpush1.msra.mxu1 %v11455_v26  ;;  %v11484_v19 = vld [vmem:[#allocation89_spill] sm:$0xff]  ;;  %v11485_v26 = vld [vmem:[#allocation90_spill] sm:$0xff] }
 0x3be   :  { %1790 = vmatprep.subr.mxu0 %v11456_v3  ;;  %1861 = vmatprep.subr.mxu1 %v11457_v21  ;;  %v11486_v3 = vld [vmem:[#allocation91_spill] sm:$0xff]  ;;  %v11487_v21 = vld [vmem:[#allocation92_spill] sm:$0xff] }
 0x3bf   :  { %1791 = vmatpush1.msra.mxu0 %v11458_v36  ;;  %1862 = vmatpush1.msra.mxu1 %v11459_v31  ;;  %v11488_v36 = vld [vmem:[#allocation93_spill] sm:$0xff]  ;;  %v11489_v31 = vld [vmem:[#allocation94_spill] sm:$0xff] }
 0x3c0   :  { %1792 = vmatprep.subr.mxu0 %v11460_v37  ;;  %1863 = vmatprep.subr.mxu1 %v11461_v41  ;;  %v11490_v37 = vld [vmem:[#allocation95_spill] sm:$0xff]  ;;  %v11491_v41 = vld [vmem:[#allocation96_spill] sm:$0xff] }
 0x3c1   :  { %1793 = vmatpush2.msra.mxu0 %v11462_v11  ;;  %1864 = vmatpush2.msra.mxu1 %v11463_v34  ;;  %v11492_v11 = vld [vmem:[#allocation97_spill] sm:$0xff]  ;;  %v11493_v34 = vld [vmem:[#allocation98_spill] sm:$0xff] }
 0x3c2   :  { %1794 = vmatprep.subr.mxu0 %v11464_v23  ;;  %1865 = vmatprep.subr.mxu1 %v11465_v29  ;;  %v11494_v23 = vld [vmem:[#allocation99_spill] sm:$0xff]  ;;  %v11495_v29 = vld [vmem:[#allocation100_spill] sm:$0xff] }
 0x3c3   :  { %1795 = vmatpush2.msra.mxu0 %v11466_v2  ;;  %1866 = vmatpush2.msra.mxu1 %v11467_v4  ;;  %v11496_v2 = vld [vmem:[#allocation101_spill] sm:$0xff]  ;;  %v11497_v4 = vld [vmem:[#allocation102_spill] sm:$0xff] }
 0x3c4   :  { %1796 = vmatprep.subr.mxu0 %v11468_v5  ;;  %1867 = vmatprep.subr.mxu1 %v11469_v6  ;;  %v11498_v5 = vld [vmem:[#allocation103_spill] sm:$0xff]  ;;  %v11499_v6 = vld [vmem:[#allocation104_spill] sm:$0xff] }
 0x3c5   :  { %1797 = vmatpush2.msra.mxu0 %v11470_v7  ;;  %1868 = vmatpush2.msra.mxu1 %v11471_v9  ;;  %v11500_v7 = vld [vmem:[#allocation105_spill] sm:$0xff]  ;;  %v11501_v9 = vld [vmem:[#allocation106_spill] sm:$0xff] }
 0x3c6   :  { %1798 = vmatprep.subr.mxu0 %v11472_v12  ;;  %1869 = vmatprep.subr.mxu1 %v11473_v13  ;;  %v11502_v12 = vld [vmem:[#allocation107_spill] sm:$0xff]  ;;  %v11503_v13 = vld [vmem:[#allocation108_spill] sm:$0xff] }
 0x3c7   :  { %1799 = vmatpush2.msra.mxu0 %v11474_v14  ;;  %1870 = vmatpush2.msra.mxu1 %v11475_v15  ;;  %v11504_v14 = vld [vmem:[#allocation109_spill] sm:$0xff]  ;;  %v11505_v15 = vld [vmem:[#allocation110_spill] sm:$0xff] }
 0x3c8   :  { %1800 = vmatprep.subr.mxu0 %v11476_v16  ;;  %1871 = vmatprep.subr.mxu1 %v11477_v17  ;;  %v11506_v16 = vld [vmem:[#allocation111_spill] sm:$0xff]  ;;  %v11507_v17 = vld [vmem:[#allocation112_spill] sm:$0xff] }
 0x3c9   :  { %1801 = vmatpush2.msra.mxu0 %v11478_v18  ;;  %1872 = vmatpush2.msra.mxu1 %v11479_v30  ;;  %v11508_v18 = vld [vmem:[#allocation113_spill] sm:$0xff]  ;;  %v11509_v30 = vld [vmem:[#allocation114_spill] sm:$0xff] }
 0x3ca   :  { %1802 = vmatprep.subr.mxu0 %v11480_v33  ;;  %1873 = vmatprep.subr.mxu1 %v11481_v10  ;;  %v11510_v33 = vld [vmem:[#allocation115_spill] sm:$0xff]  ;;  %v11511_v10 = vld [vmem:[#allocation116_spill] sm:$0xff] }
 0x3cb   :  { %1803 = vmatpush2.msra.mxu0 %v11482_v35  ;;  %1874 = vmatpush2.msra.mxu1 %v11483_v25  ;;  %v11512_v35 = vld [vmem:[#allocation117_spill] sm:$0xff]  ;;  %v11513_v25 = vld [vmem:[#allocation118_spill] sm:$0xff] }
 0x3cc   :  { %1804 = vmatprep.subr.mxu0 %v11484_v19  ;;  %1875 = vmatprep.subr.mxu1 %v11485_v26  ;;  %v11514_v19 = vld [vmem:[#allocation119_spill] sm:$0xff]  ;;  %v11515_v26 = vld [vmem:[#allocation120_spill] sm:$0xff] }
 0x3cd   :  { %1805 = vmatpush2.msra.mxu0 %v11486_v3  ;;  %1876 = vmatpush2.msra.mxu1 %v11487_v21  ;;  %v11516_v3 = vld [vmem:[#allocation121_spill] sm:$0xff]  ;;  %v11517_v21 = vld [vmem:[#allocation122_spill] sm:$0xff] }
 0x3ce   :  { %1806 = vmatprep.subr.mxu0 %v11488_v36  ;;  %1877 = vmatprep.subr.mxu1 %v11489_v31  ;;  %v11518_v36 = vld [vmem:[#allocation123_spill] sm:$0xff]  ;;  %v11519_v31 = vld [vmem:[#allocation124_spill] sm:$0xff] }
 0x3cf   :  { %1807 = vmatpush2.msra.mxu0 %v11490_v37  ;;  %1878 = vmatpush2.msra.mxu1 %v11491_v41  ;;  %v11520_v37 = vld [vmem:[#allocation125_spill] sm:$0xff]  ;;  %v11521_v41 = vld [vmem:[#allocation126_spill] sm:$0xff] }
 0x3d0   :  { %1808 = vmatprep.subr.mxu0 %v11492_v11  ;;  %1879 = vmatprep.subr.mxu1 %v11493_v34  ;;  %v11522_v11 = vld [vmem:[#allocation127_spill] sm:$0xff]  ;;  %v11523_v34 = vld [vmem:[#allocation128_spill] sm:$0xff] }
 0x3d1   :  { %1809 = vmatpush2.msra.mxu0 %v11494_v23  ;;  %1880 = vmatpush2.msra.mxu1 %v11495_v29  ;;  %v11524_v23 = vld [vmem:[#allocation153_spill] sm:$0xff]  ;;  %v7672_v29 = vld [vmem:[%s10499_s2 + $0x1f8] sm:$0xff] }
 0x3d2   :  { %1810 = vmatprep.subr.mxu0 %v11496_v2  ;;  %1881 = vmatprep.subr.mxu1 %v11497_v4  ;;  %v11525_v4 = vld [vmem:[#allocation7_spill] sm:$0xff] }
 0x3d3   :  { %1811 = vmatpush2.msra.mxu0 %v11498_v5  ;;  %1882 = vmatpush2.msra.mxu1 %v11499_v6 }
 0x3d4   :  { %1812 = vmatprep.subr.mxu0 %v11500_v7  ;;  %1883 = vmatprep.subr.mxu1 %v11501_v9  ;;  %v11526_v9 = vld [vmem:[#allocation8_spill] sm:$0xff] }
 0x3d5   :  { %1813 = vmatpush2.msra.mxu0 %v11502_v12  ;;  %1884 = vmatpush2.msra.mxu1 %v11503_v13 }
 0x3d6   :  { %1814 = vmatprep.subr.mxu0 %v11504_v14  ;;  %1885 = vmatprep.subr.mxu1 %v11505_v15 }
 0x3d7   :  { %1815 = vmatpush2.msra.mxu0 %v11506_v16  ;;  %1886 = vmatpush2.msra.mxu1 %v11507_v17  ;;  %v11527_v16 = vld [vmem:[#allocation9_spill] sm:$0xff] }
 0x3d8   :  { %1816 = vmatprep.subr.mxu0 %v11508_v18  ;;  %1887 = vmatprep.subr.mxu1 %v11509_v30 }
 0x3d9   :  { %1817 = vmatpush2.msra.mxu0 %v11510_v33  ;;  %1888 = vmatpush2.msra.mxu1 %v11511_v10  ;;  %v11528_v33 = vld [vmem:[#allocation10_spill] sm:$0xff] }
 0x3da   :  { %1818 = vmatprep.subr.mxu0 %v11512_v35  ;;  %1889 = vmatprep.subr.mxu1 %v11513_v25 }
 0x3db   :  { %1819 = vmatpush2.msra.mxu0 %v11514_v19  ;;  %1890 = vmatpush2.msra.mxu1 %v11515_v26 }
 0x3dc   :  { %1820 = vmatprep.subr.mxu0 %v11516_v3  ;;  %1891 = vmatprep.subr.mxu1 %v11517_v21 }
 0x3dd   :  { %1821 = vmatpush2.msra.mxu0 %v11518_v36  ;;  %1892 = vmatpush2.msra.mxu1 %v11519_v31  ;;  %v11529_v36 = vld [vmem:[#allocation131_spill] sm:$0xff] }
 0x3de   :  { %1822 = vmatprep.subr.mxu0 %v11520_v37  ;;  %1893 = vmatprep.subr.mxu1 %v11521_v41 }
 0x3df   :  { %1823 = vmatpush2.msra.mxu0 %v11522_v11  ;;  %1894 = vmatpush2.msra.mxu1 %v11523_v34 }
 0x3e0   :  { %1928 = vmatprep.subr.mxu0 %v11524_v23  ;;  %1999 = vmatprep.subr.mxu1 %v7672_v29  ;;  %v11530_v23 = vld [vmem:[#allocation132_spill] sm:$0xff] }
 0x43e   :  { %v1488_v2 = vpop.f32.mrf.mxu0  ;;  %v1559_v13 = vpop.f32.mrf.mxu1 }
 0x43f   :  { %v1489_v5 = vadd.f32 %v1488_v2, %v11525_v4  ;;  %v1560_v10 = vadd.f32 %v1559_v13, %v11528_v33 }
 0x440   :  { %v1490_v6 = vpop.f32.mrf.mxu0  ;;  %v1561_v15 = vpop.f32.mrf.mxu1 }
 0x441   :  { %v3467_v7 = vmul.f32 -1.442695, %v1489_v5  ;;  %v1491_v12 = vadd.f32 %v1490_v6, %v11526_v9  ;;  %v1562_v17 = vadd.f32 %v1561_v15, %v11527_v16 }
 0x443   :  { %3650 = vpow2.f32 %v3467_v7  ;;  %v3468_v14 = vmul.f32 -1.442695, %v1491_v12  ;;  %v3469_v18 = vmul.f32 -1.442695, %v1562_v17  ;;  %v11531_v17 = vld [vmem:[#allocation144_spill] sm:$0xff] }
 0x445   :  { %3652 = vpow2.f32 %v3468_v14 }
 0x446   :  { %3654 = vpow2.f32 %v3469_v18 }
 0x450   :  { %v3651_v30 = vpop.eup %3650 }
 0x451   :  { %v1567_v35 = vadd.f32 1.0, %v3651_v30  ;;  %v11532_v30 = vld [vmem:[#allocation143_spill] sm:$0xff] }
 0x452   :  { %v3653_v25 = vpop.eup %3652 }
 0x453   :  { %3656 = vrcp.f32 %v1567_v35  ;;  %v1573_v19 = vadd.f32 1.0, %v3653_v25  ;;  %v3655_v26 = vpop.eup %3654 }
 0x454   :  { %3658 = vtanh.f32 %v1560_v10  ;;  %v1580_v7 = vadd.f32 1.0, %v3655_v26 }
 0x455   :  { %3660 = vrcp.f32 %v1573_v19 }
 0x45f   :  { %v1656_v3 = vpop.f32.mrf.mxu0  ;;  %v1727_v12 = vpop.f32.mrf.mxu1 }
 0x460   :  { %v3657_v21 = vpop.eup %3656  ;;  %v1732_v31 = vadd.f32 %v1656_v3, %v11529_v36  ;;  %v1734_v10 = vadd.f32 %v1727_v12, %v11532_v30  ;;  %v7952_v30 = vld [vmem:[%s10501_s4 + $0x1d8] sm:$0xff] }
 0x461   :  { %v3659_v37 = vpop.eup %3658  ;;  %v1658_v41 = vpop.f32.mrf.mxu0 }
 0x462   :  { %v3661_v11 = vpop.eup %3660  ;;  %v3470_v34 = vmul.f32 -1.442695, %v1732_v31  ;;  %v1733_v2 = vadd.f32 %v1658_v41, %v11530_v23  ;;  %v1584_v5 = vmul.f32 %v3659_v37, %v3657_v21  ;;  %v1729_v15 = vpop.f32.mrf.mxu1 }
 0x463   :  { %v1583_v6 = vmul.f32 %v3661_v11, %v7303_v28  ;;  %v1735_v18 = vadd.f32 %v1729_v15, %v11531_v17  ;;  %v7934_v15 = vld [vmem:[%s10501_s4 + $0x1e0] sm:$0xff]  ;;  %v7940_v17 = vld [vmem:[%s10501_s4 + $0x1f0] sm:$0xff] }
 0x464   :  { %3662 = vpow2.f32 %v3470_v34  ;;  %v3471_v13 = vmul.f32 -1.442695, %v1733_v2 }
 0x465   :  { %v7682_v14 = vadd.f32 %v1584_v5, %v1583_v6  ;;  %v3472_v35 = vmul.f32 -1.442695, %v1735_v18  ;;  %v7946_v18 = vld [vmem:[%s10501_s4 + $0x1c8] sm:$0xff] }
 0x466   :  { %3664 = vpow2.f32 %v3471_v13  ;;  %v7702_v13 = vld [vmem:[%s10499_s2 + $0x1f0] sm:$0xff] }
 0x467   :  { %3666 = vrcp.f32 %v1580_v7 }
 0x468   :  { %3668 = vtanh.f32 %v7682_v14 }
 0x469   :  { %3670 = vtanh.f32 %v1734_v10  ;;  %v7958_v10 = vld [vmem:[%s10501_s4 + $0x1c0] sm:$0xff] }
 0x46a   :  { %3672 = vpow2.f32 %v3472_v35  ;;  %v7964_v35 = vld [vmem:[%s10501_s4 + $0x1d0] sm:$0xff] }
 0x471   :  { %v3663_v25 = vpop.eup %3662 }
 0x472   :  { %v1739_v19 = vadd.f32 1.0, %v3663_v25  ;;  %v7970_v25 = vld [vmem:[%s10501_s4 + $0x1a8] sm:$0xff] }
 0x473   :  { %v3665_v28 = vpop.eup %3664 }
 0x474   :  { %v3667_v26 = vpop.eup %3666  ;;  %3674 = vrcp.f32 %v1739_v19  ;;  %v1745_v3 = vadd.f32 1.0, %v3665_v28  ;;  %v7976_v19 = vld [vmem:[%s10501_s4 + $0x1b8] sm:$0xff]  ;;  %v7982_v28 = vld [vmem:[%s10501_s4 + $0x1a0] sm:$0xff] }
 0x475   :  { %v3669_v21 = vpop.eup %3668  ;;  %11533 = vst [vmem:[#allocation129_spill] sm:$0xff] %v7982_v28 }
 0x476   :  { %3676 = vrcp.f32 %v1745_v3  ;;  %v1587_v36 = vmul.f32 %v3669_v21, %v3667_v26  ;;  %v3671_v31 = vpop.eup %3670  ;;  %v7988_v26 = vld [vmem:[%s10501_s4 + $0x1b0] sm:$0xff]  ;;  %v7994_v3 = vld [vmem:[%s10501_s4 + $0x188] sm:$0xff]  ;;  %v8000_v21 = vld [vmem:[%s10501_s4 + $0x198] sm:$0xff] }
 0x477   :  { %v3673_v37 = vpop.eup %3672  ;;  %11534 = vst [vmem:[#allocation130_spill] sm:$0xff] %v7988_v26  ;;  %11535 = vst [vmem:[#allocation142_spill] sm:$0xff] %v7994_v3 }
 0x478   :  { %1824 = vmatprep.mubr.f32.mxu0 %v1587_v36  ;;  %3294 = vst [vmem:[%s10504_s9 + $0x10] sm:$0xff] %v1587_v36  ;;  %1895 = vmatprep.mubr.f32.mxu1 %v1587_v36  ;;  %v1752_v23 = vadd.f32 1.0, %v3673_v37  ;;  %11536 = vst [vmem:[#allocation141_spill] sm:$0xff] %v8000_v21  ;;  %v8006_v36 = vld [vmem:[%s10501_s4 + $0x180] sm:$0xff]  ;;  %v8018_v37 = vld [vmem:[%s10501_s4 + $0x168] sm:$0xff] }
 0x479   :  { %11537 = vst [vmem:[#allocation11_spill] sm:$0xff] %v8006_v36  ;;  %11539 = vst [vmem:[#allocation13_spill] sm:$0xff] %v8018_v37 }
 0x47a   :  { %3678 = vrcp.f32 %v1752_v23  ;;  %v8042_v23 = vld [vmem:[%s10501_s4 + $0x148] sm:$0xff] }
 0x47b   :  { %11543 = vst [vmem:[#allocation17_spill] sm:$0xff] %v8042_v23 }
 0x481   :  { %v3675_v41 = vpop.eup %3674 }
 0x482   :  { %v1756_v11 = vmul.f32 %v3675_v41, %v3671_v31  ;;  %v8012_v31 = vld [vmem:[%s10501_s4 + $0x190] sm:$0xff]  ;;  %v8024_v41 = vld [vmem:[%s10501_s4 + $0x178] sm:$0xff] }
 0x483   :  { %v3677_v34 = vpop.eup %3676  ;;  %11538 = vst [vmem:[#allocation12_spill] sm:$0xff] %v8012_v31  ;;  %11540 = vst [vmem:[#allocation14_spill] sm:$0xff] %v8024_v41 }
 0x484   :  { %v1755_v2 = vmul.f32 %v3677_v34, %v7312_v22  ;;  %v7709_v22 = vld [vmem:[%s10499_s2 + $0x1d8] sm:$0xff]  ;;  %v8036_v34 = vld [vmem:[%s10501_s4 + $0x170] sm:$0xff] }
 0x485   :  { %11542 = vst [vmem:[#allocation16_spill] sm:$0xff] %v8036_v34 }
 0x486   :  { %v7691_v5 = vadd.f32 %v1756_v11, %v1755_v2  ;;  %v8030_v11 = vld [vmem:[%s10501_s4 + $0x160] sm:$0xff]  ;;  %v8048_v2 = vld [vmem:[%s10501_s4 + $0x158] sm:$0xff] }
 0x487   :  { %v3679_v6 = vpop.eup %3678  ;;  %11541 = vst [vmem:[#allocation15_spill] sm:$0xff] %v8030_v11  ;;  %11544 = vst [vmem:[#allocation18_spill] sm:$0xff] %v8048_v2 }
 0x488   :  { %3680 = vtanh.f32 %v7691_v5 }
 0x495   :  { %v3681_v7 = vpop.eup %3680 }
 0x496   :  { %v7694_v12 = vmul.f32 %v3681_v7, %v3679_v6  ;;  %v8054_v6 = vld [vmem:[%s10501_s4 + $0x140] sm:$0xff]  ;;  %v8060_v7 = vld [vmem:[%s10501_s4 + $0x150] sm:$0xff] }
 0x497   :  { %11545 = vst [vmem:[#allocation19_spill] sm:$0xff] %v8054_v6  ;;  %11546 = vst [vmem:[#allocation20_spill] sm:$0xff] %v8060_v7 }
 0x498   :  { %1825 = vmatmul.mubr.f32.vlgmr.msra.gmra.mxu0 %v7694_v12  ;;  %1896 = vmatmul.mubr.f32.vlgmr.msra.gmra.mxu1 %v7694_v12 }
 0x499   :  { %1929 = vmatpush1.msra.mxu0 %v7322_v27  ;;  %2000 = vmatpush1.msra.mxu1 %v7702_v13  ;;  %v7716_v27 = vld [vmem:[%s10499_s2 + $0x1d0] sm:$0xff] }
 0x49a   :  { %1930 = vmatprep.subr.mxu0 %v7329_v40  ;;  %2001 = vmatprep.subr.mxu1 %v7709_v22  ;;  %v7723_v40 = vld [vmem:[%s10499_s2 + $0x1b8] sm:$0xff] }
 0x49b   :  { %1931 = vmatpush1.msra.mxu0 %v7336_v42  ;;  %2002 = vmatpush1.msra.mxu1 %v7716_v27  ;;  %v7730_v42 = vld [vmem:[%s10499_s2 + $0x1b0] sm:$0xff] }
 0x49c   :  { %1932 = vmatprep.subr.mxu0 %v7343_v8  ;;  %2003 = vmatprep.subr.mxu1 %v7723_v40  ;;  %v7737_v8 = vld [vmem:[%s10499_s2 + $0x198] sm:$0xff] }
 0x49d   :  { %1933 = vmatpush1.msra.mxu0 %v7350_v32  ;;  %2004 = vmatpush1.msra.mxu1 %v7730_v42  ;;  %v7744_v32 = vld [vmem:[%s10499_s2 + $0x190] sm:$0xff] }
 0x49e   :  { %1934 = vmatprep.subr.mxu0 %v7357_v20  ;;  %2005 = vmatprep.subr.mxu1 %v7737_v8  ;;  %v7751_v20 = vld [vmem:[%s10499_s2 + $0x178] sm:$0xff] }
 0x49f   :  { %1935 = vmatpush1.msra.mxu0 %v7364_v38  ;;  %2006 = vmatpush1.msra.mxu1 %v7744_v32  ;;  %v7758_v38 = vld [vmem:[%s10499_s2 + $0x170] sm:$0xff] }
 0x4a0   :  { %1936 = vmatprep.subr.mxu0 %v7371_v24  ;;  %2007 = vmatprep.subr.mxu1 %v7751_v20  ;;  %v7765_v24 = vld [vmem:[%s10499_s2 + $0x158] sm:$0xff] }
 0x4a1   :  { %1937 = vmatpush1.msra.mxu0 %v7378_v43  ;;  %2008 = vmatpush1.msra.mxu1 %v7758_v38  ;;  %v7772_v43 = vld [vmem:[%s10499_s2 + $0x150] sm:$0xff] }
 0x4a2   :  { %1938 = vmatprep.subr.mxu0 %v7385_v44  ;;  %2009 = vmatprep.subr.mxu1 %v7765_v24  ;;  %v7779_v44 = vld [vmem:[%s10499_s2 + $0x138] sm:$0xff] }
 0x4a3   :  { %1939 = vmatpush1.msra.mxu0 %v7392_v45  ;;  %2010 = vmatpush1.msra.mxu1 %v7772_v43  ;;  %v7786_v45 = vld [vmem:[%s10499_s2 + $0x130] sm:$0xff] }
 0x4a4   :  { %1940 = vmatprep.subr.mxu0 %v7399_v46  ;;  %2011 = vmatprep.subr.mxu1 %v7779_v44  ;;  %v7793_v46 = vld [vmem:[%s10499_s2 + $0x118] sm:$0xff] }
 0x4a5   :  { %1941 = vmatpush1.msra.mxu0 %v7406_v47  ;;  %2012 = vmatpush1.msra.mxu1 %v7786_v45  ;;  %v7800_v47 = vld [vmem:[%s10499_s2 + $0x110] sm:$0xff] }
 0x4a6   :  { %1942 = vmatprep.subr.mxu0 %v7413_v48  ;;  %2013 = vmatprep.subr.mxu1 %v7793_v46  ;;  %v7807_v48 = vld [vmem:[%s10499_s2 + $0xf8] sm:$0xff] }
 0x4a7   :  { %1943 = vmatpush1.msra.mxu0 %v7420_v49  ;;  %2014 = vmatpush1.msra.mxu1 %v7800_v47  ;;  %v7814_v49 = vld [vmem:[%s10499_s2 + $0xf0] sm:$0xff] }
 0x4a8   :  { %1944 = vmatprep.subr.mxu0 %v7427_v50  ;;  %2015 = vmatprep.subr.mxu1 %v7807_v48  ;;  %v7821_v50 = vld [vmem:[%s10499_s2 + $0xd8] sm:$0xff] }
 0x4a9   :  { %1945 = vmatpush1.msra.mxu0 %v7434_v51  ;;  %2016 = vmatpush1.msra.mxu1 %v7814_v49  ;;  %v7828_v51 = vld [vmem:[%s10499_s2 + $0xd0] sm:$0xff] }
 0x4aa   :  { %1946 = vmatprep.subr.mxu0 %v7441_v52  ;;  %2017 = vmatprep.subr.mxu1 %v7821_v50  ;;  %v7835_v52 = vld [vmem:[%s10499_s2 + $0xb8] sm:$0xff] }
 0x4ab   :  { %1947 = vmatpush1.msra.mxu0 %v7448_v53  ;;  %2018 = vmatpush1.msra.mxu1 %v7828_v51  ;;  %v7842_v53 = vld [vmem:[%s10499_s2 + $0xb0] sm:$0xff] }
 0x4ac   :  { %1948 = vmatprep.subr.mxu0 %v7455_v54  ;;  %2019 = vmatprep.subr.mxu1 %v7835_v52  ;;  %v7849_v54 = vld [vmem:[%s10499_s2 + $0x98] sm:$0xff] }
 0x4ad   :  { %1949 = vmatpush1.msra.mxu0 %v7462_v55  ;;  %2020 = vmatpush1.msra.mxu1 %v7842_v53  ;;  %v7856_v55 = vld [vmem:[%s10499_s2 + $0x90] sm:$0xff] }
 0x4ae   :  { %1950 = vmatprep.subr.mxu0 %v7469_v56  ;;  %2021 = vmatprep.subr.mxu1 %v7849_v54  ;;  %v7863_v56 = vld [vmem:[%s10499_s2 + $0x78] sm:$0xff] }
 0x4af   :  { %1951 = vmatpush1.msra.mxu0 %v7476_v57  ;;  %2022 = vmatpush1.msra.mxu1 %v7856_v55  ;;  %v7870_v57 = vld [vmem:[%s10499_s2 + $0x70] sm:$0xff] }
 0x4b0   :  { %1952 = vmatprep.subr.mxu0 %v7483_v58  ;;  %2023 = vmatprep.subr.mxu1 %v7863_v56  ;;  %v7877_v58 = vld [vmem:[%s10499_s2 + $0x58] sm:$0xff] }
 0x4b1   :  { %1953 = vmatpush1.msra.mxu0 %v7490_v59  ;;  %2024 = vmatpush1.msra.mxu1 %v7870_v57  ;;  %v7884_v59 = vld [vmem:[%s10499_s2 + $0x50] sm:$0xff] }
 0x4b2   :  { %1954 = vmatprep.subr.mxu0 %v7497_v60  ;;  %2025 = vmatprep.subr.mxu1 %v7877_v58  ;;  %v7891_v60 = vld [vmem:[%s10499_s2 + $0x38] sm:$0xff] }
 0x4b3   :  { %1955 = vmatpush1.msra.mxu0 %v7504_v61  ;;  %2026 = vmatpush1.msra.mxu1 %v7884_v59  ;;  %v7898_v61 = vld [vmem:[%s10499_s2 + $0x30] sm:$0xff] }
 0x4b4   :  { %1956 = vmatprep.subr.mxu0 %v7511_v62  ;;  %2027 = vmatprep.subr.mxu1 %v7891_v60  ;;  %v7905_v62 = vld [vmem:[%s10499_s2 + $0x18] sm:$0xff] }
 0x4b5   :  { %1957 = vmatpush1.msra.mxu0 %v7518_v63  ;;  %2028 = vmatpush1.msra.mxu1 %v7898_v61  ;;  %v7913_v63 = vld [vmem:[%s10499_s2 + $0x10] sm:$0xff] }
 0x4b6   :  { %1958 = vmatprep.subr.mxu0 %v7525_v0  ;;  %2029 = vmatprep.subr.mxu1 %v7905_v62  ;;  %v7922_v0 = vld [vmem:[%s10501_s4 + $0x1e8] sm:$0xff] }
 0x4b7   :  { %1959 = vmatpush1.msra.mxu0 %v7532_v1  ;;  %1992 = vmatprep.mubr.f32.mxu0 %v11152_v39  ;;  %v7928_v1 = vld [vmem:[%s10501_s4 + $0x1f8] sm:$0xff] }
 0x4b8   :  { %2030 = vmatpush1.msra.mxu1 %v7913_v63  ;;  %2063 = vmatprep.mubr.f32.mxu1 %v11152_v39 }
 0x4b9   :  { %1993 = vmatmul.mubr.f32.vlgmr.msra.gmra.mxu0 %v7694_v12  ;;  %2064 = vmatmul.mubr.f32.vlgmr.msra.gmra.mxu1 %v7694_v12  ;;  %v8066_v12 = vld [vmem:[%s10501_s4 + $0x128] sm:$0xff] }
 0x4ba   :  { %2098 = vmatprep.subr.mxu0 %v7922_v0  ;;  %2169 = vmatprep.subr.mxu1 %v7928_v1  ;;  %11547 = vst [vmem:[#allocation21_spill] sm:$0xff] %v8066_v12 }
 0x4bb   :  { %2099 = vmatpush1.msra.mxu0 %v7934_v15  ;;  %2170 = vmatpush1.msra.mxu1 %v7940_v17 }
 0x4bc   :  { %2100 = vmatprep.subr.mxu0 %v7946_v18  ;;  %2171 = vmatprep.subr.mxu1 %v7952_v30 }
 0x4bd   :  { %2101 = vmatpush1.msra.mxu0 %v7958_v10  ;;  %2172 = vmatpush1.msra.mxu1 %v7964_v35 }
 0x4be   :  { %2102 = vmatprep.subr.mxu0 %v7970_v25  ;;  %2173 = vmatprep.subr.mxu1 %v7976_v19 }
 0x4bf   :  { %2103 = vmatpush1.msra.mxu0 %v7982_v28  ;;  %2174 = vmatpush1.msra.mxu1 %v7988_v26 }
 0x4c0   :  { %2104 = vmatprep.subr.mxu0 %v7994_v3  ;;  %2175 = vmatprep.subr.mxu1 %v8000_v21 }
 0x4c1   :  { %2105 = vmatpush1.msra.mxu0 %v8006_v36  ;;  %2176 = vmatpush1.msra.mxu1 %v8012_v31 }
 0x4c2   :  { %2106 = vmatprep.subr.mxu0 %v8018_v37  ;;  %2177 = vmatprep.subr.mxu1 %v8024_v41 }
 0x4c3   :  { %2107 = vmatpush1.msra.mxu0 %v8030_v11  ;;  %2178 = vmatpush1.msra.mxu1 %v8036_v34 }
 0x4c4   :  { %2108 = vmatprep.subr.mxu0 %v8042_v23  ;;  %2179 = vmatprep.subr.mxu1 %v8048_v2  ;;  %v8072_v2 = vld [vmem:[%s10501_s4 + $0x138] sm:$0xff] }
 0x4c5   :  { %2109 = vmatpush1.msra.mxu0 %v8054_v6  ;;  %2180 = vmatpush1.msra.mxu1 %v8060_v7  ;;  %11548 = vst [vmem:[#allocation22_spill] sm:$0xff] %v8072_v2  ;;  %v8078_v6 = vld [vmem:[%s10501_s4 + $0x120] sm:$0xff]  ;;  %v8084_v7 = vld [vmem:[%s10501_s4 + $0x130] sm:$0xff] }
 0x4c6   :  { %2110 = vmatprep.subr.mxu0 %v8066_v12  ;;  %2181 = vmatprep.subr.mxu1 %v8072_v2  ;;  %11549 = vst [vmem:[#allocation23_spill] sm:$0xff] %v8078_v6  ;;  %11550 = vst [vmem:[#allocation24_spill] sm:$0xff] %v8084_v7  ;;  %v8090_v12 = vld [vmem:[%s10501_s4 + $0x108] sm:$0xff]  ;;  %v8096_v2 = vld [vmem:[%s10501_s4 + $0x118] sm:$0xff] }
 0x4c7   :  { %2111 = vmatpush1.msra.mxu0 %v8078_v6  ;;  %2182 = vmatpush1.msra.mxu1 %v8084_v7  ;;  %11551 = vst [vmem:[#allocation25_spill] sm:$0xff] %v8090_v12  ;;  %11552 = vst [vmem:[#allocation26_spill] sm:$0xff] %v8096_v2  ;;  %v8102_v6 = vld [vmem:[%s10501_s4 + $0x100] sm:$0xff]  ;;  %v8108_v7 = vld [vmem:[%s10501_s4 + $0x110] sm:$0xff] }
 0x4c8   :  { %2112 = vmatprep.subr.mxu0 %v8090_v12  ;;  %2183 = vmatprep.subr.mxu1 %v8096_v2  ;;  %11553 = vst [vmem:[#allocation27_spill] sm:$0xff] %v8102_v6  ;;  %11554 = vst [vmem:[#allocation28_spill] sm:$0xff] %v8108_v7  ;;  %v8114_v12 = vld [vmem:[%s10501_s4 + $0xe8] sm:$0xff]  ;;  %v8120_v2 = vld [vmem:[%s10501_s4 + $0xf8] sm:$0xff] }
 0x4c9   :  { %2113 = vmatpush1.msra.mxu0 %v8102_v6  ;;  %2184 = vmatpush1.msra.mxu1 %v8108_v7  ;;  %11555 = vst [vmem:[#allocation29_spill] sm:$0xff] %v8114_v12  ;;  %11556 = vst [vmem:[#allocation30_spill] sm:$0xff] %v8120_v2  ;;  %v8126_v6 = vld [vmem:[%s10501_s4 + $0xe0] sm:$0xff]  ;;  %v8132_v7 = vld [vmem:[%s10501_s4 + $0xf0] sm:$0xff] }
 0x4ca   :  { %2114 = vmatprep.subr.mxu0 %v8114_v12  ;;  %2185 = vmatprep.subr.mxu1 %v8120_v2  ;;  %11557 = vst [vmem:[#allocation31_spill] sm:$0xff] %v8126_v6  ;;  %11558 = vst [vmem:[#allocation32_spill] sm:$0xff] %v8132_v7  ;;  %v8138_v12 = vld [vmem:[%s10501_s4 + $0xc8] sm:$0xff]  ;;  %v8144_v2 = vld [vmem:[%s10501_s4 + $0xd8] sm:$0xff] }
 0x4cb   :  { %2115 = vmatpush1.msra.mxu0 %v8126_v6  ;;  %2186 = vmatpush1.msra.mxu1 %v8132_v7  ;;  %11559 = vst [vmem:[#allocation33_spill] sm:$0xff] %v8138_v12  ;;  %11560 = vst [vmem:[#allocation34_spill] sm:$0xff] %v8144_v2  ;;  %v8150_v6 = vld [vmem:[%s10501_s4 + $0xc0] sm:$0xff]  ;;  %v8156_v7 = vld [vmem:[%s10501_s4 + $0xd0] sm:$0xff] }
 0x4cc   :  { %2116 = vmatprep.subr.mxu0 %v8138_v12  ;;  %2187 = vmatprep.subr.mxu1 %v8144_v2  ;;  %11561 = vst [vmem:[#allocation35_spill] sm:$0xff] %v8150_v6  ;;  %11562 = vst [vmem:[#allocation36_spill] sm:$0xff] %v8156_v7  ;;  %v8162_v12 = vld [vmem:[%s10501_s4 + $0xa8] sm:$0xff]  ;;  %v8168_v2 = vld [vmem:[%s10501_s4 + $0xb8] sm:$0xff] }
 0x4cd   :  { %2117 = vmatpush1.msra.mxu0 %v8150_v6  ;;  %2188 = vmatpush1.msra.mxu1 %v8156_v7  ;;  %11563 = vst [vmem:[#allocation37_spill] sm:$0xff] %v8162_v12  ;;  %11564 = vst [vmem:[#allocation38_spill] sm:$0xff] %v8168_v2  ;;  %v8174_v6 = vld [vmem:[%s10501_s4 + $0xa0] sm:$0xff]  ;;  %v8180_v7 = vld [vmem:[%s10501_s4 + $0xb0] sm:$0xff] }
 0x4ce   :  { %2118 = vmatprep.subr.mxu0 %v8162_v12  ;;  %2189 = vmatprep.subr.mxu1 %v8168_v2  ;;  %11565 = vst [vmem:[#allocation39_spill] sm:$0xff] %v8174_v6  ;;  %11566 = vst [vmem:[#allocation40_spill] sm:$0xff] %v8180_v7  ;;  %v8186_v12 = vld [vmem:[%s10501_s4 + $0x88] sm:$0xff]  ;;  %v8192_v2 = vld [vmem:[%s10501_s4 + $0x98] sm:$0xff] }
 0x4cf   :  { %2119 = vmatpush1.msra.mxu0 %v8174_v6  ;;  %2190 = vmatpush1.msra.mxu1 %v8180_v7  ;;  %11567 = vst [vmem:[#allocation41_spill] sm:$0xff] %v8186_v12  ;;  %11568 = vst [vmem:[#allocation42_spill] sm:$0xff] %v8192_v2  ;;  %v8198_v6 = vld [vmem:[%s10501_s4 + $0x80] sm:$0xff]  ;;  %v8204_v7 = vld [vmem:[%s10501_s4 + $0x90] sm:$0xff] }
 0x4d0   :  { %2120 = vmatprep.subr.mxu0 %v8186_v12  ;;  %2191 = vmatprep.subr.mxu1 %v8192_v2  ;;  %11569 = vst [vmem:[#allocation43_spill] sm:$0xff] %v8198_v6  ;;  %11570 = vst [vmem:[#allocation44_spill] sm:$0xff] %v8204_v7  ;;  %v8210_v12 = vld [vmem:[%s10501_s4 + $0x68] sm:$0xff]  ;;  %v8216_v2 = vld [vmem:[%s10501_s4 + $0x78] sm:$0xff] }
 0x4d1   :  { %2121 = vmatpush1.msra.mxu0 %v8198_v6  ;;  %2192 = vmatpush1.msra.mxu1 %v8204_v7  ;;  %11571 = vst [vmem:[#allocation45_spill] sm:$0xff] %v8210_v12  ;;  %11572 = vst [vmem:[#allocation46_spill] sm:$0xff] %v8216_v2  ;;  %v8222_v6 = vld [vmem:[%s10501_s4 + $0x60] sm:$0xff]  ;;  %v8228_v7 = vld [vmem:[%s10501_s4 + $0x70] sm:$0xff] }
 0x4d2   :  { %2122 = vmatprep.subr.mxu0 %v8210_v12  ;;  %2193 = vmatprep.subr.mxu1 %v8216_v2  ;;  %11573 = vst [vmem:[#allocation47_spill] sm:$0xff] %v8222_v6  ;;  %11574 = vst [vmem:[#allocation48_spill] sm:$0xff] %v8228_v7  ;;  %v8234_v12 = vld [vmem:[%s10501_s4 + $0x48] sm:$0xff]  ;;  %v8240_v2 = vld [vmem:[%s10501_s4 + $0x58] sm:$0xff] }
 0x4d3   :  { %2123 = vmatpush1.msra.mxu0 %v8222_v6  ;;  %2194 = vmatpush1.msra.mxu1 %v8228_v7  ;;  %11575 = vst [vmem:[#allocation49_spill] sm:$0xff] %v8234_v12  ;;  %11576 = vst [vmem:[#allocation50_spill] sm:$0xff] %v8240_v2  ;;  %v8246_v6 = vld [vmem:[%s10501_s4 + $0x40] sm:$0xff]  ;;  %v8252_v7 = vld [vmem:[%s10501_s4 + $0x50] sm:$0xff] }
 0x4d4   :  { %2124 = vmatprep.subr.mxu0 %v8234_v12  ;;  %2195 = vmatprep.subr.mxu1 %v8240_v2  ;;  %11577 = vst [vmem:[#allocation51_spill] sm:$0xff] %v8246_v6  ;;  %11578 = vst [vmem:[#allocation52_spill] sm:$0xff] %v8252_v7  ;;  %v8258_v12 = vld [vmem:[%s10501_s4 + $0x28] sm:$0xff]  ;;  %v8264_v2 = vld [vmem:[%s10501_s4 + $0x38] sm:$0xff] }
 0x4d5   :  { %2125 = vmatpush1.msra.mxu0 %v8246_v6  ;;  %2196 = vmatpush1.msra.mxu1 %v8252_v7  ;;  %11579 = vst [vmem:[#allocation53_spill] sm:$0xff] %v8258_v12  ;;  %11580 = vst [vmem:[#allocation54_spill] sm:$0xff] %v8264_v2  ;;  %v8270_v6 = vld [vmem:[%s10501_s4 + $0x20] sm:$0xff]  ;;  %v8276_v7 = vld [vmem:[%s10501_s4 + $0x30] sm:$0xff] }
 0x4d6   :  { %2126 = vmatprep.subr.mxu0 %v8258_v12  ;;  %2197 = vmatprep.subr.mxu1 %v8264_v2  ;;  %11581 = vst [vmem:[#allocation55_spill] sm:$0xff] %v8270_v6  ;;  %11582 = vst [vmem:[#allocation56_spill] sm:$0xff] %v8276_v7  ;;  %v8282_v12 = vld [vmem:[%s10501_s4 + $0x8] sm:$0xff]  ;;  %v8288_v2 = vld [vmem:[%s10501_s4 + $0x18] sm:$0xff] }
 0x4d7   :  { %2127 = vmatpush1.msra.mxu0 %v8270_v6  ;;  %2198 = vmatpush1.msra.mxu1 %v8276_v7  ;;  %11583 = vst [vmem:[#allocation57_spill] sm:$0xff] %v8282_v12  ;;  %11584 = vst [vmem:[#allocation58_spill] sm:$0xff] %v8288_v2  ;;  %v8294_v6 = vld [vmem:[%s10501_s4] sm:$0xff]  ;;  %v8300_v7 = vld [vmem:[%s10501_s4 + $0x10] sm:$0xff] }
 0x4d8   :  { %2128 = vmatprep.subr.mxu0 %v8282_v12  ;;  %2199 = vmatprep.subr.mxu1 %v8288_v2  ;;  %11585 = vst [vmem:[#allocation59_spill] sm:$0xff] %v8294_v6  ;;  %11586 = vst [vmem:[#allocation60_spill] sm:$0xff] %v8300_v7  ;;  %v8306_v12 = vld [vmem:[%s10501_s4 + $0x3e8] sm:$0xff]  ;;  %v8312_v2 = vld [vmem:[%s10501_s4 + $0x3f8] sm:$0xff] }
 0x4d9   :  { %2129 = vmatpush1.msra.mxu0 %v8294_v6  ;;  %2200 = vmatpush1.msra.mxu1 %v8300_v7  ;;  %11587 = vst [vmem:[#allocation61_spill] sm:$0xff] %v8306_v12  ;;  %11588 = vst [vmem:[#allocation62_spill] sm:$0xff] %v8312_v2  ;;  %v8318_v6 = vld [vmem:[%s10501_s4 + $0x3e0] sm:$0xff]  ;;  %v8324_v7 = vld [vmem:[%s10501_s4 + $0x3f0] sm:$0xff] }
 0x4da   :  { %2130 = vmatprep.subr.mxu0 %v8306_v12  ;;  %2201 = vmatprep.subr.mxu1 %v8312_v2  ;;  %11589 = vst [vmem:[#allocation63_spill] sm:$0xff] %v8318_v6  ;;  %11590 = vst [vmem:[#allocation64_spill] sm:$0xff] %v8324_v7  ;;  %v8330_v12 = vld [vmem:[%s10501_s4 + $0x3c8] sm:$0xff]  ;;  %v8336_v2 = vld [vmem:[%s10501_s4 + $0x3d8] sm:$0xff] }
 0x4db   :  { %2131 = vmatpush2.msra.mxu0 %v8318_v6  ;;  %2202 = vmatpush2.msra.mxu1 %v8324_v7  ;;  %11591 = vst [vmem:[#allocation65_spill] sm:$0xff] %v8330_v12  ;;  %11592 = vst [vmem:[#allocation66_spill] sm:$0xff] %v8336_v2  ;;  %v8342_v6 = vld [vmem:[%s10501_s4 + $0x3c0] sm:$0xff]  ;;  %v8348_v7 = vld [vmem:[%s10501_s4 + $0x3d0] sm:$0xff] }
 0x4dc   :  { %2132 = vmatprep.subr.mxu0 %v8330_v12  ;;  %2203 = vmatprep.subr.mxu1 %v8336_v2  ;;  %11593 = vst [vmem:[#allocation67_spill] sm:$0xff] %v8342_v6  ;;  %11594 = vst [vmem:[#allocation68_spill] sm:$0xff] %v8348_v7  ;;  %v8354_v12 = vld [vmem:[%s10501_s4 + $0x3a8] sm:$0xff]  ;;  %v8360_v2 = vld [vmem:[%s10501_s4 + $0x3b8] sm:$0xff] }
 0x4dd   :  { %2133 = vmatpush2.msra.mxu0 %v8342_v6  ;;  %2204 = vmatpush2.msra.mxu1 %v8348_v7  ;;  %11595 = vst [vmem:[#allocation69_spill] sm:$0xff] %v8354_v12  ;;  %11596 = vst [vmem:[#allocation70_spill] sm:$0xff] %v8360_v2  ;;  %v8366_v6 = vld [vmem:[%s10501_s4 + $0x3a0] sm:$0xff]  ;;  %v8372_v7 = vld [vmem:[%s10501_s4 + $0x3b0] sm:$0xff] }
 0x4de   :  { %2134 = vmatprep.subr.mxu0 %v8354_v12  ;;  %2205 = vmatprep.subr.mxu1 %v8360_v2  ;;  %11597 = vst [vmem:[#allocation71_spill] sm:$0xff] %v8366_v6  ;;  %11598 = vst [vmem:[#allocation72_spill] sm:$0xff] %v8372_v7  ;;  %v8378_v12 = vld [vmem:[%s10501_s4 + $0x388] sm:$0xff]  ;;  %v8384_v2 = vld [vmem:[%s10501_s4 + $0x398] sm:$0xff] }
 0x4df   :  { %2135 = vmatpush2.msra.mxu0 %v8366_v6  ;;  %2206 = vmatpush2.msra.mxu1 %v8372_v7  ;;  %11599 = vst [vmem:[#allocation73_spill] sm:$0xff] %v8378_v12  ;;  %11600 = vst [vmem:[#allocation74_spill] sm:$0xff] %v8384_v2  ;;  %v8390_v6 = vld [vmem:[%s10501_s4 + $0x380] sm:$0xff]  ;;  %v8396_v7 = vld [vmem:[%s10501_s4 + $0x390] sm:$0xff] }
 0x4e0   :  { %2136 = vmatprep.subr.mxu0 %v8378_v12  ;;  %2207 = vmatprep.subr.mxu1 %v8384_v2  ;;  %11601 = vst [vmem:[#allocation75_spill] sm:$0xff] %v8390_v6  ;;  %11602 = vst [vmem:[#allocation76_spill] sm:$0xff] %v8396_v7  ;;  %v8402_v12 = vld [vmem:[%s10501_s4 + $0x368] sm:$0xff]  ;;  %v8408_v2 = vld [vmem:[%s10501_s4 + $0x378] sm:$0xff] }
 0x4e1   :  { %2137 = vmatpush2.msra.mxu0 %v8390_v6  ;;  %2208 = vmatpush2.msra.mxu1 %v8396_v7  ;;  %11603 = vst [vmem:[#allocation77_spill] sm:$0xff] %v8402_v12  ;;  %11604 = vst [vmem:[#allocation78_spill] sm:$0xff] %v8408_v2  ;;  %v8414_v6 = vld [vmem:[%s10501_s4 + $0x360] sm:$0xff]  ;;  %v8420_v7 = vld [vmem:[%s10501_s4 + $0x370] sm:$0xff] }
 0x4e2   :  { %2138 = vmatprep.subr.mxu0 %v8402_v12  ;;  %2209 = vmatprep.subr.mxu1 %v8408_v2  ;;  %11605 = vst [vmem:[#allocation79_spill] sm:$0xff] %v8414_v6  ;;  %11606 = vst [vmem:[#allocation80_spill] sm:$0xff] %v8420_v7  ;;  %v8426_v12 = vld [vmem:[%s10501_s4 + $0x348] sm:$0xff]  ;;  %v8432_v2 = vld [vmem:[%s10501_s4 + $0x358] sm:$0xff] }
 0x4e3   :  { %2139 = vmatpush2.msra.mxu0 %v8414_v6  ;;  %2210 = vmatpush2.msra.mxu1 %v8420_v7  ;;  %11607 = vst [vmem:[#allocation81_spill] sm:$0xff] %v8426_v12  ;;  %11608 = vst [vmem:[#allocation82_spill] sm:$0xff] %v8432_v2  ;;  %v8438_v6 = vld [vmem:[%s10501_s4 + $0x340] sm:$0xff]  ;;  %v8444_v7 = vld [vmem:[%s10501_s4 + $0x350] sm:$0xff] }
 0x4e4   :  { %2140 = vmatprep.subr.mxu0 %v8426_v12  ;;  %2211 = vmatprep.subr.mxu1 %v8432_v2  ;;  %11609 = vst [vmem:[#allocation83_spill] sm:$0xff] %v8438_v6  ;;  %11610 = vst [vmem:[#allocation84_spill] sm:$0xff] %v8444_v7  ;;  %v8450_v12 = vld [vmem:[%s10501_s4 + $0x328] sm:$0xff]  ;;  %v8456_v2 = vld [vmem:[%s10501_s4 + $0x338] sm:$0xff] }
 0x4e5   :  { %2141 = vmatpush2.msra.mxu0 %v8438_v6  ;;  %2212 = vmatpush2.msra.mxu1 %v8444_v7  ;;  %11611 = vst [vmem:[#allocation85_spill] sm:$0xff] %v8450_v12  ;;  %11612 = vst [vmem:[#allocation86_spill] sm:$0xff] %v8456_v2  ;;  %v8462_v6 = vld [vmem:[%s10501_s4 + $0x320] sm:$0xff]  ;;  %v8468_v7 = vld [vmem:[%s10501_s4 + $0x330] sm:$0xff] }
 0x4e6   :  { %2142 = vmatprep.subr.mxu0 %v8450_v12  ;;  %2213 = vmatprep.subr.mxu1 %v8456_v2  ;;  %11613 = vst [vmem:[#allocation87_spill] sm:$0xff] %v8462_v6  ;;  %11614 = vst [vmem:[#allocation88_spill] sm:$0xff] %v8468_v7  ;;  %v8474_v12 = vld [vmem:[%s10501_s4 + $0x308] sm:$0xff]  ;;  %v8480_v2 = vld [vmem:[%s10501_s4 + $0x318] sm:$0xff] }
 0x4e7   :  { %2143 = vmatpush2.msra.mxu0 %v8462_v6  ;;  %2214 = vmatpush2.msra.mxu1 %v8468_v7  ;;  %11615 = vst [vmem:[#allocation89_spill] sm:$0xff] %v8474_v12  ;;  %11616 = vst [vmem:[#allocation90_spill] sm:$0xff] %v8480_v2  ;;  %v8486_v6 = vld [vmem:[%s10501_s4 + $0x300] sm:$0xff]  ;;  %v8492_v7 = vld [vmem:[%s10501_s4 + $0x310] sm:$0xff] }
 0x4e8   :  { %2144 = vmatprep.subr.mxu0 %v8474_v12  ;;  %2215 = vmatprep.subr.mxu1 %v8480_v2  ;;  %11617 = vst [vmem:[#allocation91_spill] sm:$0xff] %v8486_v6  ;;  %11618 = vst [vmem:[#allocation92_spill] sm:$0xff] %v8492_v7  ;;  %v8498_v12 = vld [vmem:[%s10501_s4 + $0x2e8] sm:$0xff]  ;;  %v8504_v2 = vld [vmem:[%s10501_s4 + $0x2f8] sm:$0xff] }
 0x4e9   :  { %2145 = vmatpush2.msra.mxu0 %v8486_v6  ;;  %2216 = vmatpush2.msra.mxu1 %v8492_v7  ;;  %11619 = vst [vmem:[#allocation93_spill] sm:$0xff] %v8498_v12  ;;  %11620 = vst [vmem:[#allocation94_spill] sm:$0xff] %v8504_v2  ;;  %v8510_v6 = vld [vmem:[%s10501_s4 + $0x2e0] sm:$0xff]  ;;  %v8516_v7 = vld [vmem:[%s10501_s4 + $0x2f0] sm:$0xff] }
 0x4ea   :  { %2146 = vmatprep.subr.mxu0 %v8498_v12  ;;  %2217 = vmatprep.subr.mxu1 %v8504_v2  ;;  %11621 = vst [vmem:[#allocation95_spill] sm:$0xff] %v8510_v6  ;;  %11622 = vst [vmem:[#allocation96_spill] sm:$0xff] %v8516_v7  ;;  %v8522_v12 = vld [vmem:[%s10501_s4 + $0x2c8] sm:$0xff]  ;;  %v8528_v2 = vld [vmem:[%s10501_s4 + $0x2d8] sm:$0xff] }
 0x4eb   :  { %2147 = vmatpush2.msra.mxu0 %v8510_v6  ;;  %2218 = vmatpush2.msra.mxu1 %v8516_v7  ;;  %11623 = vst [vmem:[#allocation97_spill] sm:$0xff] %v8522_v12  ;;  %11624 = vst [vmem:[#allocation98_spill] sm:$0xff] %v8528_v2  ;;  %v8534_v6 = vld [vmem:[%s10501_s4 + $0x2c0] sm:$0xff]  ;;  %v8540_v7 = vld [vmem:[%s10501_s4 + $0x2d0] sm:$0xff] }
 0x4ec   :  { %2148 = vmatprep.subr.mxu0 %v8522_v12  ;;  %2219 = vmatprep.subr.mxu1 %v8528_v2  ;;  %11625 = vst [vmem:[#allocation99_spill] sm:$0xff] %v8534_v6  ;;  %11626 = vst [vmem:[#allocation100_spill] sm:$0xff] %v8540_v7  ;;  %v8546_v12 = vld [vmem:[%s10501_s4 + $0x2a8] sm:$0xff]  ;;  %v8552_v2 = vld [vmem:[%s10501_s4 + $0x2b8] sm:$0xff] }
 0x4ed   :  { %2149 = vmatpush2.msra.mxu0 %v8534_v6  ;;  %2220 = vmatpush2.msra.mxu1 %v8540_v7  ;;  %11627 = vst [vmem:[#allocation101_spill] sm:$0xff] %v8546_v12  ;;  %11628 = vst [vmem:[#allocation102_spill] sm:$0xff] %v8552_v2  ;;  %v8558_v6 = vld [vmem:[%s10501_s4 + $0x2a0] sm:$0xff]  ;;  %v8564_v7 = vld [vmem:[%s10501_s4 + $0x2b0] sm:$0xff] }
 0x4ee   :  { %2150 = vmatprep.subr.mxu0 %v8546_v12  ;;  %2221 = vmatprep.subr.mxu1 %v8552_v2  ;;  %11629 = vst [vmem:[#allocation103_spill] sm:$0xff] %v8558_v6  ;;  %11630 = vst [vmem:[#allocation104_spill] sm:$0xff] %v8564_v7  ;;  %v8570_v12 = vld [vmem:[%s10501_s4 + $0x288] sm:$0xff]  ;;  %v8576_v2 = vld [vmem:[%s10501_s4 + $0x298] sm:$0xff] }
 0x4ef   :  { %2151 = vmatpush2.msra.mxu0 %v8558_v6  ;;  %2222 = vmatpush2.msra.mxu1 %v8564_v7  ;;  %11631 = vst [vmem:[#allocation105_spill] sm:$0xff] %v8570_v12  ;;  %11632 = vst [vmem:[#allocation106_spill] sm:$0xff] %v8576_v2  ;;  %v8582_v6 = vld [vmem:[%s10501_s4 + $0x280] sm:$0xff]  ;;  %v8588_v7 = vld [vmem:[%s10501_s4 + $0x290] sm:$0xff] }
 0x4f0   :  { %2152 = vmatprep.subr.mxu0 %v8570_v12  ;;  %2223 = vmatprep.subr.mxu1 %v8576_v2  ;;  %11633 = vst [vmem:[#allocation107_spill] sm:$0xff] %v8582_v6  ;;  %11634 = vst [vmem:[#allocation108_spill] sm:$0xff] %v8588_v7  ;;  %v8594_v12 = vld [vmem:[%s10501_s4 + $0x268] sm:$0xff]  ;;  %v8600_v2 = vld [vmem:[%s10501_s4 + $0x278] sm:$0xff] }
 0x4f1   :  { %2153 = vmatpush2.msra.mxu0 %v8582_v6  ;;  %2224 = vmatpush2.msra.mxu1 %v8588_v7  ;;  %11635 = vst [vmem:[#allocation109_spill] sm:$0xff] %v8594_v12  ;;  %11636 = vst [vmem:[#allocation110_spill] sm:$0xff] %v8600_v2  ;;  %v8606_v6 = vld [vmem:[%s10501_s4 + $0x260] sm:$0xff]  ;;  %v8612_v7 = vld [vmem:[%s10501_s4 + $0x270] sm:$0xff] }
 0x4f2   :  { %2154 = vmatprep.subr.mxu0 %v8594_v12  ;;  %2225 = vmatprep.subr.mxu1 %v8600_v2  ;;  %11637 = vst [vmem:[#allocation111_spill] sm:$0xff] %v8606_v6  ;;  %11638 = vst [vmem:[#allocation112_spill] sm:$0xff] %v8612_v7  ;;  %v8618_v12 = vld [vmem:[%s10501_s4 + $0x248] sm:$0xff]  ;;  %v8624_v2 = vld [vmem:[%s10501_s4 + $0x258] sm:$0xff] }
 0x4f3   :  { %2155 = vmatpush2.msra.mxu0 %v8606_v6  ;;  %2226 = vmatpush2.msra.mxu1 %v8612_v7  ;;  %11639 = vst [vmem:[#allocation113_spill] sm:$0xff] %v8618_v12  ;;  %11640 = vst [vmem:[#allocation114_spill] sm:$0xff] %v8624_v2  ;;  %v8630_v6 = vld [vmem:[%s10501_s4 + $0x240] sm:$0xff]  ;;  %v8636_v7 = vld [vmem:[%s10501_s4 + $0x250] sm:$0xff] }
 0x4f4   :  { %2156 = vmatprep.subr.mxu0 %v8618_v12  ;;  %2227 = vmatprep.subr.mxu1 %v8624_v2  ;;  %11641 = vst [vmem:[#allocation115_spill] sm:$0xff] %v8630_v6  ;;  %11642 = vst [vmem:[#allocation116_spill] sm:$0xff] %v8636_v7  ;;  %v8642_v12 = vld [vmem:[%s10501_s4 + $0x228] sm:$0xff]  ;;  %v8648_v2 = vld [vmem:[%s10501_s4 + $0x238] sm:$0xff] }
 0x4f5   :  { %2157 = vmatpush2.msra.mxu0 %v8630_v6  ;;  %2228 = vmatpush2.msra.mxu1 %v8636_v7  ;;  %11643 = vst [vmem:[#allocation117_spill] sm:$0xff] %v8642_v12  ;;  %11644 = vst [vmem:[#allocation118_spill] sm:$0xff] %v8648_v2  ;;  %v8654_v6 = vld [vmem:[%s10501_s4 + $0x220] sm:$0xff]  ;;  %v8660_v7 = vld [vmem:[%s10501_s4 + $0x230] sm:$0xff] }
 0x4f6   :  { %2158 = vmatprep.subr.mxu0 %v8642_v12  ;;  %2229 = vmatprep.subr.mxu1 %v8648_v2  ;;  %11645 = vst [vmem:[#allocation119_spill] sm:$0xff] %v8654_v6  ;;  %11646 = vst [vmem:[#allocation120_spill] sm:$0xff] %v8660_v7  ;;  %v8666_v12 = vld [vmem:[%s10501_s4 + $0x208] sm:$0xff]  ;;  %v8672_v2 = vld [vmem:[%s10501_s4 + $0x218] sm:$0xff] }
 0x4f7   :  { %2159 = vmatpush2.msra.mxu0 %v8654_v6  ;;  %2230 = vmatpush2.msra.mxu1 %v8660_v7  ;;  %11647 = vst [vmem:[#allocation121_spill] sm:$0xff] %v8666_v12  ;;  %11648 = vst [vmem:[#allocation122_spill] sm:$0xff] %v8672_v2  ;;  %v8678_v6 = vld [vmem:[%s10501_s4 + $0x200] sm:$0xff]  ;;  %v8684_v7 = vld [vmem:[%s10501_s4 + $0x210] sm:$0xff] }
 0x4f8   :  { %2160 = vmatprep.subr.mxu0 %v8666_v12  ;;  %2231 = vmatprep.subr.mxu1 %v8672_v2  ;;  %11649 = vst [vmem:[#allocation123_spill] sm:$0xff] %v8678_v6  ;;  %11650 = vst [vmem:[#allocation124_spill] sm:$0xff] %v8684_v7  ;;  %v8690_v12 = vld [vmem:[%s10499_s2 + $0x1e8] sm:$0xff] }
 0x4f9   :  { %2161 = vmatpush2.msra.mxu0 %v8678_v6  ;;  %2232 = vmatpush2.msra.mxu1 %v8684_v7  ;;  %11651 = vst [vmem:[#allocation125_spill] sm:$0xff] %v8690_v12 }
 0x4fa   :  { %2266 = vmatprep.subr.mxu0 %v8690_v12  ;;  %2337 = vmatprep.subr.mxu1 %v7672_v29 }
 0x558   :  { %v1826_v2 = vpop.f32.mrf.mxu0  ;;  %v1897_v41 = vpop.f32.mrf.mxu1 }
 0x559   :  { %v1827_v23 = vadd.f32 %v1826_v2, %v11525_v4  ;;  %v1898_v12 = vadd.f32 %v1897_v41, %v11528_v33 }
 0x55a   :  { %v1828_v6 = vpop.f32.mrf.mxu0  ;;  %v1899_v7 = vpop.f32.mrf.mxu1 }
 0x55b   :  { %v3473_v34 = vmul.f32 -1.442695, %v1827_v23  ;;  %v1829_v11 = vadd.f32 %v1828_v6, %v11526_v9  ;;  %v1900_v31 = vadd.f32 %v1899_v7, %v11527_v16  ;;  %v11652_v9 = vld [vmem:[#allocation133_spill] sm:$0xff] }
 0x55d   :  { %3682 = vpow2.f32 %v3473_v34  ;;  %v3474_v37 = vmul.f32 -1.442695, %v1829_v11  ;;  %v3475_v36 = vmul.f32 -1.442695, %v1900_v31  ;;  %v11653_v31 = vld [vmem:[#allocation134_spill] sm:$0xff] }
 0x55f   :  { %3684 = vpow2.f32 %v3474_v37 }
 0x560   :  { %3686 = vpow2.f32 %v3475_v36 }
 0x56a   :  { %v3683_v21 = vpop.eup %3682 }
 0x56b   :  { %v1905_v3 = vadd.f32 1.0, %v3683_v21 }
 0x56c   :  { %v3685_v29 = vpop.eup %3684 }
 0x56d   :  { %3688 = vrcp.f32 %v1905_v3  ;;  %v1911_v2 = vadd.f32 1.0, %v3685_v29  ;;  %v3687_v23 = vpop.eup %3686 }
 0x56e   :  { %3690 = vtanh.f32 %v1898_v12  ;;  %v1918_v41 = vadd.f32 1.0, %v3687_v23 }
 0x56f   :  { %3692 = vrcp.f32 %v1911_v2 }
 0x579   :  { %v1994_v6 = vpop.f32.mrf.mxu0  ;;  %v2065_v3 = vpop.f32.mrf.mxu1 }
 0x57a   :  { %v3689_v34 = vpop.eup %3688  ;;  %v2070_v11 = vadd.f32 %v1994_v6, %v11652_v9  ;;  %v11654_v9 = vld [vmem:[#allocation146_spill] sm:$0xff]  ;;  %v11655_v6 = vld [vmem:[#allocation145_spill] sm:$0xff] }
 0x57b   :  { %v3691_v37 = vpop.eup %3690  ;;  %v1996_v4 = vpop.f32.mrf.mxu0 }
 0x57c   :  { %v3693_v26 = vpop.eup %3692  ;;  %v3476_v7 = vmul.f32 -1.442695, %v2070_v11  ;;  %v2071_v16 = vadd.f32 %v1996_v4, %v11653_v31  ;;  %v1922_v28 = vmul.f32 %v3691_v37, %v3689_v34  ;;  %v2067_v29 = vpop.f32.mrf.mxu1  ;;  %v2072_v11 = vadd.f32 %v2065_v3, %v11655_v6  ;;  %v8720_v6 = vld [vmem:[%s10499_s2 + $0x1e0] sm:$0xff] }
 0x57d   :  { %v1921_v21 = vmul.f32 %v3693_v26, %v7682_v14  ;;  %v2073_v2 = vadd.f32 %v2067_v29, %v11654_v9 }
 0x57e   :  { %3694 = vpow2.f32 %v3476_v7  ;;  %v3477_v36 = vmul.f32 -1.442695, %v2071_v16 }
 0x57f   :  { %v8701_v12 = vadd.f32 %v1922_v28, %v1921_v21  ;;  %v3478_v33 = vmul.f32 -1.442695, %v2073_v2 }
 0x580   :  { %3696 = vpow2.f32 %v3477_v36 }
 0x581   :  { %3698 = vrcp.f32 %v1918_v41 }
 0x582   :  { %3700 = vtanh.f32 %v8701_v12 }
 0x583   :  { %3702 = vtanh.f32 %v2072_v11  ;;  %v8734_v11 = vld [vmem:[%s10499_s2 + $0x1c0] sm:$0xff] }
 0x584   :  { %3704 = vpow2.f32 %v3478_v33 }
 0x58b   :  { %v3695_v4 = vpop.eup %3694 }
 0x58c   :  { %v2077_v34 = vadd.f32 1.0, %v3695_v4  ;;  %v11669_v4 = vld [vmem:[#allocation20_spill] sm:$0xff] }
 0x58d   :  { %v3697_v14 = vpop.eup %3696 }
 0x58e   :  { %v3699_v26 = vpop.eup %3698  ;;  %3706 = vrcp.f32 %v2077_v34  ;;  %v2083_v16 = vadd.f32 1.0, %v3697_v14  ;;  %v11670_v34 = vld [vmem:[#allocation21_spill] sm:$0xff]  ;;  %v11671_v14 = vld [vmem:[#allocation22_spill] sm:$0xff] }
 0x58f   :  { %v3701_v28 = vpop.eup %3700 }
 0x590   :  { %3708 = vrcp.f32 %v2083_v16  ;;  %v1925_v23 = vmul.f32 %v3701_v28, %v3699_v26  ;;  %v3703_v37 = vpop.eup %3702  ;;  %v11672_v26 = vld [vmem:[#allocation23_spill] sm:$0xff]  ;;  %v11673_v16 = vld [vmem:[#allocation24_spill] sm:$0xff]  ;;  %v11674_v28 = vld [vmem:[#allocation25_spill] sm:$0xff] }
 0x591   :  { %v3705_v7 = vpop.eup %3704 }
 0x592   :  { %2162 = vmatprep.mubr.f32.mxu0 %v1925_v23  ;;  %3295 = vst [vmem:[%s10504_s9 + $0x18] sm:$0xff] %v1925_v23  ;;  %2233 = vmatprep.mubr.f32.mxu1 %v1925_v23  ;;  %v2090_v3 = vadd.f32 1.0, %v3705_v7  ;;  %v11675_v23 = vld [vmem:[#allocation26_spill] sm:$0xff]  ;;  %v11677_v7 = vld [vmem:[#allocation28_spill] sm:$0xff] }
 0x594   :  { %3710 = vrcp.f32 %v2090_v3  ;;  %v11681_v3 = vld [vmem:[#allocation32_spill] sm:$0xff] }
 0x59b   :  { %v3707_v31 = vpop.eup %3706 }
 0x59c   :  { %v2094_v21 = vmul.f32 %v3707_v31, %v3703_v37  ;;  %v11676_v37 = vld [vmem:[#allocation27_spill] sm:$0xff]  ;;  %v11678_v31 = vld [vmem:[#allocation29_spill] sm:$0xff] }
 0x59d   :  { %v3709_v41 = vpop.eup %3708 }
 0x59e   :  { %v2093_v33 = vmul.f32 %v3709_v41, %v7691_v5  ;;  %v8727_v5 = vld [vmem:[%s10499_s2 + $0x1c8] sm:$0xff]  ;;  %v11680_v41 = vld [vmem:[#allocation31_spill] sm:$0xff] }
 0x5a0   :  { %v8710_v36 = vadd.f32 %v2094_v21, %v2093_v33  ;;  %v11679_v21 = vld [vmem:[#allocation30_spill] sm:$0xff]  ;;  %v11682_v33 = vld [vmem:[#allocation33_spill] sm:$0xff] }
 0x5a1   :  { %v3711_v29 = vpop.eup %3710 }
 0x5a2   :  { %3712 = vtanh.f32 %v8710_v36 }
 0x5af   :  { %v3713_v9 = vpop.eup %3712 }
 0x5b0   :  { %v8713_v2 = vmul.f32 %v3713_v9, %v3711_v29  ;;  %v11683_v29 = vld [vmem:[#allocation34_spill] sm:$0xff]  ;;  %v11684_v9 = vld [vmem:[#allocation35_spill] sm:$0xff] }
 0x5b2   :  { %2163 = vmatmul.mubr.f32.vlgmr.msra.gmra.mxu0 %v8713_v2  ;;  %2234 = vmatmul.mubr.f32.vlgmr.msra.gmra.mxu1 %v8713_v2 }
 0x5b3   :  { %2267 = vmatpush1.msra.mxu0 %v8720_v6  ;;  %2338 = vmatpush1.msra.mxu1 %v7702_v13  ;;  %v8741_v13 = vld [vmem:[%s10499_s2 + $0x1a8] sm:$0xff] }
 0x5b4   :  { %2268 = vmatprep.subr.mxu0 %v8727_v5  ;;  %2339 = vmatprep.subr.mxu1 %v7709_v22  ;;  %v8748_v22 = vld [vmem:[%s10499_s2 + $0x1a0] sm:$0xff] }
 0x5b5   :  { %2269 = vmatpush1.msra.mxu0 %v8734_v11  ;;  %2340 = vmatpush1.msra.mxu1 %v7716_v27  ;;  %v8755_v27 = vld [vmem:[%s10499_s2 + $0x188] sm:$0xff] }
 0x5b6   :  { %2270 = vmatprep.subr.mxu0 %v8741_v13  ;;  %2341 = vmatprep.subr.mxu1 %v7723_v40  ;;  %v8762_v40 = vld [vmem:[%s10499_s2 + $0x180] sm:$0xff] }
 0x5b7   :  { %2271 = vmatpush1.msra.mxu0 %v8748_v22  ;;  %2342 = vmatpush1.msra.mxu1 %v7730_v42  ;;  %v8769_v42 = vld [vmem:[%s10499_s2 + $0x168] sm:$0xff] }
 0x5b8   :  { %2272 = vmatprep.subr.mxu0 %v8755_v27  ;;  %2343 = vmatprep.subr.mxu1 %v7737_v8  ;;  %v8776_v8 = vld [vmem:[%s10499_s2 + $0x160] sm:$0xff] }
 0x5b9   :  { %2273 = vmatpush1.msra.mxu0 %v8762_v40  ;;  %2344 = vmatpush1.msra.mxu1 %v7744_v32  ;;  %v8783_v32 = vld [vmem:[%s10499_s2 + $0x148] sm:$0xff] }
 0x5ba   :  { %2274 = vmatprep.subr.mxu0 %v8769_v42  ;;  %2345 = vmatprep.subr.mxu1 %v7751_v20  ;;  %v8790_v20 = vld [vmem:[%s10499_s2 + $0x140] sm:$0xff] }
 0x5bb   :  { %2275 = vmatpush1.msra.mxu0 %v8776_v8  ;;  %2346 = vmatpush1.msra.mxu1 %v7758_v38  ;;  %v8797_v38 = vld [vmem:[%s10499_s2 + $0x128] sm:$0xff] }
 0x5bc   :  { %2276 = vmatprep.subr.mxu0 %v8783_v32  ;;  %2347 = vmatprep.subr.mxu1 %v7765_v24  ;;  %v8804_v24 = vld [vmem:[%s10499_s2 + $0x120] sm:$0xff] }
 0x5bd   :  { %2277 = vmatpush1.msra.mxu0 %v8790_v20  ;;  %2348 = vmatpush1.msra.mxu1 %v7772_v43  ;;  %v8811_v43 = vld [vmem:[%s10499_s2 + $0x108] sm:$0xff] }
 0x5be   :  { %2278 = vmatprep.subr.mxu0 %v8797_v38  ;;  %2349 = vmatprep.subr.mxu1 %v7779_v44  ;;  %v8818_v44 = vld [vmem:[%s10499_s2 + $0x100] sm:$0xff] }
 0x5bf   :  { %2279 = vmatpush1.msra.mxu0 %v8804_v24  ;;  %2350 = vmatpush1.msra.mxu1 %v7786_v45  ;;  %v8825_v45 = vld [vmem:[%s10499_s2 + $0xe8] sm:$0xff] }
 0x5c0   :  { %2280 = vmatprep.subr.mxu0 %v8811_v43  ;;  %2351 = vmatprep.subr.mxu1 %v7793_v46  ;;  %v8832_v46 = vld [vmem:[%s10499_s2 + $0xe0] sm:$0xff] }
 0x5c1   :  { %2281 = vmatpush1.msra.mxu0 %v8818_v44  ;;  %2352 = vmatpush1.msra.mxu1 %v7800_v47  ;;  %v8839_v47 = vld [vmem:[%s10499_s2 + $0xc8] sm:$0xff] }
 0x5c2   :  { %2282 = vmatprep.subr.mxu0 %v8825_v45  ;;  %2353 = vmatprep.subr.mxu1 %v7807_v48  ;;  %v8846_v48 = vld [vmem:[%s10499_s2 + $0xc0] sm:$0xff] }
 0x5c3   :  { %2283 = vmatpush1.msra.mxu0 %v8832_v46  ;;  %2354 = vmatpush1.msra.mxu1 %v7814_v49  ;;  %v8853_v49 = vld [vmem:[%s10499_s2 + $0xa8] sm:$0xff] }
 0x5c4   :  { %2284 = vmatprep.subr.mxu0 %v8839_v47  ;;  %2355 = vmatprep.subr.mxu1 %v7821_v50  ;;  %v8860_v50 = vld [vmem:[%s10499_s2 + $0xa0] sm:$0xff] }
 0x5c5   :  { %2285 = vmatpush1.msra.mxu0 %v8846_v48  ;;  %2356 = vmatpush1.msra.mxu1 %v7828_v51  ;;  %v8867_v51 = vld [vmem:[%s10499_s2 + $0x88] sm:$0xff] }
 0x5c6   :  { %2286 = vmatprep.subr.mxu0 %v8853_v49  ;;  %2357 = vmatprep.subr.mxu1 %v7835_v52  ;;  %v8874_v52 = vld [vmem:[%s10499_s2 + $0x80] sm:$0xff] }
 0x5c7   :  { %2287 = vmatpush1.msra.mxu0 %v8860_v50  ;;  %2358 = vmatpush1.msra.mxu1 %v7842_v53  ;;  %v8881_v53 = vld [vmem:[%s10499_s2 + $0x68] sm:$0xff] }
 0x5c8   :  { %2288 = vmatprep.subr.mxu0 %v8867_v51  ;;  %2359 = vmatprep.subr.mxu1 %v7849_v54  ;;  %v8888_v54 = vld [vmem:[%s10499_s2 + $0x60] sm:$0xff] }
 0x5c9   :  { %2289 = vmatpush1.msra.mxu0 %v8874_v52  ;;  %2360 = vmatpush1.msra.mxu1 %v7856_v55  ;;  %v8895_v55 = vld [vmem:[%s10499_s2 + $0x48] sm:$0xff] }
 0x5ca   :  { %2290 = vmatprep.subr.mxu0 %v8881_v53  ;;  %2361 = vmatprep.subr.mxu1 %v7863_v56  ;;  %v8902_v56 = vld [vmem:[%s10499_s2 + $0x40] sm:$0xff] }
 0x5cb   :  { %2291 = vmatpush1.msra.mxu0 %v8888_v54  ;;  %2362 = vmatpush1.msra.mxu1 %v7870_v57  ;;  %v8909_v57 = vld [vmem:[%s10499_s2 + $0x28] sm:$0xff] }
 0x5cc   :  { %2292 = vmatprep.subr.mxu0 %v8895_v55  ;;  %2363 = vmatprep.subr.mxu1 %v7877_v58  ;;  %v8916_v58 = vld [vmem:[%s10499_s2 + $0x20] sm:$0xff] }
 0x5cd   :  { %2293 = vmatpush1.msra.mxu0 %v8902_v56  ;;  %2364 = vmatpush1.msra.mxu1 %v7884_v59  ;;  %v8923_v59 = vld [vmem:[%s10499_s2 + $0x8] sm:$0xff] }
 0x5ce   :  { %2294 = vmatprep.subr.mxu0 %v8909_v57  ;;  %2365 = vmatprep.subr.mxu1 %v7891_v60  ;;  %v8930_v60 = vld [vmem:[%s10499_s2] sm:$0xff] }
 0x5cf   :  { %2295 = vmatpush1.msra.mxu0 %v8916_v58  ;;  %2366 = vmatpush1.msra.mxu1 %v7898_v61  ;;  %v11656_v61 = vld [vmem:[#allocation129_spill] sm:$0xff] }
 0x5d0   :  { %2296 = vmatprep.subr.mxu0 %v8923_v59  ;;  %2367 = vmatprep.subr.mxu1 %v7905_v62  ;;  %v11657_v62 = vld [vmem:[#allocation130_spill] sm:$0xff] }
 0x5d1   :  { %2297 = vmatpush1.msra.mxu0 %v8930_v60  ;;  %2330 = vmatprep.mubr.f32.mxu0 %v11152_v39 }
 0x5d2   :  { %2368 = vmatpush1.msra.mxu1 %v7913_v63  ;;  %2401 = vmatprep.mubr.f32.mxu1 %v11152_v39  ;;  %v11658_v63 = vld [vmem:[#allocation142_spill] sm:$0xff] }
 0x5d3   :  { %2331 = vmatmul.mubr.f32.vlgmr.msra.gmra.mxu0 %v8713_v2  ;;  %2402 = vmatmul.mubr.f32.vlgmr.msra.gmra.mxu1 %v8713_v2  ;;  %v11685_v2 = vld [vmem:[#allocation36_spill] sm:$0xff] }
 0x5d4   :  { %2436 = vmatprep.subr.mxu0 %v7922_v0  ;;  %2507 = vmatprep.subr.mxu1 %v7928_v1  ;;  %v11659_v0 = vld [vmem:[#allocation141_spill] sm:$0xff]  ;;  %v11660_v1 = vld [vmem:[#allocation11_spill] sm:$0xff] }
 0x5d5   :  { %2437 = vmatpush1.msra.mxu0 %v7934_v15  ;;  %2508 = vmatpush1.msra.mxu1 %v7940_v17  ;;  %v11661_v15 = vld [vmem:[#allocation12_spill] sm:$0xff]  ;;  %v11662_v17 = vld [vmem:[#allocation13_spill] sm:$0xff] }
 0x5d6   :  { %2438 = vmatprep.subr.mxu0 %v7946_v18  ;;  %2509 = vmatprep.subr.mxu1 %v7952_v30  ;;  %v11663_v18 = vld [vmem:[#allocation14_spill] sm:$0xff]  ;;  %v11664_v30 = vld [vmem:[#allocation15_spill] sm:$0xff] }
 0x5d7   :  { %2439 = vmatpush1.msra.mxu0 %v7958_v10  ;;  %2510 = vmatpush1.msra.mxu1 %v7964_v35  ;;  %v11665_v10 = vld [vmem:[#allocation16_spill] sm:$0xff]  ;;  %v11666_v35 = vld [vmem:[#allocation17_spill] sm:$0xff] }
 0x5d8   :  { %2440 = vmatprep.subr.mxu0 %v7970_v25  ;;  %2511 = vmatprep.subr.mxu1 %v7976_v19  ;;  %v11667_v25 = vld [vmem:[#allocation18_spill] sm:$0xff]  ;;  %v11668_v19 = vld [vmem:[#allocation19_spill] sm:$0xff] }
 0x5d9   :  { %2441 = vmatpush1.msra.mxu0 %v11656_v61  ;;  %2512 = vmatpush1.msra.mxu1 %v11657_v62  ;;  %v11686_v61 = vld [vmem:[#allocation37_spill] sm:$0xff]  ;;  %v11687_v62 = vld [vmem:[#allocation38_spill] sm:$0xff] }
 0x5da   :  { %2442 = vmatprep.subr.mxu0 %v11658_v63  ;;  %2513 = vmatprep.subr.mxu1 %v11659_v0  ;;  %v11688_v63 = vld [vmem:[#allocation39_spill] sm:$0xff]  ;;  %v11689_v0 = vld [vmem:[#allocation40_spill] sm:$0xff] }
 0x5db   :  { %2443 = vmatpush1.msra.mxu0 %v11660_v1  ;;  %2514 = vmatpush1.msra.mxu1 %v11661_v15  ;;  %v11690_v1 = vld [vmem:[#allocation41_spill] sm:$0xff]  ;;  %v11691_v15 = vld [vmem:[#allocation42_spill] sm:$0xff] }
 0x5dc   :  { %2444 = vmatprep.subr.mxu0 %v11662_v17  ;;  %2515 = vmatprep.subr.mxu1 %v11663_v18  ;;  %v11692_v17 = vld [vmem:[#allocation43_spill] sm:$0xff]  ;;  %v11693_v18 = vld [vmem:[#allocation44_spill] sm:$0xff] }
 0x5dd   :  { %2445 = vmatpush1.msra.mxu0 %v11664_v30  ;;  %2516 = vmatpush1.msra.mxu1 %v11665_v10  ;;  %v11694_v30 = vld [vmem:[#allocation45_spill] sm:$0xff]  ;;  %v11695_v10 = vld [vmem:[#allocation46_spill] sm:$0xff] }
 0x5de   :  { %2446 = vmatprep.subr.mxu0 %v11666_v35  ;;  %2517 = vmatprep.subr.mxu1 %v11667_v25  ;;  %v11696_v35 = vld [vmem:[#allocation47_spill] sm:$0xff]  ;;  %v11697_v25 = vld [vmem:[#allocation48_spill] sm:$0xff] }
 0x5df   :  { %2447 = vmatpush1.msra.mxu0 %v11668_v19  ;;  %2518 = vmatpush1.msra.mxu1 %v11669_v4  ;;  %v11698_v19 = vld [vmem:[#allocation49_spill] sm:$0xff]  ;;  %v11699_v4 = vld [vmem:[#allocation50_spill] sm:$0xff] }
 0x5e0   :  { %2448 = vmatprep.subr.mxu0 %v11670_v34  ;;  %2519 = vmatprep.subr.mxu1 %v11671_v14  ;;  %v11700_v34 = vld [vmem:[#allocation51_spill] sm:$0xff]  ;;  %v11701_v14 = vld [vmem:[#allocation52_spill] sm:$0xff] }
 0x5e1   :  { %2449 = vmatpush1.msra.mxu0 %v11672_v26  ;;  %2520 = vmatpush1.msra.mxu1 %v11673_v16  ;;  %v11702_v26 = vld [vmem:[#allocation53_spill] sm:$0xff]  ;;  %v11703_v16 = vld [vmem:[#allocation54_spill] sm:$0xff] }
 0x5e2   :  { %2450 = vmatprep.subr.mxu0 %v11674_v28  ;;  %2521 = vmatprep.subr.mxu1 %v11675_v23  ;;  %v11704_v28 = vld [vmem:[#allocation55_spill] sm:$0xff]  ;;  %v11705_v23 = vld [vmem:[#allocation56_spill] sm:$0xff] }
 0x5e3   :  { %2451 = vmatpush1.msra.mxu0 %v11676_v37  ;;  %2522 = vmatpush1.msra.mxu1 %v11677_v7  ;;  %v11706_v37 = vld [vmem:[#allocation57_spill] sm:$0xff]  ;;  %v11707_v7 = vld [vmem:[#allocation58_spill] sm:$0xff] }
 0x5e4   :  { %2452 = vmatprep.subr.mxu0 %v11678_v31  ;;  %2523 = vmatprep.subr.mxu1 %v11679_v21  ;;  %v11708_v31 = vld [vmem:[#allocation59_spill] sm:$0xff]  ;;  %v11709_v21 = vld [vmem:[#allocation60_spill] sm:$0xff] }
 0x5e5   :  { %2453 = vmatpush1.msra.mxu0 %v11680_v41  ;;  %2524 = vmatpush1.msra.mxu1 %v11681_v3  ;;  %v11710_v41 = vld [vmem:[#allocation61_spill] sm:$0xff]  ;;  %v11711_v3 = vld [vmem:[#allocation62_spill] sm:$0xff] }
 0x5e6   :  { %2454 = vmatprep.subr.mxu0 %v11682_v33  ;;  %2525 = vmatprep.subr.mxu1 %v11683_v29  ;;  %v11712_v33 = vld [vmem:[#allocation63_spill] sm:$0xff]  ;;  %v11713_v29 = vld [vmem:[#allocation64_spill] sm:$0xff] }
 0x5e7   :  { %2455 = vmatpush1.msra.mxu0 %v11684_v9  ;;  %2526 = vmatpush1.msra.mxu1 %v11685_v2  ;;  %v11714_v9 = vld [vmem:[#allocation65_spill] sm:$0xff]  ;;  %v11715_v2 = vld [vmem:[#allocation66_spill] sm:$0xff] }
 0x5e8   :  { %2456 = vmatprep.subr.mxu0 %v11686_v61  ;;  %2527 = vmatprep.subr.mxu1 %v11687_v62  ;;  %v11716_v61 = vld [vmem:[#allocation67_spill] sm:$0xff]  ;;  %v11717_v62 = vld [vmem:[#allocation68_spill] sm:$0xff] }
 0x5e9   :  { %2457 = vmatpush1.msra.mxu0 %v11688_v63  ;;  %2528 = vmatpush1.msra.mxu1 %v11689_v0  ;;  %v11718_v63 = vld [vmem:[#allocation69_spill] sm:$0xff]  ;;  %v11719_v0 = vld [vmem:[#allocation70_spill] sm:$0xff] }
 0x5ea   :  { %2458 = vmatprep.subr.mxu0 %v11690_v1  ;;  %2529 = vmatprep.subr.mxu1 %v11691_v15  ;;  %v11720_v1 = vld [vmem:[#allocation71_spill] sm:$0xff]  ;;  %v11721_v15 = vld [vmem:[#allocation72_spill] sm:$0xff] }
 0x5eb   :  { %2459 = vmatpush1.msra.mxu0 %v11692_v17  ;;  %2530 = vmatpush1.msra.mxu1 %v11693_v18  ;;  %v11722_v17 = vld [vmem:[#allocation73_spill] sm:$0xff]  ;;  %v11723_v18 = vld [vmem:[#allocation74_spill] sm:$0xff] }
 0x5ec   :  { %2460 = vmatprep.subr.mxu0 %v11694_v30  ;;  %2531 = vmatprep.subr.mxu1 %v11695_v10  ;;  %v11724_v30 = vld [vmem:[#allocation75_spill] sm:$0xff]  ;;  %v11725_v10 = vld [vmem:[#allocation76_spill] sm:$0xff] }
 0x5ed   :  { %2461 = vmatpush1.msra.mxu0 %v11696_v35  ;;  %2532 = vmatpush1.msra.mxu1 %v11697_v25  ;;  %v11726_v35 = vld [vmem:[#allocation77_spill] sm:$0xff]  ;;  %v11727_v25 = vld [vmem:[#allocation78_spill] sm:$0xff] }
 0x5ee   :  { %2462 = vmatprep.subr.mxu0 %v11698_v19  ;;  %2533 = vmatprep.subr.mxu1 %v11699_v4  ;;  %v11728_v19 = vld [vmem:[#allocation79_spill] sm:$0xff]  ;;  %v11729_v4 = vld [vmem:[#allocation80_spill] sm:$0xff] }
 0x5ef   :  { %2463 = vmatpush1.msra.mxu0 %v11700_v34  ;;  %2534 = vmatpush1.msra.mxu1 %v11701_v14  ;;  %v11730_v34 = vld [vmem:[#allocation81_spill] sm:$0xff]  ;;  %v11731_v14 = vld [vmem:[#allocation82_spill] sm:$0xff] }
 0x5f0   :  { %2464 = vmatprep.subr.mxu0 %v11702_v26  ;;  %2535 = vmatprep.subr.mxu1 %v11703_v16  ;;  %v11732_v26 = vld [vmem:[#allocation83_spill] sm:$0xff]  ;;  %v11733_v16 = vld [vmem:[#allocation84_spill] sm:$0xff] }
 0x5f1   :  { %2465 = vmatpush1.msra.mxu0 %v11704_v28  ;;  %2536 = vmatpush1.msra.mxu1 %v11705_v23  ;;  %v11734_v28 = vld [vmem:[#allocation85_spill] sm:$0xff]  ;;  %v11735_v23 = vld [vmem:[#allocation86_spill] sm:$0xff] }
 0x5f2   :  { %2466 = vmatprep.subr.mxu0 %v11706_v37  ;;  %2537 = vmatprep.subr.mxu1 %v11707_v7  ;;  %v11736_v37 = vld [vmem:[#allocation87_spill] sm:$0xff]  ;;  %v11737_v7 = vld [vmem:[#allocation88_spill] sm:$0xff] }
 0x5f3   :  { %2467 = vmatpush1.msra.mxu0 %v11708_v31  ;;  %2538 = vmatpush1.msra.mxu1 %v11709_v21  ;;  %v11738_v31 = vld [vmem:[#allocation89_spill] sm:$0xff]  ;;  %v11739_v21 = vld [vmem:[#allocation90_spill] sm:$0xff] }
 0x5f4   :  { %2468 = vmatprep.subr.mxu0 %v11710_v41  ;;  %2539 = vmatprep.subr.mxu1 %v11711_v3  ;;  %v11740_v41 = vld [vmem:[#allocation91_spill] sm:$0xff]  ;;  %v11741_v3 = vld [vmem:[#allocation92_spill] sm:$0xff] }
 0x5f5   :  { %2469 = vmatpush2.msra.mxu0 %v11712_v33  ;;  %2540 = vmatpush2.msra.mxu1 %v11713_v29  ;;  %v11742_v33 = vld [vmem:[#allocation93_spill] sm:$0xff]  ;;  %v11743_v29 = vld [vmem:[#allocation94_spill] sm:$0xff] }
 0x5f6   :  { %2470 = vmatprep.subr.mxu0 %v11714_v9  ;;  %2541 = vmatprep.subr.mxu1 %v11715_v2  ;;  %v11744_v9 = vld [vmem:[#allocation95_spill] sm:$0xff]  ;;  %v11745_v2 = vld [vmem:[#allocation96_spill] sm:$0xff] }
 0x5f7   :  { %2471 = vmatpush2.msra.mxu0 %v11716_v61  ;;  %2542 = vmatpush2.msra.mxu1 %v11717_v62  ;;  %v11746_v61 = vld [vmem:[#allocation97_spill] sm:$0xff]  ;;  %v11747_v62 = vld [vmem:[#allocation98_spill] sm:$0xff] }
 0x5f8   :  { %2472 = vmatprep.subr.mxu0 %v11718_v63  ;;  %2543 = vmatprep.subr.mxu1 %v11719_v0  ;;  %v11748_v63 = vld [vmem:[#allocation99_spill] sm:$0xff]  ;;  %v11749_v0 = vld [vmem:[#allocation100_spill] sm:$0xff] }
 0x5f9   :  { %2473 = vmatpush2.msra.mxu0 %v11720_v1  ;;  %2544 = vmatpush2.msra.mxu1 %v11721_v15  ;;  %v11750_v1 = vld [vmem:[#allocation101_spill] sm:$0xff]  ;;  %v11751_v15 = vld [vmem:[#allocation102_spill] sm:$0xff] }
 0x5fa   :  { %2474 = vmatprep.subr.mxu0 %v11722_v17  ;;  %2545 = vmatprep.subr.mxu1 %v11723_v18  ;;  %v11752_v17 = vld [vmem:[#allocation103_spill] sm:$0xff]  ;;  %v11753_v18 = vld [vmem:[#allocation104_spill] sm:$0xff] }
 0x5fb   :  { %2475 = vmatpush2.msra.mxu0 %v11724_v30  ;;  %2546 = vmatpush2.msra.mxu1 %v11725_v10  ;;  %v11754_v30 = vld [vmem:[#allocation105_spill] sm:$0xff]  ;;  %v11755_v10 = vld [vmem:[#allocation106_spill] sm:$0xff] }
 0x5fc   :  { %2476 = vmatprep.subr.mxu0 %v11726_v35  ;;  %2547 = vmatprep.subr.mxu1 %v11727_v25  ;;  %v11756_v35 = vld [vmem:[#allocation107_spill] sm:$0xff]  ;;  %v11757_v25 = vld [vmem:[#allocation108_spill] sm:$0xff] }
 0x5fd   :  { %2477 = vmatpush2.msra.mxu0 %v11728_v19  ;;  %2548 = vmatpush2.msra.mxu1 %v11729_v4  ;;  %v11758_v19 = vld [vmem:[#allocation109_spill] sm:$0xff]  ;;  %v11759_v4 = vld [vmem:[#allocation110_spill] sm:$0xff] }
 0x5fe   :  { %2478 = vmatprep.subr.mxu0 %v11730_v34  ;;  %2549 = vmatprep.subr.mxu1 %v11731_v14  ;;  %v11760_v34 = vld [vmem:[#allocation111_spill] sm:$0xff]  ;;  %v11761_v14 = vld [vmem:[#allocation112_spill] sm:$0xff] }
 0x5ff   :  { %2479 = vmatpush2.msra.mxu0 %v11732_v26  ;;  %2550 = vmatpush2.msra.mxu1 %v11733_v16  ;;  %v11762_v26 = vld [vmem:[#allocation113_spill] sm:$0xff]  ;;  %v11763_v16 = vld [vmem:[#allocation114_spill] sm:$0xff] }
 0x600   :  { %2480 = vmatprep.subr.mxu0 %v11734_v28  ;;  %2551 = vmatprep.subr.mxu1 %v11735_v23  ;;  %v11764_v28 = vld [vmem:[#allocation115_spill] sm:$0xff]  ;;  %v11765_v23 = vld [vmem:[#allocation116_spill] sm:$0xff] }
 0x601   :  { %2481 = vmatpush2.msra.mxu0 %v11736_v37  ;;  %2552 = vmatpush2.msra.mxu1 %v11737_v7  ;;  %v11766_v37 = vld [vmem:[#allocation117_spill] sm:$0xff]  ;;  %v11767_v7 = vld [vmem:[#allocation118_spill] sm:$0xff] }
 0x602   :  { %2482 = vmatprep.subr.mxu0 %v11738_v31  ;;  %2553 = vmatprep.subr.mxu1 %v11739_v21  ;;  %v11768_v31 = vld [vmem:[#allocation119_spill] sm:$0xff]  ;;  %v11769_v21 = vld [vmem:[#allocation120_spill] sm:$0xff] }
 0x603   :  { %2483 = vmatpush2.msra.mxu0 %v11740_v41  ;;  %2554 = vmatpush2.msra.mxu1 %v11741_v3  ;;  %v11770_v41 = vld [vmem:[#allocation121_spill] sm:$0xff]  ;;  %v11771_v3 = vld [vmem:[#allocation122_spill] sm:$0xff] }
 0x604   :  { %2484 = vmatprep.subr.mxu0 %v11742_v33  ;;  %2555 = vmatprep.subr.mxu1 %v11743_v29  ;;  %v11772_v33 = vld [vmem:[#allocation123_spill] sm:$0xff]  ;;  %v11773_v29 = vld [vmem:[#allocation124_spill] sm:$0xff] }
 0x605   :  { %2485 = vmatpush2.msra.mxu0 %v11744_v9  ;;  %2556 = vmatpush2.msra.mxu1 %v11745_v2  ;;  %v11774_v9 = vld [vmem:[#allocation125_spill] sm:$0xff]  ;;  %v9070_v2 = vld [vmem:[%s10499_s2 + $0x1f8] sm:$0xff] }
 0x606   :  { %2486 = vmatprep.subr.mxu0 %v11746_v61  ;;  %2557 = vmatprep.subr.mxu1 %v11747_v62  ;;  %v11775_v62 = vld [vmem:[#allocation7_spill] sm:$0xff] }
 0x607   :  { %2487 = vmatpush2.msra.mxu0 %v11748_v63  ;;  %2558 = vmatpush2.msra.mxu1 %v11749_v0 }
 0x608   :  { %2488 = vmatprep.subr.mxu0 %v11750_v1  ;;  %2559 = vmatprep.subr.mxu1 %v11751_v15  ;;  %v11776_v15 = vld [vmem:[#allocation8_spill] sm:$0xff] }
 0x609   :  { %2489 = vmatpush2.msra.mxu0 %v11752_v17  ;;  %2560 = vmatpush2.msra.mxu1 %v11753_v18 }
 0x60a   :  { %2490 = vmatprep.subr.mxu0 %v11754_v30  ;;  %2561 = vmatprep.subr.mxu1 %v11755_v10 }
 0x60b   :  { %2491 = vmatpush2.msra.mxu0 %v11756_v35  ;;  %2562 = vmatpush2.msra.mxu1 %v11757_v25  ;;  %v11777_v35 = vld [vmem:[#allocation9_spill] sm:$0xff] }
 0x60c   :  { %2492 = vmatprep.subr.mxu0 %v11758_v19  ;;  %2563 = vmatprep.subr.mxu1 %v11759_v4 }
 0x60d   :  { %2493 = vmatpush2.msra.mxu0 %v11760_v34  ;;  %2564 = vmatpush2.msra.mxu1 %v11761_v14  ;;  %v11778_v34 = vld [vmem:[#allocation10_spill] sm:$0xff] }
 0x60e   :  { %2494 = vmatprep.subr.mxu0 %v11762_v26  ;;  %2565 = vmatprep.subr.mxu1 %v11763_v16 }
 0x60f   :  { %2495 = vmatpush2.msra.mxu0 %v11764_v28  ;;  %2566 = vmatpush2.msra.mxu1 %v11765_v23 }
 0x610   :  { %2496 = vmatprep.subr.mxu0 %v11766_v37  ;;  %2567 = vmatprep.subr.mxu1 %v11767_v7 }
 0x611   :  { %2497 = vmatpush2.msra.mxu0 %v11768_v31  ;;  %2568 = vmatpush2.msra.mxu1 %v11769_v21  ;;  %v11779_v31 = vld [vmem:[#allocation135_spill] sm:$0xff] }
 0x612   :  { %2498 = vmatprep.subr.mxu0 %v11770_v41  ;;  %2569 = vmatprep.subr.mxu1 %v11771_v3 }
 0x613   :  { %2499 = vmatpush2.msra.mxu0 %v11772_v33  ;;  %2570 = vmatpush2.msra.mxu1 %v11773_v29 }
 0x614   :  { %2604 = vmatprep.subr.mxu0 %v11774_v9  ;;  %2675 = vmatprep.subr.mxu1 %v9070_v2  ;;  %v11780_v9 = vld [vmem:[#allocation136_spill] sm:$0xff] }
 0x672   :  { %v2164_v61 = vpop.f32.mrf.mxu0  ;;  %v2235_v18 = vpop.f32.mrf.mxu1 }
 0x673   :  { %v2165_v63 = vadd.f32 %v2164_v61, %v11775_v62  ;;  %v2236_v14 = vadd.f32 %v2235_v18, %v11778_v34 }
 0x674   :  { %v2166_v0 = vpop.f32.mrf.mxu0  ;;  %v2237_v10 = vpop.f32.mrf.mxu1 }
 0x675   :  { %v3479_v1 = vmul.f32 -1.442695, %v2165_v63  ;;  %v2167_v17 = vadd.f32 %v2166_v0, %v11776_v15  ;;  %v2238_v25 = vadd.f32 %v2237_v10, %v11777_v35 }
 0x677   :  { %3714 = vpow2.f32 %v3479_v1  ;;  %v3480_v30 = vmul.f32 -1.442695, %v2167_v17  ;;  %v3481_v19 = vmul.f32 -1.442695, %v2238_v25  ;;  %v11781_v25 = vld [vmem:[#allocation148_spill] sm:$0xff] }
 0x679   :  { %3716 = vpow2.f32 %v3480_v30 }
 0x67a   :  { %3718 = vpow2.f32 %v3481_v19 }
 0x684   :  { %v3715_v4 = vpop.eup %3714 }
 0x685   :  { %v2243_v26 = vadd.f32 1.0, %v3715_v4  ;;  %v11782_v4 = vld [vmem:[#allocation147_spill] sm:$0xff] }
 0x686   :  { %v3717_v16 = vpop.eup %3716 }
 0x687   :  { %3720 = vrcp.f32 %v2243_v26  ;;  %v2249_v28 = vadd.f32 1.0, %v3717_v16  ;;  %v3719_v23 = vpop.eup %3718 }
 0x688   :  { %3722 = vtanh.f32 %v2236_v14  ;;  %v2256_v1 = vadd.f32 1.0, %v3719_v23 }
 0x689   :  { %3724 = vrcp.f32 %v2249_v28 }
 0x693   :  { %v2332_v37 = vpop.f32.mrf.mxu0  ;;  %v2403_v17 = vpop.f32.mrf.mxu1 }
 0x694   :  { %v3721_v7 = vpop.eup %3720  ;;  %v2408_v21 = vadd.f32 %v2332_v37, %v11779_v31  ;;  %v2410_v14 = vadd.f32 %v2403_v17, %v11782_v4  ;;  %v9350_v4 = vld [vmem:[%s10501_s4 + $0x1d8] sm:$0xff] }
 0x695   :  { %v3723_v41 = vpop.eup %3722  ;;  %v2334_v3 = vpop.f32.mrf.mxu0 }
 0x696   :  { %v3725_v33 = vpop.eup %3724  ;;  %v3482_v29 = vmul.f32 -1.442695, %v2408_v21  ;;  %v2409_v61 = vadd.f32 %v2334_v3, %v11780_v9  ;;  %v2260_v63 = vmul.f32 %v3723_v41, %v3721_v7  ;;  %v2405_v10 = vpop.f32.mrf.mxu1 }
 0x697   :  { %v2259_v0 = vmul.f32 %v3725_v33, %v8701_v12  ;;  %v2411_v19 = vadd.f32 %v2405_v10, %v11781_v25  ;;  %v9332_v10 = vld [vmem:[%s10501_s4 + $0x1e0] sm:$0xff]  ;;  %v9338_v25 = vld [vmem:[%s10501_s4 + $0x1f0] sm:$0xff] }
 0x698   :  { %3726 = vpow2.f32 %v3482_v29  ;;  %v3483_v18 = vmul.f32 -1.442695, %v2409_v61 }
 0x699   :  { %v9080_v30 = vadd.f32 %v2260_v63, %v2259_v0  ;;  %v3484_v26 = vmul.f32 -1.442695, %v2411_v19  ;;  %v9344_v19 = vld [vmem:[%s10501_s4 + $0x1c8] sm:$0xff] }
 0x69a   :  { %3728 = vpow2.f32 %v3483_v18  ;;  %v9100_v18 = vld [vmem:[%s10499_s2 + $0x1f0] sm:$0xff] }
 0x69b   :  { %3730 = vrcp.f32 %v2256_v1 }
 0x69c   :  { %3732 = vtanh.f32 %v9080_v30 }
 0x69d   :  { %3734 = vtanh.f32 %v2410_v14  ;;  %v9356_v14 = vld [vmem:[%s10501_s4 + $0x1c0] sm:$0xff] }
 0x69e   :  { %3736 = vpow2.f32 %v3484_v26  ;;  %v9362_v26 = vld [vmem:[%s10501_s4 + $0x1d0] sm:$0xff] }
 0x6a5   :  { %v3727_v16 = vpop.eup %3726 }
 0x6a6   :  { %v2415_v28 = vadd.f32 1.0, %v3727_v16  ;;  %v9368_v16 = vld [vmem:[%s10501_s4 + $0x1a8] sm:$0xff] }
 0x6a7   :  { %v3729_v12 = vpop.eup %3728 }
 0x6a8   :  { %v3731_v23 = vpop.eup %3730  ;;  %3738 = vrcp.f32 %v2415_v28  ;;  %v2421_v37 = vadd.f32 1.0, %v3729_v12  ;;  %v9374_v28 = vld [vmem:[%s10501_s4 + $0x1b8] sm:$0xff]  ;;  %v9380_v12 = vld [vmem:[%s10501_s4 + $0x1a0] sm:$0xff] }
 0x6a9   :  { %v3733_v7 = vpop.eup %3732  ;;  %11783 = vst [vmem:[#allocation126_spill] sm:$0xff] %v9380_v12 }
 0x6aa   :  { %3740 = vrcp.f32 %v2421_v37  ;;  %v2263_v31 = vmul.f32 %v3733_v7, %v3731_v23  ;;  %v3735_v21 = vpop.eup %3734  ;;  %v9386_v23 = vld [vmem:[%s10501_s4 + $0x1b0] sm:$0xff]  ;;  %v9392_v37 = vld [vmem:[%s10501_s4 + $0x188] sm:$0xff]  ;;  %v9398_v7 = vld [vmem:[%s10501_s4 + $0x198] sm:$0xff] }
 0x6ab   :  { %v3737_v41 = vpop.eup %3736  ;;  %11784 = vst [vmem:[#allocation127_spill] sm:$0xff] %v9386_v23  ;;  %11785 = vst [vmem:[#allocation128_spill] sm:$0xff] %v9392_v37 }
 0x6ac   :  { %2500 = vmatprep.mubr.f32.mxu0 %v2263_v31  ;;  %3296 = vst [vmem:[%s10504_s9 + $0x20] sm:$0xff] %v2263_v31  ;;  %2571 = vmatprep.mubr.f32.mxu1 %v2263_v31  ;;  %v2428_v9 = vadd.f32 1.0, %v3737_v41  ;;  %11786 = vst [vmem:[#allocation153_spill] sm:$0xff] %v9398_v7  ;;  %v9404_v31 = vld [vmem:[%s10501_s4 + $0x180] sm:$0xff]  ;;  %v9416_v41 = vld [vmem:[%s10501_s4 + $0x168] sm:$0xff] }
 0x6ad   :  { %11787 = vst [vmem:[#allocation131_spill] sm:$0xff] %v9404_v31  ;;  %11789 = vst [vmem:[#allocation144_spill] sm:$0xff] %v9416_v41 }
 0x6ae   :  { %3742 = vrcp.f32 %v2428_v9  ;;  %v9440_v9 = vld [vmem:[%s10501_s4 + $0x148] sm:$0xff] }
 0x6af   :  { %11793 = vst [vmem:[#allocation146_spill] sm:$0xff] %v9440_v9 }
 0x6b5   :  { %v3739_v3 = vpop.eup %3738 }
 0x6b6   :  { %v2432_v33 = vmul.f32 %v3739_v3, %v3735_v21  ;;  %v9410_v21 = vld [vmem:[%s10501_s4 + $0x190] sm:$0xff]  ;;  %v9422_v3 = vld [vmem:[%s10501_s4 + $0x178] sm:$0xff] }
 0x6b7   :  { %v3741_v29 = vpop.eup %3740  ;;  %11788 = vst [vmem:[#allocation132_spill] sm:$0xff] %v9410_v21  ;;  %11790 = vst [vmem:[#allocation143_spill] sm:$0xff] %v9422_v3 }
 0x6b8   :  { %v2431_v61 = vmul.f32 %v3741_v29, %v8710_v36  ;;  %v9107_v36 = vld [vmem:[%s10499_s2 + $0x1d8] sm:$0xff]  ;;  %v9434_v29 = vld [vmem:[%s10501_s4 + $0x170] sm:$0xff] }
 0x6b9   :  { %11792 = vst [vmem:[#allocation134_spill] sm:$0xff] %v9434_v29 }
 0x6ba   :  { %v9089_v63 = vadd.f32 %v2432_v33, %v2431_v61  ;;  %v9428_v33 = vld [vmem:[%s10501_s4 + $0x160] sm:$0xff]  ;;  %v9446_v61 = vld [vmem:[%s10501_s4 + $0x158] sm:$0xff] }
 0x6bb   :  { %v3743_v0 = vpop.eup %3742  ;;  %11791 = vst [vmem:[#allocation133_spill] sm:$0xff] %v9428_v33  ;;  %11794 = vst [vmem:[#allocation145_spill] sm:$0xff] %v9446_v61 }
 0x6bc   :  { %3744 = vtanh.f32 %v9089_v63 }
 0x6c9   :  { %v3745_v1 = vpop.eup %3744 }
 0x6ca   :  { %v9092_v17 = vmul.f32 %v3745_v1, %v3743_v0  ;;  %v9452_v0 = vld [vmem:[%s10501_s4 + $0x140] sm:$0xff]  ;;  %v9458_v1 = vld [vmem:[%s10501_s4 + $0x150] sm:$0xff] }
 0x6cb   :  { %11795 = vst [vmem:[#allocation129_spill] sm:$0xff] %v9452_v0  ;;  %11796 = vst [vmem:[#allocation130_spill] sm:$0xff] %v9458_v1 }
 0x6cc   :  { %2501 = vmatmul.mubr.f32.vlgmr.msra.gmra.mxu0 %v9092_v17  ;;  %2572 = vmatmul.mubr.f32.vlgmr.msra.gmra.mxu1 %v9092_v17 }
 0x6cd   :  { %2605 = vmatpush1.msra.mxu0 %v8720_v6  ;;  %2676 = vmatpush1.msra.mxu1 %v9100_v18  ;;  %v9114_v6 = vld [vmem:[%s10499_s2 + $0x1d0] sm:$0xff] }
 0x6ce   :  { %2606 = vmatprep.subr.mxu0 %v8727_v5  ;;  %2677 = vmatprep.subr.mxu1 %v9107_v36  ;;  %v9121_v5 = vld [vmem:[%s10499_s2 + $0x1b8] sm:$0xff] }
 0x6cf   :  { %2607 = vmatpush1.msra.mxu0 %v8734_v11  ;;  %2678 = vmatpush1.msra.mxu1 %v9114_v6  ;;  %v9128_v11 = vld [vmem:[%s10499_s2 + $0x1b0] sm:$0xff] }
 0x6d0   :  { %2608 = vmatprep.subr.mxu0 %v8741_v13  ;;  %2679 = vmatprep.subr.mxu1 %v9121_v5  ;;  %v9135_v13 = vld [vmem:[%s10499_s2 + $0x198] sm:$0xff] }
 0x6d1   :  { %2609 = vmatpush1.msra.mxu0 %v8748_v22  ;;  %2680 = vmatpush1.msra.mxu1 %v9128_v11  ;;  %v9142_v22 = vld [vmem:[%s10499_s2 + $0x190] sm:$0xff] }
 0x6d2   :  { %2610 = vmatprep.subr.mxu0 %v8755_v27  ;;  %2681 = vmatprep.subr.mxu1 %v9135_v13  ;;  %v9149_v27 = vld [vmem:[%s10499_s2 + $0x178] sm:$0xff] }
 0x6d3   :  { %2611 = vmatpush1.msra.mxu0 %v8762_v40  ;;  %2682 = vmatpush1.msra.mxu1 %v9142_v22  ;;  %v9156_v40 = vld [vmem:[%s10499_s2 + $0x170] sm:$0xff] }
 0x6d4   :  { %2612 = vmatprep.subr.mxu0 %v8769_v42  ;;  %2683 = vmatprep.subr.mxu1 %v9149_v27  ;;  %v9163_v42 = vld [vmem:[%s10499_s2 + $0x158] sm:$0xff] }
 0x6d5   :  { %2613 = vmatpush1.msra.mxu0 %v8776_v8  ;;  %2684 = vmatpush1.msra.mxu1 %v9156_v40  ;;  %v9170_v8 = vld [vmem:[%s10499_s2 + $0x150] sm:$0xff] }
 0x6d6   :  { %2614 = vmatprep.subr.mxu0 %v8783_v32  ;;  %2685 = vmatprep.subr.mxu1 %v9163_v42  ;;  %v9177_v32 = vld [vmem:[%s10499_s2 + $0x138] sm:$0xff] }
 0x6d7   :  { %2615 = vmatpush1.msra.mxu0 %v8790_v20  ;;  %2686 = vmatpush1.msra.mxu1 %v9170_v8  ;;  %v9184_v20 = vld [vmem:[%s10499_s2 + $0x130] sm:$0xff] }
 0x6d8   :  { %2616 = vmatprep.subr.mxu0 %v8797_v38  ;;  %2687 = vmatprep.subr.mxu1 %v9177_v32  ;;  %v9191_v38 = vld [vmem:[%s10499_s2 + $0x118] sm:$0xff] }
 0x6d9   :  { %2617 = vmatpush1.msra.mxu0 %v8804_v24  ;;  %2688 = vmatpush1.msra.mxu1 %v9184_v20  ;;  %v9198_v24 = vld [vmem:[%s10499_s2 + $0x110] sm:$0xff] }
 0x6da   :  { %2618 = vmatprep.subr.mxu0 %v8811_v43  ;;  %2689 = vmatprep.subr.mxu1 %v9191_v38  ;;  %v9205_v43 = vld [vmem:[%s10499_s2 + $0xf8] sm:$0xff] }
 0x6db   :  { %2619 = vmatpush1.msra.mxu0 %v8818_v44  ;;  %2690 = vmatpush1.msra.mxu1 %v9198_v24  ;;  %v9212_v44 = vld [vmem:[%s10499_s2 + $0xf0] sm:$0xff] }
 0x6dc   :  { %2620 = vmatprep.subr.mxu0 %v8825_v45  ;;  %2691 = vmatprep.subr.mxu1 %v9205_v43  ;;  %v9219_v45 = vld [vmem:[%s10499_s2 + $0xd8] sm:$0xff] }
 0x6dd   :  { %2621 = vmatpush1.msra.mxu0 %v8832_v46  ;;  %2692 = vmatpush1.msra.mxu1 %v9212_v44  ;;  %v9226_v46 = vld [vmem:[%s10499_s2 + $0xd0] sm:$0xff] }
 0x6de   :  { %2622 = vmatprep.subr.mxu0 %v8839_v47  ;;  %2693 = vmatprep.subr.mxu1 %v9219_v45  ;;  %v9233_v47 = vld [vmem:[%s10499_s2 + $0xb8] sm:$0xff] }
 0x6df   :  { %2623 = vmatpush1.msra.mxu0 %v8846_v48  ;;  %2694 = vmatpush1.msra.mxu1 %v9226_v46  ;;  %v9240_v48 = vld [vmem:[%s10499_s2 + $0xb0] sm:$0xff] }
 0x6e0   :  { %2624 = vmatprep.subr.mxu0 %v8853_v49  ;;  %2695 = vmatprep.subr.mxu1 %v9233_v47  ;;  %v9247_v49 = vld [vmem:[%s10499_s2 + $0x98] sm:$0xff] }
 0x6e1   :  { %2625 = vmatpush1.msra.mxu0 %v8860_v50  ;;  %2696 = vmatpush1.msra.mxu1 %v9240_v48  ;;  %v9254_v50 = vld [vmem:[%s10499_s2 + $0x90] sm:$0xff] }
 0x6e2   :  { %2626 = vmatprep.subr.mxu0 %v8867_v51  ;;  %2697 = vmatprep.subr.mxu1 %v9247_v49  ;;  %v9261_v51 = vld [vmem:[%s10499_s2 + $0x78] sm:$0xff] }
 0x6e3   :  { %2627 = vmatpush1.msra.mxu0 %v8874_v52  ;;  %2698 = vmatpush1.msra.mxu1 %v9254_v50  ;;  %v9268_v52 = vld [vmem:[%s10499_s2 + $0x70] sm:$0xff] }
 0x6e4   :  { %2628 = vmatprep.subr.mxu0 %v8881_v53  ;;  %2699 = vmatprep.subr.mxu1 %v9261_v51  ;;  %v9275_v53 = vld [vmem:[%s10499_s2 + $0x58] sm:$0xff] }
 0x6e5   :  { %2629 = vmatpush1.msra.mxu0 %v8888_v54  ;;  %2700 = vmatpush1.msra.mxu1 %v9268_v52  ;;  %v9282_v54 = vld [vmem:[%s10499_s2 + $0x50] sm:$0xff] }
 0x6e6   :  { %2630 = vmatprep.subr.mxu0 %v8895_v55  ;;  %2701 = vmatprep.subr.mxu1 %v9275_v53  ;;  %v9289_v55 = vld [vmem:[%s10499_s2 + $0x38] sm:$0xff] }
 0x6e7   :  { %2631 = vmatpush1.msra.mxu0 %v8902_v56  ;;  %2702 = vmatpush1.msra.mxu1 %v9282_v54  ;;  %v9296_v56 = vld [vmem:[%s10499_s2 + $0x30] sm:$0xff] }
 0x6e8   :  { %2632 = vmatprep.subr.mxu0 %v8909_v57  ;;  %2703 = vmatprep.subr.mxu1 %v9289_v55  ;;  %v9303_v57 = vld [vmem:[%s10499_s2 + $0x18] sm:$0xff] }
 0x6e9   :  { %2633 = vmatpush1.msra.mxu0 %v8916_v58  ;;  %2704 = vmatpush1.msra.mxu1 %v9296_v56  ;;  %v9311_v58 = vld [vmem:[%s10499_s2 + $0x10] sm:$0xff] }
 0x6ea   :  { %2634 = vmatprep.subr.mxu0 %v8923_v59  ;;  %2705 = vmatprep.subr.mxu1 %v9303_v57  ;;  %v9320_v59 = vld [vmem:[%s10501_s4 + $0x1e8] sm:$0xff] }
 0x6eb   :  { %2635 = vmatpush1.msra.mxu0 %v8930_v60  ;;  %2668 = vmatprep.mubr.f32.mxu0 %v11152_v39  ;;  %v9326_v60 = vld [vmem:[%s10501_s4 + $0x1f8] sm:$0xff] }
 0x6ec   :  { %2706 = vmatpush1.msra.mxu1 %v9311_v58  ;;  %2739 = vmatprep.mubr.f32.mxu1 %v11152_v39 }
 0x6ed   :  { %2669 = vmatmul.mubr.f32.vlgmr.msra.gmra.mxu0 %v9092_v17  ;;  %2740 = vmatmul.mubr.f32.vlgmr.msra.gmra.mxu1 %v9092_v17  ;;  %v9464_v17 = vld [vmem:[%s10501_s4 + $0x128] sm:$0xff] }
 0x6ee   :  { %2774 = vmatprep.subr.mxu0 %v9320_v59  ;;  %2845 = vmatprep.subr.mxu1 %v9326_v60  ;;  %11797 = vst [vmem:[#allocation142_spill] sm:$0xff] %v9464_v17 }
 0x6ef   :  { %2775 = vmatpush1.msra.mxu0 %v9332_v10  ;;  %2846 = vmatpush1.msra.mxu1 %v9338_v25 }
 0x6f0   :  { %2776 = vmatprep.subr.mxu0 %v9344_v19  ;;  %2847 = vmatprep.subr.mxu1 %v9350_v4 }
 0x6f1   :  { %2777 = vmatpush1.msra.mxu0 %v9356_v14  ;;  %2848 = vmatpush1.msra.mxu1 %v9362_v26 }
 0x6f2   :  { %2778 = vmatprep.subr.mxu0 %v9368_v16  ;;  %2849 = vmatprep.subr.mxu1 %v9374_v28 }
 0x6f3   :  { %2779 = vmatpush1.msra.mxu0 %v9380_v12  ;;  %2850 = vmatpush1.msra.mxu1 %v9386_v23 }
 0x6f4   :  { %2780 = vmatprep.subr.mxu0 %v9392_v37  ;;  %2851 = vmatprep.subr.mxu1 %v9398_v7 }
 0x6f5   :  { %2781 = vmatpush1.msra.mxu0 %v9404_v31  ;;  %2852 = vmatpush1.msra.mxu1 %v9410_v21 }
 0x6f6   :  { %2782 = vmatprep.subr.mxu0 %v9416_v41  ;;  %2853 = vmatprep.subr.mxu1 %v9422_v3 }
 0x6f7   :  { %2783 = vmatpush1.msra.mxu0 %v9428_v33  ;;  %2854 = vmatpush1.msra.mxu1 %v9434_v29 }
 0x6f8   :  { %2784 = vmatprep.subr.mxu0 %v9440_v9  ;;  %2855 = vmatprep.subr.mxu1 %v9446_v61  ;;  %v9470_v61 = vld [vmem:[%s10501_s4 + $0x138] sm:$0xff] }
 0x6f9   :  { %2785 = vmatpush1.msra.mxu0 %v9452_v0  ;;  %2856 = vmatpush1.msra.mxu1 %v9458_v1  ;;  %11798 = vst [vmem:[#allocation141_spill] sm:$0xff] %v9470_v61  ;;  %v9476_v0 = vld [vmem:[%s10501_s4 + $0x120] sm:$0xff]  ;;  %v9482_v1 = vld [vmem:[%s10501_s4 + $0x130] sm:$0xff] }
 0x6fa   :  { %2786 = vmatprep.subr.mxu0 %v9464_v17  ;;  %2857 = vmatprep.subr.mxu1 %v9470_v61  ;;  %11799 = vst [vmem:[#allocation11_spill] sm:$0xff] %v9476_v0  ;;  %11800 = vst [vmem:[#allocation12_spill] sm:$0xff] %v9482_v1  ;;  %v9488_v17 = vld [vmem:[%s10501_s4 + $0x108] sm:$0xff]  ;;  %v9494_v61 = vld [vmem:[%s10501_s4 + $0x118] sm:$0xff] }
 0x6fb   :  { %2787 = vmatpush1.msra.mxu0 %v9476_v0  ;;  %2858 = vmatpush1.msra.mxu1 %v9482_v1  ;;  %11801 = vst [vmem:[#allocation13_spill] sm:$0xff] %v9488_v17  ;;  %11802 = vst [vmem:[#allocation14_spill] sm:$0xff] %v9494_v61  ;;  %v9500_v0 = vld [vmem:[%s10501_s4 + $0x100] sm:$0xff]  ;;  %v9506_v1 = vld [vmem:[%s10501_s4 + $0x110] sm:$0xff] }
 0x6fc   :  { %2788 = vmatprep.subr.mxu0 %v9488_v17  ;;  %2859 = vmatprep.subr.mxu1 %v9494_v61  ;;  %11803 = vst [vmem:[#allocation15_spill] sm:$0xff] %v9500_v0  ;;  %11804 = vst [vmem:[#allocation16_spill] sm:$0xff] %v9506_v1  ;;  %v9512_v17 = vld [vmem:[%s10501_s4 + $0xe8] sm:$0xff]  ;;  %v9518_v61 = vld [vmem:[%s10501_s4 + $0xf8] sm:$0xff] }
 0x6fd   :  { %2789 = vmatpush1.msra.mxu0 %v9500_v0  ;;  %2860 = vmatpush1.msra.mxu1 %v9506_v1  ;;  %11805 = vst [vmem:[#allocation17_spill] sm:$0xff] %v9512_v17  ;;  %11806 = vst [vmem:[#allocation18_spill] sm:$0xff] %v9518_v61  ;;  %v9524_v0 = vld [vmem:[%s10501_s4 + $0xe0] sm:$0xff]  ;;  %v9530_v1 = vld [vmem:[%s10501_s4 + $0xf0] sm:$0xff] }
 0x6fe   :  { %2790 = vmatprep.subr.mxu0 %v9512_v17  ;;  %2861 = vmatprep.subr.mxu1 %v9518_v61  ;;  %11807 = vst [vmem:[#allocation19_spill] sm:$0xff] %v9524_v0  ;;  %11808 = vst [vmem:[#allocation20_spill] sm:$0xff] %v9530_v1  ;;  %v9536_v17 = vld [vmem:[%s10501_s4 + $0xc8] sm:$0xff]  ;;  %v9542_v61 = vld [vmem:[%s10501_s4 + $0xd8] sm:$0xff] }
 0x6ff   :  { %2791 = vmatpush1.msra.mxu0 %v9524_v0  ;;  %2862 = vmatpush1.msra.mxu1 %v9530_v1  ;;  %11809 = vst [vmem:[#allocation21_spill] sm:$0xff] %v9536_v17  ;;  %11810 = vst [vmem:[#allocation22_spill] sm:$0xff] %v9542_v61  ;;  %v9548_v0 = vld [vmem:[%s10501_s4 + $0xc0] sm:$0xff]  ;;  %v9554_v1 = vld [vmem:[%s10501_s4 + $0xd0] sm:$0xff] }
 0x700   :  { %2792 = vmatprep.subr.mxu0 %v9536_v17  ;;  %2863 = vmatprep.subr.mxu1 %v9542_v61  ;;  %11811 = vst [vmem:[#allocation23_spill] sm:$0xff] %v9548_v0  ;;  %11812 = vst [vmem:[#allocation24_spill] sm:$0xff] %v9554_v1  ;;  %v9560_v17 = vld [vmem:[%s10501_s4 + $0xa8] sm:$0xff]  ;;  %v9566_v61 = vld [vmem:[%s10501_s4 + $0xb8] sm:$0xff] }
 0x701   :  { %2793 = vmatpush1.msra.mxu0 %v9548_v0  ;;  %2864 = vmatpush1.msra.mxu1 %v9554_v1  ;;  %11813 = vst [vmem:[#allocation25_spill] sm:$0xff] %v9560_v17  ;;  %11814 = vst [vmem:[#allocation26_spill] sm:$0xff] %v9566_v61  ;;  %v9572_v0 = vld [vmem:[%s10501_s4 + $0xa0] sm:$0xff]  ;;  %v9578_v1 = vld [vmem:[%s10501_s4 + $0xb0] sm:$0xff] }
 0x702   :  { %2794 = vmatprep.subr.mxu0 %v9560_v17  ;;  %2865 = vmatprep.subr.mxu1 %v9566_v61  ;;  %11815 = vst [vmem:[#allocation27_spill] sm:$0xff] %v9572_v0  ;;  %11816 = vst [vmem:[#allocation28_spill] sm:$0xff] %v9578_v1  ;;  %v9584_v17 = vld [vmem:[%s10501_s4 + $0x88] sm:$0xff]  ;;  %v9590_v61 = vld [vmem:[%s10501_s4 + $0x98] sm:$0xff] }
 0x703   :  { %2795 = vmatpush1.msra.mxu0 %v9572_v0  ;;  %2866 = vmatpush1.msra.mxu1 %v9578_v1  ;;  %11817 = vst [vmem:[#allocation29_spill] sm:$0xff] %v9584_v17  ;;  %11818 = vst [vmem:[#allocation30_spill] sm:$0xff] %v9590_v61  ;;  %v9596_v0 = vld [vmem:[%s10501_s4 + $0x80] sm:$0xff]  ;;  %v9602_v1 = vld [vmem:[%s10501_s4 + $0x90] sm:$0xff] }
 0x704   :  { %2796 = vmatprep.subr.mxu0 %v9584_v17  ;;  %2867 = vmatprep.subr.mxu1 %v9590_v61  ;;  %11819 = vst [vmem:[#allocation31_spill] sm:$0xff] %v9596_v0  ;;  %11820 = vst [vmem:[#allocation32_spill] sm:$0xff] %v9602_v1  ;;  %v9608_v17 = vld [vmem:[%s10501_s4 + $0x68] sm:$0xff]  ;;  %v9614_v61 = vld [vmem:[%s10501_s4 + $0x78] sm:$0xff] }
 0x705   :  { %2797 = vmatpush1.msra.mxu0 %v9596_v0  ;;  %2868 = vmatpush1.msra.mxu1 %v9602_v1  ;;  %11821 = vst [vmem:[#allocation33_spill] sm:$0xff] %v9608_v17  ;;  %11822 = vst [vmem:[#allocation34_spill] sm:$0xff] %v9614_v61  ;;  %v9620_v0 = vld [vmem:[%s10501_s4 + $0x60] sm:$0xff]  ;;  %v9626_v1 = vld [vmem:[%s10501_s4 + $0x70] sm:$0xff] }
 0x706   :  { %2798 = vmatprep.subr.mxu0 %v9608_v17  ;;  %2869 = vmatprep.subr.mxu1 %v9614_v61  ;;  %11823 = vst [vmem:[#allocation35_spill] sm:$0xff] %v9620_v0  ;;  %11824 = vst [vmem:[#allocation36_spill] sm:$0xff] %v9626_v1  ;;  %v9632_v17 = vld [vmem:[%s10501_s4 + $0x48] sm:$0xff]  ;;  %v9638_v61 = vld [vmem:[%s10501_s4 + $0x58] sm:$0xff] }
 0x707   :  { %2799 = vmatpush1.msra.mxu0 %v9620_v0  ;;  %2870 = vmatpush1.msra.mxu1 %v9626_v1  ;;  %11825 = vst [vmem:[#allocation37_spill] sm:$0xff] %v9632_v17  ;;  %11826 = vst [vmem:[#allocation38_spill] sm:$0xff] %v9638_v61  ;;  %v9644_v0 = vld [vmem:[%s10501_s4 + $0x40] sm:$0xff]  ;;  %v9650_v1 = vld [vmem:[%s10501_s4 + $0x50] sm:$0xff] }
 0x708   :  { %2800 = vmatprep.subr.mxu0 %v9632_v17  ;;  %2871 = vmatprep.subr.mxu1 %v9638_v61  ;;  %11827 = vst [vmem:[#allocation39_spill] sm:$0xff] %v9644_v0  ;;  %11828 = vst [vmem:[#allocation40_spill] sm:$0xff] %v9650_v1  ;;  %v9656_v17 = vld [vmem:[%s10501_s4 + $0x28] sm:$0xff]  ;;  %v9662_v61 = vld [vmem:[%s10501_s4 + $0x38] sm:$0xff] }
 0x709   :  { %2801 = vmatpush1.msra.mxu0 %v9644_v0  ;;  %2872 = vmatpush1.msra.mxu1 %v9650_v1  ;;  %11829 = vst [vmem:[#allocation41_spill] sm:$0xff] %v9656_v17  ;;  %11830 = vst [vmem:[#allocation42_spill] sm:$0xff] %v9662_v61  ;;  %v9668_v0 = vld [vmem:[%s10501_s4 + $0x20] sm:$0xff]  ;;  %v9674_v1 = vld [vmem:[%s10501_s4 + $0x30] sm:$0xff] }
 0x70a   :  { %2802 = vmatprep.subr.mxu0 %v9656_v17  ;;  %2873 = vmatprep.subr.mxu1 %v9662_v61  ;;  %11831 = vst [vmem:[#allocation43_spill] sm:$0xff] %v9668_v0  ;;  %11832 = vst [vmem:[#allocation44_spill] sm:$0xff] %v9674_v1  ;;  %v9680_v17 = vld [vmem:[%s10501_s4 + $0x8] sm:$0xff]  ;;  %v9686_v61 = vld [vmem:[%s10501_s4 + $0x18] sm:$0xff] }
 0x70b   :  { %2803 = vmatpush1.msra.mxu0 %v9668_v0  ;;  %2874 = vmatpush1.msra.mxu1 %v9674_v1  ;;  %11833 = vst [vmem:[#allocation45_spill] sm:$0xff] %v9680_v17  ;;  %11834 = vst [vmem:[#allocation46_spill] sm:$0xff] %v9686_v61  ;;  %v9692_v0 = vld [vmem:[%s10501_s4] sm:$0xff]  ;;  %v9698_v1 = vld [vmem:[%s10501_s4 + $0x10] sm:$0xff] }
 0x70c   :  { %2804 = vmatprep.subr.mxu0 %v9680_v17  ;;  %2875 = vmatprep.subr.mxu1 %v9686_v61  ;;  %11835 = vst [vmem:[#allocation47_spill] sm:$0xff] %v9692_v0  ;;  %11836 = vst [vmem:[#allocation48_spill] sm:$0xff] %v9698_v1  ;;  %v9704_v17 = vld [vmem:[%s10501_s4 + $0x3e8] sm:$0xff]  ;;  %v9710_v61 = vld [vmem:[%s10501_s4 + $0x3f8] sm:$0xff] }
 0x70d   :  { %2805 = vmatpush1.msra.mxu0 %v9692_v0  ;;  %2876 = vmatpush1.msra.mxu1 %v9698_v1  ;;  %11837 = vst [vmem:[#allocation49_spill] sm:$0xff] %v9704_v17  ;;  %11838 = vst [vmem:[#allocation50_spill] sm:$0xff] %v9710_v61  ;;  %v9716_v0 = vld [vmem:[%s10501_s4 + $0x3e0] sm:$0xff]  ;;  %v9722_v1 = vld [vmem:[%s10501_s4 + $0x3f0] sm:$0xff] }
 0x70e   :  { %2806 = vmatprep.subr.mxu0 %v9704_v17  ;;  %2877 = vmatprep.subr.mxu1 %v9710_v61  ;;  %11839 = vst [vmem:[#allocation51_spill] sm:$0xff] %v9716_v0  ;;  %11840 = vst [vmem:[#allocation52_spill] sm:$0xff] %v9722_v1  ;;  %v9728_v17 = vld [vmem:[%s10501_s4 + $0x3c8] sm:$0xff]  ;;  %v9734_v61 = vld [vmem:[%s10501_s4 + $0x3d8] sm:$0xff] }
 0x70f   :  { %2807 = vmatpush2.msra.mxu0 %v9716_v0  ;;  %2878 = vmatpush2.msra.mxu1 %v9722_v1  ;;  %11841 = vst [vmem:[#allocation53_spill] sm:$0xff] %v9728_v17  ;;  %11842 = vst [vmem:[#allocation54_spill] sm:$0xff] %v9734_v61  ;;  %v9740_v0 = vld [vmem:[%s10501_s4 + $0x3c0] sm:$0xff]  ;;  %v9746_v1 = vld [vmem:[%s10501_s4 + $0x3d0] sm:$0xff] }
 0x710   :  { %2808 = vmatprep.subr.mxu0 %v9728_v17  ;;  %2879 = vmatprep.subr.mxu1 %v9734_v61  ;;  %11843 = vst [vmem:[#allocation55_spill] sm:$0xff] %v9740_v0  ;;  %11844 = vst [vmem:[#allocation56_spill] sm:$0xff] %v9746_v1  ;;  %v9752_v17 = vld [vmem:[%s10501_s4 + $0x3a8] sm:$0xff]  ;;  %v9758_v61 = vld [vmem:[%s10501_s4 + $0x3b8] sm:$0xff] }
 0x711   :  { %2809 = vmatpush2.msra.mxu0 %v9740_v0  ;;  %2880 = vmatpush2.msra.mxu1 %v9746_v1  ;;  %11845 = vst [vmem:[#allocation57_spill] sm:$0xff] %v9752_v17  ;;  %11846 = vst [vmem:[#allocation58_spill] sm:$0xff] %v9758_v61  ;;  %v9764_v0 = vld [vmem:[%s10501_s4 + $0x3a0] sm:$0xff]  ;;  %v9770_v1 = vld [vmem:[%s10501_s4 + $0x3b0] sm:$0xff] }
 0x712   :  { %2810 = vmatprep.subr.mxu0 %v9752_v17  ;;  %2881 = vmatprep.subr.mxu1 %v9758_v61  ;;  %11847 = vst [vmem:[#allocation59_spill] sm:$0xff] %v9764_v0  ;;  %11848 = vst [vmem:[#allocation60_spill] sm:$0xff] %v9770_v1  ;;  %v9776_v17 = vld [vmem:[%s10501_s4 + $0x388] sm:$0xff]  ;;  %v9782_v61 = vld [vmem:[%s10501_s4 + $0x398] sm:$0xff] }
 0x713   :  { %2811 = vmatpush2.msra.mxu0 %v9764_v0  ;;  %2882 = vmatpush2.msra.mxu1 %v9770_v1  ;;  %11849 = vst [vmem:[#allocation61_spill] sm:$0xff] %v9776_v17  ;;  %11850 = vst [vmem:[#allocation62_spill] sm:$0xff] %v9782_v61  ;;  %v9788_v0 = vld [vmem:[%s10501_s4 + $0x380] sm:$0xff]  ;;  %v9794_v1 = vld [vmem:[%s10501_s4 + $0x390] sm:$0xff] }
 0x714   :  { %2812 = vmatprep.subr.mxu0 %v9776_v17  ;;  %2883 = vmatprep.subr.mxu1 %v9782_v61  ;;  %11851 = vst [vmem:[#allocation63_spill] sm:$0xff] %v9788_v0  ;;  %11852 = vst [vmem:[#allocation64_spill] sm:$0xff] %v9794_v1  ;;  %v9800_v17 = vld [vmem:[%s10501_s4 + $0x368] sm:$0xff]  ;;  %v9806_v61 = vld [vmem:[%s10501_s4 + $0x378] sm:$0xff] }
 0x715   :  { %2813 = vmatpush2.msra.mxu0 %v9788_v0  ;;  %2884 = vmatpush2.msra.mxu1 %v9794_v1  ;;  %11853 = vst [vmem:[#allocation65_spill] sm:$0xff] %v9800_v17  ;;  %11854 = vst [vmem:[#allocation66_spill] sm:$0xff] %v9806_v61  ;;  %v9812_v0 = vld [vmem:[%s10501_s4 + $0x360] sm:$0xff]  ;;  %v9818_v1 = vld [vmem:[%s10501_s4 + $0x370] sm:$0xff] }
 0x716   :  { %2814 = vmatprep.subr.mxu0 %v9800_v17  ;;  %2885 = vmatprep.subr.mxu1 %v9806_v61  ;;  %11855 = vst [vmem:[#allocation67_spill] sm:$0xff] %v9812_v0  ;;  %11856 = vst [vmem:[#allocation68_spill] sm:$0xff] %v9818_v1  ;;  %v9824_v17 = vld [vmem:[%s10501_s4 + $0x348] sm:$0xff]  ;;  %v9830_v61 = vld [vmem:[%s10501_s4 + $0x358] sm:$0xff] }
 0x717   :  { %2815 = vmatpush2.msra.mxu0 %v9812_v0  ;;  %2886 = vmatpush2.msra.mxu1 %v9818_v1  ;;  %11857 = vst [vmem:[#allocation69_spill] sm:$0xff] %v9824_v17  ;;  %11858 = vst [vmem:[#allocation70_spill] sm:$0xff] %v9830_v61  ;;  %v9836_v0 = vld [vmem:[%s10501_s4 + $0x340] sm:$0xff]  ;;  %v9842_v1 = vld [vmem:[%s10501_s4 + $0x350] sm:$0xff] }
 0x718   :  { %2816 = vmatprep.subr.mxu0 %v9824_v17  ;;  %2887 = vmatprep.subr.mxu1 %v9830_v61  ;;  %11859 = vst [vmem:[#allocation71_spill] sm:$0xff] %v9836_v0  ;;  %11860 = vst [vmem:[#allocation72_spill] sm:$0xff] %v9842_v1  ;;  %v9848_v17 = vld [vmem:[%s10501_s4 + $0x328] sm:$0xff]  ;;  %v9854_v61 = vld [vmem:[%s10501_s4 + $0x338] sm:$0xff] }
 0x719   :  { %2817 = vmatpush2.msra.mxu0 %v9836_v0  ;;  %2888 = vmatpush2.msra.mxu1 %v9842_v1  ;;  %11861 = vst [vmem:[#allocation73_spill] sm:$0xff] %v9848_v17  ;;  %11862 = vst [vmem:[#allocation74_spill] sm:$0xff] %v9854_v61  ;;  %v9860_v0 = vld [vmem:[%s10501_s4 + $0x320] sm:$0xff]  ;;  %v9866_v1 = vld [vmem:[%s10501_s4 + $0x330] sm:$0xff] }
 0x71a   :  { %2818 = vmatprep.subr.mxu0 %v9848_v17  ;;  %2889 = vmatprep.subr.mxu1 %v9854_v61  ;;  %11863 = vst [vmem:[#allocation75_spill] sm:$0xff] %v9860_v0  ;;  %11864 = vst [vmem:[#allocation76_spill] sm:$0xff] %v9866_v1  ;;  %v9872_v17 = vld [vmem:[%s10501_s4 + $0x308] sm:$0xff]  ;;  %v9878_v61 = vld [vmem:[%s10501_s4 + $0x318] sm:$0xff] }
 0x71b   :  { %2819 = vmatpush2.msra.mxu0 %v9860_v0  ;;  %2890 = vmatpush2.msra.mxu1 %v9866_v1  ;;  %11865 = vst [vmem:[#allocation77_spill] sm:$0xff] %v9872_v17  ;;  %11866 = vst [vmem:[#allocation78_spill] sm:$0xff] %v9878_v61  ;;  %v9884_v0 = vld [vmem:[%s10501_s4 + $0x300] sm:$0xff]  ;;  %v9890_v1 = vld [vmem:[%s10501_s4 + $0x310] sm:$0xff] }
 0x71c   :  { %2820 = vmatprep.subr.mxu0 %v9872_v17  ;;  %2891 = vmatprep.subr.mxu1 %v9878_v61  ;;  %11867 = vst [vmem:[#allocation79_spill] sm:$0xff] %v9884_v0  ;;  %11868 = vst [vmem:[#allocation80_spill] sm:$0xff] %v9890_v1  ;;  %v9896_v17 = vld [vmem:[%s10501_s4 + $0x2e8] sm:$0xff]  ;;  %v9902_v61 = vld [vmem:[%s10501_s4 + $0x2f8] sm:$0xff] }
 0x71d   :  { %2821 = vmatpush2.msra.mxu0 %v9884_v0  ;;  %2892 = vmatpush2.msra.mxu1 %v9890_v1  ;;  %11869 = vst [vmem:[#allocation81_spill] sm:$0xff] %v9896_v17  ;;  %11870 = vst [vmem:[#allocation82_spill] sm:$0xff] %v9902_v61  ;;  %v9908_v0 = vld [vmem:[%s10501_s4 + $0x2e0] sm:$0xff]  ;;  %v9914_v1 = vld [vmem:[%s10501_s4 + $0x2f0] sm:$0xff] }
 0x71e   :  { %2822 = vmatprep.subr.mxu0 %v9896_v17  ;;  %2893 = vmatprep.subr.mxu1 %v9902_v61  ;;  %11871 = vst [vmem:[#allocation83_spill] sm:$0xff] %v9908_v0  ;;  %11872 = vst [vmem:[#allocation84_spill] sm:$0xff] %v9914_v1  ;;  %v9920_v17 = vld [vmem:[%s10501_s4 + $0x2c8] sm:$0xff]  ;;  %v9926_v61 = vld [vmem:[%s10501_s4 + $0x2d8] sm:$0xff] }
 0x71f   :  { %2823 = vmatpush2.msra.mxu0 %v9908_v0  ;;  %2894 = vmatpush2.msra.mxu1 %v9914_v1  ;;  %11873 = vst [vmem:[#allocation85_spill] sm:$0xff] %v9920_v17  ;;  %11874 = vst [vmem:[#allocation86_spill] sm:$0xff] %v9926_v61  ;;  %v9932_v0 = vld [vmem:[%s10501_s4 + $0x2c0] sm:$0xff]  ;;  %v9938_v1 = vld [vmem:[%s10501_s4 + $0x2d0] sm:$0xff] }
 0x720   :  { %2824 = vmatprep.subr.mxu0 %v9920_v17  ;;  %2895 = vmatprep.subr.mxu1 %v9926_v61  ;;  %11875 = vst [vmem:[#allocation87_spill] sm:$0xff] %v9932_v0  ;;  %11876 = vst [vmem:[#allocation88_spill] sm:$0xff] %v9938_v1  ;;  %v9944_v17 = vld [vmem:[%s10501_s4 + $0x2a8] sm:$0xff]  ;;  %v9950_v61 = vld [vmem:[%s10501_s4 + $0x2b8] sm:$0xff] }
 0x721   :  { %2825 = vmatpush2.msra.mxu0 %v9932_v0  ;;  %2896 = vmatpush2.msra.mxu1 %v9938_v1  ;;  %11877 = vst [vmem:[#allocation89_spill] sm:$0xff] %v9944_v17  ;;  %11878 = vst [vmem:[#allocation90_spill] sm:$0xff] %v9950_v61  ;;  %v9956_v0 = vld [vmem:[%s10501_s4 + $0x2a0] sm:$0xff]  ;;  %v9962_v1 = vld [vmem:[%s10501_s4 + $0x2b0] sm:$0xff] }
 0x722   :  { %2826 = vmatprep.subr.mxu0 %v9944_v17  ;;  %2897 = vmatprep.subr.mxu1 %v9950_v61  ;;  %11879 = vst [vmem:[#allocation91_spill] sm:$0xff] %v9956_v0  ;;  %11880 = vst [vmem:[#allocation92_spill] sm:$0xff] %v9962_v1  ;;  %v9968_v17 = vld [vmem:[%s10501_s4 + $0x288] sm:$0xff]  ;;  %v9974_v61 = vld [vmem:[%s10501_s4 + $0x298] sm:$0xff] }
 0x723   :  { %2827 = vmatpush2.msra.mxu0 %v9956_v0  ;;  %2898 = vmatpush2.msra.mxu1 %v9962_v1  ;;  %11881 = vst [vmem:[#allocation93_spill] sm:$0xff] %v9968_v17  ;;  %11882 = vst [vmem:[#allocation94_spill] sm:$0xff] %v9974_v61  ;;  %v9980_v0 = vld [vmem:[%s10501_s4 + $0x280] sm:$0xff]  ;;  %v9986_v1 = vld [vmem:[%s10501_s4 + $0x290] sm:$0xff] }
 0x724   :  { %2828 = vmatprep.subr.mxu0 %v9968_v17  ;;  %2899 = vmatprep.subr.mxu1 %v9974_v61  ;;  %11883 = vst [vmem:[#allocation95_spill] sm:$0xff] %v9980_v0  ;;  %11884 = vst [vmem:[#allocation96_spill] sm:$0xff] %v9986_v1  ;;  %v9992_v17 = vld [vmem:[%s10501_s4 + $0x268] sm:$0xff]  ;;  %v9998_v61 = vld [vmem:[%s10501_s4 + $0x278] sm:$0xff] }
 0x725   :  { %2829 = vmatpush2.msra.mxu0 %v9980_v0  ;;  %2900 = vmatpush2.msra.mxu1 %v9986_v1  ;;  %11885 = vst [vmem:[#allocation97_spill] sm:$0xff] %v9992_v17  ;;  %11886 = vst [vmem:[#allocation98_spill] sm:$0xff] %v9998_v61  ;;  %v10004_v0 = vld [vmem:[%s10501_s4 + $0x260] sm:$0xff]  ;;  %v10010_v1 = vld [vmem:[%s10501_s4 + $0x270] sm:$0xff] }
 0x726   :  { %2830 = vmatprep.subr.mxu0 %v9992_v17  ;;  %2901 = vmatprep.subr.mxu1 %v9998_v61  ;;  %11887 = vst [vmem:[#allocation99_spill] sm:$0xff] %v10004_v0  ;;  %11888 = vst [vmem:[#allocation100_spill] sm:$0xff] %v10010_v1  ;;  %v10016_v17 = vld [vmem:[%s10501_s4 + $0x248] sm:$0xff]  ;;  %v10022_v61 = vld [vmem:[%s10501_s4 + $0x258] sm:$0xff] }
 0x727   :  { %2831 = vmatpush2.msra.mxu0 %v10004_v0  ;;  %2902 = vmatpush2.msra.mxu1 %v10010_v1  ;;  %11889 = vst [vmem:[#allocation101_spill] sm:$0xff] %v10016_v17  ;;  %11890 = vst [vmem:[#allocation102_spill] sm:$0xff] %v10022_v61  ;;  %v10028_v0 = vld [vmem:[%s10501_s4 + $0x240] sm:$0xff]  ;;  %v10034_v1 = vld [vmem:[%s10501_s4 + $0x250] sm:$0xff] }
 0x728   :  { %2832 = vmatprep.subr.mxu0 %v10016_v17  ;;  %2903 = vmatprep.subr.mxu1 %v10022_v61  ;;  %11891 = vst [vmem:[#allocation103_spill] sm:$0xff] %v10028_v0  ;;  %11892 = vst [vmem:[#allocation104_spill] sm:$0xff] %v10034_v1  ;;  %v10040_v17 = vld [vmem:[%s10501_s4 + $0x228] sm:$0xff]  ;;  %v10046_v61 = vld [vmem:[%s10501_s4 + $0x238] sm:$0xff] }
 0x729   :  { %2833 = vmatpush2.msra.mxu0 %v10028_v0  ;;  %2904 = vmatpush2.msra.mxu1 %v10034_v1  ;;  %11893 = vst [vmem:[#allocation105_spill] sm:$0xff] %v10040_v17  ;;  %11894 = vst [vmem:[#allocation106_spill] sm:$0xff] %v10046_v61  ;;  %v10052_v0 = vld [vmem:[%s10501_s4 + $0x220] sm:$0xff]  ;;  %v10058_v1 = vld [vmem:[%s10501_s4 + $0x230] sm:$0xff] }
 0x72a   :  { %2834 = vmatprep.subr.mxu0 %v10040_v17  ;;  %2905 = vmatprep.subr.mxu1 %v10046_v61  ;;  %11895 = vst [vmem:[#allocation107_spill] sm:$0xff] %v10052_v0  ;;  %11896 = vst [vmem:[#allocation108_spill] sm:$0xff] %v10058_v1  ;;  %v10064_v17 = vld [vmem:[%s10501_s4 + $0x208] sm:$0xff]  ;;  %v10070_v61 = vld [vmem:[%s10501_s4 + $0x218] sm:$0xff] }
 0x72b   :  { %2835 = vmatpush2.msra.mxu0 %v10052_v0  ;;  %2906 = vmatpush2.msra.mxu1 %v10058_v1  ;;  %11897 = vst [vmem:[#allocation109_spill] sm:$0xff] %v10064_v17  ;;  %11898 = vst [vmem:[#allocation110_spill] sm:$0xff] %v10070_v61  ;;  %v10076_v0 = vld [vmem:[%s10501_s4 + $0x200] sm:$0xff]  ;;  %v10082_v1 = vld [vmem:[%s10501_s4 + $0x210] sm:$0xff] }
 0x72c   :  { %2836 = vmatprep.subr.mxu0 %v10064_v17  ;;  %2907 = vmatprep.subr.mxu1 %v10070_v61  ;;  %11899 = vst [vmem:[#allocation111_spill] sm:$0xff] %v10076_v0  ;;  %11900 = vst [vmem:[#allocation112_spill] sm:$0xff] %v10082_v1  ;;  %v4402_v17 = vld [vmem:[%s10499_s2 + $0x1e8] sm:$0xff] }
 0x72d   :  { %2837 = vmatpush2.msra.mxu0 %v10076_v0  ;;  %2908 = vmatpush2.msra.mxu1 %v10082_v1 }
 0x72e   :  { %2942 = vmatprep.subr.mxu0 %v4402_v17  ;;  %3013 = vmatprep.subr.mxu1 %v9070_v2 }
 0x78c   :  { %v2502_v61 = vpop.f32.mrf.mxu0  ;;  %v2573_v3 = vpop.f32.mrf.mxu1 }
 0x78d   :  { %v2503_v9 = vadd.f32 %v2502_v61, %v11775_v62  ;;  %v2574_v17 = vadd.f32 %v2573_v3, %v11778_v34 }
 0x78e   :  { %v2504_v29 = vpop.f32.mrf.mxu0  ;;  %v2575_v21 = vpop.f32.mrf.mxu1 }
 0x78f   :  { %v3485_v33 = vmul.f32 -1.442695, %v2503_v9  ;;  %v2505_v0 = vadd.f32 %v2504_v29, %v11776_v15  ;;  %v2576_v1 = vadd.f32 %v2575_v21, %v11777_v35  ;;  %v11901_v15 = vld [vmem:[#allocation137_spill] sm:$0xff] }
 0x791   :  { %3746 = vpow2.f32 %v3485_v33  ;;  %v3486_v41 = vmul.f32 -1.442695, %v2505_v0  ;;  %v3487_v31 = vmul.f32 -1.442695, %v2576_v1  ;;  %v11902_v1 = vld [vmem:[#allocation138_spill] sm:$0xff] }
 0x793   :  { %3748 = vpow2.f32 %v3486_v41 }
 0x794   :  { %3750 = vpow2.f32 %v3487_v31 }
 0x79e   :  { %v3747_v7 = vpop.eup %3746 }
 0x79f   :  { %v2581_v37 = vadd.f32 1.0, %v3747_v7 }
 0x7a0   :  { %v3749_v2 = vpop.eup %3748 }
 0x7a1   :  { %3752 = vrcp.f32 %v2581_v37  ;;  %v2587_v61 = vadd.f32 1.0, %v3749_v2  ;;  %v3751_v9 = vpop.eup %3750 }
 0x7a2   :  { %3754 = vtanh.f32 %v2574_v17  ;;  %v2594_v3 = vadd.f32 1.0, %v3751_v9 }
 0x7a3   :  { %3756 = vrcp.f32 %v2587_v61 }
 0x7ad   :  { %v2670_v29 = vpop.f32.mrf.mxu0  ;;  %v2741_v37 = vpop.f32.mrf.mxu1 }
 0x7ae   :  { %v3753_v33 = vpop.eup %3752  ;;  %v2746_v0 = vadd.f32 %v2670_v29, %v11901_v15  ;;  %v11903_v15 = vld [vmem:[#allocation150_spill] sm:$0xff]  ;;  %v11904_v29 = vld [vmem:[#allocation149_spill] sm:$0xff] }
 0x7af   :  { %v3755_v41 = vpop.eup %3754  ;;  %v2672_v62 = vpop.f32.mrf.mxu0 }
 0x7b0   :  { %v3757_v23 = vpop.eup %3756  ;;  %v3488_v21 = vmul.f32 -1.442695, %v2746_v0  ;;  %v2747_v35 = vadd.f32 %v2672_v62, %v11902_v1  ;;  %v2598_v12 = vmul.f32 %v3755_v41, %v3753_v33  ;;  %v2743_v2 = vpop.f32.mrf.mxu1  ;;  %v2748_v0 = vadd.f32 %v2741_v37, %v11904_v29  ;;  %v4403_v29 = vld [vmem:[%s10499_s2 + $0x1e0] sm:$0xff] }
 0x7b1   :  { %v2597_v7 = vmul.f32 %v3757_v23, %v9080_v30  ;;  %v2749_v61 = vadd.f32 %v2743_v2, %v11903_v15 }
 0x7b2   :  { %3758 = vpow2.f32 %v3488_v21  ;;  %v3489_v31 = vmul.f32 -1.442695, %v2747_v35 }
 0x7b3   :  { %v10096_v17 = vadd.f32 %v2598_v12, %v2597_v7  ;;  %v3490_v34 = vmul.f32 -1.442695, %v2749_v61 }
 0x7b4   :  { %3760 = vpow2.f32 %v3489_v31 }
 0x7b5   :  { %3762 = vrcp.f32 %v2594_v3 }
 0x7b6   :  { %3764 = vtanh.f32 %v10096_v17 }
 0x7b7   :  { %3766 = vtanh.f32 %v2748_v0  ;;  %v4405_v0 = vld [vmem:[%s10499_s2 + $0x1c0] sm:$0xff] }
 0x7b8   :  { %3768 = vpow2.f32 %v3490_v34 }
 0x7bf   :  { %v3759_v62 = vpop.eup %3758 }
 0x7c0   :  { %v2753_v33 = vadd.f32 1.0, %v3759_v62  ;;  %v4406_v62 = vld [vmem:[%s10499_s2 + $0x1a8] sm:$0xff] }
 0x7c1   :  { %v3761_v30 = vpop.eup %3760 }
 0x7c2   :  { %v3763_v23 = vpop.eup %3762  ;;  %3770 = vrcp.f32 %v2753_v33  ;;  %v2759_v35 = vadd.f32 1.0, %v3761_v30  ;;  %v11920_v33 = vld [vmem:[#allocation141_spill] sm:$0xff]  ;;  %v11921_v30 = vld [vmem:[#allocation11_spill] sm:$0xff] }
 0x7c3   :  { %v3765_v12 = vpop.eup %3764 }
 0x7c4   :  { %3772 = vrcp.f32 %v2759_v35  ;;  %v10101_v9 = vmul.f32 %v3765_v12, %v3763_v23  ;;  %v3767_v41 = vpop.eup %3766  ;;  %v11922_v23 = vld [vmem:[#allocation12_spill] sm:$0xff]  ;;  %v11923_v35 = vld [vmem:[#allocation13_spill] sm:$0xff]  ;;  %v11924_v12 = vld [vmem:[#allocation14_spill] sm:$0xff] }
 0x7c5   :  { %v3769_v21 = vpop.eup %3768 }
 0x7c6   :  { %2838 = vmatprep.mubr.f32.mxu0 %v10101_v9  ;;  %3297 = vst [vmem:[%s10504_s9 + $0x28] sm:$0xff] %v10101_v9  ;;  %2909 = vmatprep.mubr.f32.mxu1 %v10101_v9  ;;  %v2766_v3 = vadd.f32 1.0, %v3769_v21  ;;  %v11926_v21 = vld [vmem:[#allocation16_spill] sm:$0xff] }
 0x7c8   :  { %3774 = vrcp.f32 %v2766_v3  ;;  %v11930_v3 = vld [vmem:[#allocation20_spill] sm:$0xff] }
 0x7cf   :  { %v3771_v1 = vpop.eup %3770 }
 0x7d0   :  { %v2770_v34 = vmul.f32 %v3771_v1, %v3767_v41  ;;  %v11925_v41 = vld [vmem:[#allocation15_spill] sm:$0xff]  ;;  %v11927_v1 = vld [vmem:[#allocation17_spill] sm:$0xff] }
 0x7d1   :  { %v3773_v7 = vpop.eup %3772 }
 0x7d2   :  { %v2769_v37 = vmul.f32 %v3773_v7, %v9089_v63  ;;  %v4404_v63 = vld [vmem:[%s10499_s2 + $0x1c8] sm:$0xff]  ;;  %v11929_v7 = vld [vmem:[#allocation19_spill] sm:$0xff] }
 0x7d4   :  { %v10110_v31 = vadd.f32 %v2770_v34, %v2769_v37  ;;  %v11928_v34 = vld [vmem:[#allocation18_spill] sm:$0xff]  ;;  %v11931_v37 = vld [vmem:[#allocation21_spill] sm:$0xff] }
 0x7d5   :  { %v3775_v2 = vpop.eup %3774 }
 0x7d6   :  { %3776 = vtanh.f32 %v10110_v31 }
 0x7e3   :  { %v3777_v15 = vpop.eup %3776 }
 0x7e4   :  { %v10113_v61 = vmul.f32 %v3777_v15, %v3775_v2  ;;  %v11932_v2 = vld [vmem:[#allocation22_spill] sm:$0xff]  ;;  %v11933_v15 = vld [vmem:[#allocation23_spill] sm:$0xff] }
 0x7e6   :  { %2839 = vmatmul.mubr.f32.vlgmr.msra.gmra.mxu0 %v10113_v61  ;;  %2910 = vmatmul.mubr.f32.vlgmr.msra.gmra.mxu1 %v10113_v61 }
 0x7e7   :  { %2943 = vmatpush1.msra.mxu0 %v4403_v29  ;;  %3014 = vmatpush1.msra.mxu1 %v9100_v18  ;;  %v4407_v18 = vld [vmem:[%s10499_s2 + $0x1a0] sm:$0xff]  ;;  %v11935_v29 = vld [vmem:[#allocation25_spill] sm:$0xff] }
 0x7e8   :  { %2944 = vmatprep.subr.mxu0 %v4404_v63  ;;  %3015 = vmatprep.subr.mxu1 %v9107_v36  ;;  %v4408_v36 = vld [vmem:[%s10499_s2 + $0x188] sm:$0xff]  ;;  %v11936_v63 = vld [vmem:[#allocation26_spill] sm:$0xff] }
 0x7e9   :  { %2945 = vmatpush1.msra.mxu0 %v4405_v0  ;;  %3016 = vmatpush1.msra.mxu1 %v9114_v6  ;;  %v4409_v6 = vld [vmem:[%s10499_s2 + $0x180] sm:$0xff] }
 0x7ea   :  { %2946 = vmatprep.subr.mxu0 %v4406_v62  ;;  %3017 = vmatprep.subr.mxu1 %v9121_v5  ;;  %v4410_v5 = vld [vmem:[%s10499_s2 + $0x168] sm:$0xff]  ;;  %v11937_v0 = vld [vmem:[#allocation27_spill] sm:$0xff] }
 0x7eb   :  { %2947 = vmatpush1.msra.mxu0 %v4407_v18  ;;  %3018 = vmatpush1.msra.mxu1 %v9128_v11  ;;  %v4411_v11 = vld [vmem:[%s10499_s2 + $0x160] sm:$0xff]  ;;  %v11938_v62 = vld [vmem:[#allocation28_spill] sm:$0xff]  ;;  %v11939_v18 = vld [vmem:[#allocation29_spill] sm:$0xff] }
 0x7ec   :  { %2948 = vmatprep.subr.mxu0 %v4408_v36  ;;  %3019 = vmatprep.subr.mxu1 %v9135_v13  ;;  %v4412_v13 = vld [vmem:[%s10499_s2 + $0x148] sm:$0xff]  ;;  %v11940_v36 = vld [vmem:[#allocation30_spill] sm:$0xff] }
 0x7ed   :  { %2949 = vmatpush1.msra.mxu0 %v4409_v6  ;;  %3020 = vmatpush1.msra.mxu1 %v9142_v22  ;;  %v4413_v22 = vld [vmem:[%s10499_s2 + $0x140] sm:$0xff] }
 0x7ee   :  { %2950 = vmatprep.subr.mxu0 %v4410_v5  ;;  %3021 = vmatprep.subr.mxu1 %v9149_v27  ;;  %v4414_v27 = vld [vmem:[%s10499_s2 + $0x128] sm:$0xff]  ;;  %v11941_v6 = vld [vmem:[#allocation31_spill] sm:$0xff] }
 0x7ef   :  { %2951 = vmatpush1.msra.mxu0 %v4411_v11  ;;  %3022 = vmatpush1.msra.mxu1 %v9156_v40  ;;  %v4415_v40 = vld [vmem:[%s10499_s2 + $0x120] sm:$0xff]  ;;  %v11942_v5 = vld [vmem:[#allocation32_spill] sm:$0xff]  ;;  %v11943_v11 = vld [vmem:[#allocation33_spill] sm:$0xff] }
 0x7f0   :  { %2952 = vmatprep.subr.mxu0 %v4412_v13  ;;  %3023 = vmatprep.subr.mxu1 %v9163_v42  ;;  %v4416_v42 = vld [vmem:[%s10499_s2 + $0x108] sm:$0xff]  ;;  %v11944_v13 = vld [vmem:[#allocation34_spill] sm:$0xff] }
 0x7f1   :  { %2953 = vmatpush1.msra.mxu0 %v4413_v22  ;;  %3024 = vmatpush1.msra.mxu1 %v9170_v8  ;;  %v4417_v8 = vld [vmem:[%s10499_s2 + $0x100] sm:$0xff] }
 0x7f2   :  { %2954 = vmatprep.subr.mxu0 %v4414_v27  ;;  %3025 = vmatprep.subr.mxu1 %v9177_v32  ;;  %v4418_v32 = vld [vmem:[%s10499_s2 + $0xe8] sm:$0xff]  ;;  %v11945_v22 = vld [vmem:[#allocation35_spill] sm:$0xff] }
 0x7f3   :  { %2955 = vmatpush1.msra.mxu0 %v4415_v40  ;;  %3026 = vmatpush1.msra.mxu1 %v9184_v20  ;;  %v4419_v20 = vld [vmem:[%s10499_s2 + $0xe0] sm:$0xff]  ;;  %v11946_v27 = vld [vmem:[#allocation36_spill] sm:$0xff]  ;;  %v11947_v40 = vld [vmem:[#allocation37_spill] sm:$0xff] }
 0x7f4   :  { %2956 = vmatprep.subr.mxu0 %v4416_v42  ;;  %3027 = vmatprep.subr.mxu1 %v9191_v38  ;;  %v4420_v38 = vld [vmem:[%s10499_s2 + $0xc8] sm:$0xff]  ;;  %v11948_v42 = vld [vmem:[#allocation38_spill] sm:$0xff] }
 0x7f5   :  { %2957 = vmatpush1.msra.mxu0 %v4417_v8  ;;  %3028 = vmatpush1.msra.mxu1 %v9198_v24  ;;  %v4421_v24 = vld [vmem:[%s10499_s2 + $0xc0] sm:$0xff] }
 0x7f6   :  { %2958 = vmatprep.subr.mxu0 %v4418_v32  ;;  %3029 = vmatprep.subr.mxu1 %v9205_v43  ;;  %v4422_v43 = vld [vmem:[%s10499_s2 + $0xa8] sm:$0xff]  ;;  %v11949_v8 = vld [vmem:[#allocation39_spill] sm:$0xff] }
 0x7f7   :  { %2959 = vmatpush1.msra.mxu0 %v4419_v20  ;;  %3030 = vmatpush1.msra.mxu1 %v9212_v44  ;;  %v4423_v44 = vld [vmem:[%s10499_s2 + $0xa0] sm:$0xff]  ;;  %v11950_v32 = vld [vmem:[#allocation40_spill] sm:$0xff]  ;;  %v11951_v20 = vld [vmem:[#allocation41_spill] sm:$0xff] }
 0x7f8   :  { %2960 = vmatprep.subr.mxu0 %v4420_v38  ;;  %3031 = vmatprep.subr.mxu1 %v9219_v45  ;;  %v4424_v45 = vld [vmem:[%s10499_s2 + $0x88] sm:$0xff]  ;;  %v11952_v38 = vld [vmem:[#allocation42_spill] sm:$0xff] }
 0x7f9   :  { %2961 = vmatpush1.msra.mxu0 %v4421_v24  ;;  %3032 = vmatpush1.msra.mxu1 %v9226_v46  ;;  %v4425_v46 = vld [vmem:[%s10499_s2 + $0x80] sm:$0xff] }
 0x7fa   :  { %2962 = vmatprep.subr.mxu0 %v4422_v43  ;;  %3033 = vmatprep.subr.mxu1 %v9233_v47  ;;  %v4426_v47 = vld [vmem:[%s10499_s2 + $0x68] sm:$0xff]  ;;  %v11953_v24 = vld [vmem:[#allocation43_spill] sm:$0xff] }
 0x7fb   :  { %2963 = vmatpush1.msra.mxu0 %v4423_v44  ;;  %3034 = vmatpush1.msra.mxu1 %v9240_v48  ;;  %v4427_v48 = vld [vmem:[%s10499_s2 + $0x60] sm:$0xff]  ;;  %v11954_v43 = vld [vmem:[#allocation44_spill] sm:$0xff]  ;;  %v11955_v44 = vld [vmem:[#allocation45_spill] sm:$0xff] }
 0x7fc   :  { %2964 = vmatprep.subr.mxu0 %v4424_v45  ;;  %3035 = vmatprep.subr.mxu1 %v9247_v49  ;;  %v4428_v49 = vld [vmem:[%s10499_s2 + $0x48] sm:$0xff]  ;;  %v11956_v45 = vld [vmem:[#allocation46_spill] sm:$0xff] }
 0x7fd   :  { %2965 = vmatpush1.msra.mxu0 %v4425_v46  ;;  %3036 = vmatpush1.msra.mxu1 %v9254_v50  ;;  %v4429_v50 = vld [vmem:[%s10499_s2 + $0x40] sm:$0xff] }
 0x7fe   :  { %2966 = vmatprep.subr.mxu0 %v4426_v47  ;;  %3037 = vmatprep.subr.mxu1 %v9261_v51  ;;  %v4430_v51 = vld [vmem:[%s10499_s2 + $0x28] sm:$0xff]  ;;  %v11957_v46 = vld [vmem:[#allocation47_spill] sm:$0xff] }
 0x7ff   :  { %2967 = vmatpush1.msra.mxu0 %v4427_v48  ;;  %3038 = vmatpush1.msra.mxu1 %v9268_v52  ;;  %v4431_v52 = vld [vmem:[%s10499_s2 + $0x20] sm:$0xff]  ;;  %v11958_v47 = vld [vmem:[#allocation48_spill] sm:$0xff]  ;;  %v11959_v48 = vld [vmem:[#allocation49_spill] sm:$0xff] }
 0x800   :  { %2968 = vmatprep.subr.mxu0 %v4428_v49  ;;  %3039 = vmatprep.subr.mxu1 %v9275_v53  ;;  %v4432_v53 = vld [vmem:[%s10499_s2 + $0x8] sm:$0xff]  ;;  %v11960_v49 = vld [vmem:[#allocation50_spill] sm:$0xff] }
 0x801   :  { %2969 = vmatpush1.msra.mxu0 %v4429_v50  ;;  %3040 = vmatpush1.msra.mxu1 %v9282_v54  ;;  %v4433_v54 = vld [vmem:[%s10499_s2] sm:$0xff] }
 0x802   :  { %2970 = vmatprep.subr.mxu0 %v4430_v51  ;;  %3041 = vmatprep.subr.mxu1 %v9289_v55  ;;  %v11906_v55 = vld [vmem:[#allocation127_spill] sm:$0xff]  ;;  %v11962_v51 = vld [vmem:[#allocation52_spill] sm:$0xff] }
 0x803   :  { %2971 = vmatpush1.msra.mxu0 %v4431_v52  ;;  %3042 = vmatpush1.msra.mxu1 %v9296_v56  ;;  %v11907_v56 = vld [vmem:[#allocation128_spill] sm:$0xff]  ;;  %v11961_v50 = vld [vmem:[#allocation51_spill] sm:$0xff]  ;;  %v11963_v52 = vld [vmem:[#allocation53_spill] sm:$0xff] }
 0x804   :  { %2972 = vmatprep.subr.mxu0 %v4432_v53  ;;  %3043 = vmatprep.subr.mxu1 %v9303_v57  ;;  %v11908_v57 = vld [vmem:[#allocation153_spill] sm:$0xff]  ;;  %v11964_v53 = vld [vmem:[#allocation54_spill] sm:$0xff] }
 0x805   :  { %2973 = vmatpush1.msra.mxu0 %v4433_v54  ;;  %3006 = vmatprep.mubr.f32.mxu0 %v11152_v39  ;;  %v11965_v54 = vld [vmem:[#allocation55_spill] sm:$0xff] }
 0x806   :  { %3044 = vmatpush1.msra.mxu1 %v9311_v58  ;;  %3077 = vmatprep.mubr.f32.mxu1 %v11152_v39  ;;  %v11905_v39 = vld [vmem:[#allocation126_spill] sm:$0xff]  ;;  %v11909_v58 = vld [vmem:[#allocation131_spill] sm:$0xff] }
 0x807   :  { %3007 = vmatmul.mubr.f32.vlgmr.msra.gmra.mxu0 %v10113_v61  ;;  %3078 = vmatmul.mubr.f32.vlgmr.msra.gmra.mxu1 %v10113_v61  ;;  %v11934_v61 = vld [vmem:[#allocation24_spill] sm:$0xff] }
 0x808   :  { %3112 = vmatprep.subr.mxu0 %v9320_v59  ;;  %3183 = vmatprep.subr.mxu1 %v9326_v60  ;;  %v11910_v59 = vld [vmem:[#allocation132_spill] sm:$0xff] }
 0x809   :  { %3113 = vmatpush1.msra.mxu0 %v9332_v10  ;;  %3184 = vmatpush1.msra.mxu1 %v9338_v25  ;;  %v11911_v60 = vld [vmem:[#allocation144_spill] sm:$0xff]  ;;  %v11912_v10 = vld [vmem:[#allocation143_spill] sm:$0xff]  ;;  %v11913_v25 = vld [vmem:[#allocation133_spill] sm:$0xff] }
 0x80a   :  { %3114 = vmatprep.subr.mxu0 %v9344_v19  ;;  %3185 = vmatprep.subr.mxu1 %v9350_v4  ;;  %v11914_v19 = vld [vmem:[#allocation134_spill] sm:$0xff] }
 0x80b   :  { %3115 = vmatpush1.msra.mxu0 %v9356_v14  ;;  %3186 = vmatpush1.msra.mxu1 %v9362_v26  ;;  %v11915_v4 = vld [vmem:[#allocation146_spill] sm:$0xff]  ;;  %v11916_v14 = vld [vmem:[#allocation145_spill] sm:$0xff] }
 0x80c   :  { %3116 = vmatprep.subr.mxu0 %v9368_v16  ;;  %3187 = vmatprep.subr.mxu1 %v9374_v28  ;;  %v11917_v26 = vld [vmem:[#allocation129_spill] sm:$0xff]  ;;  %v11918_v16 = vld [vmem:[#allocation130_spill] sm:$0xff] }
 0x80d   :  { %3117 = vmatpush1.msra.mxu0 %v11905_v39  ;;  %3188 = vmatpush1.msra.mxu1 %v11906_v55  ;;  %v11919_v28 = vld [vmem:[#allocation142_spill] sm:$0xff]  ;;  %v11966_v39 = vld [vmem:[#allocation56_spill] sm:$0xff]  ;;  %v11967_v55 = vld [vmem:[#allocation57_spill] sm:$0xff] }
 0x80e   :  { %3118 = vmatprep.subr.mxu0 %v11907_v56  ;;  %3189 = vmatprep.subr.mxu1 %v11908_v57  ;;  %v11968_v56 = vld [vmem:[#allocation58_spill] sm:$0xff]  ;;  %v11969_v57 = vld [vmem:[#allocation59_spill] sm:$0xff] }
 0x80f   :  { %3119 = vmatpush1.msra.mxu0 %v11909_v58  ;;  %3190 = vmatpush1.msra.mxu1 %v11910_v59  ;;  %v11970_v58 = vld [vmem:[#allocation60_spill] sm:$0xff]  ;;  %v11971_v59 = vld [vmem:[#allocation61_spill] sm:$0xff] }
 0x810   :  { %3120 = vmatprep.subr.mxu0 %v11911_v60  ;;  %3191 = vmatprep.subr.mxu1 %v11912_v10  ;;  %v11972_v60 = vld [vmem:[#allocation62_spill] sm:$0xff]  ;;  %v11973_v10 = vld [vmem:[#allocation63_spill] sm:$0xff] }
 0x811   :  { %3121 = vmatpush1.msra.mxu0 %v11913_v25  ;;  %3192 = vmatpush1.msra.mxu1 %v11914_v19  ;;  %v11974_v25 = vld [vmem:[#allocation64_spill] sm:$0xff]  ;;  %v11975_v19 = vld [vmem:[#allocation65_spill] sm:$0xff] }
 0x812   :  { %3122 = vmatprep.subr.mxu0 %v11915_v4  ;;  %3193 = vmatprep.subr.mxu1 %v11916_v14  ;;  %v11976_v4 = vld [vmem:[#allocation66_spill] sm:$0xff]  ;;  %v11977_v14 = vld [vmem:[#allocation67_spill] sm:$0xff] }
 0x813   :  { %3123 = vmatpush1.msra.mxu0 %v11917_v26  ;;  %3194 = vmatpush1.msra.mxu1 %v11918_v16  ;;  %v11978_v26 = vld [vmem:[#allocation68_spill] sm:$0xff]  ;;  %v11979_v16 = vld [vmem:[#allocation69_spill] sm:$0xff] }
 0x814   :  { %3124 = vmatprep.subr.mxu0 %v11919_v28  ;;  %3195 = vmatprep.subr.mxu1 %v11920_v33  ;;  %v11980_v28 = vld [vmem:[#allocation70_spill] sm:$0xff]  ;;  %v11981_v33 = vld [vmem:[#allocation71_spill] sm:$0xff] }
 0x815   :  { %3125 = vmatpush1.msra.mxu0 %v11921_v30  ;;  %3196 = vmatpush1.msra.mxu1 %v11922_v23  ;;  %v11982_v30 = vld [vmem:[#allocation72_spill] sm:$0xff]  ;;  %v11983_v23 = vld [vmem:[#allocation73_spill] sm:$0xff] }
 0x816   :  { %3126 = vmatprep.subr.mxu0 %v11923_v35  ;;  %3197 = vmatprep.subr.mxu1 %v11924_v12  ;;  %v11984_v35 = vld [vmem:[#allocation74_spill] sm:$0xff]  ;;  %v11985_v12 = vld [vmem:[#allocation75_spill] sm:$0xff] }
 0x817   :  { %3127 = vmatpush1.msra.mxu0 %v11925_v41  ;;  %3198 = vmatpush1.msra.mxu1 %v11926_v21  ;;  %v11986_v41 = vld [vmem:[#allocation76_spill] sm:$0xff]  ;;  %v11987_v21 = vld [vmem:[#allocation77_spill] sm:$0xff] }
 0x818   :  { %3128 = vmatprep.subr.mxu0 %v11927_v1  ;;  %3199 = vmatprep.subr.mxu1 %v11928_v34  ;;  %v11988_v1 = vld [vmem:[#allocation78_spill] sm:$0xff]  ;;  %v11989_v34 = vld [vmem:[#allocation79_spill] sm:$0xff] }
 0x819   :  { %3129 = vmatpush1.msra.mxu0 %v11929_v7  ;;  %3200 = vmatpush1.msra.mxu1 %v11930_v3  ;;  %v11990_v7 = vld [vmem:[#allocation80_spill] sm:$0xff]  ;;  %v11991_v3 = vld [vmem:[#allocation81_spill] sm:$0xff] }
 0x81a   :  { %3130 = vmatprep.subr.mxu0 %v11931_v37  ;;  %3201 = vmatprep.subr.mxu1 %v11932_v2  ;;  %v11992_v37 = vld [vmem:[#allocation82_spill] sm:$0xff]  ;;  %v11993_v2 = vld [vmem:[#allocation83_spill] sm:$0xff] }
 0x81b   :  { %3131 = vmatpush1.msra.mxu0 %v11933_v15  ;;  %3202 = vmatpush1.msra.mxu1 %v11934_v61  ;;  %v11994_v15 = vld [vmem:[#allocation84_spill] sm:$0xff]  ;;  %v11995_v61 = vld [vmem:[#allocation85_spill] sm:$0xff] }
 0x81c   :  { %3132 = vmatprep.subr.mxu0 %v11935_v29  ;;  %3203 = vmatprep.subr.mxu1 %v11936_v63  ;;  %v11996_v29 = vld [vmem:[#allocation86_spill] sm:$0xff]  ;;  %v11997_v63 = vld [vmem:[#allocation87_spill] sm:$0xff] }
 0x81d   :  { %3133 = vmatpush1.msra.mxu0 %v11937_v0  ;;  %3204 = vmatpush1.msra.mxu1 %v11938_v62  ;;  %v11998_v0 = vld [vmem:[#allocation88_spill] sm:$0xff]  ;;  %v11999_v62 = vld [vmem:[#allocation89_spill] sm:$0xff] }
 0x81e   :  { %3134 = vmatprep.subr.mxu0 %v11939_v18  ;;  %3205 = vmatprep.subr.mxu1 %v11940_v36  ;;  %v12000_v18 = vld [vmem:[#allocation90_spill] sm:$0xff]  ;;  %v12001_v36 = vld [vmem:[#allocation91_spill] sm:$0xff] }
 0x81f   :  { %3135 = vmatpush1.msra.mxu0 %v11941_v6  ;;  %3206 = vmatpush1.msra.mxu1 %v11942_v5  ;;  %v12002_v6 = vld [vmem:[#allocation92_spill] sm:$0xff]  ;;  %v12003_v5 = vld [vmem:[#allocation93_spill] sm:$0xff] }
 0x820   :  { %3136 = vmatprep.subr.mxu0 %v11943_v11  ;;  %3207 = vmatprep.subr.mxu1 %v11944_v13  ;;  %v12004_v11 = vld [vmem:[#allocation94_spill] sm:$0xff]  ;;  %v12005_v13 = vld [vmem:[#allocation95_spill] sm:$0xff] }
 0x821   :  { %3137 = vmatpush1.msra.mxu0 %v11945_v22  ;;  %3208 = vmatpush1.msra.mxu1 %v11946_v27  ;;  %v12006_v22 = vld [vmem:[#allocation96_spill] sm:$0xff]  ;;  %v12007_v27 = vld [vmem:[#allocation97_spill] sm:$0xff] }
 0x822   :  { %3138 = vmatprep.subr.mxu0 %v11947_v40  ;;  %3209 = vmatprep.subr.mxu1 %v11948_v42  ;;  %v12008_v40 = vld [vmem:[#allocation98_spill] sm:$0xff]  ;;  %v12009_v42 = vld [vmem:[#allocation99_spill] sm:$0xff] }
 0x823   :  { %3139 = vmatpush1.msra.mxu0 %v11949_v8  ;;  %3210 = vmatpush1.msra.mxu1 %v11950_v32  ;;  %v12010_v8 = vld [vmem:[#allocation100_spill] sm:$0xff]  ;;  %v12011_v32 = vld [vmem:[#allocation101_spill] sm:$0xff] }
 0x824   :  { %3140 = vmatprep.subr.mxu0 %v11951_v20  ;;  %3211 = vmatprep.subr.mxu1 %v11952_v38  ;;  %v12012_v20 = vld [vmem:[#allocation102_spill] sm:$0xff]  ;;  %v12013_v38 = vld [vmem:[#allocation103_spill] sm:$0xff] }
 0x825   :  { %3141 = vmatpush1.msra.mxu0 %v11953_v24  ;;  %3212 = vmatpush1.msra.mxu1 %v11954_v43  ;;  %v12014_v24 = vld [vmem:[#allocation104_spill] sm:$0xff]  ;;  %v12015_v43 = vld [vmem:[#allocation105_spill] sm:$0xff] }
 0x826   :  { %3142 = vmatprep.subr.mxu0 %v11955_v44  ;;  %3213 = vmatprep.subr.mxu1 %v11956_v45  ;;  %v12016_v44 = vld [vmem:[#allocation106_spill] sm:$0xff]  ;;  %v12017_v45 = vld [vmem:[#allocation107_spill] sm:$0xff] }
 0x827   :  { %3143 = vmatpush1.msra.mxu0 %v11957_v46  ;;  %3214 = vmatpush1.msra.mxu1 %v11958_v47  ;;  %v12018_v46 = vld [vmem:[#allocation108_spill] sm:$0xff]  ;;  %v12019_v47 = vld [vmem:[#allocation109_spill] sm:$0xff] }
 0x828   :  { %3144 = vmatprep.subr.mxu0 %v11959_v48  ;;  %3215 = vmatprep.subr.mxu1 %v11960_v49  ;;  %v12020_v48 = vld [vmem:[#allocation110_spill] sm:$0xff]  ;;  %v12021_v49 = vld [vmem:[#allocation111_spill] sm:$0xff] }
 0x829   :  { %3145 = vmatpush2.msra.mxu0 %v11961_v50  ;;  %3216 = vmatpush2.msra.mxu1 %v11962_v51  ;;  %v12022_v50 = vld [vmem:[#allocation112_spill] sm:$0xff]  ;;  %v10376_v51 = vld [vmem:[%s10505_s6 + $0x78] sm:$0xff] }
 0x82a   :  { %3146 = vmatprep.subr.mxu0 %v11963_v52  ;;  %3217 = vmatprep.subr.mxu1 %v11964_v53  ;;  %v12023_v53 = vld [vmem:[#allocation7_spill] sm:$0xff] }
 0x82b   :  { %3147 = vmatpush2.msra.mxu0 %v11965_v54  ;;  %3218 = vmatpush2.msra.mxu1 %v11966_v39 }
 0x82c   :  { %3148 = vmatprep.subr.mxu0 %v11967_v55  ;;  %3219 = vmatprep.subr.mxu1 %v11968_v56  ;;  %v12024_v56 = vld [vmem:[#allocation8_spill] sm:$0xff] }
 0x82d   :  { %3149 = vmatpush2.msra.mxu0 %v11969_v57  ;;  %3220 = vmatpush2.msra.mxu1 %v11970_v58 }
 0x82e   :  { %3150 = vmatprep.subr.mxu0 %v11971_v59  ;;  %3221 = vmatprep.subr.mxu1 %v11972_v60 }
 0x82f   :  { %3151 = vmatpush2.msra.mxu0 %v11973_v10  ;;  %3222 = vmatpush2.msra.mxu1 %v11974_v25  ;;  %v12025_v10 = vld [vmem:[#allocation9_spill] sm:$0xff] }
 0x830   :  { %3152 = vmatprep.subr.mxu0 %v11975_v19  ;;  %3223 = vmatprep.subr.mxu1 %v11976_v4 }
 0x831   :  { %3153 = vmatpush2.msra.mxu0 %v11977_v14  ;;  %3224 = vmatpush2.msra.mxu1 %v11978_v26  ;;  %v12026_v14 = vld [vmem:[#allocation10_spill] sm:$0xff] }
 0x832   :  { %3154 = vmatprep.subr.mxu0 %v11979_v16  ;;  %3225 = vmatprep.subr.mxu1 %v11980_v28 }
 0x833   :  { %3155 = vmatpush2.msra.mxu0 %v11981_v33  ;;  %3226 = vmatpush2.msra.mxu1 %v11982_v30 }
 0x834   :  { %3156 = vmatprep.subr.mxu0 %v11983_v23  ;;  %3227 = vmatprep.subr.mxu1 %v11984_v35 }
 0x835   :  { %3157 = vmatpush2.msra.mxu0 %v11985_v12  ;;  %3228 = vmatpush2.msra.mxu1 %v11986_v41  ;;  %v12027_v12 = vld [vmem:[#allocation139_spill] sm:$0xff] }
 0x836   :  { %3158 = vmatprep.subr.mxu0 %v11987_v21  ;;  %3229 = vmatprep.subr.mxu1 %v11988_v1 }
 0x837   :  { %3159 = vmatpush2.msra.mxu0 %v11989_v34  ;;  %3230 = vmatpush2.msra.mxu1 %v11990_v7 }
 0x838   :  { %3160 = vmatprep.subr.mxu0 %v11991_v3  ;;  %3231 = vmatprep.subr.mxu1 %v11992_v37  ;;  %v12028_v3 = vld [vmem:[#allocation140_spill] sm:$0xff] }
 0x839   :  { %3161 = vmatpush2.msra.mxu0 %v11993_v2  ;;  %3232 = vmatpush2.msra.mxu1 %v11994_v15 }
 0x83a   :  { %3162 = vmatprep.subr.mxu0 %v11995_v61  ;;  %3233 = vmatprep.subr.mxu1 %v11996_v29 }
 0x83b   :  { %3163 = vmatpush2.msra.mxu0 %v11997_v63  ;;  %3234 = vmatpush2.msra.mxu1 %v11998_v0 }
 0x83c   :  { %3164 = vmatprep.subr.mxu0 %v11999_v62  ;;  %3235 = vmatprep.subr.mxu1 %v12000_v18  ;;  %v12029_v18 = vld [vmem:[#allocation152_spill] sm:$0xff] }
 0x83d   :  { %3165 = vmatpush2.msra.mxu0 %v12001_v36  ;;  %3236 = vmatpush2.msra.mxu1 %v12002_v6  ;;  %v12030_v6 = vld [vmem:[#allocation151_spill] sm:$0xff] }
 0x83e   :  { %3166 = vmatprep.subr.mxu0 %v12003_v5  ;;  %3237 = vmatprep.subr.mxu1 %v12004_v11 }
 0x83f   :  { %3167 = vmatpush2.msra.mxu0 %v12005_v13  ;;  %3238 = vmatpush2.msra.mxu1 %v12006_v22 }
 0x840   :  { %3168 = vmatprep.subr.mxu0 %v12007_v27  ;;  %3239 = vmatprep.subr.mxu1 %v12008_v40 }
 0x841   :  { %3169 = vmatpush2.msra.mxu0 %v12009_v42  ;;  %3240 = vmatpush2.msra.mxu1 %v12010_v8 }
 0x842   :  { %3170 = vmatprep.subr.mxu0 %v12011_v32  ;;  %3241 = vmatprep.subr.mxu1 %v12012_v20 }
 0x843   :  { %3171 = vmatpush2.msra.mxu0 %v12013_v38  ;;  %3242 = vmatpush2.msra.mxu1 %v12014_v24 }
 0x844   :  { %3172 = vmatprep.subr.mxu0 %v12015_v43  ;;  %3243 = vmatprep.subr.mxu1 %v12016_v44 }
 0x845   :  { %3173 = vmatpush2.msra.mxu0 %v12017_v45  ;;  %3244 = vmatpush2.msra.mxu1 %v12018_v46 }
 0x846   :  { %3174 = vmatprep.subr.mxu0 %v12019_v47  ;;  %3245 = vmatprep.subr.mxu1 %v12020_v48 }
 0x847   :  { %3175 = vmatpush2.msra.mxu0 %v12021_v49  ;;  %3246 = vmatpush2.msra.mxu1 %v12022_v50  ;;  %v3322_v50 = vld [vmem:[%s10505_s6 + $0x70] sm:$0xff] }
 0x848   :  { %3525 = vmatprep.subr.mxu0 %v10376_v51 }
 0x8a6   :  { %v2840_v52 = vpop.f32.mrf.mxu0  ;;  %v2911_v58 = vpop.f32.mrf.mxu1 }
 0x8a7   :  { %v2841_v54 = vadd.f32 %v2840_v52, %v12023_v53  ;;  %v2912_v26 = vadd.f32 %v2911_v58, %v12026_v14  ;;  %v4434_v52 = vld [vmem:[%s10504_s9] sm:$0xff]  ;;  %v3315_v58 = vld [vmem:[%s10505_s6 + $0x38] sm:$0xff] }
 0x8a8   :  { %v2842_v39 = vpop.f32.mrf.mxu0  ;;  %v2913_v60 = vpop.f32.mrf.mxu1 }
 0x8a9   :  { %v3491_v55 = vmul.f32 -1.442695, %v2841_v54  ;;  %v2843_v57 = vadd.f32 %v2842_v39, %v12024_v56  ;;  %v2914_v25 = vadd.f32 %v2913_v60, %v12025_v10  ;;  %v3320_v54 = vld [vmem:[%s10505_s6 + $0x60] sm:$0xff]  ;;  %v3318_v39 = vld [vmem:[%s10505_s6 + $0x50] sm:$0xff]  ;;  %v3313_v60 = vld [vmem:[%s10505_s6 + $0x28] sm:$0xff] }
 0x8ab   :  { %3778 = vpow2.f32 %v3491_v55  ;;  %v3492_v59 = vmul.f32 -1.442695, %v2843_v57  ;;  %v3493_v19 = vmul.f32 -1.442695, %v2914_v25  ;;  %v3317_v55 = vld [vmem:[%s10505_s6 + $0x48] sm:$0xff]  ;;  %v3316_v57 = vld [vmem:[%s10505_s6 + $0x40] sm:$0xff] }
 0x8ac   :  { %v3312_v25 = vld [vmem:[%s10505_s6 + $0x20] sm:$0xff] }
 0x8ad   :  { %3780 = vpow2.f32 %v3492_v59  ;;  %v3314_v59 = vld [vmem:[%s10505_s6 + $0x30] sm:$0xff] }
 0x8ae   :  { %3782 = vpow2.f32 %v3493_v19  ;;  %v3311_v19 = vld [vmem:[%s10505_s6 + $0x18] sm:$0xff] }
 0x8b8   :  { %v3779_v4 = vpop.eup %3778 }
 0x8b9   :  { %v2919_v16 = vadd.f32 1.0, %v3779_v4  ;;  %v3310_v4 = vld [vmem:[%s10505_s6 + $0x10] sm:$0xff] }
 0x8ba   :  { %v3781_v28 = vpop.eup %3780 }
 0x8bb   :  { %3784 = vrcp.f32 %v2919_v16  ;;  %v2925_v33 = vadd.f32 1.0, %v3781_v28  ;;  %v3783_v30 = vpop.eup %3782  ;;  %v3308_v16 = vld [vmem:[%s10505_s6] sm:$0xff]  ;;  %v4435_v28 = vld [vmem:[%s10504_s9 + $0x8] sm:$0xff] }
 0x8bc   :  { %3786 = vtanh.f32 %v2912_v26  ;;  %v2932_v61 = vadd.f32 1.0, %v3783_v30  ;;  %v3309_v26 = vld [vmem:[%s10505_s6 + $0x8] sm:$0xff]  ;;  %v4437_v30 = vld [vmem:[%s10504_s9 + $0x18] sm:$0xff] }
 0x8bd   :  { %3788 = vrcp.f32 %v2925_v33  ;;  %v4436_v33 = vld [vmem:[%s10504_s9 + $0x10] sm:$0xff] }
 0x8c7   :  { %v3008_v23 = vpop.f32.mrf.mxu0  ;;  %v3079_v29 = vpop.f32.mrf.mxu1 }
 0x8c8   :  { %v3785_v35 = vpop.eup %3784  ;;  %v3084_v41 = vadd.f32 %v3008_v23, %v12027_v12  ;;  %v3086_v5 = vadd.f32 %v3079_v29, %v12030_v6  ;;  %v4438_v23 = vld [vmem:[%s10504_s9 + $0x20] sm:$0xff] }
 0x8c9   :  { %v3787_v21 = vpop.eup %3786  ;;  %v3010_v1 = vpop.f32.mrf.mxu0 }
 0x8ca   :  { %v3789_v34 = vpop.eup %3788  ;;  %v3494_v7 = vmul.f32 -1.442695, %v3084_v41  ;;  %v3085_v37 = vadd.f32 %v3010_v1, %v12028_v3  ;;  %v2936_v2 = vmul.f32 %v3787_v21, %v3785_v35  ;;  %v3081_v62 = vpop.f32.mrf.mxu1 }
 0x8cb   :  { %v2935_v15 = vmul.f32 %v3789_v34, %v10096_v17  ;;  %v3087_v36 = vadd.f32 %v3081_v62, %v12029_v18 }
 0x8cc   :  { %3790 = vpow2.f32 %v3494_v7  ;;  %v3495_v63 = vmul.f32 -1.442695, %v3085_v37 }
 0x8cd   :  { %v10386_v0 = vadd.f32 %v2936_v2, %v2935_v15  ;;  %v3496_v11 = vmul.f32 -1.442695, %v3087_v36 }
 0x8ce   :  { %3792 = vpow2.f32 %v3495_v63 }
 0x8cf   :  { %3794 = vrcp.f32 %v2932_v61 }
 0x8d0   :  { %3796 = vtanh.f32 %v10386_v0 }
 0x8d1   :  { %3798 = vtanh.f32 %v3086_v5 }
 0x8d2   :  { %3800 = vpow2.f32 %v3496_v11 }
 0x8d9   :  { %v3791_v13 = vpop.eup %3790 }
 0x8da   :  { %v3091_v22 = vadd.f32 1.0, %v3791_v13 }
 0x8db   :  { %v3793_v17 = vpop.eup %3792 }
 0x8dc   :  { %v3795_v27 = vpop.eup %3794  ;;  %3802 = vrcp.f32 %v3091_v22  ;;  %v3097_v40 = vadd.f32 1.0, %v3793_v17 }
 0x8dd   :  { %v3797_v42 = vpop.eup %3796 }
 0x8de   :  { %3804 = vrcp.f32 %v3097_v40  ;;  %v10391_v8 = vmul.f32 %v3797_v42, %v3795_v27  ;;  %v3799_v32 = vpop.eup %3798 }
 0x8df   :  { %v3801_v20 = vpop.eup %3800 }
 0x8e0   :  { %3176 = vmatprep.mubr.f32.mxu0 %v10391_v8  ;;  %3298 = vst [vmem:[%s10504_s9 + $0x30] sm:$0xff] %v10391_v8  ;;  %3247 = vmatprep.mubr.f32.mxu1 %v10391_v8  ;;  %v3104_v44 = vadd.f32 1.0, %v3801_v20 }
 0x8e2   :  { %3806 = vrcp.f32 %v3104_v44 }
 0x8e9   :  { %v3803_v38 = vpop.eup %3802 }
 0x8ea   :  { %v3108_v24 = vmul.f32 %v3803_v38, %v3799_v32 }
 0x8eb   :  { %v3805_v43 = vpop.eup %3804 }
 0x8ec   :  { %v3107_v45 = vmul.f32 %v3805_v43, %v10110_v31  ;;  %v3321_v31 = vld [vmem:[%s10505_s6 + $0x68] sm:$0xff] }
 0x8ee   :  { %v3109_v46 = vadd.f32 %v3108_v24, %v3107_v45 }
 0x8ef   :  { %v3807_v47 = vpop.eup %3806 }
 0x8f0   :  { %3808 = vtanh.f32 %v3109_v46 }
 0x8fd   :  { %v3809_v48 = vpop.eup %3808 }
 0x8fe   :  { %v3111_v49 = vmul.f32 %v3809_v48, %v3807_v47 }
 0x900   :  { %3177 = vmatmul.mubr.f32.vlgmr.msra.gmra.mxu0 %v3111_v49  ;;  %3248 = vmatmul.mubr.f32.vlgmr.msra.gmra.mxu1 %v3111_v49 }
 0x901   :  { %3526 = vmatpush3.msra.mxu0 %v10376_v51  ;;  %3557 = vmatprep.mubr.f32.mxu0 %v4434_v52  ;;  %v3319_v51 = vld [vmem:[%s10505_s6 + $0x58] sm:$0xff] }
 0x902   :  { %3527 = vmatprep.subr.mxu0 %v3322_v50 }
 0x903   :  { %3528 = vmatpush3.msra.mxu0 %v3322_v50 }
 0x904   :  { %3529 = vmatprep.subr.mxu0 %v3321_v31 }
 0x905   :  { %3530 = vmatpush3.msra.mxu0 %v3321_v31 }
 0x906   :  { %3531 = vmatprep.subr.mxu0 %v3320_v54 }
 0x907   :  { %3532 = vmatpush3.msra.mxu0 %v3320_v54 }
 0x908   :  { %3533 = vmatprep.subr.mxu0 %v3319_v51 }
 0x909   :  { %3534 = vmatpush3.msra.mxu0 %v3319_v51 }
 0x90a   :  { %3535 = vmatprep.subr.mxu0 %v3318_v39 }
 0x90b   :  { %3536 = vmatpush3.msra.mxu0 %v3318_v39 }
 0x90c   :  { %3537 = vmatprep.subr.mxu0 %v3317_v55 }
 0x90d   :  { %3538 = vmatpush3.msra.mxu0 %v3317_v55 }
 0x90e   :  { %3539 = vmatprep.subr.mxu0 %v3316_v57 }
 0x90f   :  { %3540 = vmatpush3.msra.mxu0 %v3316_v57 }
 0x910   :  { %3541 = vmatprep.subr.mxu0 %v3315_v58 }
 0x911   :  { %3542 = vmatpush3.msra.mxu0 %v3315_v58 }
 0x912   :  { %3543 = vmatprep.subr.mxu0 %v3314_v59 }
 0x913   :  { %3544 = vmatpush3.msra.mxu0 %v3314_v59 }
 0x914   :  { %3545 = vmatprep.subr.mxu0 %v3313_v60 }
 0x915   :  { %3546 = vmatpush3.msra.mxu0 %v3313_v60 }
 0x916   :  { %3547 = vmatprep.subr.mxu0 %v3312_v25 }
 0x917   :  { %3548 = vmatpush3.msra.mxu0 %v3312_v25 }
 0x918   :  { %3549 = vmatprep.subr.mxu0 %v3311_v19 }
 0x919   :  { %3550 = vmatpush3.msra.mxu0 %v3311_v19 }
 0x91a   :  { %3551 = vmatprep.subr.mxu0 %v3310_v4 }
 0x91b   :  { %3552 = vmatpush3.msra.mxu0 %v3310_v4 }
 0x91c   :  { %3553 = vmatprep.subr.mxu0 %v3309_v26 }
 0x91d   :  { %3554 = vmatpush3.msra.mxu0 %v3309_v26 }
 0x91e   :  { %3555 = vmatprep.subr.mxu0 %v3308_v16 }
 0x91f   :  { %3556 = vmatpush3.msra.mxu0 %v3308_v16 }
 0x920   :  { %3558 = vmatmul.mubr.f32.vlgmr.msra.gmra.mxu0 %v4435_v28 }
 0x921   :  { %3560 = vmatprep.mubr.f32.mxu0 %v4436_v33 }
 0x924   :  { %3561 = vmatmul.mubr.f32.gmra.mxu0 %v4437_v30 }
 0x925   :  { %3563 = vmatprep.mubr.f32.mxu0 %v4438_v23 }
 0x928   :  { %3564 = vmatmul.mubr.f32.gmra.mxu0 %v10101_v9 }
 0x929   :  { %3566 = vmatprep.mubr.f32.mxu0 %v10391_v8 }
 0x9c0   :  { %v3178_v35 = vpop.f32.mrf.mxu0  ;;  %v3249_v34 = vpop.f32.mrf.mxu1 }
 0x9c1   :  { %v3179_v12 = vadd.f32 %v3178_v35, %v12023_v53  ;;  %v3250_v9 = vadd.f32 %v3249_v34, %v12026_v14 }
 0x9c2   :  { %v3180_v41 = vpop.f32.mrf.mxu0  ;;  %v3251_v3 = vpop.f32.mrf.mxu1 }
 0x9c3   :  { %v3497_v21 = vmul.f32 -1.442695, %v3179_v12  ;;  %v3181_v1 = vadd.f32 %v3180_v41, %v12024_v56  ;;  %v3252_v37 = vadd.f32 %v3251_v3, %v12025_v10  ;;  %v3500_v56 = vld [vmem:[%s10506_s7] ss:$0 sm:$0xff] }
 0x9c5   :  { %3810 = vpow2.f32 %v3497_v21  ;;  %v3498_v7 = vmul.f32 -1.442695, %v3181_v1  ;;  %v3499_v2 = vmul.f32 -1.442695, %v3252_v37 }
 0x9c7   :  { %3812 = vpow2.f32 %v3498_v7 }
 0x9c8   :  { %3814 = vpow2.f32 %v3499_v2 }
 0x9d2   :  { %v3811_v15 = vpop.eup %3810 }
 0x9d3   :  { %v3257_v61 = vadd.f32 1.0, %v3811_v15 }
 0x9d4   :  { %v3813_v29 = vpop.eup %3812 }
 0x9d5   :  { %3816 = vrcp.f32 %v3257_v61  ;;  %v3263_v53 = vadd.f32 1.0, %v3813_v29  ;;  %v3815_v62 = vpop.eup %3814 }
 0x9d6   :  { %3818 = vtanh.f32 %v3250_v9  ;;  %v3270_v11 = vadd.f32 1.0, %v3815_v62 }
 0x9d7   :  { %3820 = vrcp.f32 %v3263_v53 }
 0x9d8   :  { %3822 = vrcp.f32 %v3270_v11 }
 0x9e0   :  { %v3559_v63 = vpop.f32.mrf.mxu0 }
 0x9e1   :  { %v3403_v18 = vadd.f32 %v3559_v63, %v3500_v56 }
 0x9e2   :  { %v3817_v36 = vpop.eup %3816  ;;  %v3397_v10 = vpop.f32.mrf.mxu0 }
 0x9e3   :  { %v3819_v6 = vpop.eup %3818  ;;  %3437 = vst [vmem:[%s10507_s8 + $0x8] sm:$0xff] %v3403_v18  ;;  %v3398_v14 = vadd.f32 %v3500_v56, %v3397_v10 }
 0x9e4   :  { %v3821_v5 = vpop.eup %3820  ;;  %v3562_v13 = vpop.f32.mrf.mxu0  ;;  %v3274_v22 = vmul.f32 %v3819_v6, %v3817_v36 }
 0x9e5   :  { %v3273_v17 = vmul.f32 %v3821_v5, %v10386_v0  ;;  %3436 = vst [vmem:[%s10507_s8] sm:$0xff] %v3398_v14  ;;  %v3413_v27 = vadd.f32 %v3562_v13, %v3500_v56  ;;  %v3823_v24 = vpop.eup %3822 }
 0x9e6   :  { %v3407_v40 = vpop.f32.mrf.mxu0 }
 0x9e7   :  { %3439 = vst [vmem:[%s10507_s8 + $0x18] sm:$0xff] %v3413_v27  ;;  %v3408_v42 = vadd.f32 %v3500_v56, %v3407_v40  ;;  %v3275_v8 = vadd.f32 %v3274_v22, %v3273_v17 }
 0x9e8   :  { %v3565_v32 = vpop.f32.mrf.mxu0 }
 0x9e9   :  { %3438 = vst [vmem:[%s10507_s8 + $0x10] sm:$0xff] %v3408_v42  ;;  %v3423_v20 = vadd.f32 %v3565_v32, %v3500_v56  ;;  %3824 = vtanh.f32 %v3275_v8 }
 0x9ea   :  { %v3417_v0 = vpop.f32.mrf.mxu0 }
 0x9eb   :  { %3441 = vst [vmem:[%s10507_s8 + $0x28] sm:$0xff] %v3423_v20  ;;  %v3418_v38 = vadd.f32 %v3500_v56, %v3417_v0 }
 0x9ed   :  { %3440 = vst [vmem:[%s10507_s8 + $0x20] sm:$0xff] %v3418_v38 }
 0x9f6   :  { %v3825_v43 = vpop.eup %3824 }
 0x9f7   :  { %v3277_v44 = vmul.f32 %v3825_v43, %v3823_v24 }
 0x9f9   :  { %3299 = vst [vmem:[%s10504_s9 + $0x38] sm:$0xff] %v3277_v44  ;;  %3567 = vmatmul.mubr.f32.gmra.mxu0 %v3277_v44 }
 0xab9   :  { %v3568_v45 = vpop.f32.mrf.mxu0 }
 0xaba   :  { %v3433_v46 = vadd.f32 %v3568_v45, %v3500_v56 }
 0xabb   :  { %v3427_v47 = vpop.f32.mrf.mxu0 }
 0xabc   :  { %3443 = vst [vmem:[%s10507_s8 + $0x38] sm:$0xff] %v3433_v46  ;;  %v3428_v48 = vadd.f32 %v3500_v56, %v3427_v47 }
 0xabe   :  { %3442 = vst [vmem:[%s10507_s8 + $0x30] sm:$0xff] %v3428_v48 }

</bundles_post_ra>
